<compile_context>
chip_gen: v7x
topology: tpu7x:2x2x1
jax: 0.10.0
libtpu: 0.0.40
codegen_flags: <defaults>
</compile_context>

<pallas_src>
import functools

import numpy as np

import jax
import jax.numpy as jnp
from jax.experimental import pallas as pl
from jax.experimental.pallas import tpu as pltpu

VMEM_LIMIT = 48 * 1024 * 1024   # > default scoped limits, < v7x physical 64 MiB


# ----------------------------- Pallas kernels -----------------------------

def _stem_kernel(x_ref, w_ref, b_ref, o_ref):
    """conv0 (im2col matmul, bf16 operands) + norm0 (scale folded into w) + relu0."""
    y = jnp.dot(x_ref[...], w_ref[...], preferred_element_type=jnp.float32)
    o_ref[...] = jnp.maximum(y + b_ref[...], 0.0).astype(o_ref.dtype)


def _dense_layer_kernel(x_ref, s1_ref, t1_ref, w1_ref, b2_ref, w2_ref, sh_ref,
                        o_ref, *, c_cur, growth):
    """One whole DenseNet layer for one image:
       norm1 -> relu1 -> conv1(1x1, norm2 scale folded) -> norm2 shift -> relu2
       -> conv2(3x3, pad 1) as 9 shift-operator matmul accumulations
       -> dense concat written in-register into the 128-padded feature buffer."""
    HW, C = x_ref.shape[1], x_ref.shape[2]
    x = x_ref[0].astype(jnp.float32)                            # [HW, C]
    a = jnp.maximum(x * s1_ref[...] + t1_ref[...], 0.0)         # norm1 + relu1 (f32 VPU)
    h = jnp.dot(a.astype(jnp.bfloat16), w1_ref[...],            # 1x1 conv on bf16 MXU
                preferred_element_type=jnp.float32)
    h = jnp.maximum(h + b2_ref[...], 0.0)                       # norm2 shift + relu2
    hb = h.astype(jnp.bfloat16)

    acc = jnp.zeros((HW, growth), jnp.float32)
    for t in range(9):                                          # 3x3 conv, in VMEM only
        sh_h = jnp.dot(sh_ref[t], hb,                           # exact 0/1 spatial shift
                       preferred_element_type=jnp.float32)
        acc = acc + jnp.dot(sh_h.astype(jnp.bfloat16), w2_ref[t],
                            preferred_element_type=jnp.float32)

    tail = C - c_cur - growth                                   # place the new channels
    pieces = [jnp.zeros((HW, c_cur), jnp.float32), acc]
    if tail > 0:
        pieces.append(jnp.zeros((HW, tail), jnp.float32))
    placed = jnp.concatenate(pieces, axis=-1)                   # [HW, C]
    # untouched columns of x are the previous features (or exact zeros beyond c_cur),
    # so x + placed == dense concatenation, stored as one 128-lane-dense block.
    o_ref[0] = (x + placed).astype(o_ref.dtype)


def _transition_kernel(x_ref, s_ref, t_ref, p_ref, w_ref, o_ref):
    """norm -> relu -> AvgPool2d(2) (pooling matmul, commutes with 1x1 conv) -> conv."""
    x = x_ref[0].astype(jnp.float32)                            # [HW, C]
    a = jnp.maximum(x * s_ref[...] + t_ref[...], 0.0)           # BN + ReLU in f32
    pooled = jnp.dot(p_ref[...], a.astype(jnp.bfloat16),        # 2x2 average pool
                     preferred_element_type=jnp.float32)        # [HW/4, C]
    y = jnp.dot(pooled.astype(jnp.bfloat16), w_ref[...],        # 1x1 conv
                preferred_element_type=jnp.float32)
    o_ref[0] = y.astype(o_ref.dtype)


def _global_pool_bn_kernel(x_ref, s_ref, t_ref, o_ref):
    """norm5 + AdaptiveAvgPool2d((1,1)) + flatten (BN affine commutes with the mean)."""
    x = x_ref[0].astype(jnp.float32)                            # [HW, C]
    m = jnp.mean(x, axis=0, keepdims=True)                      # [1, C]
    o_ref[0] = (m * s_ref[...] + t_ref[...]).astype(o_ref.dtype)


# ----------------------------- pallas_call wrappers -----------------------------

def _row_tile(m, cap=512):
    """Largest multiple-of-8 divisor of m that is <= cap and leaves >= 2 grid steps."""
    limit = min(cap, max(8, m // 2))
    limit -= limit % 8
    for t in range(limit, 7, -8):
        if m % t == 0:
            return t
    return m


def stem_matmul(patches, w, b):
    M, K = patches.shape
    N = w.shape[1]
    tm = _row_tile(M)
    return pl.pallas_call(
        _stem_kernel,
        out_shape=jax.ShapeDtypeStruct((M, N), jnp.bfloat16),
        grid=(M // tm,),
        in_specs=[pl.BlockSpec((tm, K), lambda i: (i, 0)),
                  pl.BlockSpec((K, N), lambda i: (0, 0)),
                  pl.BlockSpec((1, N), lambda i: (0, 0))],
        out_specs=pl.BlockSpec((tm, N), lambda i: (i, 0)),
        compiler_params=pltpu.CompilerParams(
            dimension_semantics=("parallel",),
            vmem_limit_bytes=VMEM_LIMIT),
    )(patches, w, b)


def dense_layer(feats, lyr, shifts, *, c_cur):
    B, HW, C = feats.shape
    Kb = lyr["w1"].shape[1]
    G = lyr["w2"].shape[-1]
    kernel = functools.partial(_dense_layer_kernel, c_cur=c_cur, growth=G)
    return pl.pallas_call(
        kernel,
        out_shape=jax.ShapeDtypeStruct((B, HW, C), jnp.bfloat16),
        grid=(B,),
        in_specs=[pl.BlockSpec((1, HW, C), lambda b: (b, 0, 0)),
                  pl.BlockSpec((1, C), lambda b: (0, 0)),
                  pl.BlockSpec((1, C), lambda b: (0, 0)),
                  pl.BlockSpec((C, Kb), lambda b: (0, 0)),
                  pl.BlockSpec((1, Kb), lambda b: (0, 0)),
                  pl.BlockSpec((9, Kb, G), lambda b: (0, 0, 0)),
                  pl.BlockSpec((9, HW, HW), lambda b: (0, 0, 0))],
        out_specs=pl.BlockSpec((1, HW, C), lambda b: (b, 0, 0)),
        input_output_aliases={0: 0},       # write back into the same feature buffer
        compiler_params=pltpu.CompilerParams(
            dimension_semantics=("parallel",),
            vmem_limit_bytes=VMEM_LIMIT),
    )(feats, lyr["s1"], lyr["t1"], lyr["w1"], lyr["b2"], lyr["w2"], shifts)


def transition_layer(feats, tr):
    B, HW, C = feats.shape
    HWq = tr["pool"].shape[0]
    Cn = tr["w"].shape[1]
    return pl.pallas_call(
        _transition_kernel,
        out_shape=jax.ShapeDtypeStruct((B, HWq, Cn), jnp.bfloat16),
        grid=(B,),
        in_specs=[pl.BlockSpec((1, HW, C), lambda b: (b, 0, 0)),
                  pl.BlockSpec((1, C), lambda b: (0, 0)),
                  pl.BlockSpec((1, C), lambda b: (0, 0)),
                  pl.BlockSpec((HWq, HW), lambda b: (0, 0)),
                  pl.BlockSpec((C, Cn), lambda b: (0, 0))],
        out_specs=pl.BlockSpec((1, HWq, Cn), lambda b: (b, 0, 0)),
        compiler_params=pltpu.CompilerParams(
            dimension_semantics=("parallel",),
            vmem_limit_bytes=VMEM_LIMIT),
    )(feats, tr["s"], tr["t"], tr["pool"], tr["w"])


def global_pool_bn(feats, scale, shift):
    B, HW, C = feats.shape
    out = pl.pallas_call(
        _global_pool_bn_kernel,
        out_shape=jax.ShapeDtypeStruct((B, 1, C), jnp.float32),
        grid=(B,),
        in_specs=[pl.BlockSpec((1, HW, C), lambda b: (b, 0, 0)),
                  pl.BlockSpec((1, C), lambda b: (0, 0)),
                  pl.BlockSpec((1, C), lambda b: (0, 0))],
        out_specs=pl.BlockSpec((1, 1, C), lambda b: (b, 0, 0)),
        compiler_params=pltpu.CompilerParams(
            dimension_semantics=("parallel",),
            vmem_limit_bytes=VMEM_LIMIT),
    )(feats, scale, shift)
    return out.reshape(B, C)


# ----------------------------- XLA layout glue (no heavy math) -----------------------------

def im2col(x_nhwc, k, stride, pad):
    """Zero-padded patch extraction; (dy, dx, c) column order matches _conv_w_to_mat."""
    B, H, W, C = x_nhwc.shape
    xp = jnp.pad(x_nhwc, ((0, 0), (pad, pad), (pad, pad), (0, 0)))
    Ho = (H + 2 * pad - k) // stride + 1
    Wo = (W + 2 * pad - k) // stride + 1
    cols = []
    for dy in range(k):
        for dx in range(k):
            cols.append(xp[:, dy:dy + stride * Ho:stride,
                           dx:dx + stride * Wo:stride, :])
    patches = jnp.concatenate(cols, axis=-1)
    return patches.reshape(B * Ho * Wo, k * k * C), Ho, Wo


def maxpool_3x3_s2_p1(x_nhwc):
    B, H, W, C = x_nhwc.shape
    Ho, Wo = (H + 2 - 3) // 2 + 1, (W + 2 - 3) // 2 + 1
    xp = jnp.pad(x_nhwc, ((0, 0), (1, 1), (1, 1), (0, 0)),
                 constant_values=-jnp.inf)
    out = jnp.full((B, Ho, Wo, C), -jnp.inf, x_nhwc.dtype)
    for dy in range(3):
        for dx in range(3):
            out = jnp.maximum(out, xp[:, dy:dy + 2 * Ho:2, dx:dx + 2 * Wo:2, :])
    return out


# ----------------------------- one-time host-side param prep -----------------------------

def _rup(n, m):
    return ((n + m - 1) // m) * m


def _conv_w_to_mat(w):
    """PyTorch conv weight [O, C, kh, kw] -> matmul weight [kh*kw*C, O] ((dy,dx,c) rows)."""
    O, C, kh, kw = w.shape
    return jnp.transpose(w, (2, 3, 1, 0)).reshape(kh * kw * C, O)


def _pad2(a, rows, cols):
    return jnp.pad(a, ((0, rows - a.shape[0]), (0, cols - a.shape[1])))


def _pad1(v, n):
    return jnp.pad(v, (0, n - v.shape[0]))


def _make_shift_mats(H, W):
    """S[t] is the 0/1 operator applying the spatial shift of 3x3-conv tap t (zero border)."""
    HW = H * W
    S = np.zeros((9, HW, HW), np.float32)
    for t in range(9):
        dy, dx = t // 3 - 1, t % 3 - 1
        for y in range(H):
            for x in range(W):
                ys, xs = y + dy, x + dx
                if 0 <= ys < H and 0 <= xs < W:
                    S[t, y * W + x, ys * W + xs] = 1.0
    return jnp.asarray(S, jnp.bfloat16)


def _make_pool_mat(H, W):
    """P so that P @ x equals the 2x2 average pool of x laid out as [H*W, C]."""
    Hq, Wq = H // 2, W // 2
    P = np.zeros((Hq * Wq, H * W), np.float32)
    for y in range(H):
        for x in range(W):
            P[(y // 2) * Wq + (x // 2), y * W + x] = 0.25
    return jnp.asarray(P, jnp.bfloat16)


def prepare_params(params, cfg):
    """Matmul layouts, BN-scale folding, 128-lane padding, bf16 weights - done ONCE."""
    g = cfg["growth_rate"]
    bw = cfg["bn_size"] * g
    bwp = _rup(bw, 128)
    nif = cfg["num_init_features"]
    n_blocks = len(cfg["block_config"])

    c0p = _rup(nif + cfg["block_config"][0] * g, 128)     # block-0 buffer width
    s0, t0 = params["bn0"]
    wm = _conv_w_to_mat(params["conv0"]) * s0[None, :]    # fold norm0 scale
    prep = {
        "stem_w": _pad2(wm, _rup(wm.shape[0], 128), c0p).astype(jnp.bfloat16),
        "stem_b": _pad1(t0, c0p).reshape(1, c0p).astype(jnp.float32),
        "blocks": [],
    }

    spatial = cfg["image_size"] // 4                      # after stem(s2) + maxpool(s2)
    c = nif
    for bi, n_layers in enumerate(cfg["block_config"]):
        c_final = c + n_layers * g
        cp = _rup(c_final, 128)
        H = W = spatial // (2 ** bi)
        layers = []
        for li in range(n_layers):
            p = params["blocks"][bi][li]
            s1, t1 = p["bn1"]
            s2, t2 = p["bn2"]
            w1 = _conv_w_to_mat(p["conv1"]) * s2[None, :]           # fold norm2 scale
            w2 = jnp.transpose(p["conv2"], (2, 3, 1, 0)).reshape(9, bw, g)
            w2 = jnp.pad(w2, ((0, 0), (0, bwp - bw), (0, 0)))
            layers.append({
                "s1": _pad1(s1, cp).reshape(1, cp).astype(jnp.float32),
                "t1": _pad1(t1, cp).reshape(1, cp).astype(jnp.float32),
                "w1": _pad2(w1, cp, bwp).astype(jnp.bfloat16),
                "b2": _pad1(t2, bwp).reshape(1, bwp).astype(jnp.float32),
                "w2": w2.astype(jnp.bfloat16),
            })
        blk = {"layers": layers, "shifts": _make_shift_mats(H, W)}
        if bi != n_blocks - 1:
            tp = params["transitions"][bi]
            st, tt = tp["bn"]
            c_half = c_final // 2
            cnp = _rup(c_half + cfg["block_config"][bi + 1] * g, 128)
            wt = _conv_w_to_mat(tp["conv"])                         # [c_final, c_half]
            blk["transition"] = {
                "s": _pad1(st, cp).reshape(1, cp).astype(jnp.float32),
                "t": _pad1(tt, cp).reshape(1, cp).astype(jnp.float32),
                "pool": _make_pool_mat(H, W),
                "w": _pad2(wt, cp, cnp).astype(jnp.bfloat16),
            }
            c = c_half
        else:
            c = c_final
        prep["blocks"].append(blk)

    s5, t5 = params["bn5"]
    cpl = _rup(c, 128)
    prep["bn5_s"] = _pad1(s5, cpl).reshape(1, cpl).astype(jnp.float32)
    prep["bn5_t"] = _pad1(t5, cpl).reshape(1, cpl).astype(jnp.float32)
    return prep


# --------------------------- model (params + forward) ---------------------------

CFG = dict(
    image_size=32,
    in_channels=3,
    num_init_features=64,
    growth_rate=32,
    bn_size=4,
    block_config=(2, 2),     # two dense blocks of 2 layers each (toy DenseNet)
    eps=1e-5,
)


def init_params(key, cfg):
    eps = cfg["eps"]

    def conv_init(k, o, c, kh, kw):
        std = (2.0 / (c * kh * kw)) ** 0.5                  # kaiming-normal, bias=False
        w = std * jax.random.normal(k, (o, c, kh, kw), jnp.float32)
        return w.astype(jnp.bfloat16).astype(jnp.float32)   # shared bf16 master weights

    def bn_init(k, c):
        k1, k2, k3, k4 = jax.random.split(k, 4)
        gamma = 1.0 + 0.1 * jax.random.normal(k1, (c,), jnp.float32)
        beta = 0.1 * jax.random.normal(k2, (c,), jnp.float32)
        mean = 0.1 * jax.random.normal(k3, (c,), jnp.float32)
        var = 1.0 + 0.1 * jax.random.uniform(k4, (c,), jnp.float32)
        scale = gamma * jax.lax.rsqrt(var + eps)            # eval-mode BN -> affine
        shift = beta - mean * scale
        return scale, shift

    keys = iter(jax.random.split(key, 128))
    nif, g, bs = cfg["num_init_features"], cfg["growth_rate"], cfg["bn_size"]

    params = {
        "conv0": conv_init(next(keys), nif, cfg["in_channels"], 7, 7),
        "bn0": bn_init(next(keys), nif),
        "blocks": [],
        "transitions": [],
    }
    c = nif
    for bi, n_layers in enumerate(cfg["block_config"]):
        layers = []
        for _ in range(n_layers):
            layers.append({
                "bn1": bn_init(next(keys), c),
                "conv1": conv_init(next(keys), bs * g, c, 1, 1),
                "bn2": bn_init(next(keys), bs * g),
                "conv2": conv_init(next(keys), g, bs * g, 3, 3),
            })
            c += g
        params["blocks"].append(layers)
        if bi != len(cfg["block_config"]) - 1:
            params["transitions"].append({
                "bn": bn_init(next(keys), c),
                "conv": conv_init(next(keys), c // 2, c, 1, 1),
            })
            c //= 2
    params["bn5"] = bn_init(next(keys), c)
    return params


def densenet_backbone_forward(x_nchw, prep, cfg):
    """DenseNetBackbone.forward: model.features(x) -> AdaptiveAvgPool2d((1,1)) -> flatten."""
    g = cfg["growth_rate"]
    B = x_nchw.shape[0]
    x = jnp.transpose(x_nchw, (0, 2, 3, 1))                  # NCHW -> NHWC (lane-dense C)

    # stem: conv0(7x7,s2,p3) + norm0 + relu0 in ONE kernel (K padded 147->256, N->128)
    patches, Ho, Wo = im2col(x, k=7, stride=2, pad=3)
    kp = prep["stem_w"].shape[0]
    patches = jnp.pad(patches, ((0, 0), (0, kp - patches.shape[1]))).astype(jnp.bfloat16)
    f = stem_matmul(patches, prep["stem_w"], prep["stem_b"])
    fm = maxpool_3x3_s2_p1(f.reshape(B, Ho, Wo, -1))         # pool0 (XLA glue)
    _, Hc, Wc, Cp = fm.shape
    feats = fm.reshape(B, Hc * Wc, Cp)                       # block-0 buffer, 128-padded

    c = cfg["num_init_features"]
    n_blocks = len(cfg["block_config"])
    for bi, n_layers in enumerate(cfg["block_config"]):
        blk = prep["blocks"][bi]
        for li in range(n_layers):
            feats = dense_layer(feats, blk["layers"][li], blk["shifts"],
                                c_cur=c + li * g)            # one pallas_call per layer
        c += n_layers * g
        if bi != n_blocks - 1:
            feats = transition_layer(feats, blk["transition"])
            c //= 2

    pooled = global_pool_bn(feats, prep["bn5_s"], prep["bn5_t"])   # norm5 + pool + flatten
    return pooled[:, :c]                                           # drop lane padding


# --------------------------- pure-JAX reference (correctness check) ---------------------------

def _conv_ref(x_nhwc, w_torch, stride, pad):
    w = jnp.transpose(w_torch, (2, 3, 1, 0))
    return jax.lax.conv_general_dilated(
        x_nhwc, w, window_strides=(stride, stride),
        padding=((pad, pad), (pad, pad)),
        dimension_numbers=("NHWC", "HWIO", "NHWC"),
        precision=jax.lax.Precision.HIGHEST)


def _bn_relu_ref(x, bn, relu=True):
    y = x * bn[0] + bn[1]
    return jnp.maximum(y, 0.0) if relu else y


def densenet_backbone_ref(x_nchw, params, cfg):
    x = jnp.transpose(x_nchw, (0, 2, 3, 1))
    f = _conv_ref(x, params["conv0"], 2, 3)
    f = _bn_relu_ref(f, params["bn0"])
    f = jax.lax.reduce_window(f, -jnp.inf, jax.lax.max, (1, 3, 3, 1), (1, 2, 2, 1),
                              ((0, 0), (1, 1), (1, 1), (0, 0)))
    n_blocks = len(params["blocks"])
    for bi, layers in enumerate(params["blocks"]):
        for lyr in layers:
            h = _bn_relu_ref(f, lyr["bn1"])
            h = _conv_ref(h, lyr["conv1"], 1, 0)
            h = _bn_relu_ref(h, lyr["bn2"])
            h = _conv_ref(h, lyr["conv2"], 1, 1)
            f = jnp.concatenate([f, h], axis=-1)
        if bi != n_blocks - 1:
            t = params["transitions"][bi]
            h = _bn_relu_ref(f, t["bn"])
            h = _conv_ref(h, t["conv"], 1, 0)
            f = jax.lax.reduce_window(h, 0.0, jax.lax.add, (1, 2, 2, 1), (1, 2, 2, 1),
                                      ((0, 0), (0, 0), (0, 0), (0, 0))) / 4.0
    pooled = jnp.mean(f, axis=(1, 2))
    return pooled * params["bn5"][0] + params["bn5"][1]


# --------------------------------- main ---------------------------------

if __name__ == "__main__":
    key = jax.random.PRNGKey(0)
    k_params, k_x = jax.random.split(key)

    params = init_params(k_params, CFG)
    prep = prepare_params(params, CFG)        # weight prep hoisted out of the forward
    x = jax.random.normal(
        k_x, (2, CFG["in_channels"], CFG["image_size"], CFG["image_size"]),
        dtype=jnp.float32)                    # NCHW, like PyTorch

    fwd = jax.jit(functools.partial(densenet_backbone_forward, cfg=CFG))
    out = jax.block_until_ready(fwd(x, prep))

    n_features = CFG["num_init_features"]
    for bi, n in enumerate(CFG["block_config"]):
        n_features += n * CFG["growth_rate"]
        if bi != len(CFG["block_config"]) - 1:
            n_features //= 2
    assert out.shape == (2, n_features), out.shape
    assert bool(jnp.all(jnp.isfinite(out)))

    # cross-check against a pure-JAX/XLA reference (same bf16-rounded master weights);
    # tolerance covers the documented bf16-operand / bf16-activation rounding.
    ref = jax.block_until_ready(densenet_backbone_ref(x, params, CFG))
    err = float(jnp.max(jnp.abs(out - ref)))
    scale = float(jnp.max(jnp.abs(ref)))
    assert err <= 0.05 * scale + 0.05, f"max|out-ref|={err} (scale={scale})"

    print("KERNEL_OK")
</pallas_src>

<mosaic_0001>
module attributes {stable_mosaic.version = 11 : i64} {
  func.func @_stem_kernel(%arg0: i32, %arg1: memref<256x256xbf16, #tpu.memory_space<vmem>>, %arg2: memref<256x128xbf16, #tpu.memory_space<vmem>>, %arg3: memref<1x128xf32, #tpu.memory_space<vmem>>, %arg4: memref<256x128xbf16, #tpu.memory_space<vmem>>) attributes {dimension_semantics = [#tpu.dimension_semantics<parallel>], iteration_bounds = array<i64: 2>, scalar_prefetch = 0 : i64, scratch_operands = 0 : i64, tpu.core_type = #tpu.core_type<tc>, window_params = [{transform_indices = @transform_0, window_bounds = array<i64: 256, 256>}, {pipeline_mode = #tpu.pipeline_mode<synchronous>, transform_indices = @transform_1, window_bounds = array<i64: 256, 128>}, {pipeline_mode = #tpu.pipeline_mode<synchronous>, transform_indices = @transform_2, window_bounds = array<i64: 1, 128>}, {transform_indices = @transform_3, window_bounds = array<i64: 256, 128>}]} {
    %c0 = arith.constant 0 : index
    %c0_0 = arith.constant 0 : index
    %0 = vector.load %arg1[%c0, %c0_0] : memref<256x256xbf16, #tpu.memory_space<vmem>>, vector<256x256xbf16>
    %c0_1 = arith.constant 0 : index
    %c0_2 = arith.constant 0 : index
    %1 = vector.load %arg2[%c0_1, %c0_2] : memref<256x128xbf16, #tpu.memory_space<vmem>>, vector<256x128xbf16>
    %cst = arith.constant dense<0.000000e+00> : vector<256x128xf32>
    %2 = tpu.matmul %0, %1, %cst {dimension_numbers = #tpu.dot_dimension_numbers<[1], [0], [0], [1], [0, 0, 1, 1], [], []>} : vector<256x256xbf16>, vector<256x128xbf16>, vector<256x128xf32> -> vector<256x128xf32>
    %c0_3 = arith.constant 0 : index
    %c0_4 = arith.constant 0 : index
    %3 = vector.load %arg3[%c0_3, %c0_4] : memref<1x128xf32, #tpu.memory_space<vmem>>, vector<1x128xf32>
    %4 = vector.broadcast %3 : vector<1x128xf32> to vector<256x128xf32>
    %5 = arith.addf %2, %4 : vector<256x128xf32>
    %cst_5 = arith.constant 0.000000e+00 : f32
    %6 = vector.broadcast %cst_5 : f32 to vector<256x128xf32>
    %7 = arith.maximumf %5, %6 : vector<256x128xf32>
    %8 = arith.truncf %7 : vector<256x128xf32> to vector<256x128xbf16>
    %c0_6 = arith.constant 0 : index
    %c0_7 = arith.constant 0 : index
    %9 = vector.load %arg4[%c0_6, %c0_7] : memref<256x128xbf16, #tpu.memory_space<vmem>>, vector<256x128xbf16>
    tpu.vector_store %arg4[%c0_6, %c0_7], %8 {strides = array<i32>} : memref<256x128xbf16, #tpu.memory_space<vmem>>, vector<256x128xbf16>,
    return
  }
  func.func @transform_0(%arg0: i32) -> (i32, i32) {
    %c0_i32 = arith.constant 0 : i32
    %c0_i32_0 = arith.constant 0 : i32
    return %arg0, %c0_i32 : i32, i32
  }
  func.func @transform_1(%arg0: i32) -> (i32, i32) {
    %c0_i32 = arith.constant 0 : i32
    %c0_i32_0 = arith.constant 0 : i32
    %c0_i32_1 = arith.constant 0 : i32
    return %c0_i32, %c0_i32_0 : i32, i32
  }
  func.func @transform_2(%arg0: i32) -> (i32, i32) {
    %c0_i32 = arith.constant 0 : i32
    %c0_i32_0 = arith.constant 0 : i32
    %c0_i32_1 = arith.constant 0 : i32
    return %c0_i32, %c0_i32_0 : i32, i32
  }
  func.func @transform_3(%arg0: i32) -> (i32, i32) {
    %c0_i32 = arith.constant 0 : i32
    %c0_i32_0 = arith.constant 0 : i32
    return %arg0, %c0_i32 : i32, i32
  }
}

module attributes {stable_mosaic.version = 11 : i64} {
  func.func @_dense_layer_kernel(%arg0: i32, %arg1: memref<1x64x128xbf16, #tpu.memory_space<vmem>>, %arg2: memref<1x128xf32, #tpu.memory_space<vmem>>, %arg3: memref<1x128xf32, #tpu.memory_space<vmem>>, %arg4: memref<128x128xbf16, #tpu.memory_space<vmem>>, %arg5: memref<1x128xf32, #tpu.memory_space<vmem>>, %arg6: memref<9x128x32xbf16, #tpu.memory_space<vmem>>, %arg7: memref<9x64x64xbf16, #tpu.memory_space<vmem>>, %arg8: memref<1x64x128xbf16, #tpu.memory_space<vmem>>) attributes {dimension_semantics = [#tpu.dimension_semantics<parallel>], iteration_bounds = array<i64: 2>, scalar_prefetch = 0 : i64, scratch_operands = 0 : i64, tpu.core_type = #tpu.core_type<tc>, window_params = [{transform_indices = @transform_0, window_bounds = array<i64: 1, 64, 128>}, {pipeline_mode = #tpu.pipeline_mode<synchronous>, transform_indices = @transform_1, window_bounds = array<i64: 1, 128>}, {pipeline_mode = #tpu.pipeline_mode<synchronous>, transform_indices = @transform_2, window_bounds = array<i64: 1, 128>}, {pipeline_mode = #tpu.pipeline_mode<synchronous>, transform_indices = @transform_3, window_bounds = array<i64: 128, 128>}, {pipeline_mode = #tpu.pipeline_mode<synchronous>, transform_indices = @transform_4, window_bounds = array<i64: 1, 128>}, {pipeline_mode = #tpu.pipeline_mode<synchronous>, transform_indices = @transform_5, window_bounds = array<i64: 9, 128, 32>}, {pipeline_mode = #tpu.pipeline_mode<synchronous>, transform_indices = @transform_6, window_bounds = array<i64: 9, 64, 64>}, {transform_indices = @transform_7, window_bounds = array<i64: 1, 64, 128>}]} {
    %c0 = arith.constant 0 : index
    %c0_0 = arith.constant 0 : index
    %c0_1 = arith.constant 0 : index
    %0 = vector.load %arg1[%c0, %c0_0, %c0_1] : memref<1x64x128xbf16, #tpu.memory_space<vmem>>, vector<1x64x128xbf16>
    %1 = vector.shape_cast %0 : vector<1x64x128xbf16> to vector<64x128xbf16>
    %2 = arith.extf %1 : vector<64x128xbf16> to vector<64x128xf32>
    %c0_2 = arith.constant 0 : index
    %c0_3 = arith.constant 0 : index
    %3 = vector.load %arg2[%c0_2, %c0_3] : memref<1x128xf32, #tpu.memory_space<vmem>>, vector<1x128xf32>
    %4 = vector.broadcast %3 : vector<1x128xf32> to vector<64x128xf32>
    %5 = arith.mulf %2, %4 : vector<64x128xf32>
    %c0_4 = arith.constant 0 : index
    %c0_5 = arith.constant 0 : index
    %6 = vector.load %arg3[%c0_4, %c0_5] : memref<1x128xf32, #tpu.memory_space<vmem>>, vector<1x128xf32>
    %7 = vector.broadcast %6 : vector<1x128xf32> to vector<64x128xf32>
    %8 = arith.addf %5, %7 : vector<64x128xf32>
    %cst = arith.constant 0.000000e+00 : f32
    %9 = vector.broadcast %cst : f32 to vector<64x128xf32>
    %10 = arith.maximumf %8, %9 : vector<64x128xf32>
    %11 = arith.truncf %10 : vector<64x128xf32> to vector<64x128xbf16>
    %c0_6 = arith.constant 0 : index
    %c0_7 = arith.constant 0 : index
    %12 = vector.load %arg4[%c0_6, %c0_7] : memref<128x128xbf16, #tpu.memory_space<vmem>>, vector<128x128xbf16>
    %cst_8 = arith.constant dense<0.000000e+00> : vector<64x128xf32>
    %13 = tpu.matmul %11, %12, %cst_8 {dimension_numbers = #tpu.dot_dimension_numbers<[1], [0], [0], [1], [0, 0, 1, 1], [], []>} : vector<64x128xbf16>, vector<128x128xbf16>, vector<64x128xf32> -> vector<64x128xf32>
    %c0_9 = arith.constant 0 : index
    %c0_10 = arith.constant 0 : index
    %14 = vector.load %arg5[%c0_9, %c0_10] : memref<1x128xf32, #tpu.memory_space<vmem>>, vector<1x128xf32>
    %15 = vector.broadcast %14 : vector<1x128xf32> to vector<64x128xf32>
    %16 = arith.addf %13, %15 : vector<64x128xf32>
    %cst_11 = arith.constant 0.000000e+00 : f32
    %17 = vector.broadcast %cst_11 : f32 to vector<64x128xf32>
    %18 = arith.maximumf %16, %17 : vector<64x128xf32>
    %19 = arith.truncf %18 : vector<64x128xf32> to vector<64x128xbf16>
    %cst_12 = arith.constant 0.000000e+00 : f32
    %20 = vector.broadcast %cst_12 : f32 to vector<64x32xf32>
    %c0_13 = arith.constant 0 : index
    %c0_14 = arith.constant 0 : index
    %c0_15 = arith.constant 0 : index
    %21 = vector.load %arg7[%c0_13, %c0_14, %c0_15] : memref<9x64x64xbf16, #tpu.memory_space<vmem>>, vector<1x64x64xbf16>
    %22 = vector.shape_cast %21 : vector<1x64x64xbf16> to vector<64x64xbf16>
    %cst_16 = arith.constant dense<0.000000e+00> : vector<64x128xf32>
    %23 = tpu.matmul %22, %19, %cst_16 {dimension_numbers = #tpu.dot_dimension_numbers<[1], [0], [0], [1], [0, 0, 1, 1], [], []>} : vector<64x64xbf16>, vector<64x128xbf16>, vector<64x128xf32> -> vector<64x128xf32>
    %24 = arith.truncf %23 : vector<64x128xf32> to vector<64x128xbf16>
    %c0_17 = arith.constant 0 : index
    %c0_18 = arith.constant 0 : index
    %c0_19 = arith.constant 0 : index
    %25 = vector.load %arg6[%c0_17, %c0_18, %c0_19] : memref<9x128x32xbf16, #tpu.memory_space<vmem>>, vector<1x128x32xbf16>
    %26 = vector.shape_cast %25 : vector<1x128x32xbf16> to vector<128x32xbf16>
    %cst_20 = arith.constant dense<0.000000e+00> : vector<64x32xf32>
    %27 = tpu.matmul %24, %26, %cst_20 {dimension_numbers = #tpu.dot_dimension_numbers<[1], [0], [0], [1], [0, 0, 1, 1], [], []>} : vector<64x128xbf16>, vector<128x32xbf16>, vector<64x32xf32> -> vector<64x32xf32>
    %28 = arith.addf %20, %27 : vector<64x32xf32>
    %c1 = arith.constant 1 : index
    %c0_21 = arith.constant 0 : index
    %c0_22 = arith.constant 0 : index
    %29 = vector.load %arg7[%c1, %c0_21, %c0_22] : memref<9x64x64xbf16, #tpu.memory_space<vmem>>, vector<1x64x64xbf16>
    %30 = vector.shape_cast %29 : vector<1x64x64xbf16> to vector<64x64xbf16>
    %cst_23 = arith.constant dense<0.000000e+00> : vector<64x128xf32>
    %31 = tpu.matmul %30, %19, %cst_23 {dimension_numbers = #tpu.dot_dimension_numbers<[1], [0], [0], [1], [0, 0, 1, 1], [], []>} : vector<64x64xbf16>, vector<64x128xbf16>, vector<64x128xf32> -> vector<64x128xf32>
    %32 = arith.truncf %31 : vector<64x128xf32> to vector<64x128xbf16>
    %c1_24 = arith.constant 1 : index
    %c0_25 = arith.constant 0 : index
    %c0_26 = arith.constant 0 : index
    %33 = vector.load %arg6[%c1_24, %c0_25, %c0_26] : memref<9x128x32xbf16, #tpu.memory_space<vmem>>, vector<1x128x32xbf16>
    %34 = vector.shape_cast %33 : vector<1x128x32xbf16> to vector<128x32xbf16>
    %cst_27 = arith.constant dense<0.000000e+00> : vector<64x32xf32>
    %35 = tpu.matmul %32, %34, %cst_27 {dimension_numbers = #tpu.dot_dimension_numbers<[1], [0], [0], [1], [0, 0, 1, 1], [], []>} : vector<64x128xbf16>, vector<128x32xbf16>, vector<64x32xf32> -> vector<64x32xf32>
    %36 = arith.addf %28, %35 : vector<64x32xf32>
    %c2 = arith.constant 2 : index
    %c0_28 = arith.constant 0 : index
    %c0_29 = arith.constant 0 : index
    %37 = vector.load %arg7[%c2, %c0_28, %c0_29] : memref<9x64x64xbf16, #tpu.memory_space<vmem>>, vector<1x64x64xbf16>
    %38 = vector.shape_cast %37 : vector<1x64x64xbf16> to vector<64x64xbf16>
    %cst_30 = arith.constant dense<0.000000e+00> : vector<64x128xf32>
    %39 = tpu.matmul %38, %19, %cst_30 {dimension_numbers = #tpu.dot_dimension_numbers<[1], [0], [0], [1], [0, 0, 1, 1], [], []>} : vector<64x64xbf16>, vector<64x128xbf16>, vector<64x128xf32> -> vector<64x128xf32>
    %40 = arith.truncf %39 : vector<64x128xf32> to vector<64x128xbf16>
    %c2_31 = arith.constant 2 : index
    %c0_32 = arith.constant 0 : index
    %c0_33 = arith.constant 0 : index
    %41 = vector.load %arg6[%c2_31, %c0_32, %c0_33] : memref<9x128x32xbf16, #tpu.memory_space<vmem>>, vector<1x128x32xbf16>
    %42 = vector.shape_cast %41 : vector<1x128x32xbf16> to vector<128x32xbf16>
    %cst_34 = arith.constant dense<0.000000e+00> : vector<64x32xf32>
    %43 = tpu.matmul %40, %42, %cst_34 {dimension_numbers = #tpu.dot_dimension_numbers<[1], [0], [0], [1], [0, 0, 1, 1], [], []>} : vector<64x128xbf16>, vector<128x32xbf16>, vector<64x32xf32> -> vector<64x32xf32>
    %44 = arith.addf %36, %43 : vector<64x32xf32>
    %c3 = arith.constant 3 : index
    %c0_35 = arith.constant 0 : index
    %c0_36 = arith.constant 0 : index
    %45 = vector.load %arg7[%c3, %c0_35, %c0_36] : memref<9x64x64xbf16, #tpu.memory_space<vmem>>, vector<1x64x64xbf16>
    %46 = vector.shape_cast %45 : vector<1x64x64xbf16> to vector<64x64xbf16>
    %cst_37 = arith.constant dense<0.000000e+00> : vector<64x128xf32>
    %47 = tpu.matmul %46, %19, %cst_37 {dimension_numbers = #tpu.dot_dimension_numbers<[1], [0], [0], [1], [0, 0, 1, 1], [], []>} : vector<64x64xbf16>, vector<64x128xbf16>, vector<64x128xf32> -> vector<64x128xf32>
    %48 = arith.truncf %47 : vector<64x128xf32> to vector<64x128xbf16>
    %c3_38 = arith.constant 3 : index
    %c0_39 = arith.constant 0 : index
    %c0_40 = arith.constant 0 : index
    %49 = vector.load %arg6[%c3_38, %c0_39, %c0_40] : memref<9x128x32xbf16, #tpu.memory_space<vmem>>, vector<1x128x32xbf16>
    %50 = vector.shape_cast %49 : vector<1x128x32xbf16> to vector<128x32xbf16>
    %cst_41 = arith.constant dense<0.000000e+00> : vector<64x32xf32>
    %51 = tpu.matmul %48, %50, %cst_41 {dimension_numbers = #tpu.dot_dimension_numbers<[1], [0], [0], [1], [0, 0, 1, 1], [], []>} : vector<64x128xbf16>, vector<128x32xbf16>, vector<64x32xf32> -> vector<64x32xf32>
    %52 = arith.addf %44, %51 : vector<64x32xf32>
    %c4 = arith.constant 4 : index
    %c0_42 = arith.constant 0 : index
    %c0_43 = arith.constant 0 : index
    %53 = vector.load %arg7[%c4, %c0_42, %c0_43] : memref<9x64x64xbf16, #tpu.memory_space<vmem>>, vector<1x64x64xbf16>
    %54 = vector.shape_cast %53 : vector<1x64x64xbf16> to vector<64x64xbf16>
    %cst_44 = arith.constant dense<0.000000e+00> : vector<64x128xf32>
    %55 = tpu.matmul %54, %19, %cst_44 {dimension_numbers = #tpu.dot_dimension_numbers<[1], [0], [0], [1], [0, 0, 1, 1], [], []>} : vector<64x64xbf16>, vector<64x128xbf16>, vector<64x128xf32> -> vector<64x128xf32>
    %56 = arith.truncf %55 : vector<64x128xf32> to vector<64x128xbf16>
    %c4_45 = arith.constant 4 : index
    %c0_46 = arith.constant 0 : index
    %c0_47 = arith.constant 0 : index
    %57 = vector.load %arg6[%c4_45, %c0_46, %c0_47] : memref<9x128x32xbf16, #tpu.memory_space<vmem>>, vector<1x128x32xbf16>
    %58 = vector.shape_cast %57 : vector<1x128x32xbf16> to vector<128x32xbf16>
    %cst_48 = arith.constant dense<0.000000e+00> : vector<64x32xf32>
    %59 = tpu.matmul %56, %58, %cst_48 {dimension_numbers = #tpu.dot_dimension_numbers<[1], [0], [0], [1], [0, 0, 1, 1], [], []>} : vector<64x128xbf16>, vector<128x32xbf16>, vector<64x32xf32> -> vector<64x32xf32>
    %60 = arith.addf %52, %59 : vector<64x32xf32>
    %c5 = arith.constant 5 : index
    %c0_49 = arith.constant 0 : index
    %c0_50 = arith.constant 0 : index
    %61 = vector.load %arg7[%c5, %c0_49, %c0_50] : memref<9x64x64xbf16, #tpu.memory_space<vmem>>, vector<1x64x64xbf16>
    %62 = vector.shape_cast %61 : vector<1x64x64xbf16> to vector<64x64xbf16>
    %cst_51 = arith.constant dense<0.000000e+00> : vector<64x128xf32>
    %63 = tpu.matmul %62, %19, %cst_51 {dimension_numbers = #tpu.dot_dimension_numbers<[1], [0], [0], [1], [0, 0, 1, 1], [], []>} : vector<64x64xbf16>, vector<64x128xbf16>, vector<64x128xf32> -> vector<64x128xf32>
    %64 = arith.truncf %63 : vector<64x128xf32> to vector<64x128xbf16>
    %c5_52 = arith.constant 5 : index
    %c0_53 = arith.constant 0 : index
    %c0_54 = arith.constant 0 : index
    %65 = vector.load %arg6[%c5_52, %c0_53, %c0_54] : memref<9x128x32xbf16, #tpu.memory_space<vmem>>, vector<1x128x32xbf16>
    %66 = vector.shape_cast %65 : vector<1x128x32xbf16> to vector<128x32xbf16>
    %cst_55 = arith.constant dense<0.000000e+00> : vector<64x32xf32>
    %67 = tpu.matmul %64, %66, %cst_55 {dimension_numbers = #tpu.dot_dimension_numbers<[1], [0], [0], [1], [0, 0, 1, 1], [], []>} : vector<64x128xbf16>, vector<128x32xbf16>, vector<64x32xf32> -> vector<64x32xf32>
    %68 = arith.addf %60, %67 : vector<64x32xf32>
    %c6 = arith.constant 6 : index
    %c0_56 = arith.constant 0 : index
    %c0_57 = arith.constant 0 : index
    %69 = vector.load %arg7[%c6, %c0_56, %c0_57] : memref<9x64x64xbf16, #tpu.memory_space<vmem>>, vector<1x64x64xbf16>
    %70 = vector.shape_cast %69 : vector<1x64x64xbf16> to vector<64x64xbf16>
    %cst_58 = arith.constant dense<0.000000e+00> : vector<64x128xf32>
    %71 = tpu.matmul %70, %19, %cst_58 {dimension_numbers = #tpu.dot_dimension_numbers<[1], [0], [0], [1], [0, 0, 1, 1], [], []>} : vector<64x64xbf16>, vector<64x128xbf16>, vector<64x128xf32> -> vector<64x128xf32>
    %72 = arith.truncf %71 : vector<64x128xf32> to vector<64x128xbf16>
    %c6_59 = arith.constant 6 : index
    %c0_60 = arith.constant 0 : index
    %c0_61 = arith.constant 0 : index
    %73 = vector.load %arg6[%c6_59, %c0_60, %c0_61] : memref<9x128x32xbf16, #tpu.memory_space<vmem>>, vector<1x128x32xbf16>
    %74 = vector.shape_cast %73 : vector<1x128x32xbf16> to vector<128x32xbf16>
    %cst_62 = arith.constant dense<0.000000e+00> : vector<64x32xf32>
    %75 = tpu.matmul %72, %74, %cst_62 {dimension_numbers = #tpu.dot_dimension_numbers<[1], [0], [0], [1], [0, 0, 1, 1], [], []>} : vector<64x128xbf16>, vector<128x32xbf16>, vector<64x32xf32> -> vector<64x32xf32>
    %76 = arith.addf %68, %75 : vector<64x32xf32>
    %c7 = arith.constant 7 : index
    %c0_63 = arith.constant 0 : index
    %c0_64 = arith.constant 0 : index
    %77 = vector.load %arg7[%c7, %c0_63, %c0_64] : memref<9x64x64xbf16, #tpu.memory_space<vmem>>, vector<1x64x64xbf16>
    %78 = vector.shape_cast %77 : vector<1x64x64xbf16> to vector<64x64xbf16>
    %cst_65 = arith.constant dense<0.000000e+00> : vector<64x128xf32>
    %79 = tpu.matmul %78, %19, %cst_65 {dimension_numbers = #tpu.dot_dimension_numbers<[1], [0], [0], [1], [0, 0, 1, 1], [], []>} : vector<64x64xbf16>, vector<64x128xbf16>, vector<64x128xf32> -> vector<64x128xf32>
    %80 = arith.truncf %79 : vector<64x128xf32> to vector<64x128xbf16>
    %c7_66 = arith.constant 7 : index
    %c0_67 = arith.constant 0 : index
    %c0_68 = arith.constant 0 : index
    %81 = vector.load %arg6[%c7_66, %c0_67, %c0_68] : memref<9x128x32xbf16, #tpu.memory_space<vmem>>, vector<1x128x32xbf16>
    %82 = vector.shape_cast %81 : vector<1x128x32xbf16> to vector<128x32xbf16>
    %cst_69 = arith.constant dense<0.000000e+00> : vector<64x32xf32>
    %83 = tpu.matmul %80, %82, %cst_69 {dimension_numbers = #tpu.dot_dimension_numbers<[1], [0], [0], [1], [0, 0, 1, 1], [], []>} : vector<64x128xbf16>, vector<128x32xbf16>, vector<64x32xf32> -> vector<64x32xf32>
    %84 = arith.addf %76, %83 : vector<64x32xf32>
    %c8 = arith.constant 8 : index
    %c0_70 = arith.constant 0 : index
    %c0_71 = arith.constant 0 : index
    %85 = vector.load %arg7[%c8, %c0_70, %c0_71] : memref<9x64x64xbf16, #tpu.memory_space<vmem>>, vector<1x64x64xbf16>
    %86 = vector.shape_cast %85 : vector<1x64x64xbf16> to vector<64x64xbf16>
    %cst_72 = arith.constant dense<0.000000e+00> : vector<64x128xf32>
    %87 = tpu.matmul %86, %19, %cst_72 {dimension_numbers = #tpu.dot_dimension_numbers<[1], [0], [0], [1], [0, 0, 1, 1], [], []>} : vector<64x64xbf16>, vector<64x128xbf16>, vector<64x128xf32> -> vector<64x128xf32>
    %88 = arith.truncf %87 : vector<64x128xf32> to vector<64x128xbf16>
    %c8_73 = arith.constant 8 : index
    %c0_74 = arith.constant 0 : index
    %c0_75 = arith.constant 0 : index
    %89 = vector.load %arg6[%c8_73, %c0_74, %c0_75] : memref<9x128x32xbf16, #tpu.memory_space<vmem>>, vector<1x128x32xbf16>
    %90 = vector.shape_cast %89 : vector<1x128x32xbf16> to vector<128x32xbf16>
    %cst_76 = arith.constant dense<0.000000e+00> : vector<64x32xf32>
    %91 = tpu.matmul %88, %90, %cst_76 {dimension_numbers = #tpu.dot_dimension_numbers<[1], [0], [0], [1], [0, 0, 1, 1], [], []>} : vector<64x128xbf16>, vector<128x32xbf16>, vector<64x32xf32> -> vector<64x32xf32>
    %92 = arith.addf %84, %91 : vector<64x32xf32>
    %cst_77 = arith.constant 0.000000e+00 : f32
    %93 = vector.broadcast %cst_77 : f32 to vector<64x64xf32>
    %cst_78 = arith.constant 0.000000e+00 : f32
    %94 = vector.broadcast %cst_78 : f32 to vector<64x32xf32>
    %95 = tpu.concatenate %93, %92, %94 in 1 : vector<64x64xf32>, vector<64x32xf32>, vector<64x32xf32> -> vector<64x128xf32>
    %96 = arith.addf %2, %95 : vector<64x128xf32>
    %97 = arith.truncf %96 : vector<64x128xf32> to vector<64x128xbf16>
    %c0_79 = arith.constant 0 : index
    %c0_80 = arith.constant 0 : index
    %c0_81 = arith.constant 0 : index
    %98 = vector.load %arg8[%c0_79, %c0_80, %c0_81] : memref<1x64x128xbf16, #tpu.memory_space<vmem>>, vector<1x64x128xbf16>
    %99 = vector.shape_cast %98 : vector<1x64x128xbf16> to vector<64x128xbf16>
    %100 = vector.shape_cast %97 : vector<64x128xbf16> to vector<1x64x128xbf16>
    tpu.vector_store %arg8[%c0_79, %c0_80, %c0_81], %100 {strides = array<i32>} : memref<1x64x128xbf16, #tpu.memory_space<vmem>>, vector<1x64x128xbf16>,
    return
  }
  func.func @transform_0(%arg0: i32) -> (i32, i32, i32) {
    %c0_i32 = arith.constant 0 : i32
    %c0_i32_0 = arith.constant 0 : i32
    %c0_i32_1 = arith.constant 0 : i32
    return %arg0, %c0_i32, %c0_i32_0 : i32, i32, i32
  }
  func.func @transform_1(%arg0: i32) -> (i32, i32) {
    %c0_i32 = arith.constant 0 : i32
    %c0_i32_0 = arith.constant 0 : i32
    %c0_i32_1 = arith.constant 0 : i32
    return %c0_i32, %c0_i32_0 : i32, i32
  }
  func.func @transform_2(%arg0: i32) -> (i32, i32) {
    %c0_i32 = arith.constant 0 : i32
    %c0_i32_0 = arith.constant 0 : i32
    %c0_i32_1 = arith.constant 0 : i32
    return %c0_i32, %c0_i32_0 : i32, i32
  }
  func.func @transform_3(%arg0: i32) -> (i32, i32) {
    %c0_i32 = arith.constant 0 : i32
    %c0_i32_0 = arith.constant 0 : i32
    %c0_i32_1 = arith.constant 0 : i32
    return %c0_i32, %c0_i32_0 : i32, i32
  }
  func.func @transform_4(%arg0: i32) -> (i32, i32) {
    %c0_i32 = arith.constant 0 : i32
    %c0_i32_0 = arith.constant 0 : i32
    %c0_i32_1 = arith.constant 0 : i32
    return %c0_i32, %c0_i32_0 : i32, i32
  }
  func.func @transform_5(%arg0: i32) -> (i32, i32, i32) {
    %c0_i32 = arith.constant 0 : i32
    %c0_i32_0 = arith.constant 0 : i32
    %c0_i32_1 = arith.constant 0 : i32
    %c0_i32_2 = arith.constant 0 : i32
    return %c0_i32, %c0_i32_0, %c0_i32_1 : i32, i32, i32
  }
  func.func @transform_6(%arg0: i32) -> (i32, i32, i32) {
    %c0_i32 = arith.constant 0 : i32
    %c0_i32_0 = arith.constant 0 : i32
    %c0_i32_1 = arith.constant 0 : i32
    %c0_i32_2 = arith.constant 0 : i32
    return %c0_i32, %c0_i32_0, %c0_i32_1 : i32, i32, i32
  }
  func.func @transform_7(%arg0: i32) -> (i32, i32, i32) {
    %c0_i32 = arith.constant 0 : i32
    %c0_i32_0 = arith.constant 0 : i32
    %c0_i32_1 = arith.constant 0 : i32
    return %arg0, %c0_i32, %c0_i32_0 : i32, i32, i32
  }
}

module attributes {stable_mosaic.version = 11 : i64} {
  func.func @_dense_layer_kernel(%arg0: i32, %arg1: memref<1x64x128xbf16, #tpu.memory_space<vmem>>, %arg2: memref<1x128xf32, #tpu.memory_space<vmem>>, %arg3: memref<1x128xf32, #tpu.memory_space<vmem>>, %arg4: memref<128x128xbf16, #tpu.memory_space<vmem>>, %arg5: memref<1x128xf32, #tpu.memory_space<vmem>>, %arg6: memref<9x128x32xbf16, #tpu.memory_space<vmem>>, %arg7: memref<9x64x64xbf16, #tpu.memory_space<vmem>>, %arg8: memref<1x64x128xbf16, #tpu.memory_space<vmem>>) attributes {dimension_semantics = [#tpu.dimension_semantics<parallel>], iteration_bounds = array<i64: 2>, scalar_prefetch = 0 : i64, scratch_operands = 0 : i64, tpu.core_type = #tpu.core_type<tc>, window_params = [{transform_indices = @transform_0, window_bounds = array<i64: 1, 64, 128>}, {pipeline_mode = #tpu.pipeline_mode<synchronous>, transform_indices = @transform_1, window_bounds = array<i64: 1, 128>}, {pipeline_mode = #tpu.pipeline_mode<synchronous>, transform_indices = @transform_2, window_bounds = array<i64: 1, 128>}, {pipeline_mode = #tpu.pipeline_mode<synchronous>, transform_indices = @transform_3, window_bounds = array<i64: 128, 128>}, {pipeline_mode = #tpu.pipeline_mode<synchronous>, transform_indices = @transform_4, window_bounds = array<i64: 1, 128>}, {pipeline_mode = #tpu.pipeline_mode<synchronous>, transform_indices = @transform_5, window_bounds = array<i64: 9, 128, 32>}, {pipeline_mode = #tpu.pipeline_mode<synchronous>, transform_indices = @transform_6, window_bounds = array<i64: 9, 64, 64>}, {transform_indices = @transform_7, window_bounds = array<i64: 1, 64, 128>}]} {
    %c0 = arith.constant 0 : index
    %c0_0 = arith.constant 0 : index
    %c0_1 = arith.constant 0 : index
    %0 = vector.load %arg1[%c0, %c0_0, %c0_1] : memref<1x64x128xbf16, #tpu.memory_space<vmem>>, vector<1x64x128xbf16>
    %1 = vector.shape_cast %0 : vector<1x64x128xbf16> to vector<64x128xbf16>
    %2 = arith.extf %1 : vector<64x128xbf16> to vector<64x128xf32>
    %c0_2 = arith.constant 0 : index
    %c0_3 = arith.constant 0 : index
    %3 = vector.load %arg2[%c0_2, %c0_3] : memref<1x128xf32, #tpu.memory_space<vmem>>, vector<1x128xf32>
    %4 = vector.broadcast %3 : vector<1x128xf32> to vector<64x128xf32>
    %5 = arith.mulf %2, %4 : vector<64x128xf32>
    %c0_4 = arith.constant 0 : index
    %c0_5 = arith.constant 0 : index
    %6 = vector.load %arg3[%c0_4, %c0_5] : memref<1x128xf32, #tpu.memory_space<vmem>>, vector<1x128xf32>
    %7 = vector.broadcast %6 : vector<1x128xf32> to vector<64x128xf32>
    %8 = arith.addf %5, %7 : vector<64x128xf32>
    %cst = arith.constant 0.000000e+00 : f32
    %9 = vector.broadcast %cst : f32 to vector<64x128xf32>
    %10 = arith.maximumf %8, %9 : vector<64x128xf32>
    %11 = arith.truncf %10 : vector<64x128xf32> to vector<64x128xbf16>
    %c0_6 = arith.constant 0 : index
    %c0_7 = arith.constant 0 : index
    %12 = vector.load %arg4[%c0_6, %c0_7] : memref<128x128xbf16, #tpu.memory_space<vmem>>, vector<128x128xbf16>
    %cst_8 = arith.constant dense<0.000000e+00> : vector<64x128xf32>
    %13 = tpu.matmul %11, %12, %cst_8 {dimension_numbers = #tpu.dot_dimension_numbers<[1], [0], [0], [1], [0, 0, 1, 1], [], []>} : vector<64x128xbf16>, vector<128x128xbf16>, vector<64x128xf32> -> vector<64x128xf32>
    %c0_9 = arith.constant 0 : index
    %c0_10 = arith.constant 0 : index
    %14 = vector.load %arg5[%c0_9, %c0_10] : memref<1x128xf32, #tpu.memory_space<vmem>>, vector<1x128xf32>
    %15 = vector.broadcast %14 : vector<1x128xf32> to vector<64x128xf32>
    %16 = arith.addf %13, %15 : vector<64x128xf32>
    %cst_11 = arith.constant 0.000000e+00 : f32
    %17 = vector.broadcast %cst_11 : f32 to vector<64x128xf32>
    %18 = arith.maximumf %16, %17 : vector<64x128xf32>
    %19 = arith.truncf %18 : vector<64x128xf32> to vector<64x128xbf16>
    %cst_12 = arith.constant 0.000000e+00 : f32
    %20 = vector.broadcast %cst_12 : f32 to vector<64x32xf32>
    %c0_13 = arith.constant 0 : index
    %c0_14 = arith.constant 0 : index
    %c0_15 = arith.constant 0 : index
    %21 = vector.load %arg7[%c0_13, %c0_14, %c0_15] : memref<9x64x64xbf16, #tpu.memory_space<vmem>>, vector<1x64x64xbf16>
    %22 = vector.shape_cast %21 : vector<1x64x64xbf16> to vector<64x64xbf16>
    %cst_16 = arith.constant dense<0.000000e+00> : vector<64x128xf32>
    %23 = tpu.matmul %22, %19, %cst_16 {dimension_numbers = #tpu.dot_dimension_numbers<[1], [0], [0], [1], [0, 0, 1, 1], [], []>} : vector<64x64xbf16>, vector<64x128xbf16>, vector<64x128xf32> -> vector<64x128xf32>
    %24 = arith.truncf %23 : vector<64x128xf32> to vector<64x128xbf16>
    %c0_17 = arith.constant 0 : index
    %c0_18 = arith.constant 0 : index
    %c0_19 = arith.constant 0 : index
    %25 = vector.load %arg6[%c0_17, %c0_18, %c0_19] : memref<9x128x32xbf16, #tpu.memory_space<vmem>>, vector<1x128x32xbf16>
    %26 = vector.shape_cast %25 : vector<1x128x32xbf16> to vector<128x32xbf16>
    %cst_20 = arith.constant dense<0.000000e+00> : vector<64x32xf32>
    %27 = tpu.matmul %24, %26, %cst_20 {dimension_numbers = #tpu.dot_dimension_numbers<[1], [0], [0], [1], [0, 0, 1, 1], [], []>} : vector<64x128xbf16>, vector<128x32xbf16>, vector<64x32xf32> -> vector<64x32xf32>
    %28 = arith.addf %20, %27 : vector<64x32xf32>
    %c1 = arith.constant 1 : index
    %c0_21 = arith.constant 0 : index
    %c0_22 = arith.constant 0 : index
    %29 = vector.load %arg7[%c1, %c0_21, %c0_22] : memref<9x64x64xbf16, #tpu.memory_space<vmem>>, vector<1x64x64xbf16>
    %30 = vector.shape_cast %29 : vector<1x64x64xbf16> to vector<64x64xbf16>
    %cst_23 = arith.constant dense<0.000000e+00> : vector<64x128xf32>
    %31 = tpu.matmul %30, %19, %cst_23 {dimension_numbers = #tpu.dot_dimension_numbers<[1], [0], [0], [1], [0, 0, 1, 1], [], []>} : vector<64x64xbf16>, vector<64x128xbf16>, vector<64x128xf32> -> vector<64x128xf32>
    %32 = arith.truncf %31 : vector<64x128xf32> to vector<64x128xbf16>
    %c1_24 = arith.constant 1 : index
    %c0_25 = arith.constant 0 : index
    %c0_26 = arith.constant 0 : index
    %33 = vector.load %arg6[%c1_24, %c0_25, %c0_26] : memref<9x128x32xbf16, #tpu.memory_space<vmem>>, vector<1x128x32xbf16>
    %34 = vector.shape_cast %33 : vector<1x128x32xbf16> to vector<128x32xbf16>
    %cst_27 = arith.constant dense<0.000000e+00> : vector<64x32xf32>
    %35 = tpu.matmul %32, %34, %cst_27 {dimension_numbers = #tpu.dot_dimension_numbers<[1], [0], [0], [1], [0, 0, 1, 1], [], []>} : vector<64x128xbf16>, vector<128x32xbf16>, vector<64x32xf32> -> vector<64x32xf32>
    %36 = arith.addf %28, %35 : vector<64x32xf32>
    %c2 = arith.constant 2 : index
    %c0_28 = arith.constant 0 : index
    %c0_29 = arith.constant 0 : index
    %37 = vector.load %arg7[%c2, %c0_28, %c0_29] : memref<9x64x64xbf16, #tpu.memory_space<vmem>>, vector<1x64x64xbf16>
    %38 = vector.shape_cast %37 : vector<1x64x64xbf16> to vector<64x64xbf16>
    %cst_30 = arith.constant dense<0.000000e+00> : vector<64x128xf32>
    %39 = tpu.matmul %38, %19, %cst_30 {dimension_numbers = #tpu.dot_dimension_numbers<[1], [0], [0], [1], [0, 0, 1, 1], [], []>} : vector<64x64xbf16>, vector<64x128xbf16>, vector<64x128xf32> -> vector<64x128xf32>
    %40 = arith.truncf %39 : vector<64x128xf32> to vector<64x128xbf16>
    %c2_31 = arith.constant 2 : index
    %c0_32 = arith.constant 0 : index
    %c0_33 = arith.constant 0 : index
    %41 = vector.load %arg6[%c2_31, %c0_32, %c0_33] : memref<9x128x32xbf16, #tpu.memory_space<vmem>>, vector<1x128x32xbf16>
    %42 = vector.shape_cast %41 : vector<1x128x32xbf16> to vector<128x32xbf16>
    %cst_34 = arith.constant dense<0.000000e+00> : vector<64x32xf32>
    %43 = tpu.matmul %40, %42, %cst_34 {dimension_numbers = #tpu.dot_dimension_numbers<[1], [0], [0], [1], [0, 0, 1, 1], [], []>} : vector<64x128xbf16>, vector<128x32xbf16>, vector<64x32xf32> -> vector<64x32xf32>
    %44 = arith.addf %36, %43 : vector<64x32xf32>
    %c3 = arith.constant 3 : index
    %c0_35 = arith.constant 0 : index
    %c0_36 = arith.constant 0 : index
    %45 = vector.load %arg7[%c3, %c0_35, %c0_36] : memref<9x64x64xbf16, #tpu.memory_space<vmem>>, vector<1x64x64xbf16>
    %46 = vector.shape_cast %45 : vector<1x64x64xbf16> to vector<64x64xbf16>
    %cst_37 = arith.constant dense<0.000000e+00> : vector<64x128xf32>
    %47 = tpu.matmul %46, %19, %cst_37 {dimension_numbers = #tpu.dot_dimension_numbers<[1], [0], [0], [1], [0, 0, 1, 1], [], []>} : vector<64x64xbf16>, vector<64x128xbf16>, vector<64x128xf32> -> vector<64x128xf32>
    %48 = arith.truncf %47 : vector<64x128xf32> to vector<64x128xbf16>
    %c3_38 = arith.constant 3 : index
    %c0_39 = arith.constant 0 : index
    %c0_40 = arith.constant 0 : index
    %49 = vector.load %arg6[%c3_38, %c0_39, %c0_40] : memref<9x128x32xbf16, #tpu.memory_space<vmem>>, vector<1x128x32xbf16>
    %50 = vector.shape_cast %49 : vector<1x128x32xbf16> to vector<128x32xbf16>
    %cst_41 = arith.constant dense<0.000000e+00> : vector<64x32xf32>
    %51 = tpu.matmul %48, %50, %cst_41 {dimension_numbers = #tpu.dot_dimension_numbers<[1], [0], [0], [1], [0, 0, 1, 1], [], []>} : vector<64x128xbf16>, vector<128x32xbf16>, vector<64x32xf32> -> vector<64x32xf32>
    %52 = arith.addf %44, %51 : vector<64x32xf32>
    %c4 = arith.constant 4 : index
    %c0_42 = arith.constant 0 : index
    %c0_43 = arith.constant 0 : index
    %53 = vector.load %arg7[%c4, %c0_42, %c0_43] : memref<9x64x64xbf16, #tpu.memory_space<vmem>>, vector<1x64x64xbf16>
    %54 = vector.shape_cast %53 : vector<1x64x64xbf16> to vector<64x64xbf16>
    %cst_44 = arith.constant dense<0.000000e+00> : vector<64x128xf32>
    %55 = tpu.matmul %54, %19, %cst_44 {dimension_numbers = #tpu.dot_dimension_numbers<[1], [0], [0], [1], [0, 0, 1, 1], [], []>} : vector<64x64xbf16>, vector<64x128xbf16>, vector<64x128xf32> -> vector<64x128xf32>
    %56 = arith.truncf %55 : vector<64x128xf32> to vector<64x128xbf16>
    %c4_45 = arith.constant 4 : index
    %c0_46 = arith.constant 0 : index
    %c0_47 = arith.constant 0 : index
    %57 = vector.load %arg6[%c4_45, %c0_46, %c0_47] : memref<9x128x32xbf16, #tpu.memory_space<vmem>>, vector<1x128x32xbf16>
    %58 = vector.shape_cast %57 : vector<1x128x32xbf16> to vector<128x32xbf16>
    %cst_48 = arith.constant dense<0.000000e+00> : vector<64x32xf32>
    %59 = tpu.matmul %56, %58, %cst_48 {dimension_numbers = #tpu.dot_dimension_numbers<[1], [0], [0], [1], [0, 0, 1, 1], [], []>} : vector<64x128xbf16>, vector<128x32xbf16>, vector<64x32xf32> -> vector<64x32xf32>
    %60 = arith.addf %52, %59 : vector<64x32xf32>
    %c5 = arith.constant 5 : index
    %c0_49 = arith.constant 0 : index
    %c0_50 = arith.constant 0 : index
    %61 = vector.load %arg7[%c5, %c0_49, %c0_50] : memref<9x64x64xbf16, #tpu.memory_space<vmem>>, vector<1x64x64xbf16>
    %62 = vector.shape_cast %61 : vector<1x64x64xbf16> to vector<64x64xbf16>
    %cst_51 = arith.constant dense<0.000000e+00> : vector<64x128xf32>
    %63 = tpu.matmul %62, %19, %cst_51 {dimension_numbers = #tpu.dot_dimension_numbers<[1], [0], [0], [1], [0, 0, 1, 1], [], []>} : vector<64x64xbf16>, vector<64x128xbf16>, vector<64x128xf32> -> vector<64x128xf32>
    %64 = arith.truncf %63 : vector<64x128xf32> to vector<64x128xbf16>
    %c5_52 = arith.constant 5 : index
    %c0_53 = arith.constant 0 : index
    %c0_54 = arith.constant 0 : index
    %65 = vector.load %arg6[%c5_52, %c0_53, %c0_54] : memref<9x128x32xbf16, #tpu.memory_space<vmem>>, vector<1x128x32xbf16>
    %66 = vector.shape_cast %65 : vector<1x128x32xbf16> to vector<128x32xbf16>
    %cst_55 = arith.constant dense<0.000000e+00> : vector<64x32xf32>
    %67 = tpu.matmul %64, %66, %cst_55 {dimension_numbers = #tpu.dot_dimension_numbers<[1], [0], [0], [1], [0, 0, 1, 1], [], []>} : vector<64x128xbf16>, vector<128x32xbf16>, vector<64x32xf32> -> vector<64x32xf32>
    %68 = arith.addf %60, %67 : vector<64x32xf32>
    %c6 = arith.constant 6 : index
    %c0_56 = arith.constant 0 : index
    %c0_57 = arith.constant 0 : index
    %69 = vector.load %arg7[%c6, %c0_56, %c0_57] : memref<9x64x64xbf16, #tpu.memory_space<vmem>>, vector<1x64x64xbf16>
    %70 = vector.shape_cast %69 : vector<1x64x64xbf16> to vector<64x64xbf16>
    %cst_58 = arith.constant dense<0.000000e+00> : vector<64x128xf32>
    %71 = tpu.matmul %70, %19, %cst_58 {dimension_numbers = #tpu.dot_dimension_numbers<[1], [0], [0], [1], [0, 0, 1, 1], [], []>} : vector<64x64xbf16>, vector<64x128xbf16>, vector<64x128xf32> -> vector<64x128xf32>
    %72 = arith.truncf %71 : vector<64x128xf32> to vector<64x128xbf16>
    %c6_59 = arith.constant 6 : index
    %c0_60 = arith.constant 0 : index
    %c0_61 = arith.constant 0 : index
    %73 = vector.load %arg6[%c6_59, %c0_60, %c0_61] : memref<9x128x32xbf16, #tpu.memory_space<vmem>>, vector<1x128x32xbf16>
    %74 = vector.shape_cast %73 : vector<1x128x32xbf16> to vector<128x32xbf16>
    %cst_62 = arith.constant dense<0.000000e+00> : vector<64x32xf32>
    %75 = tpu.matmul %72, %74, %cst_62 {dimension_numbers = #tpu.dot_dimension_numbers<[1], [0], [0], [1], [0, 0, 1, 1], [], []>} : vector<64x128xbf16>, vector<128x32xbf16>, vector<64x32xf32> -> vector<64x32xf32>
    %76 = arith.addf %68, %75 : vector<64x32xf32>
    %c7 = arith.constant 7 : index
    %c0_63 = arith.constant 0 : index
    %c0_64 = arith.constant 0 : index
    %77 = vector.load %arg7[%c7, %c0_63, %c0_64] : memref<9x64x64xbf16, #tpu.memory_space<vmem>>, vector<1x64x64xbf16>
    %78 = vector.shape_cast %77 : vector<1x64x64xbf16> to vector<64x64xbf16>
    %cst_65 = arith.constant dense<0.000000e+00> : vector<64x128xf32>
    %79 = tpu.matmul %78, %19, %cst_65 {dimension_numbers = #tpu.dot_dimension_numbers<[1], [0], [0], [1], [0, 0, 1, 1], [], []>} : vector<64x64xbf16>, vector<64x128xbf16>, vector<64x128xf32> -> vector<64x128xf32>
    %80 = arith.truncf %79 : vector<64x128xf32> to vector<64x128xbf16>
    %c7_66 = arith.constant 7 : index
    %c0_67 = arith.constant 0 : index
    %c0_68 = arith.constant 0 : index
    %81 = vector.load %arg6[%c7_66, %c0_67, %c0_68] : memref<9x128x32xbf16, #tpu.memory_space<vmem>>, vector<1x128x32xbf16>
    %82 = vector.shape_cast %81 : vector<1x128x32xbf16> to vector<128x32xbf16>
    %cst_69 = arith.constant dense<0.000000e+00> : vector<64x32xf32>
    %83 = tpu.matmul %80, %82, %cst_69 {dimension_numbers = #tpu.dot_dimension_numbers<[1], [0], [0], [1], [0, 0, 1, 1], [], []>} : vector<64x128xbf16>, vector<128x32xbf16>, vector<64x32xf32> -> vector<64x32xf32>
    %84 = arith.addf %76, %83 : vector<64x32xf32>
    %c8 = arith.constant 8 : index
    %c0_70 = arith.constant 0 : index
    %c0_71 = arith.constant 0 : index
    %85 = vector.load %arg7[%c8, %c0_70, %c0_71] : memref<9x64x64xbf16, #tpu.memory_space<vmem>>, vector<1x64x64xbf16>
    %86 = vector.shape_cast %85 : vector<1x64x64xbf16> to vector<64x64xbf16>
    %cst_72 = arith.constant dense<0.000000e+00> : vector<64x128xf32>
    %87 = tpu.matmul %86, %19, %cst_72 {dimension_numbers = #tpu.dot_dimension_numbers<[1], [0], [0], [1], [0, 0, 1, 1], [], []>} : vector<64x64xbf16>, vector<64x128xbf16>, vector<64x128xf32> -> vector<64x128xf32>
    %88 = arith.truncf %87 : vector<64x128xf32> to vector<64x128xbf16>
    %c8_73 = arith.constant 8 : index
    %c0_74 = arith.constant 0 : index
    %c0_75 = arith.constant 0 : index
    %89 = vector.load %arg6[%c8_73, %c0_74, %c0_75] : memref<9x128x32xbf16, #tpu.memory_space<vmem>>, vector<1x128x32xbf16>
    %90 = vector.shape_cast %89 : vector<1x128x32xbf16> to vector<128x32xbf16>
    %cst_76 = arith.constant dense<0.000000e+00> : vector<64x32xf32>
    %91 = tpu.matmul %88, %90, %cst_76 {dimension_numbers = #tpu.dot_dimension_numbers<[1], [0], [0], [1], [0, 0, 1, 1], [], []>} : vector<64x128xbf16>, vector<128x32xbf16>, vector<64x32xf32> -> vector<64x32xf32>
    %92 = arith.addf %84, %91 : vector<64x32xf32>
    %cst_77 = arith.constant 0.000000e+00 : f32
    %93 = vector.broadcast %cst_77 : f32 to vector<64x96xf32>
    %94 = tpu.concatenate %93, %92 in 1 : vector<64x96xf32>, vector<64x32xf32> -> vector<64x128xf32>
    %95 = arith.addf %2, %94 : vector<64x128xf32>
    %96 = arith.truncf %95 : vector<64x128xf32> to vector<64x128xbf16>
    %c0_78 = arith.constant 0 : index
    %c0_79 = arith.constant 0 : index
    %c0_80 = arith.constant 0 : index
    %97 = vector.load %arg8[%c0_78, %c0_79, %c0_80] : memref<1x64x128xbf16, #tpu.memory_space<vmem>>, vector<1x64x128xbf16>
    %98 = vector.shape_cast %97 : vector<1x64x128xbf16> to vector<64x128xbf16>
    %99 = vector.shape_cast %96 : vector<64x128xbf16> to vector<1x64x128xbf16>
    tpu.vector_store %arg8[%c0_78, %c0_79, %c0_80], %99 {strides = array<i32>} : memref<1x64x128xbf16, #tpu.memory_space<vmem>>, vector<1x64x128xbf16>,
    return
  }
  func.func @transform_0(%arg0: i32) -> (i32, i32, i32) {
    %c0_i32 = arith.constant 0 : i32
    %c0_i32_0 = arith.constant 0 : i32
    %c0_i32_1 = arith.constant 0 : i32
    return %arg0, %c0_i32, %c0_i32_0 : i32, i32, i32
  }
  func.func @transform_1(%arg0: i32) -> (i32, i32) {
    %c0_i32 = arith.constant 0 : i32
    %c0_i32_0 = arith.constant 0 : i32
    %c0_i32_1 = arith.constant 0 : i32
    return %c0_i32, %c0_i32_0 : i32, i32
  }
  func.func @transform_2(%arg0: i32) -> (i32, i32) {
    %c0_i32 = arith.constant 0 : i32
    %c0_i32_0 = arith.constant 0 : i32
    %c0_i32_1 = arith.constant 0 : i32
    return %c0_i32, %c0_i32_0 : i32, i32
  }
  func.func @transform_3(%arg0: i32) -> (i32, i32) {
    %c0_i32 = arith.constant 0 : i32
    %c0_i32_0 = arith.constant 0 : i32
    %c0_i32_1 = arith.constant 0 : i32
    return %c0_i32, %c0_i32_0 : i32, i32
  }
  func.func @transform_4(%arg0: i32) -> (i32, i32) {
    %c0_i32 = arith.constant 0 : i32
    %c0_i32_0 = arith.constant 0 : i32
    %c0_i32_1 = arith.constant 0 : i32
    return %c0_i32, %c0_i32_0 : i32, i32
  }
  func.func @transform_5(%arg0: i32) -> (i32, i32, i32) {
    %c0_i32 = arith.constant 0 : i32
    %c0_i32_0 = arith.constant 0 : i32
    %c0_i32_1 = arith.constant 0 : i32
    %c0_i32_2 = arith.constant 0 : i32
    return %c0_i32, %c0_i32_0, %c0_i32_1 : i32, i32, i32
  }
  func.func @transform_6(%arg0: i32) -> (i32, i32, i32) {
    %c0_i32 = arith.constant 0 : i32
    %c0_i32_0 = arith.constant 0 : i32
    %c0_i32_1 = arith.constant 0 : i32
    %c0_i32_2 = arith.constant 0 : i32
    return %c0_i32, %c0_i32_0, %c0_i32_1 : i32, i32, i32
  }
  func.func @transform_7(%arg0: i32) -> (i32, i32, i32) {
    %c0_i32 = arith.constant 0 : i32
    %c0_i32_0 = arith.constant 0 : i32
    %c0_i32_1 = arith.constant 0 : i32
    return %arg0, %c0_i32, %c0_i32_0 : i32, i32, i32
  }
}

module attributes {stable_mosaic.version = 11 : i64} {
  func.func @_transition_kernel(%arg0: i32, %arg1: memref<1x64x128xbf16, #tpu.memory_space<vmem>>, %arg2: memref<1x128xf32, #tpu.memory_space<vmem>>, %arg3: memref<1x128xf32, #tpu.memory_space<vmem>>, %arg4: memref<16x64xbf16, #tpu.memory_space<vmem>>, %arg5: memref<128x128xbf16, #tpu.memory_space<vmem>>, %arg6: memref<1x16x128xbf16, #tpu.memory_space<vmem>>) attributes {dimension_semantics = [#tpu.dimension_semantics<parallel>], iteration_bounds = array<i64: 2>, scalar_prefetch = 0 : i64, scratch_operands = 0 : i64, tpu.core_type = #tpu.core_type<tc>, window_params = [{transform_indices = @transform_0, window_bounds = array<i64: 1, 64, 128>}, {pipeline_mode = #tpu.pipeline_mode<synchronous>, transform_indices = @transform_1, window_bounds = array<i64: 1, 128>}, {pipeline_mode = #tpu.pipeline_mode<synchronous>, transform_indices = @transform_2, window_bounds = array<i64: 1, 128>}, {pipeline_mode = #tpu.pipeline_mode<synchronous>, transform_indices = @transform_3, window_bounds = array<i64: 16, 64>}, {pipeline_mode = #tpu.pipeline_mode<synchronous>, transform_indices = @transform_4, window_bounds = array<i64: 128, 128>}, {transform_indices = @transform_5, window_bounds = array<i64: 1, 16, 128>}]} {
    %c0 = arith.constant 0 : index
    %c0_0 = arith.constant 0 : index
    %c0_1 = arith.constant 0 : index
    %0 = vector.load %arg1[%c0, %c0_0, %c0_1] : memref<1x64x128xbf16, #tpu.memory_space<vmem>>, vector<1x64x128xbf16>
    %1 = vector.shape_cast %0 : vector<1x64x128xbf16> to vector<64x128xbf16>
    %2 = arith.extf %1 : vector<64x128xbf16> to vector<64x128xf32>
    %c0_2 = arith.constant 0 : index
    %c0_3 = arith.constant 0 : index
    %3 = vector.load %arg2[%c0_2, %c0_3] : memref<1x128xf32, #tpu.memory_space<vmem>>, vector<1x128xf32>
    %4 = vector.broadcast %3 : vector<1x128xf32> to vector<64x128xf32>
    %5 = arith.mulf %2, %4 : vector<64x128xf32>
    %c0_4 = arith.constant 0 : index
    %c0_5 = arith.constant 0 : index
    %6 = vector.load %arg3[%c0_4, %c0_5] : memref<1x128xf32, #tpu.memory_space<vmem>>, vector<1x128xf32>
    %7 = vector.broadcast %6 : vector<1x128xf32> to vector<64x128xf32>
    %8 = arith.addf %5, %7 : vector<64x128xf32>
    %cst = arith.constant 0.000000e+00 : f32
    %9 = vector.broadcast %cst : f32 to vector<64x128xf32>
    %10 = arith.maximumf %8, %9 : vector<64x128xf32>
    %c0_6 = arith.constant 0 : index
    %c0_7 = arith.constant 0 : index
    %11 = vector.load %arg4[%c0_6, %c0_7] : memref<16x64xbf16, #tpu.memory_space<vmem>>, vector<16x64xbf16>
    %12 = arith.truncf %10 : vector<64x128xf32> to vector<64x128xbf16>
    %cst_8 = arith.constant dense<0.000000e+00> : vector<16x128xf32>
    %13 = tpu.matmul %11, %12, %cst_8 {dimension_numbers = #tpu.dot_dimension_numbers<[1], [0], [0], [1], [0, 0, 1, 1], [], []>} : vector<16x64xbf16>, vector<64x128xbf16>, vector<16x128xf32> -> vector<16x128xf32>
    %14 = arith.truncf %13 : vector<16x128xf32> to vector<16x128xbf16>
    %c0_9 = arith.constant 0 : index
    %c0_10 = arith.constant 0 : index
    %15 = vector.load %arg5[%c0_9, %c0_10] : memref<128x128xbf16, #tpu.memory_space<vmem>>, vector<128x128xbf16>
    %cst_11 = arith.constant dense<0.000000e+00> : vector<16x128xf32>
    %16 = tpu.matmul %14, %15, %cst_11 {dimension_numbers = #tpu.dot_dimension_numbers<[1], [0], [0], [1], [0, 0, 1, 1], [], []>} : vector<16x128xbf16>, vector<128x128xbf16>, vector<16x128xf32> -> vector<16x128xf32>
    %17 = arith.truncf %16 : vector<16x128xf32> to vector<16x128xbf16>
    %c0_12 = arith.constant 0 : index
    %c0_13 = arith.constant 0 : index
    %c0_14 = arith.constant 0 : index
    %18 = vector.load %arg6[%c0_12, %c0_13, %c0_14] : memref<1x16x128xbf16, #tpu.memory_space<vmem>>, vector<1x16x128xbf16>
    %19 = vector.shape_cast %18 : vector<1x16x128xbf16> to vector<16x128xbf16>
    %20 = vector.shape_cast %17 : vector<16x128xbf16> to vector<1x16x128xbf16>
    tpu.vector_store %arg6[%c0_12, %c0_13, %c0_14], %20 {strides = array<i32>} : memref<1x16x128xbf16, #tpu.memory_space<vmem>>, vector<1x16x128xbf16>,
    return
  }
  func.func @transform_0(%arg0: i32) -> (i32, i32, i32) {
    %c0_i32 = arith.constant 0 : i32
    %c0_i32_0 = arith.constant 0 : i32
    %c0_i32_1 = arith.constant 0 : i32
    return %arg0, %c0_i32, %c0_i32_0 : i32, i32, i32
  }
  func.func @transform_1(%arg0: i32) -> (i32, i32) {
    %c0_i32 = arith.constant 0 : i32
    %c0_i32_0 = arith.constant 0 : i32
    %c0_i32_1 = arith.constant 0 : i32
    return %c0_i32, %c0_i32_0 : i32, i32
  }
  func.func @transform_2(%arg0: i32) -> (i32, i32) {
    %c0_i32 = arith.constant 0 : i32
    %c0_i32_0 = arith.constant 0 : i32
    %c0_i32_1 = arith.constant 0 : i32
    return %c0_i32, %c0_i32_0 : i32, i32
  }
  func.func @transform_3(%arg0: i32) -> (i32, i32) {
    %c0_i32 = arith.constant 0 : i32
    %c0_i32_0 = arith.constant 0 : i32
    %c0_i32_1 = arith.constant 0 : i32
    return %c0_i32, %c0_i32_0 : i32, i32
  }
  func.func @transform_4(%arg0: i32) -> (i32, i32) {
    %c0_i32 = arith.constant 0 : i32
    %c0_i32_0 = arith.constant 0 : i32
    %c0_i32_1 = arith.constant 0 : i32
    return %c0_i32, %c0_i32_0 : i32, i32
  }
  func.func @transform_5(%arg0: i32) -> (i32, i32, i32) {
    %c0_i32 = arith.constant 0 : i32
    %c0_i32_0 = arith.constant 0 : i32
    %c0_i32_1 = arith.constant 0 : i32
    return %arg0, %c0_i32, %c0_i32_0 : i32, i32, i32
  }
}

module attributes {stable_mosaic.version = 11 : i64} {
  func.func @_dense_layer_kernel(%arg0: i32, %arg1: memref<1x16x128xbf16, #tpu.memory_space<vmem>>, %arg2: memref<1x128xf32, #tpu.memory_space<vmem>>, %arg3: memref<1x128xf32, #tpu.memory_space<vmem>>, %arg4: memref<128x128xbf16, #tpu.memory_space<vmem>>, %arg5: memref<1x128xf32, #tpu.memory_space<vmem>>, %arg6: memref<9x128x32xbf16, #tpu.memory_space<vmem>>, %arg7: memref<9x16x16xbf16, #tpu.memory_space<vmem>>, %arg8: memref<1x16x128xbf16, #tpu.memory_space<vmem>>) attributes {dimension_semantics = [#tpu.dimension_semantics<parallel>], iteration_bounds = array<i64: 2>, scalar_prefetch = 0 : i64, scratch_operands = 0 : i64, tpu.core_type = #tpu.core_type<tc>, window_params = [{transform_indices = @transform_0, window_bounds = array<i64: 1, 16, 128>}, {pipeline_mode = #tpu.pipeline_mode<synchronous>, transform_indices = @transform_1, window_bounds = array<i64: 1, 128>}, {pipeline_mode = #tpu.pipeline_mode<synchronous>, transform_indices = @transform_2, window_bounds = array<i64: 1, 128>}, {pipeline_mode = #tpu.pipeline_mode<synchronous>, transform_indices = @transform_3, window_bounds = array<i64: 128, 128>}, {pipeline_mode = #tpu.pipeline_mode<synchronous>, transform_indices = @transform_4, window_bounds = array<i64: 1, 128>}, {pipeline_mode = #tpu.pipeline_mode<synchronous>, transform_indices = @transform_5, window_bounds = array<i64: 9, 128, 32>}, {pipeline_mode = #tpu.pipeline_mode<synchronous>, transform_indices = @transform_6, window_bounds = array<i64: 9, 16, 16>}, {transform_indices = @transform_7, window_bounds = array<i64: 1, 16, 128>}]} {
    %c0 = arith.constant 0 : index
    %c0_0 = arith.constant 0 : index
    %c0_1 = arith.constant 0 : index
    %0 = vector.load %arg1[%c0, %c0_0, %c0_1] : memref<1x16x128xbf16, #tpu.memory_space<vmem>>, vector<1x16x128xbf16>
    %1 = vector.shape_cast %0 : vector<1x16x128xbf16> to vector<16x128xbf16>
    %2 = arith.extf %1 : vector<16x128xbf16> to vector<16x128xf32>
    %c0_2 = arith.constant 0 : index
    %c0_3 = arith.constant 0 : index
    %3 = vector.load %arg2[%c0_2, %c0_3] : memref<1x128xf32, #tpu.memory_space<vmem>>, vector<1x128xf32>
    %4 = vector.broadcast %3 : vector<1x128xf32> to vector<16x128xf32>
    %5 = arith.mulf %2, %4 : vector<16x128xf32>
    %c0_4 = arith.constant 0 : index
    %c0_5 = arith.constant 0 : index
    %6 = vector.load %arg3[%c0_4, %c0_5] : memref<1x128xf32, #tpu.memory_space<vmem>>, vector<1x128xf32>
    %7 = vector.broadcast %6 : vector<1x128xf32> to vector<16x128xf32>
    %8 = arith.addf %5, %7 : vector<16x128xf32>
    %cst = arith.constant 0.000000e+00 : f32
    %9 = vector.broadcast %cst : f32 to vector<16x128xf32>
    %10 = arith.maximumf %8, %9 : vector<16x128xf32>
    %11 = arith.truncf %10 : vector<16x128xf32> to vector<16x128xbf16>
    %c0_6 = arith.constant 0 : index
    %c0_7 = arith.constant 0 : index
    %12 = vector.load %arg4[%c0_6, %c0_7] : memref<128x128xbf16, #tpu.memory_space<vmem>>, vector<128x128xbf16>
    %cst_8 = arith.constant dense<0.000000e+00> : vector<16x128xf32>
    %13 = tpu.matmul %11, %12, %cst_8 {dimension_numbers = #tpu.dot_dimension_numbers<[1], [0], [0], [1], [0, 0, 1, 1], [], []>} : vector<16x128xbf16>, vector<128x128xbf16>, vector<16x128xf32> -> vector<16x128xf32>
    %c0_9 = arith.constant 0 : index
    %c0_10 = arith.constant 0 : index
    %14 = vector.load %arg5[%c0_9, %c0_10] : memref<1x128xf32, #tpu.memory_space<vmem>>, vector<1x128xf32>
    %15 = vector.broadcast %14 : vector<1x128xf32> to vector<16x128xf32>
    %16 = arith.addf %13, %15 : vector<16x128xf32>
    %cst_11 = arith.constant 0.000000e+00 : f32
    %17 = vector.broadcast %cst_11 : f32 to vector<16x128xf32>
    %18 = arith.maximumf %16, %17 : vector<16x128xf32>
    %19 = arith.truncf %18 : vector<16x128xf32> to vector<16x128xbf16>
    %cst_12 = arith.constant 0.000000e+00 : f32
    %20 = vector.broadcast %cst_12 : f32 to vector<16x32xf32>
    %c0_13 = arith.constant 0 : index
    %c0_14 = arith.constant 0 : index
    %c0_15 = arith.constant 0 : index
    %21 = vector.load %arg7[%c0_13, %c0_14, %c0_15] : memref<9x16x16xbf16, #tpu.memory_space<vmem>>, vector<1x16x16xbf16>
    %22 = vector.shape_cast %21 : vector<1x16x16xbf16> to vector<16x16xbf16>
    %cst_16 = arith.constant dense<0.000000e+00> : vector<16x128xf32>
    %23 = tpu.matmul %22, %19, %cst_16 {dimension_numbers = #tpu.dot_dimension_numbers<[1], [0], [0], [1], [0, 0, 1, 1], [], []>} : vector<16x16xbf16>, vector<16x128xbf16>, vector<16x128xf32> -> vector<16x128xf32>
    %24 = arith.truncf %23 : vector<16x128xf32> to vector<16x128xbf16>
    %c0_17 = arith.constant 0 : index
    %c0_18 = arith.constant 0 : index
    %c0_19 = arith.constant 0 : index
    %25 = vector.load %arg6[%c0_17, %c0_18, %c0_19] : memref<9x128x32xbf16, #tpu.memory_space<vmem>>, vector<1x128x32xbf16>
    %26 = vector.shape_cast %25 : vector<1x128x32xbf16> to vector<128x32xbf16>
    %cst_20 = arith.constant dense<0.000000e+00> : vector<16x32xf32>
    %27 = tpu.matmul %24, %26, %cst_20 {dimension_numbers = #tpu.dot_dimension_numbers<[1], [0], [0], [1], [0, 0, 1, 1], [], []>} : vector<16x128xbf16>, vector<128x32xbf16>, vector<16x32xf32> -> vector<16x32xf32>
    %28 = arith.addf %20, %27 : vector<16x32xf32>
    %c1 = arith.constant 1 : index
    %c0_21 = arith.constant 0 : index
    %c0_22 = arith.constant 0 : index
    %29 = vector.load %arg7[%c1, %c0_21, %c0_22] : memref<9x16x16xbf16, #tpu.memory_space<vmem>>, vector<1x16x16xbf16>
    %30 = vector.shape_cast %29 : vector<1x16x16xbf16> to vector<16x16xbf16>
    %cst_23 = arith.constant dense<0.000000e+00> : vector<16x128xf32>
    %31 = tpu.matmul %30, %19, %cst_23 {dimension_numbers = #tpu.dot_dimension_numbers<[1], [0], [0], [1], [0, 0, 1, 1], [], []>} : vector<16x16xbf16>, vector<16x128xbf16>, vector<16x128xf32> -> vector<16x128xf32>
    %32 = arith.truncf %31 : vector<16x128xf32> to vector<16x128xbf16>
    %c1_24 = arith.constant 1 : index
    %c0_25 = arith.constant 0 : index
    %c0_26 = arith.constant 0 : index
    %33 = vector.load %arg6[%c1_24, %c0_25, %c0_26] : memref<9x128x32xbf16, #tpu.memory_space<vmem>>, vector<1x128x32xbf16>
    %34 = vector.shape_cast %33 : vector<1x128x32xbf16> to vector<128x32xbf16>
    %cst_27 = arith.constant dense<0.000000e+00> : vector<16x32xf32>
    %35 = tpu.matmul %32, %34, %cst_27 {dimension_numbers = #tpu.dot_dimension_numbers<[1], [0], [0], [1], [0, 0, 1, 1], [], []>} : vector<16x128xbf16>, vector<128x32xbf16>, vector<16x32xf32> -> vector<16x32xf32>
    %36 = arith.addf %28, %35 : vector<16x32xf32>
    %c2 = arith.constant 2 : index
    %c0_28 = arith.constant 0 : index
    %c0_29 = arith.constant 0 : index
    %37 = vector.load %arg7[%c2, %c0_28, %c0_29] : memref<9x16x16xbf16, #tpu.memory_space<vmem>>, vector<1x16x16xbf16>
    %38 = vector.shape_cast %37 : vector<1x16x16xbf16> to vector<16x16xbf16>
    %cst_30 = arith.constant dense<0.000000e+00> : vector<16x128xf32>
    %39 = tpu.matmul %38, %19, %cst_30 {dimension_numbers = #tpu.dot_dimension_numbers<[1], [0], [0], [1], [0, 0, 1, 1], [], []>} : vector<16x16xbf16>, vector<16x128xbf16>, vector<16x128xf32> -> vector<16x128xf32>
    %40 = arith.truncf %39 : vector<16x128xf32> to vector<16x128xbf16>
    %c2_31 = arith.constant 2 : index
    %c0_32 = arith.constant 0 : index
    %c0_33 = arith.constant 0 : index
    %41 = vector.load %arg6[%c2_31, %c0_32, %c0_33] : memref<9x128x32xbf16, #tpu.memory_space<vmem>>, vector<1x128x32xbf16>
    %42 = vector.shape_cast %41 : vector<1x128x32xbf16> to vector<128x32xbf16>
    %cst_34 = arith.constant dense<0.000000e+00> : vector<16x32xf32>
    %43 = tpu.matmul %40, %42, %cst_34 {dimension_numbers = #tpu.dot_dimension_numbers<[1], [0], [0], [1], [0, 0, 1, 1], [], []>} : vector<16x128xbf16>, vector<128x32xbf16>, vector<16x32xf32> -> vector<16x32xf32>
    %44 = arith.addf %36, %43 : vector<16x32xf32>
    %c3 = arith.constant 3 : index
    %c0_35 = arith.constant 0 : index
    %c0_36 = arith.constant 0 : index
    %45 = vector.load %arg7[%c3, %c0_35, %c0_36] : memref<9x16x16xbf16, #tpu.memory_space<vmem>>, vector<1x16x16xbf16>
    %46 = vector.shape_cast %45 : vector<1x16x16xbf16> to vector<16x16xbf16>
    %cst_37 = arith.constant dense<0.000000e+00> : vector<16x128xf32>
    %47 = tpu.matmul %46, %19, %cst_37 {dimension_numbers = #tpu.dot_dimension_numbers<[1], [0], [0], [1], [0, 0, 1, 1], [], []>} : vector<16x16xbf16>, vector<16x128xbf16>, vector<16x128xf32> -> vector<16x128xf32>
    %48 = arith.truncf %47 : vector<16x128xf32> to vector<16x128xbf16>
    %c3_38 = arith.constant 3 : index
    %c0_39 = arith.constant 0 : index
    %c0_40 = arith.constant 0 : index
    %49 = vector.load %arg6[%c3_38, %c0_39, %c0_40] : memref<9x128x32xbf16, #tpu.memory_space<vmem>>, vector<1x128x32xbf16>
    %50 = vector.shape_cast %49 : vector<1x128x32xbf16> to vector<128x32xbf16>
    %cst_41 = arith.constant dense<0.000000e+00> : vector<16x32xf32>
    %51 = tpu.matmul %48, %50, %cst_41 {dimension_numbers = #tpu.dot_dimension_numbers<[1], [0], [0], [1], [0, 0, 1, 1], [], []>} : vector<16x128xbf16>, vector<128x32xbf16>, vector<16x32xf32> -> vector<16x32xf32>
    %52 = arith.addf %44, %51 : vector<16x32xf32>
    %c4 = arith.constant 4 : index
    %c0_42 = arith.constant 0 : index
    %c0_43 = arith.constant 0 : index
    %53 = vector.load %arg7[%c4, %c0_42, %c0_43] : memref<9x16x16xbf16, #tpu.memory_space<vmem>>, vector<1x16x16xbf16>
    %54 = vector.shape_cast %53 : vector<1x16x16xbf16> to vector<16x16xbf16>
    %cst_44 = arith.constant dense<0.000000e+00> : vector<16x128xf32>
    %55 = tpu.matmul %54, %19, %cst_44 {dimension_numbers = #tpu.dot_dimension_numbers<[1], [0], [0], [1], [0, 0, 1, 1], [], []>} : vector<16x16xbf16>, vector<16x128xbf16>, vector<16x128xf32> -> vector<16x128xf32>
    %56 = arith.truncf %55 : vector<16x128xf32> to vector<16x128xbf16>
    %c4_45 = arith.constant 4 : index
    %c0_46 = arith.constant 0 : index
    %c0_47 = arith.constant 0 : index
    %57 = vector.load %arg6[%c4_45, %c0_46, %c0_47] : memref<9x128x32xbf16, #tpu.memory_space<vmem>>, vector<1x128x32xbf16>
    %58 = vector.shape_cast %57 : vector<1x128x32xbf16> to vector<128x32xbf16>
    %cst_48 = arith.constant dense<0.000000e+00> : vector<16x32xf32>
    %59 = tpu.matmul %56, %58, %cst_48 {dimension_numbers = #tpu.dot_dimension_numbers<[1], [0], [0], [1], [0, 0, 1, 1], [], []>} : vector<16x128xbf16>, vector<128x32xbf16>, vector<16x32xf32> -> vector<16x32xf32>
    %60 = arith.addf %52, %59 : vector<16x32xf32>
    %c5 = arith.constant 5 : index
    %c0_49 = arith.constant 0 : index
    %c0_50 = arith.constant 0 : index
    %61 = vector.load %arg7[%c5, %c0_49, %c0_50] : memref<9x16x16xbf16, #tpu.memory_space<vmem>>, vector<1x16x16xbf16>
    %62 = vector.shape_cast %61 : vector<1x16x16xbf16> to vector<16x16xbf16>
    %cst_51 = arith.constant dense<0.000000e+00> : vector<16x128xf32>
    %63 = tpu.matmul %62, %19, %cst_51 {dimension_numbers = #tpu.dot_dimension_numbers<[1], [0], [0], [1], [0, 0, 1, 1], [], []>} : vector<16x16xbf16>, vector<16x128xbf16>, vector<16x128xf32> -> vector<16x128xf32>
    %64 = arith.truncf %63 : vector<16x128xf32> to vector<16x128xbf16>
    %c5_52 = arith.constant 5 : index
    %c0_53 = arith.constant 0 : index
    %c0_54 = arith.constant 0 : index
    %65 = vector.load %arg6[%c5_52, %c0_53, %c0_54] : memref<9x128x32xbf16, #tpu.memory_space<vmem>>, vector<1x128x32xbf16>
    %66 = vector.shape_cast %65 : vector<1x128x32xbf16> to vector<128x32xbf16>
    %cst_55 = arith.constant dense<0.000000e+00> : vector<16x32xf32>
    %67 = tpu.matmul %64, %66, %cst_55 {dimension_numbers = #tpu.dot_dimension_numbers<[1], [0], [0], [1], [0, 0, 1, 1], [], []>} : vector<16x128xbf16>, vector<128x32xbf16>, vector<16x32xf32> -> vector<16x32xf32>
    %68 = arith.addf %60, %67 : vector<16x32xf32>
    %c6 = arith.constant 6 : index
    %c0_56 = arith.constant 0 : index
    %c0_57 = arith.constant 0 : index
    %69 = vector.load %arg7[%c6, %c0_56, %c0_57] : memref<9x16x16xbf16, #tpu.memory_space<vmem>>, vector<1x16x16xbf16>
    %70 = vector.shape_cast %69 : vector<1x16x16xbf16> to vector<16x16xbf16>
    %cst_58 = arith.constant dense<0.000000e+00> : vector<16x128xf32>
    %71 = tpu.matmul %70, %19, %cst_58 {dimension_numbers = #tpu.dot_dimension_numbers<[1], [0], [0], [1], [0, 0, 1, 1], [], []>} : vector<16x16xbf16>, vector<16x128xbf16>, vector<16x128xf32> -> vector<16x128xf32>
    %72 = arith.truncf %71 : vector<16x128xf32> to vector<16x128xbf16>
    %c6_59 = arith.constant 6 : index
    %c0_60 = arith.constant 0 : index
    %c0_61 = arith.constant 0 : index
    %73 = vector.load %arg6[%c6_59, %c0_60, %c0_61] : memref<9x128x32xbf16, #tpu.memory_space<vmem>>, vector<1x128x32xbf16>
    %74 = vector.shape_cast %73 : vector<1x128x32xbf16> to vector<128x32xbf16>
    %cst_62 = arith.constant dense<0.000000e+00> : vector<16x32xf32>
    %75 = tpu.matmul %72, %74, %cst_62 {dimension_numbers = #tpu.dot_dimension_numbers<[1], [0], [0], [1], [0, 0, 1, 1], [], []>} : vector<16x128xbf16>, vector<128x32xbf16>, vector<16x32xf32> -> vector<16x32xf32>
    %76 = arith.addf %68, %75 : vector<16x32xf32>
    %c7 = arith.constant 7 : index
    %c0_63 = arith.constant 0 : index
    %c0_64 = arith.constant 0 : index
    %77 = vector.load %arg7[%c7, %c0_63, %c0_64] : memref<9x16x16xbf16, #tpu.memory_space<vmem>>, vector<1x16x16xbf16>
    %78 = vector.shape_cast %77 : vector<1x16x16xbf16> to vector<16x16xbf16>
    %cst_65 = arith.constant dense<0.000000e+00> : vector<16x128xf32>
    %79 = tpu.matmul %78, %19, %cst_65 {dimension_numbers = #tpu.dot_dimension_numbers<[1], [0], [0], [1], [0, 0, 1, 1], [], []>} : vector<16x16xbf16>, vector<16x128xbf16>, vector<16x128xf32> -> vector<16x128xf32>
    %80 = arith.truncf %79 : vector<16x128xf32> to vector<16x128xbf16>
    %c7_66 = arith.constant 7 : index
    %c0_67 = arith.constant 0 : index
    %c0_68 = arith.constant 0 : index
    %81 = vector.load %arg6[%c7_66, %c0_67, %c0_68] : memref<9x128x32xbf16, #tpu.memory_space<vmem>>, vector<1x128x32xbf16>
    %82 = vector.shape_cast %81 : vector<1x128x32xbf16> to vector<128x32xbf16>
    %cst_69 = arith.constant dense<0.000000e+00> : vector<16x32xf32>
    %83 = tpu.matmul %80, %82, %cst_69 {dimension_numbers = #tpu.dot_dimension_numbers<[1], [0], [0], [1], [0, 0, 1, 1], [], []>} : vector<16x128xbf16>, vector<128x32xbf16>, vector<16x32xf32> -> vector<16x32xf32>
    %84 = arith.addf %76, %83 : vector<16x32xf32>
    %c8 = arith.constant 8 : index
    %c0_70 = arith.constant 0 : index
    %c0_71 = arith.constant 0 : index
    %85 = vector.load %arg7[%c8, %c0_70, %c0_71] : memref<9x16x16xbf16, #tpu.memory_space<vmem>>, vector<1x16x16xbf16>
    %86 = vector.shape_cast %85 : vector<1x16x16xbf16> to vector<16x16xbf16>
    %cst_72 = arith.constant dense<0.000000e+00> : vector<16x128xf32>
    %87 = tpu.matmul %86, %19, %cst_72 {dimension_numbers = #tpu.dot_dimension_numbers<[1], [0], [0], [1], [0, 0, 1, 1], [], []>} : vector<16x16xbf16>, vector<16x128xbf16>, vector<16x128xf32> -> vector<16x128xf32>
    %88 = arith.truncf %87 : vector<16x128xf32> to vector<16x128xbf16>
    %c8_73 = arith.constant 8 : index
    %c0_74 = arith.constant 0 : index
    %c0_75 = arith.constant 0 : index
    %89 = vector.load %arg6[%c8_73, %c0_74, %c0_75] : memref<9x128x32xbf16, #tpu.memory_space<vmem>>, vector<1x128x32xbf16>
    %90 = vector.shape_cast %89 : vector<1x128x32xbf16> to vector<128x32xbf16>
    %cst_76 = arith.constant dense<0.000000e+00> : vector<16x32xf32>
    %91 = tpu.matmul %88, %90, %cst_76 {dimension_numbers = #tpu.dot_dimension_numbers<[1], [0], [0], [1], [0, 0, 1, 1], [], []>} : vector<16x128xbf16>, vector<128x32xbf16>, vector<16x32xf32> -> vector<16x32xf32>
    %92 = arith.addf %84, %91 : vector<16x32xf32>
    %cst_77 = arith.constant 0.000000e+00 : f32
    %93 = vector.broadcast %cst_77 : f32 to vector<16x64xf32>
    %cst_78 = arith.constant 0.000000e+00 : f32
    %94 = vector.broadcast %cst_78 : f32 to vector<16x32xf32>
    %95 = tpu.concatenate %93, %92, %94 in 1 : vector<16x64xf32>, vector<16x32xf32>, vector<16x32xf32> -> vector<16x128xf32>
    %96 = arith.addf %2, %95 : vector<16x128xf32>
    %97 = arith.truncf %96 : vector<16x128xf32> to vector<16x128xbf16>
    %c0_79 = arith.constant 0 : index
    %c0_80 = arith.constant 0 : index
    %c0_81 = arith.constant 0 : index
    %98 = vector.load %arg8[%c0_79, %c0_80, %c0_81] : memref<1x16x128xbf16, #tpu.memory_space<vmem>>, vector<1x16x128xbf16>
    %99 = vector.shape_cast %98 : vector<1x16x128xbf16> to vector<16x128xbf16>
    %100 = vector.shape_cast %97 : vector<16x128xbf16> to vector<1x16x128xbf16>
    tpu.vector_store %arg8[%c0_79, %c0_80, %c0_81], %100 {strides = array<i32>} : memref<1x16x128xbf16, #tpu.memory_space<vmem>>, vector<1x16x128xbf16>,
    return
  }
  func.func @transform_0(%arg0: i32) -> (i32, i32, i32) {
    %c0_i32 = arith.constant 0 : i32
    %c0_i32_0 = arith.constant 0 : i32
    %c0_i32_1 = arith.constant 0 : i32
    return %arg0, %c0_i32, %c0_i32_0 : i32, i32, i32
  }
  func.func @transform_1(%arg0: i32) -> (i32, i32) {
    %c0_i32 = arith.constant 0 : i32
    %c0_i32_0 = arith.constant 0 : i32
    %c0_i32_1 = arith.constant 0 : i32
    return %c0_i32, %c0_i32_0 : i32, i32
  }
  func.func @transform_2(%arg0: i32) -> (i32, i32) {
    %c0_i32 = arith.constant 0 : i32
    %c0_i32_0 = arith.constant 0 : i32
    %c0_i32_1 = arith.constant 0 : i32
    return %c0_i32, %c0_i32_0 : i32, i32
  }
  func.func @transform_3(%arg0: i32) -> (i32, i32) {
    %c0_i32 = arith.constant 0 : i32
    %c0_i32_0 = arith.constant 0 : i32
    %c0_i32_1 = arith.constant 0 : i32
    return %c0_i32, %c0_i32_0 : i32, i32
  }
  func.func @transform_4(%arg0: i32) -> (i32, i32) {
    %c0_i32 = arith.constant 0 : i32
    %c0_i32_0 = arith.constant 0 : i32
    %c0_i32_1 = arith.constant 0 : i32
    return %c0_i32, %c0_i32_0 : i32, i32
  }
  func.func @transform_5(%arg0: i32) -> (i32, i32, i32) {
    %c0_i32 = arith.constant 0 : i32
    %c0_i32_0 = arith.constant 0 : i32
    %c0_i32_1 = arith.constant 0 : i32
    %c0_i32_2 = arith.constant 0 : i32
    return %c0_i32, %c0_i32_0, %c0_i32_1 : i32, i32, i32
  }
  func.func @transform_6(%arg0: i32) -> (i32, i32, i32) {
    %c0_i32 = arith.constant 0 : i32
    %c0_i32_0 = arith.constant 0 : i32
    %c0_i32_1 = arith.constant 0 : i32
    %c0_i32_2 = arith.constant 0 : i32
    return %c0_i32, %c0_i32_0, %c0_i32_1 : i32, i32, i32
  }
  func.func @transform_7(%arg0: i32) -> (i32, i32, i32) {
    %c0_i32 = arith.constant 0 : i32
    %c0_i32_0 = arith.constant 0 : i32
    %c0_i32_1 = arith.constant 0 : i32
    return %arg0, %c0_i32, %c0_i32_0 : i32, i32, i32
  }
}

module attributes {stable_mosaic.version = 11 : i64} {
  func.func @_dense_layer_kernel(%arg0: i32, %arg1: memref<1x16x128xbf16, #tpu.memory_space<vmem>>, %arg2: memref<1x128xf32, #tpu.memory_space<vmem>>, %arg3: memref<1x128xf32, #tpu.memory_space<vmem>>, %arg4: memref<128x128xbf16, #tpu.memory_space<vmem>>, %arg5: memref<1x128xf32, #tpu.memory_space<vmem>>, %arg6: memref<9x128x32xbf16, #tpu.memory_space<vmem>>, %arg7: memref<9x16x16xbf16, #tpu.memory_space<vmem>>, %arg8: memref<1x16x128xbf16, #tpu.memory_space<vmem>>) attributes {dimension_semantics = [#tpu.dimension_semantics<parallel>], iteration_bounds = array<i64: 2>, scalar_prefetch = 0 : i64, scratch_operands = 0 : i64, tpu.core_type = #tpu.core_type<tc>, window_params = [{transform_indices = @transform_0, window_bounds = array<i64: 1, 16, 128>}, {pipeline_mode = #tpu.pipeline_mode<synchronous>, transform_indices = @transform_1, window_bounds = array<i64: 1, 128>}, {pipeline_mode = #tpu.pipeline_mode<synchronous>, transform_indices = @transform_2, window_bounds = array<i64: 1, 128>}, {pipeline_mode = #tpu.pipeline_mode<synchronous>, transform_indices = @transform_3, window_bounds = array<i64: 128, 128>}, {pipeline_mode = #tpu.pipeline_mode<synchronous>, transform_indices = @transform_4, window_bounds = array<i64: 1, 128>}, {pipeline_mode = #tpu.pipeline_mode<synchronous>, transform_indices = @transform_5, window_bounds = array<i64: 9, 128, 32>}, {pipeline_mode = #tpu.pipeline_mode<synchronous>, transform_indices = @transform_6, window_bounds = array<i64: 9, 16, 16>}, {transform_indices = @transform_7, window_bounds = array<i64: 1, 16, 128>}]} {
    %c0 = arith.constant 0 : index
    %c0_0 = arith.constant 0 : index
    %c0_1 = arith.constant 0 : index
    %0 = vector.load %arg1[%c0, %c0_0, %c0_1] : memref<1x16x128xbf16, #tpu.memory_space<vmem>>, vector<1x16x128xbf16>
    %1 = vector.shape_cast %0 : vector<1x16x128xbf16> to vector<16x128xbf16>
    %2 = arith.extf %1 : vector<16x128xbf16> to vector<16x128xf32>
    %c0_2 = arith.constant 0 : index
    %c0_3 = arith.constant 0 : index
    %3 = vector.load %arg2[%c0_2, %c0_3] : memref<1x128xf32, #tpu.memory_space<vmem>>, vector<1x128xf32>
    %4 = vector.broadcast %3 : vector<1x128xf32> to vector<16x128xf32>
    %5 = arith.mulf %2, %4 : vector<16x128xf32>
    %c0_4 = arith.constant 0 : index
    %c0_5 = arith.constant 0 : index
    %6 = vector.load %arg3[%c0_4, %c0_5] : memref<1x128xf32, #tpu.memory_space<vmem>>, vector<1x128xf32>
    %7 = vector.broadcast %6 : vector<1x128xf32> to vector<16x128xf32>
    %8 = arith.addf %5, %7 : vector<16x128xf32>
    %cst = arith.constant 0.000000e+00 : f32
    %9 = vector.broadcast %cst : f32 to vector<16x128xf32>
    %10 = arith.maximumf %8, %9 : vector<16x128xf32>
    %11 = arith.truncf %10 : vector<16x128xf32> to vector<16x128xbf16>
    %c0_6 = arith.constant 0 : index
    %c0_7 = arith.constant 0 : index
    %12 = vector.load %arg4[%c0_6, %c0_7] : memref<128x128xbf16, #tpu.memory_space<vmem>>, vector<128x128xbf16>
    %cst_8 = arith.constant dense<0.000000e+00> : vector<16x128xf32>
    %13 = tpu.matmul %11, %12, %cst_8 {dimension_numbers = #tpu.dot_dimension_numbers<[1], [0], [0], [1], [0, 0, 1, 1], [], []>} : vector<16x128xbf16>, vector<128x128xbf16>, vector<16x128xf32> -> vector<16x128xf32>
    %c0_9 = arith.constant 0 : index
    %c0_10 = arith.constant 0 : index
    %14 = vector.load %arg5[%c0_9, %c0_10] : memref<1x128xf32, #tpu.memory_space<vmem>>, vector<1x128xf32>
    %15 = vector.broadcast %14 : vector<1x128xf32> to vector<16x128xf32>
    %16 = arith.addf %13, %15 : vector<16x128xf32>
    %cst_11 = arith.constant 0.000000e+00 : f32
    %17 = vector.broadcast %cst_11 : f32 to vector<16x128xf32>
    %18 = arith.maximumf %16, %17 : vector<16x128xf32>
    %19 = arith.truncf %18 : vector<16x128xf32> to vector<16x128xbf16>
    %cst_12 = arith.constant 0.000000e+00 : f32
    %20 = vector.broadcast %cst_12 : f32 to vector<16x32xf32>
    %c0_13 = arith.constant 0 : index
    %c0_14 = arith.constant 0 : index
    %c0_15 = arith.constant 0 : index
    %21 = vector.load %arg7[%c0_13, %c0_14, %c0_15] : memref<9x16x16xbf16, #tpu.memory_space<vmem>>, vector<1x16x16xbf16>
    %22 = vector.shape_cast %21 : vector<1x16x16xbf16> to vector<16x16xbf16>
    %cst_16 = arith.constant dense<0.000000e+00> : vector<16x128xf32>
    %23 = tpu.matmul %22, %19, %cst_16 {dimension_numbers = #tpu.dot_dimension_numbers<[1], [0], [0], [1], [0, 0, 1, 1], [], []>} : vector<16x16xbf16>, vector<16x128xbf16>, vector<16x128xf32> -> vector<16x128xf32>
    %24 = arith.truncf %23 : vector<16x128xf32> to vector<16x128xbf16>
    %c0_17 = arith.constant 0 : index
    %c0_18 = arith.constant 0 : index
    %c0_19 = arith.constant 0 : index
    %25 = vector.load %arg6[%c0_17, %c0_18, %c0_19] : memref<9x128x32xbf16, #tpu.memory_space<vmem>>, vector<1x128x32xbf16>
    %26 = vector.shape_cast %25 : vector<1x128x32xbf16> to vector<128x32xbf16>
    %cst_20 = arith.constant dense<0.000000e+00> : vector<16x32xf32>
    %27 = tpu.matmul %24, %26, %cst_20 {dimension_numbers = #tpu.dot_dimension_numbers<[1], [0], [0], [1], [0, 0, 1, 1], [], []>} : vector<16x128xbf16>, vector<128x32xbf16>, vector<16x32xf32> -> vector<16x32xf32>
    %28 = arith.addf %20, %27 : vector<16x32xf32>
    %c1 = arith.constant 1 : index
    %c0_21 = arith.constant 0 : index
    %c0_22 = arith.constant 0 : index
    %29 = vector.load %arg7[%c1, %c0_21, %c0_22] : memref<9x16x16xbf16, #tpu.memory_space<vmem>>, vector<1x16x16xbf16>
    %30 = vector.shape_cast %29 : vector<1x16x16xbf16> to vector<16x16xbf16>
    %cst_23 = arith.constant dense<0.000000e+00> : vector<16x128xf32>
    %31 = tpu.matmul %30, %19, %cst_23 {dimension_numbers = #tpu.dot_dimension_numbers<[1], [0], [0], [1], [0, 0, 1, 1], [], []>} : vector<16x16xbf16>, vector<16x128xbf16>, vector<16x128xf32> -> vector<16x128xf32>
    %32 = arith.truncf %31 : vector<16x128xf32> to vector<16x128xbf16>
    %c1_24 = arith.constant 1 : index
    %c0_25 = arith.constant 0 : index
    %c0_26 = arith.constant 0 : index
    %33 = vector.load %arg6[%c1_24, %c0_25, %c0_26] : memref<9x128x32xbf16, #tpu.memory_space<vmem>>, vector<1x128x32xbf16>
    %34 = vector.shape_cast %33 : vector<1x128x32xbf16> to vector<128x32xbf16>
    %cst_27 = arith.constant dense<0.000000e+00> : vector<16x32xf32>
    %35 = tpu.matmul %32, %34, %cst_27 {dimension_numbers = #tpu.dot_dimension_numbers<[1], [0], [0], [1], [0, 0, 1, 1], [], []>} : vector<16x128xbf16>, vector<128x32xbf16>, vector<16x32xf32> -> vector<16x32xf32>
    %36 = arith.addf %28, %35 : vector<16x32xf32>
    %c2 = arith.constant 2 : index
    %c0_28 = arith.constant 0 : index
    %c0_29 = arith.constant 0 : index
    %37 = vector.load %arg7[%c2, %c0_28, %c0_29] : memref<9x16x16xbf16, #tpu.memory_space<vmem>>, vector<1x16x16xbf16>
    %38 = vector.shape_cast %37 : vector<1x16x16xbf16> to vector<16x16xbf16>
    %cst_30 = arith.constant dense<0.000000e+00> : vector<16x128xf32>
    %39 = tpu.matmul %38, %19, %cst_30 {dimension_numbers = #tpu.dot_dimension_numbers<[1], [0], [0], [1], [0, 0, 1, 1], [], []>} : vector<16x16xbf16>, vector<16x128xbf16>, vector<16x128xf32> -> vector<16x128xf32>
    %40 = arith.truncf %39 : vector<16x128xf32> to vector<16x128xbf16>
    %c2_31 = arith.constant 2 : index
    %c0_32 = arith.constant 0 : index
    %c0_33 = arith.constant 0 : index
    %41 = vector.load %arg6[%c2_31, %c0_32, %c0_33] : memref<9x128x32xbf16, #tpu.memory_space<vmem>>, vector<1x128x32xbf16>
    %42 = vector.shape_cast %41 : vector<1x128x32xbf16> to vector<128x32xbf16>
    %cst_34 = arith.constant dense<0.000000e+00> : vector<16x32xf32>
    %43 = tpu.matmul %40, %42, %cst_34 {dimension_numbers = #tpu.dot_dimension_numbers<[1], [0], [0], [1], [0, 0, 1, 1], [], []>} : vector<16x128xbf16>, vector<128x32xbf16>, vector<16x32xf32> -> vector<16x32xf32>
    %44 = arith.addf %36, %43 : vector<16x32xf32>
    %c3 = arith.constant 3 : index
    %c0_35 = arith.constant 0 : index
    %c0_36 = arith.constant 0 : index
    %45 = vector.load %arg7[%c3, %c0_35, %c0_36] : memref<9x16x16xbf16, #tpu.memory_space<vmem>>, vector<1x16x16xbf16>
    %46 = vector.shape_cast %45 : vector<1x16x16xbf16> to vector<16x16xbf16>
    %cst_37 = arith.constant dense<0.000000e+00> : vector<16x128xf32>
    %47 = tpu.matmul %46, %19, %cst_37 {dimension_numbers = #tpu.dot_dimension_numbers<[1], [0], [0], [1], [0, 0, 1, 1], [], []>} : vector<16x16xbf16>, vector<16x128xbf16>, vector<16x128xf32> -> vector<16x128xf32>
    %48 = arith.truncf %47 : vector<16x128xf32> to vector<16x128xbf16>
    %c3_38 = arith.constant 3 : index
    %c0_39 = arith.constant 0 : index
    %c0_40 = arith.constant 0 : index
    %49 = vector.load %arg6[%c3_38, %c0_39, %c0_40] : memref<9x128x32xbf16, #tpu.memory_space<vmem>>, vector<1x128x32xbf16>
    %50 = vector.shape_cast %49 : vector<1x128x32xbf16> to vector<128x32xbf16>
    %cst_41 = arith.constant dense<0.000000e+00> : vector<16x32xf32>
    %51 = tpu.matmul %48, %50, %cst_41 {dimension_numbers = #tpu.dot_dimension_numbers<[1], [0], [0], [1], [0, 0, 1, 1], [], []>} : vector<16x128xbf16>, vector<128x32xbf16>, vector<16x32xf32> -> vector<16x32xf32>
    %52 = arith.addf %44, %51 : vector<16x32xf32>
    %c4 = arith.constant 4 : index
    %c0_42 = arith.constant 0 : index
    %c0_43 = arith.constant 0 : index
    %53 = vector.load %arg7[%c4, %c0_42, %c0_43] : memref<9x16x16xbf16, #tpu.memory_space<vmem>>, vector<1x16x16xbf16>
    %54 = vector.shape_cast %53 : vector<1x16x16xbf16> to vector<16x16xbf16>
    %cst_44 = arith.constant dense<0.000000e+00> : vector<16x128xf32>
    %55 = tpu.matmul %54, %19, %cst_44 {dimension_numbers = #tpu.dot_dimension_numbers<[1], [0], [0], [1], [0, 0, 1, 1], [], []>} : vector<16x16xbf16>, vector<16x128xbf16>, vector<16x128xf32> -> vector<16x128xf32>
    %56 = arith.truncf %55 : vector<16x128xf32> to vector<16x128xbf16>
    %c4_45 = arith.constant 4 : index
    %c0_46 = arith.constant 0 : index
    %c0_47 = arith.constant 0 : index
    %57 = vector.load %arg6[%c4_45, %c0_46, %c0_47] : memref<9x128x32xbf16, #tpu.memory_space<vmem>>, vector<1x128x32xbf16>
    %58 = vector.shape_cast %57 : vector<1x128x32xbf16> to vector<128x32xbf16>
    %cst_48 = arith.constant dense<0.000000e+00> : vector<16x32xf32>
    %59 = tpu.matmul %56, %58, %cst_48 {dimension_numbers = #tpu.dot_dimension_numbers<[1], [0], [0], [1], [0, 0, 1, 1], [], []>} : vector<16x128xbf16>, vector<128x32xbf16>, vector<16x32xf32> -> vector<16x32xf32>
    %60 = arith.addf %52, %59 : vector<16x32xf32>
    %c5 = arith.constant 5 : index
    %c0_49 = arith.constant 0 : index
    %c0_50 = arith.constant 0 : index
    %61 = vector.load %arg7[%c5, %c0_49, %c0_50] : memref<9x16x16xbf16, #tpu.memory_space<vmem>>, vector<1x16x16xbf16>
    %62 = vector.shape_cast %61 : vector<1x16x16xbf16> to vector<16x16xbf16>
    %cst_51 = arith.constant dense<0.000000e+00> : vector<16x128xf32>
    %63 = tpu.matmul %62, %19, %cst_51 {dimension_numbers = #tpu.dot_dimension_numbers<[1], [0], [0], [1], [0, 0, 1, 1], [], []>} : vector<16x16xbf16>, vector<16x128xbf16>, vector<16x128xf32> -> vector<16x128xf32>
    %64 = arith.truncf %63 : vector<16x128xf32> to vector<16x128xbf16>
    %c5_52 = arith.constant 5 : index
    %c0_53 = arith.constant 0 : index
    %c0_54 = arith.constant 0 : index
    %65 = vector.load %arg6[%c5_52, %c0_53, %c0_54] : memref<9x128x32xbf16, #tpu.memory_space<vmem>>, vector<1x128x32xbf16>
    %66 = vector.shape_cast %65 : vector<1x128x32xbf16> to vector<128x32xbf16>
    %cst_55 = arith.constant dense<0.000000e+00> : vector<16x32xf32>
    %67 = tpu.matmul %64, %66, %cst_55 {dimension_numbers = #tpu.dot_dimension_numbers<[1], [0], [0], [1], [0, 0, 1, 1], [], []>} : vector<16x128xbf16>, vector<128x32xbf16>, vector<16x32xf32> -> vector<16x32xf32>
    %68 = arith.addf %60, %67 : vector<16x32xf32>
    %c6 = arith.constant 6 : index
    %c0_56 = arith.constant 0 : index
    %c0_57 = arith.constant 0 : index
    %69 = vector.load %arg7[%c6, %c0_56, %c0_57] : memref<9x16x16xbf16, #tpu.memory_space<vmem>>, vector<1x16x16xbf16>
    %70 = vector.shape_cast %69 : vector<1x16x16xbf16> to vector<16x16xbf16>
    %cst_58 = arith.constant dense<0.000000e+00> : vector<16x128xf32>
    %71 = tpu.matmul %70, %19, %cst_58 {dimension_numbers = #tpu.dot_dimension_numbers<[1], [0], [0], [1], [0, 0, 1, 1], [], []>} : vector<16x16xbf16>, vector<16x128xbf16>, vector<16x128xf32> -> vector<16x128xf32>
    %72 = arith.truncf %71 : vector<16x128xf32> to vector<16x128xbf16>
    %c6_59 = arith.constant 6 : index
    %c0_60 = arith.constant 0 : index
    %c0_61 = arith.constant 0 : index
    %73 = vector.load %arg6[%c6_59, %c0_60, %c0_61] : memref<9x128x32xbf16, #tpu.memory_space<vmem>>, vector<1x128x32xbf16>
    %74 = vector.shape_cast %73 : vector<1x128x32xbf16> to vector<128x32xbf16>
    %cst_62 = arith.constant dense<0.000000e+00> : vector<16x32xf32>
    %75 = tpu.matmul %72, %74, %cst_62 {dimension_numbers = #tpu.dot_dimension_numbers<[1], [0], [0], [1], [0, 0, 1, 1], [], []>} : vector<16x128xbf16>, vector<128x32xbf16>, vector<16x32xf32> -> vector<16x32xf32>
    %76 = arith.addf %68, %75 : vector<16x32xf32>
    %c7 = arith.constant 7 : index
    %c0_63 = arith.constant 0 : index
    %c0_64 = arith.constant 0 : index
    %77 = vector.load %arg7[%c7, %c0_63, %c0_64] : memref<9x16x16xbf16, #tpu.memory_space<vmem>>, vector<1x16x16xbf16>
    %78 = vector.shape_cast %77 : vector<1x16x16xbf16> to vector<16x16xbf16>
    %cst_65 = arith.constant dense<0.000000e+00> : vector<16x128xf32>
    %79 = tpu.matmul %78, %19, %cst_65 {dimension_numbers = #tpu.dot_dimension_numbers<[1], [0], [0], [1], [0, 0, 1, 1], [], []>} : vector<16x16xbf16>, vector<16x128xbf16>, vector<16x128xf32> -> vector<16x128xf32>
    %80 = arith.truncf %79 : vector<16x128xf32> to vector<16x128xbf16>
    %c7_66 = arith.constant 7 : index
    %c0_67 = arith.constant 0 : index
    %c0_68 = arith.constant 0 : index
    %81 = vector.load %arg6[%c7_66, %c0_67, %c0_68] : memref<9x128x32xbf16, #tpu.memory_space<vmem>>, vector<1x128x32xbf16>
    %82 = vector.shape_cast %81 : vector<1x128x32xbf16> to vector<128x32xbf16>
    %cst_69 = arith.constant dense<0.000000e+00> : vector<16x32xf32>
    %83 = tpu.matmul %80, %82, %cst_69 {dimension_numbers = #tpu.dot_dimension_numbers<[1], [0], [0], [1], [0, 0, 1, 1], [], []>} : vector<16x128xbf16>, vector<128x32xbf16>, vector<16x32xf32> -> vector<16x32xf32>
    %84 = arith.addf %76, %83 : vector<16x32xf32>
    %c8 = arith.constant 8 : index
    %c0_70 = arith.constant 0 : index
    %c0_71 = arith.constant 0 : index
    %85 = vector.load %arg7[%c8, %c0_70, %c0_71] : memref<9x16x16xbf16, #tpu.memory_space<vmem>>, vector<1x16x16xbf16>
    %86 = vector.shape_cast %85 : vector<1x16x16xbf16> to vector<16x16xbf16>
    %cst_72 = arith.constant dense<0.000000e+00> : vector<16x128xf32>
    %87 = tpu.matmul %86, %19, %cst_72 {dimension_numbers = #tpu.dot_dimension_numbers<[1], [0], [0], [1], [0, 0, 1, 1], [], []>} : vector<16x16xbf16>, vector<16x128xbf16>, vector<16x128xf32> -> vector<16x128xf32>
    %88 = arith.truncf %87 : vector<16x128xf32> to vector<16x128xbf16>
    %c8_73 = arith.constant 8 : index
    %c0_74 = arith.constant 0 : index
    %c0_75 = arith.constant 0 : index
    %89 = vector.load %arg6[%c8_73, %c0_74, %c0_75] : memref<9x128x32xbf16, #tpu.memory_space<vmem>>, vector<1x128x32xbf16>
    %90 = vector.shape_cast %89 : vector<1x128x32xbf16> to vector<128x32xbf16>
    %cst_76 = arith.constant dense<0.000000e+00> : vector<16x32xf32>
    %91 = tpu.matmul %88, %90, %cst_76 {dimension_numbers = #tpu.dot_dimension_numbers<[1], [0], [0], [1], [0, 0, 1, 1], [], []>} : vector<16x128xbf16>, vector<128x32xbf16>, vector<16x32xf32> -> vector<16x32xf32>
    %92 = arith.addf %84, %91 : vector<16x32xf32>
    %cst_77 = arith.constant 0.000000e+00 : f32
    %93 = vector.broadcast %cst_77 : f32 to vector<16x96xf32>
    %94 = tpu.concatenate %93, %92 in 1 : vector<16x96xf32>, vector<16x32xf32> -> vector<16x128xf32>
    %95 = arith.addf %2, %94 : vector<16x128xf32>
    %96 = arith.truncf %95 : vector<16x128xf32> to vector<16x128xbf16>
    %c0_78 = arith.constant 0 : index
    %c0_79 = arith.constant 0 : index
    %c0_80 = arith.constant 0 : index
    %97 = vector.load %arg8[%c0_78, %c0_79, %c0_80] : memref<1x16x128xbf16, #tpu.memory_space<vmem>>, vector<1x16x128xbf16>
    %98 = vector.shape_cast %97 : vector<1x16x128xbf16> to vector<16x128xbf16>
    %99 = vector.shape_cast %96 : vector<16x128xbf16> to vector<1x16x128xbf16>
    tpu.vector_store %arg8[%c0_78, %c0_79, %c0_80], %99 {strides = array<i32>} : memref<1x16x128xbf16, #tpu.memory_space<vmem>>, vector<1x16x128xbf16>,
    return
  }
  func.func @transform_0(%arg0: i32) -> (i32, i32, i32) {
    %c0_i32 = arith.constant 0 : i32
    %c0_i32_0 = arith.constant 0 : i32
    %c0_i32_1 = arith.constant 0 : i32
    return %arg0, %c0_i32, %c0_i32_0 : i32, i32, i32
  }
  func.func @transform_1(%arg0: i32) -> (i32, i32) {
    %c0_i32 = arith.constant 0 : i32
    %c0_i32_0 = arith.constant 0 : i32
    %c0_i32_1 = arith.constant 0 : i32
    return %c0_i32, %c0_i32_0 : i32, i32
  }
  func.func @transform_2(%arg0: i32) -> (i32, i32) {
    %c0_i32 = arith.constant 0 : i32
    %c0_i32_0 = arith.constant 0 : i32
    %c0_i32_1 = arith.constant 0 : i32
    return %c0_i32, %c0_i32_0 : i32, i32
  }
  func.func @transform_3(%arg0: i32) -> (i32, i32) {
    %c0_i32 = arith.constant 0 : i32
    %c0_i32_0 = arith.constant 0 : i32
    %c0_i32_1 = arith.constant 0 : i32
    return %c0_i32, %c0_i32_0 : i32, i32
  }
  func.func @transform_4(%arg0: i32) -> (i32, i32) {
    %c0_i32 = arith.constant 0 : i32
    %c0_i32_0 = arith.constant 0 : i32
    %c0_i32_1 = arith.constant 0 : i32
    return %c0_i32, %c0_i32_0 : i32, i32
  }
  func.func @transform_5(%arg0: i32) -> (i32, i32, i32) {
    %c0_i32 = arith.constant 0 : i32
    %c0_i32_0 = arith.constant 0 : i32
    %c0_i32_1 = arith.constant 0 : i32
    %c0_i32_2 = arith.constant 0 : i32
    return %c0_i32, %c0_i32_0, %c0_i32_1 : i32, i32, i32
  }
  func.func @transform_6(%arg0: i32) -> (i32, i32, i32) {
    %c0_i32 = arith.constant 0 : i32
    %c0_i32_0 = arith.constant 0 : i32
    %c0_i32_1 = arith.constant 0 : i32
    %c0_i32_2 = arith.constant 0 : i32
    return %c0_i32, %c0_i32_0, %c0_i32_1 : i32, i32, i32
  }
  func.func @transform_7(%arg0: i32) -> (i32, i32, i32) {
    %c0_i32 = arith.constant 0 : i32
    %c0_i32_0 = arith.constant 0 : i32
    %c0_i32_1 = arith.constant 0 : i32
    return %arg0, %c0_i32, %c0_i32_0 : i32, i32, i32
  }
}

module attributes {stable_mosaic.version = 11 : i64} {
  func.func @_global_pool_bn_kernel(%arg0: i32, %arg1: memref<1x16x128xbf16, #tpu.memory_space<vmem>>, %arg2: memref<1x128xf32, #tpu.memory_space<vmem>>, %arg3: memref<1x128xf32, #tpu.memory_space<vmem>>, %arg4: memref<1x1x128xf32, #tpu.memory_space<vmem>>) attributes {dimension_semantics = [#tpu.dimension_semantics<parallel>], iteration_bounds = array<i64: 2>, scalar_prefetch = 0 : i64, scratch_operands = 0 : i64, tpu.core_type = #tpu.core_type<tc>, window_params = [{transform_indices = @transform_0, window_bounds = array<i64: 1, 16, 128>}, {pipeline_mode = #tpu.pipeline_mode<synchronous>, transform_indices = @transform_1, window_bounds = array<i64: 1, 128>}, {pipeline_mode = #tpu.pipeline_mode<synchronous>, transform_indices = @transform_2, window_bounds = array<i64: 1, 128>}, {transform_indices = @transform_3, window_bounds = array<i64: 1, 1, 128>}]} {
    %c0 = arith.constant 0 : index
    %c0_0 = arith.constant 0 : index
    %c0_1 = arith.constant 0 : index
    %0 = vector.load %arg1[%c0, %c0_0, %c0_1] : memref<1x16x128xbf16, #tpu.memory_space<vmem>>, vector<1x16x128xbf16>
    %1 = vector.shape_cast %0 : vector<1x16x128xbf16> to vector<16x128xbf16>
    %2 = arith.extf %1 : vector<16x128xbf16> to vector<16x128xf32>
    %cst = arith.constant dense<0.000000e+00> : vector<128xf32>
    %3 = vector.multi_reduction <add>, %2, %cst [0] : vector<16x128xf32> to vector<128xf32>
    %4 = vector.shape_cast %3 : vector<128xf32> to vector<1x128xf32>
    %cst_2 = arith.constant 1.600000e+01 : f32
    %5 = vector.broadcast %cst_2 : f32 to vector<1x128xf32>
    %6 = arith.divf %4, %5 : vector<1x128xf32>
    %c0_3 = arith.constant 0 : index
    %c0_4 = arith.constant 0 : index
    %7 = vector.load %arg2[%c0_3, %c0_4] : memref<1x128xf32, #tpu.memory_space<vmem>>, vector<1x128xf32>
    %8 = arith.mulf %6, %7 : vector<1x128xf32>
    %c0_5 = arith.constant 0 : index
    %c0_6 = arith.constant 0 : index
    %9 = vector.load %arg3[%c0_5, %c0_6] : memref<1x128xf32, #tpu.memory_space<vmem>>, vector<1x128xf32>
    %10 = arith.addf %8, %9 : vector<1x128xf32>
    %c0_7 = arith.constant 0 : index
    %c0_8 = arith.constant 0 : index
    %c0_9 = arith.constant 0 : index
    %11 = vector.load %arg4[%c0_7, %c0_8, %c0_9] : memref<1x1x128xf32, #tpu.memory_space<vmem>>, vector<1x1x128xf32>
    %12 = vector.shape_cast %11 : vector<1x1x128xf32> to vector<1x128xf32>
    %13 = vector.shape_cast %10 : vector<1x128xf32> to vector<1x1x128xf32>
    tpu.vector_store %arg4[%c0_7, %c0_8, %c0_9], %13 {strides = array<i32>} : memref<1x1x128xf32, #tpu.memory_space<vmem>>, vector<1x1x128xf32>,
    return
  }
  func.func @transform_0(%arg0: i32) -> (i32, i32, i32) {
    %c0_i32 = arith.constant 0 : i32
    %c0_i32_0 = arith.constant 0 : i32
    %c0_i32_1 = arith.constant 0 : i32
    return %arg0, %c0_i32, %c0_i32_0 : i32, i32, i32
  }
  func.func @transform_1(%arg0: i32) -> (i32, i32) {
    %c0_i32 = arith.constant 0 : i32
    %c0_i32_0 = arith.constant 0 : i32
    %c0_i32_1 = arith.constant 0 : i32
    return %c0_i32, %c0_i32_0 : i32, i32
  }
  func.func @transform_2(%arg0: i32) -> (i32, i32) {
    %c0_i32 = arith.constant 0 : i32
    %c0_i32_0 = arith.constant 0 : i32
    %c0_i32_1 = arith.constant 0 : i32
    return %c0_i32, %c0_i32_0 : i32, i32
  }
  func.func @transform_3(%arg0: i32) -> (i32, i32, i32) {
    %c0_i32 = arith.constant 0 : i32
    %c0_i32_0 = arith.constant 0 : i32
    %c0_i32_1 = arith.constant 0 : i32
    return %arg0, %c0_i32, %c0_i32_0 : i32, i32, i32
  }
}

</mosaic_0001>

<bundles_post_ra>
// kernel: densenet_backbone_forward.7
= control target key start
LH: loop header
LB: loop body
LE: loop exit
PB: predicated region body
PF: predicated region fallthrough
CT: control target
= control target key end

     0   :  { %s1363_s12 = smov 0   ;;  %s1521_s0 = inlined_call_operand.vmem [shape: bf16[512,256], index: 0, kind: input, shape index: {}]   ;;  %s1522_s1 = inlined_call_operand.vmem [shape: bf16[256,128], index: 1, kind: input, shape index: {}]   ;;  %s1523_s2 = inlined_call_operand.vmem [shape: f32[1,128], index: 2, kind: input, shape index: {}]   ;;  %s1524_s3 = inlined_call_operand.vmem [shape: bf16[512,128], index: 3, kind: output, shape index: {}]  }
   0x1 LB: > { %s914_s13 = sadd.s32 4294967295, %s1341_s12   ;;  %p918_p0 = scmp.ge.s32.totalorder %s1341_s12, 1  ;;  %s1341_s12 = sphi %s1363_s12, %s13_s12  }
   0x2   : > { %p139_p1 = scmp.lt.s32.totalorder %s1341_s12, 3 }
   0x4   : > { %p140_p2 = pnand %p918_p0, %p139_p1 }
   0x5   : > { %v1271_v0 = vld [vmem:[%s1522_s1 + $0x40] sm:$0xff] (!%p140_p2)   ;;  %s919_s16 = sshll.u32 (!%p140_p2), %s914_s13, 5  ;;  %v1273_v2 = vld [vmem:[%s1522_s1 + $0x48] sm:$0xff] (!%p140_p2)   ;;  %v1275_v4 = vld [vmem:[%s1522_s1 + $0x50] sm:$0xff] (!%p140_p2)  }
   0x6   : > { %143 = sbr.rel (%p140_p2) target bundleno = 319 (0x13f), region = 32  ;;  %v1272_v1 = vld [vmem:[%s1522_s1] sm:$0xff] (!%p140_p2)   ;;  %1135 = vmatprep.subr.bf16.mxu0 (!%p140_p2), %v1271_v0  ;;  %1247 = vmatprep.subr.bf16.mxu1 (!%p140_p2), %v1271_v0  ;;  %v1274_v3 = vld [vmem:[%s1522_s1 + $0x8] sm:$0xff] (!%p140_p2)   ;;  %p165_p3 = scmp.lt.s32.totalorder (!%p140_p2), %s919_s16, 63  ;;  %v1276_v5 = vld [vmem:[%s1522_s1 + $0x10] sm:$0xff] (!%p140_p2)  }
   0x7   : > { %1136 = vmatpush3.bf16.msra.mxu0 (!%p140_p2), %v1272_v1  ;;  %1255 = vmatpush3.bf16.msra.mxu1 (!%p140_p2), %v1272_v1  ;;  %v1277_v6 = vld [vmem:[%s1522_s1 + $0x58] sm:$0xff] (!%p140_p2)   ;;  %v1279_v8 = vld [vmem:[%s1522_s1 + $0x60] sm:$0xff] (!%p140_p2)   ;;  %v1281_v10 = vld [vmem:[%s1522_s1 + $0x68] sm:$0xff] (!%p140_p2)  }
   0x8   : > { %1137 = vmatprep.subr.bf16.mxu0 (!%p140_p2), %v1273_v2  ;;  %1248 = vmatprep.subr.bf16.mxu1 (!%p140_p2), %v1273_v2  ;;  %v1278_v7 = vld [vmem:[%s1522_s1 + $0x18] sm:$0xff] (!%p140_p2)   ;;  %v1280_v9 = vld [vmem:[%s1522_s1 + $0x20] sm:$0xff] (!%p140_p2)   ;;  %v1282_v13 = vld [vmem:[%s1522_s1 + $0x28] sm:$0xff] (!%p140_p2)  }
   0x9   : > { %v1283_v14 = vld [vmem:[%s1522_s1 + $0x70] sm:$0xff] (!%p140_p2)   ;;  %v1285_v16 = vld [vmem:[%s1522_s1 + $0x78] sm:$0xff] (!%p140_p2)   ;;  %v1462_v50 = vld [vmem:[%s1523_s2] ss:$0 sm:$0xff] (!%p140_p2) }
   0xa   : > { %v1284_v15 = vld [vmem:[%s1522_s1 + $0x30] sm:$0xff] (!%p140_p2)   ;;  %v1286_v17 = vld [vmem:[%s1522_s1 + $0x38] sm:$0xff] (!%p140_p2)  }
   0xb   : > { %1138 = vmatpush3.bf16.msra.mxu0 (!%p140_p2), %v1274_v3  ;;  %1256 = vmatpush3.bf16.msra.mxu1 (!%p140_p2), %v1274_v3 }
   0xc   : > { %1139 = vmatprep.subr.bf16.mxu0 (!%p140_p2), %v1275_v4  ;;  %1249 = vmatprep.subr.bf16.mxu1 (!%p140_p2), %v1275_v4 }
   0xd   : > { %s1526_s16 = smov (!%p165_p3, %s919_s16), 63 }
   0xe   : > { %s1007_s4 = sshll.u32 %s1526_s16, 3  ;;  %s923_s28 = sshll.u32 %s1526_s16, 2 }
   0xf   : > { %1140 = vmatpush3.bf16.msra.mxu0 %v1276_v5  ;;  %1257 = vmatpush3.bf16.msra.mxu1 %v1276_v5  ;;  %s1404_s9 = scalar_lea.vmem %s1521_s0, %s1007_s4  ;;  %s1472_s4 = scalar_lea.vmem %s1524_s3, %s923_s28 }
  0x10   : > { %1141 = vmatprep.subr.bf16.mxu0 %v1277_v6  ;;  %1250 = vmatprep.subr.bf16.mxu1 %v1277_v6  ;;  %v1289_v11 = vld [vmem:[%s1404_s9 + $0x4] ss:$8 sps:$4 sm:$0xff]   ;;  %v1287_v18 = vld [vmem:[%s1404_s9] ss:$8 sps:$4 sm:$0xff]   ;;  %v1293_v20 = vld [vmem:[%s1404_s9 + $0x14] ss:$8 sps:$4 sm:$0xff]  }
  0x11   : > { %v1292_v12 = vld [vmem:[%s1404_s9 + $0x84] ss:$8 sps:$4 sm:$0xff]   ;;  %537 = vmatprep.mubr.bf16.mxu0 %v1289_v11  ;;  %v1290_v19 = vld [vmem:[%s1404_s9 + $0x80] ss:$8 sps:$4 sm:$0xff]   ;;  %v1295_v21 = vld [vmem:[%s1404_s9 + $0x94] ss:$8 sps:$4 sm:$0xff]  }
  0x12   : > { %601 = vmatprep.mubr.bf16.mxu1 %v1292_v12  ;;  %v1297_v22 = vld [vmem:[%s1404_s9 + $0x10] ss:$8 sps:$4 sm:$0xff]   ;;  %v1299_v24 = vld [vmem:[%s1404_s9 + $0x24] ss:$8 sps:$4 sm:$0xff]   ;;  %v1303_v26 = vld [vmem:[%s1404_s9 + $0x20] ss:$8 sps:$4 sm:$0xff]  }
  0x13   : > { %1142 = vmatpush3.bf16.msra.mxu0 %v1278_v7  ;;  %1258 = vmatpush3.bf16.msra.mxu1 %v1278_v7  ;;  %v1298_v23 = vld [vmem:[%s1404_s9 + $0x90] ss:$8 sps:$4 sm:$0xff]   ;;  %v1301_v25 = vld [vmem:[%s1404_s9 + $0xa4] ss:$8 sps:$4 sm:$0xff]   ;;  %v1304_v27 = vld [vmem:[%s1404_s9 + $0xa0] ss:$8 sps:$4 sm:$0xff]  }
  0x14   : > { %1143 = vmatprep.subr.bf16.mxu0 %v1279_v8  ;;  %1251 = vmatprep.subr.bf16.mxu1 %v1279_v8  ;;  %v1305_v28 = vld [vmem:[%s1404_s9 + $0x34] ss:$8 sps:$4 sm:$0xff]   ;;  %v1309_v30 = vld [vmem:[%s1404_s9 + $0x30] ss:$8 sps:$4 sm:$0xff]   ;;  %v1311_v32 = vld [vmem:[%s1404_s9 + $0x44] ss:$8 sps:$4 sm:$0xff]  }
  0x15   : > { %v1307_v29 = vld [vmem:[%s1404_s9 + $0xb4] ss:$8 sps:$4 sm:$0xff]   ;;  %v1310_v31 = vld [vmem:[%s1404_s9 + $0xb0] ss:$8 sps:$4 sm:$0xff]   ;;  %v1313_v33 = vld [vmem:[%s1404_s9 + $0xc4] ss:$8 sps:$4 sm:$0xff]  }
  0x16   : > { %v1315_v34 = vld [vmem:[%s1404_s9 + $0x40] ss:$8 sps:$4 sm:$0xff]   ;;  %v1317_v36 = vld [vmem:[%s1404_s9 + $0x54] ss:$8 sps:$4 sm:$0xff]   ;;  %v1321_v38 = vld [vmem:[%s1404_s9 + $0x50] ss:$8 sps:$4 sm:$0xff]  }
  0x17   : > { %1144 = vmatpush3.bf16.msra.mxu0 %v1280_v9  ;;  %1259 = vmatpush3.bf16.msra.mxu1 %v1280_v9  ;;  %v1316_v35 = vld [vmem:[%s1404_s9 + $0xc0] ss:$8 sps:$4 sm:$0xff]   ;;  %v1319_v37 = vld [vmem:[%s1404_s9 + $0xd4] ss:$8 sps:$4 sm:$0xff]   ;;  %v1322_v39 = vld [vmem:[%s1404_s9 + $0xd0] ss:$8 sps:$4 sm:$0xff]  }
  0x18   : > { %1145 = vmatprep.subr.bf16.mxu0 %v1281_v10  ;;  %1252 = vmatprep.subr.bf16.mxu1 %v1281_v10  ;;  %v1323_v40 = vld [vmem:[%s1404_s9 + $0x64] ss:$8 sps:$4 sm:$0xff]   ;;  %v1327_v42 = vld [vmem:[%s1404_s9 + $0x60] ss:$8 sps:$4 sm:$0xff]   ;;  %v1329_v44 = vld [vmem:[%s1404_s9 + $0x74] ss:$8 sps:$4 sm:$0xff]  }
  0x19   : > { %v1325_v41 = vld [vmem:[%s1404_s9 + $0xe4] ss:$8 sps:$4 sm:$0xff]   ;;  %v1328_v43 = vld [vmem:[%s1404_s9 + $0xe0] ss:$8 sps:$4 sm:$0xff]   ;;  %v1331_v45 = vld [vmem:[%s1404_s9 + $0xf4] ss:$8 sps:$4 sm:$0xff]  }
  0x1a   : > { %v1333_v46 = vld [vmem:[%s1404_s9 + $0x70] ss:$8 sps:$4 sm:$0xff]  }
  0x1b   : > { %1146 = vmatpush3.bf16.msra.mxu0 %v1282_v13  ;;  %1260 = vmatpush3.bf16.msra.mxu1 %v1282_v13  ;;  %v1334_v47 = vld [vmem:[%s1404_s9 + $0xf0] ss:$8 sps:$4 sm:$0xff]  }
  0x1c   : > { %1147 = vmatprep.subr.bf16.mxu0 %v1283_v14  ;;  %1253 = vmatprep.subr.bf16.mxu1 %v1283_v14 }
  0x1f   : > { %1148 = vmatpush3.bf16.msra.mxu0 %v1284_v15  ;;  %1261 = vmatpush3.bf16.msra.mxu1 %v1284_v15 }
  0x20   : > { %1149 = vmatprep.subr.bf16.mxu0 %v1285_v16  ;;  %1254 = vmatprep.subr.bf16.mxu1 %v1285_v16 }
  0x23   : > { %1150 = vmatpush3.bf16.msra.mxu0 %v1286_v17  ;;  %1262 = vmatpush3.bf16.msra.mxu1 %v1286_v17 }
  0x26   : > { %538 = vmatmul.mubr.bf16.vlgmr.msra.gmra.mrb[0].mxu0 %v1287_v18  ;;  %602 = vmatmul.mubr.bf16.vlgmr.msra.gmra.mrb[0].mxu1 %v1290_v19 }
  0x27   : > { %545 = vmatprep.mubr.bf16.mxu0 %v1293_v20  ;;  %609 = vmatprep.mubr.bf16.mxu1 %v1295_v21 }
  0x2e   : > { %546 = vmatmul.mubr.bf16.gmra.mrb[4].mxu0 %v1297_v22  ;;  %610 = vmatmul.mubr.bf16.gmra.mrb[4].mxu1 %v1298_v23 }
  0x2f   : > { %553 = vmatprep.mubr.bf16.mxu0 %v1299_v24  ;;  %617 = vmatprep.mubr.bf16.mxu1 %v1301_v25 }
  0x36   : > { %554 = vmatmul.mubr.bf16.gmra.mrb[8].mxu0 %v1303_v26  ;;  %618 = vmatmul.mubr.bf16.gmra.mrb[8].mxu1 %v1304_v27 }
  0x37   : > { %561 = vmatprep.mubr.bf16.mxu0 %v1305_v28  ;;  %625 = vmatprep.mubr.bf16.mxu1 %v1307_v29 }
  0x3e   : > { %562 = vmatmul.mubr.bf16.gmra.mrb[12].mxu0 %v1309_v30  ;;  %626 = vmatmul.mubr.bf16.gmra.mrb[12].mxu1 %v1310_v31 }
  0x3f   : > { %569 = vmatprep.mubr.bf16.mxu0 %v1311_v32  ;;  %633 = vmatprep.mubr.bf16.mxu1 %v1313_v33 }
  0x46   : > { %570 = vmatmul.mubr.bf16.gmra.mrb[16].mxu0 %v1315_v34  ;;  %634 = vmatmul.mubr.bf16.gmra.mrb[16].mxu1 %v1316_v35 }
  0x47   : > { %577 = vmatprep.mubr.bf16.mxu0 %v1317_v36  ;;  %641 = vmatprep.mubr.bf16.mxu1 %v1319_v37 }
  0x4e   : > { %578 = vmatmul.mubr.bf16.gmra.mrb[20].mxu0 %v1321_v38  ;;  %642 = vmatmul.mubr.bf16.gmra.mrb[20].mxu1 %v1322_v39 }
  0x4f   : > { %585 = vmatprep.mubr.bf16.mxu0 %v1323_v40  ;;  %649 = vmatprep.mubr.bf16.mxu1 %v1325_v41 }
  0x56   : > { %586 = vmatmul.mubr.bf16.gmra.mrb[24].mxu0 %v1327_v42  ;;  %650 = vmatmul.mubr.bf16.gmra.mrb[24].mxu1 %v1328_v43 }
  0x57   : > { %593 = vmatprep.mubr.bf16.mxu0 %v1329_v44  ;;  %657 = vmatprep.mubr.bf16.mxu1 %v1331_v45 }
  0x5e   : > { %594 = vmatmul.mubr.bf16.gmra.mrb[28].mxu0 %v1333_v46  ;;  %658 = vmatmul.mubr.bf16.gmra.mrb[28].mxu1 %v1334_v47 }
  0xf9   : > { %v1151_v48 = vpop.f32.mrb[0].mxu0  ;;  %v1199_v49 = vpop.f32.mrb[0].mxu1 }
  0xfa   : > { %v1152_v51 = vpop.f32.mrb[1].mxu0  ;;  %v1200_v52 = vpop.f32.mrb[1].mxu1 }
  0xfb   : > { %v1153_v53 = vadd.f32 %v1152_v51, %v1151_v48  ;;  %v1201_v54 = vadd.f32 %v1200_v52, %v1199_v49  ;;  %v1154_v55 = vpop.f32.mrb[2].mxu0  ;;  %v1202_v56 = vpop.f32.mrb[2].mxu1 }
  0xfc   : > { %v1155_v57 = vpop.f32.mrb[3].mxu0  ;;  %v1203_v58 = vpop.f32.mrb[3].mxu1 }
  0xfd   : > { %v540_v59 = vadd.f32 %v1153_v53, %v1462_v50  ;;  %v604_v60 = vadd.f32 %v1201_v54, %v1462_v50  ;;  %v1156_v61 = vadd.f32 %v1155_v57, %v1154_v55  ;;  %v1204_v62 = vadd.f32 %v1203_v58, %v1202_v56 }
  0xff   : > { %v543_v63 = vadd.f32 %v1156_v61, %v1462_v50  ;;  %v607_v0 = vadd.f32 %v1204_v62, %v1462_v50  ;;  %v666_v1 = vmax.f32 %v540_v59, 0.0  ;;  %v682_v2 = vmax.f32 %v604_v60, 0.0 }
 0x101   : > { %v667_v3 = vmax.f32 %v543_v63, 0.0  ;;  %v683_v4 = vmax.f32 %v607_v0, 0.0  ;;  %v1157_v5 = vpop.f32.mrb[4].mxu0  ;;  %v1205_v6 = vpop.f32.mrb[4].mxu1 }
 0x102   : > { %v1158_v7 = vpop.f32.mrb[5].mxu0  ;;  %v1206_v8 = vpop.f32.mrb[5].mxu1 }
 0x103   : > { %v1043_v9 = vpack.c.bf16 %v667_v3, %v666_v1  ;;  %v1083_v10 = vpack.c.bf16 %v683_v4, %v682_v2  ;;  %v1159_v11 = vadd.f32 %v1158_v7, %v1157_v5  ;;  %v1207_v12 = vadd.f32 %v1206_v8, %v1205_v6  ;;  %v1160_v13 = vpop.f32.mrb[6].mxu0  ;;  %v1208_v14 = vpop.f32.mrb[6].mxu1 }
 0x104   : > { %v1161_v15 = vpop.f32.mrb[7].mxu0  ;;  %v1209_v16 = vpop.f32.mrb[7].mxu1 }
 0x105   : > { %1044 = vst [vmem:[%s1472_s4] sm:$0xff] %v1043_v9   ;;  %1127 = vst [vmem:[%s1472_s4 + $0x40] sm:$0xff] %v1083_v10   ;;  %v548_v17 = vadd.f32 %v1159_v11, %v1462_v50  ;;  %v612_v18 = vadd.f32 %v1207_v12, %v1462_v50  ;;  %v1162_v19 = vadd.f32 %v1161_v15, %v1160_v13 }
 0x106   : > { %v1210_v20 = vadd.f32 %v1209_v16, %v1208_v14 }
 0x107   : > { %v551_v21 = vadd.f32 %v1162_v19, %v1462_v50  ;;  %v668_v23 = vmax.f32 %v548_v17, 0.0  ;;  %v684_v24 = vmax.f32 %v612_v18, 0.0 }
 0x108   : > { %v615_v22 = vadd.f32 %v1210_v20, %v1462_v50 }
 0x109   : > { %v669_v25 = vmax.f32 %v551_v21, 0.0  ;;  %v1163_v27 = vpop.f32.mrb[8].mxu0  ;;  %v1211_v28 = vpop.f32.mrb[8].mxu1 }
 0x10a   : > { %v685_v26 = vmax.f32 %v615_v22, 0.0  ;;  %v1164_v29 = vpop.f32.mrb[9].mxu0  ;;  %v1212_v30 = vpop.f32.mrb[9].mxu1 }
 0x10b   : > { %v1048_v31 = vpack.c.bf16 %v669_v25, %v668_v23  ;;  %v1165_v33 = vadd.f32 %v1164_v29, %v1163_v27  ;;  %v1213_v34 = vadd.f32 %v1212_v30, %v1211_v28  ;;  %v1166_v35 = vpop.f32.mrb[10].mxu0  ;;  %v1214_v36 = vpop.f32.mrb[10].mxu1 }
 0x10c   : > { %v1088_v32 = vpack.c.bf16 %v685_v26, %v684_v24  ;;  %v1167_v37 = vpop.f32.mrb[11].mxu0  ;;  %v1215_v38 = vpop.f32.mrb[11].mxu1 }
 0x10d   : > { %1120 = vst [vmem:[%s1472_s4 + $0x8] sm:$0xff] %v1048_v31   ;;  %v556_v39 = vadd.f32 %v1165_v33, %v1462_v50  ;;  %v620_v40 = vadd.f32 %v1213_v34, %v1462_v50  ;;  %v1168_v41 = vadd.f32 %v1167_v37, %v1166_v35  ;;  %v1216_v42 = vadd.f32 %v1215_v38, %v1214_v36 }
 0x10e   : > { %1128 = vst [vmem:[%s1472_s4 + $0x48] sm:$0xff] %v1088_v32  }
 0x10f   : > { %v559_v43 = vadd.f32 %v1168_v41, %v1462_v50  ;;  %v623_v44 = vadd.f32 %v1216_v42, %v1462_v50  ;;  %v670_v45 = vmax.f32 %v556_v39, 0.0  ;;  %v686_v46 = vmax.f32 %v620_v40, 0.0 }
 0x111   : > { %v671_v47 = vmax.f32 %v559_v43, 0.0  ;;  %v687_v48 = vmax.f32 %v623_v44, 0.0  ;;  %v1169_v49 = vpop.f32.mrb[12].mxu0  ;;  %v1217_v51 = vpop.f32.mrb[12].mxu1 }
 0x112   : > { %v1170_v52 = vpop.f32.mrb[13].mxu0  ;;  %v1218_v53 = vpop.f32.mrb[13].mxu1 }
 0x113   : > { %v1053_v54 = vpack.c.bf16 %v671_v47, %v670_v45  ;;  %v1093_v55 = vpack.c.bf16 %v687_v48, %v686_v46  ;;  %v1171_v56 = vadd.f32 %v1170_v52, %v1169_v49  ;;  %v1219_v57 = vadd.f32 %v1218_v53, %v1217_v51  ;;  %v1172_v58 = vpop.f32.mrb[14].mxu0  ;;  %v1220_v59 = vpop.f32.mrb[14].mxu1 }
 0x114   : > { %v1173_v60 = vpop.f32.mrb[15].mxu0  ;;  %v1221_v61 = vpop.f32.mrb[15].mxu1 }
 0x115   : > { %1121 = vst [vmem:[%s1472_s4 + $0x10] sm:$0xff] %v1053_v54   ;;  %1129 = vst [vmem:[%s1472_s4 + $0x50] sm:$0xff] %v1093_v55   ;;  %v564_v62 = vadd.f32 %v1171_v56, %v1462_v50  ;;  %v628_v63 = vadd.f32 %v1219_v57, %v1462_v50  ;;  %v1174_v0 = vadd.f32 %v1173_v60, %v1172_v58 }
 0x116   : > { %v1222_v1 = vadd.f32 %v1221_v61, %v1220_v59 }
 0x117   : > { %v567_v2 = vadd.f32 %v1174_v0, %v1462_v50  ;;  %v672_v4 = vmax.f32 %v564_v62, 0.0  ;;  %v688_v5 = vmax.f32 %v628_v63, 0.0 }
 0x118   : > { %v631_v3 = vadd.f32 %v1222_v1, %v1462_v50 }
 0x119   : > { %v673_v6 = vmax.f32 %v567_v2, 0.0  ;;  %v1175_v8 = vpop.f32.mrb[16].mxu0  ;;  %v1223_v9 = vpop.f32.mrb[16].mxu1 }
 0x11a   : > { %v689_v7 = vmax.f32 %v631_v3, 0.0  ;;  %v1176_v10 = vpop.f32.mrb[17].mxu0  ;;  %v1224_v11 = vpop.f32.mrb[17].mxu1 }
 0x11b   : > { %v1058_v12 = vpack.c.bf16 %v673_v6, %v672_v4  ;;  %v1177_v14 = vadd.f32 %v1176_v10, %v1175_v8  ;;  %v1225_v15 = vadd.f32 %v1224_v11, %v1223_v9  ;;  %v1178_v16 = vpop.f32.mrb[18].mxu0  ;;  %v1226_v17 = vpop.f32.mrb[18].mxu1 }
 0x11c   : > { %v1098_v13 = vpack.c.bf16 %v689_v7, %v688_v5  ;;  %v1179_v18 = vpop.f32.mrb[19].mxu0  ;;  %v1227_v19 = vpop.f32.mrb[19].mxu1 }
 0x11d   : > { %1122 = vst [vmem:[%s1472_s4 + $0x18] sm:$0xff] %v1058_v12   ;;  %v572_v20 = vadd.f32 %v1177_v14, %v1462_v50  ;;  %v636_v21 = vadd.f32 %v1225_v15, %v1462_v50  ;;  %v1180_v22 = vadd.f32 %v1179_v18, %v1178_v16  ;;  %v1228_v23 = vadd.f32 %v1227_v19, %v1226_v17 }
 0x11e   : > { %1130 = vst [vmem:[%s1472_s4 + $0x58] sm:$0xff] %v1098_v13  }
 0x11f   : > { %v575_v24 = vadd.f32 %v1180_v22, %v1462_v50  ;;  %v639_v25 = vadd.f32 %v1228_v23, %v1462_v50  ;;  %v674_v26 = vmax.f32 %v572_v20, 0.0  ;;  %v690_v27 = vmax.f32 %v636_v21, 0.0 }
 0x121   : > { %v675_v28 = vmax.f32 %v575_v24, 0.0  ;;  %v691_v29 = vmax.f32 %v639_v25, 0.0  ;;  %v1181_v30 = vpop.f32.mrb[20].mxu0  ;;  %v1229_v31 = vpop.f32.mrb[20].mxu1 }
 0x122   : > { %v1182_v32 = vpop.f32.mrb[21].mxu0  ;;  %v1230_v33 = vpop.f32.mrb[21].mxu1 }
 0x123   : > { %v1063_v34 = vpack.c.bf16 %v675_v28, %v674_v26  ;;  %v1103_v35 = vpack.c.bf16 %v691_v29, %v690_v27  ;;  %v1183_v36 = vadd.f32 %v1182_v32, %v1181_v30  ;;  %v1231_v37 = vadd.f32 %v1230_v33, %v1229_v31  ;;  %v1184_v38 = vpop.f32.mrb[22].mxu0  ;;  %v1232_v39 = vpop.f32.mrb[22].mxu1 }
 0x124   : > { %v1185_v40 = vpop.f32.mrb[23].mxu0  ;;  %v1233_v41 = vpop.f32.mrb[23].mxu1 }
 0x125   : > { %1123 = vst [vmem:[%s1472_s4 + $0x20] sm:$0xff] %v1063_v34   ;;  %1131 = vst [vmem:[%s1472_s4 + $0x60] sm:$0xff] %v1103_v35   ;;  %v580_v42 = vadd.f32 %v1183_v36, %v1462_v50  ;;  %v644_v43 = vadd.f32 %v1231_v37, %v1462_v50  ;;  %v1186_v44 = vadd.f32 %v1185_v40, %v1184_v38 }
 0x126   : > { %v1234_v45 = vadd.f32 %v1233_v41, %v1232_v39 }
 0x127   : > { %v583_v46 = vadd.f32 %v1186_v44, %v1462_v50  ;;  %v676_v48 = vmax.f32 %v580_v42, 0.0  ;;  %v692_v49 = vmax.f32 %v644_v43, 0.0 }
 0x128   : > { %v647_v47 = vadd.f32 %v1234_v45, %v1462_v50 }
 0x129   : > { %v677_v51 = vmax.f32 %v583_v46, 0.0  ;;  %v1187_v53 = vpop.f32.mrb[24].mxu0  ;;  %v1235_v54 = vpop.f32.mrb[24].mxu1 }
 0x12a   : > { %v693_v52 = vmax.f32 %v647_v47, 0.0  ;;  %v1188_v55 = vpop.f32.mrb[25].mxu0  ;;  %v1236_v56 = vpop.f32.mrb[25].mxu1 }
 0x12b   : > { %v1068_v57 = vpack.c.bf16 %v677_v51, %v676_v48  ;;  %v1189_v59 = vadd.f32 %v1188_v55, %v1187_v53  ;;  %v1237_v60 = vadd.f32 %v1236_v56, %v1235_v54  ;;  %v1190_v61 = vpop.f32.mrb[26].mxu0  ;;  %v1238_v62 = vpop.f32.mrb[26].mxu1 }
 0x12c   : > { %v1108_v58 = vpack.c.bf16 %v693_v52, %v692_v49  ;;  %v1191_v63 = vpop.f32.mrb[27].mxu0  ;;  %v1239_v0 = vpop.f32.mrb[27].mxu1 }
 0x12d   : > { %1124 = vst [vmem:[%s1472_s4 + $0x28] sm:$0xff] %v1068_v57   ;;  %v588_v1 = vadd.f32 %v1189_v59, %v1462_v50  ;;  %v652_v2 = vadd.f32 %v1237_v60, %v1462_v50  ;;  %v1192_v3 = vadd.f32 %v1191_v63, %v1190_v61  ;;  %v1240_v4 = vadd.f32 %v1239_v0, %v1238_v62 }
 0x12e   : > { %1132 = vst [vmem:[%s1472_s4 + $0x68] sm:$0xff] %v1108_v58  }
 0x12f   : > { %v591_v5 = vadd.f32 %v1192_v3, %v1462_v50  ;;  %v655_v6 = vadd.f32 %v1240_v4, %v1462_v50  ;;  %v678_v7 = vmax.f32 %v588_v1, 0.0  ;;  %v694_v8 = vmax.f32 %v652_v2, 0.0 }
 0x131   : > { %v679_v9 = vmax.f32 %v591_v5, 0.0  ;;  %v695_v10 = vmax.f32 %v655_v6, 0.0  ;;  %v1193_v11 = vpop.f32.mrb[28].mxu0  ;;  %v1241_v12 = vpop.f32.mrb[28].mxu1 }
 0x132   : > { %v1194_v13 = vpop.f32.mrb[29].mxu0  ;;  %v1242_v14 = vpop.f32.mrb[29].mxu1 }
 0x133   : > { %v1073_v15 = vpack.c.bf16 %v679_v9, %v678_v7  ;;  %v1113_v16 = vpack.c.bf16 %v695_v10, %v694_v8  ;;  %v1195_v17 = vadd.f32 %v1194_v13, %v1193_v11  ;;  %v1243_v18 = vadd.f32 %v1242_v14, %v1241_v12  ;;  %v1196_v19 = vpop.f32.mrb[30].mxu0  ;;  %v1244_v20 = vpop.f32.mrb[30].mxu1 }
 0x134   : > { %v1197_v21 = vpop.f32.mrb[31].mxu0  ;;  %v1245_v22 = vpop.f32.mrb[31].mxu1 }
 0x135   : > { %1125 = vst [vmem:[%s1472_s4 + $0x30] sm:$0xff] %v1073_v15   ;;  %1133 = vst [vmem:[%s1472_s4 + $0x70] sm:$0xff] %v1113_v16   ;;  %v596_v23 = vadd.f32 %v1195_v17, %v1462_v50  ;;  %v660_v24 = vadd.f32 %v1243_v18, %v1462_v50  ;;  %v1198_v25 = vadd.f32 %v1197_v21, %v1196_v19 }
 0x136   : > { %v1246_v26 = vadd.f32 %v1245_v22, %v1244_v20 }
 0x137   : > { %v599_v27 = vadd.f32 %v1198_v25, %v1462_v50  ;;  %v680_v29 = vmax.f32 %v596_v23, 0.0  ;;  %v696_v30 = vmax.f32 %v660_v24, 0.0 }
 0x138   : > { %v663_v28 = vadd.f32 %v1246_v26, %v1462_v50 }
 0x139   : > { %v681_v31 = vmax.f32 %v599_v27, 0.0 }
 0x13a   : > { %v697_v32 = vmax.f32 %v663_v28, 0.0 }
 0x13b   : > { %v1078_v33 = vpack.c.bf16 %v681_v31, %v680_v29 }
 0x13c   : > { %v1118_v34 = vpack.c.bf16 %v697_v32, %v696_v30 }
 0x13d   : > { %1126 = vst [vmem:[%s1472_s4 + $0x38] sm:$0xff] %v1078_v33  }
 0x13e   : > { %1134 = vst [vmem:[%s1472_s4 + $0x78] sm:$0xff] %v1118_v34  }
 0x13f PF: > { %s13_s12 = sadd.s32 1, %s1341_s12  }
 0x140   : > { %p10_p4 = scmp.ge.s32.totalorder %s13_s12, 4  }
 0x142   :  { %12 = sbr.rel (!%p10_p4) target bundleno = 1 (0x1), region = 62 }

// kernel: densenet_backbone_forward.10
= control target key start
LH: loop header
LB: loop body
LE: loop exit
PB: predicated region body
PF: predicated region fallthrough
CT: control target
= control target key end

     0   :  { %s665_s18 = smov 0   ;;  %s733_s0 = inlined_call_operand.vmem [shape: bf16[2,64,128], index: 0, kind: input, shape index: {}]   ;;  %s734_s1 = inlined_call_operand.vmem [shape: f32[1,128], index: 1, kind: input, shape index: {}]   ;;  %s735_s2 = inlined_call_operand.vmem [shape: f32[1,128], index: 2, kind: input, shape index: {}]   ;;  %s736_s3 = inlined_call_operand.vmem [shape: bf16[16,64], index: 3, kind: input, shape index: {}]   ;;  %s737_s4 = inlined_call_operand.vmem [shape: bf16[128,128], index: 4, kind: input, shape index: {}]   ;;  %s738_s5 = inlined_call_operand.vmem [shape: bf16[2,16,128], index: 5, kind: output, shape index: {}]  }
   0x1 LB: > { %s507_s19 = sadd.s32 4294967295, %s631_s18   ;;  %p511_p0 = scmp.ge.s32.totalorder %s631_s18, 1  ;;  %s631_s18 = sphi %s665_s18, %s15_s18  }
   0x2   : > { %p187_p1 = scmp.lt.s32.totalorder %s631_s18, 3 }
   0x4   : > { %p188_p2 = pnand %p511_p0, %p187_p1 }
   0x5   : > { %p215_p3 = scmp.lt.s32.totalorder (!%p188_p2), %s507_s19, 1  ;;  %v633_v0 = vmov (!%p188_p2), 0.0   ;;  %vm634_vm0 = vmmov (!%p188_p2), 0   ;;  %v617_v1 = vld [vmem:[%s737_s4] sm:$0xff] (!%p188_p2)   ;;  %v618_v3 = vld [vmem:[%s737_s4 + $0x8] sm:$0xff] (!%p188_p2)   ;;  %v619_v21 = vld [vmem:[%s737_s4 + $0x10] sm:$0xff] (!%p188_p2)  }
   0x6   : > { %191 = sbr.rel (%p188_p2) target bundleno = 475 (0x1db), region = 40  ;;  %574 = vmatprep.subr.bf16.mxu0 (!%p188_p2), %v633_v0  ;;  %586 = vmatprep.subr.bf16.mxu1 (!%p188_p2), %v633_v0  ;;  %v516_v2 = vld [vmem:[%s734_s1] ss:$0 sm:$0xff] (!%p188_p2)  ;;  %v620_v36 = vld [vmem:[%s737_s4 + $0x18] sm:$0xff] (!%p188_p2)   ;;  %v622_v47 = vld [vmem:[%s737_s4 + $0x28] sm:$0xff] (!%p188_p2)   ;;  %vm291_vm1 = vcmask (!%p188_p2), 523264  }
   0x7   : > { %582 = vmatprep.mubr.msk.bf16.mxu0 (!%p188_p2), %vm634_vm0, %v633_v0  ;;  %602 = vmatprep.mubr.msk.bf16.mxu1 (!%p188_p2), %vm634_vm0, %v633_v0  ;;  %v517_v12 = vld [vmem:[%s735_s2] ss:$0 sm:$0xff] (!%p188_p2)  ;;  %v623_v49 = vld [vmem:[%s737_s4 + $0x30] sm:$0xff] (!%p188_p2)   ;;  %v624_v51 = vld [vmem:[%s737_s4 + $0x38] sm:$0xff] (!%p188_p2)  }
   0x8   : > { %587 = vmatpush3.bf16.msra.mxu1 (!%p188_p2), %v617_v1  ;;  %v621_v43 = vld [vmem:[%s737_s4 + $0x20] sm:$0xff] (!%p188_p2)  }
   0x9   : > { %588 = vmatprep.subr.bf16.mxu1 (!%p188_p2), %v633_v0  ;;  %v616_v50 = vld [vmem:[%s736_s3] sm:$0xff] (!%p188_p2)  }
   0xc   : > { %589 = vmatpush3.bf16.msra.mxu1 (!%p188_p2), %v618_v3 }
   0xd   : > { %s740_s19 = smov (!%p215_p3, %s507_s19), 1  ;;  %590 = vmatprep.subr.bf16.mxu1 %v633_v0 }
   0xe   : > { %s532_s22 = sshll.u32 %s740_s19, 5  ;;  %s533_s23 = sshll.u32 %s740_s19, 3 }
   0xf   : > { %s219_s27 = scalar_lea.vmem %s733_s0, %s532_s22  ;;  %s224_s26 = scalar_lea.vmem %s738_s5, %s533_s23 }
  0x10   : > { %v537_v4 = vld [vmem:[%s219_s27] sm:$0xff]   ;;  %v557_v5 = vld [vmem:[%s219_s27 + $0x8] sm:$0xff]   ;;  %v558_v6 = vld [vmem:[%s219_s27 + $0x10] sm:$0xff]   ;;  %591 = vmatpush3.bf16.msra.mxu1 %v619_v21 }
  0x11   : > { %v538_v7 = vunpack.c.l.bf16 %v537_v4  ;;  %v539_v8 = vunpack.c.h.bf16 %v537_v4  ;;  %v542_v9 = vunpack.c.l.bf16 %v557_v5  ;;  %v543_v10 = vunpack.c.h.bf16 %v557_v5  ;;  %v559_v11 = vld [vmem:[%s219_s27 + $0x18] sm:$0xff]   ;;  %592 = vmatprep.subr.bf16.mxu1 %v633_v0 }
  0x12   : > { %v546_v13 = vunpack.c.l.bf16 %v558_v6  ;;  %v547_v14 = vunpack.c.h.bf16 %v558_v6  ;;  %v550_v15 = vunpack.c.l.bf16 %v559_v11  ;;  %v551_v16 = vunpack.c.h.bf16 %v559_v11 }
  0x13   : > { %v249_v17 = vmul.f32 %v538_v7, %v516_v2  ;;  %v250_v18 = vmul.f32 %v539_v8, %v516_v2  ;;  %v251_v19 = vmul.f32 %v542_v9, %v516_v2  ;;  %v252_v20 = vmul.f32 %v543_v10, %v516_v2 }
  0x14   : > { %v253_v22 = vmul.f32 %v546_v13, %v516_v2  ;;  %v254_v23 = vmul.f32 %v547_v14, %v516_v2  ;;  %v255_v30 = vmul.f32 %v550_v15, %v516_v2  ;;  %v256_v31 = vmul.f32 %v551_v16, %v516_v2  ;;  %593 = vmatpush3.bf16.msra.mxu1 %v620_v36 }
  0x15   : > { %v264_v24 = vadd.f32 %v517_v12, %v249_v17  ;;  %v265_v25 = vadd.f32 %v517_v12, %v250_v18  ;;  %v266_v26 = vadd.f32 %v517_v12, %v251_v19  ;;  %v267_v27 = vadd.f32 %v517_v12, %v252_v20  ;;  %594 = vmatprep.subr.bf16.mxu1 %v633_v0 }
  0x16   : > { %v268_v28 = vadd.f32 %v517_v12, %v253_v22  ;;  %v269_v29 = vadd.f32 %v517_v12, %v254_v23  ;;  %v270_v38 = vadd.f32 %v517_v12, %v255_v30  ;;  %v271_v42 = vadd.f32 %v517_v12, %v256_v31 }
  0x17   : > { %v272_v32 = vmax.f32 %v264_v24, 0.0  ;;  %v273_v33 = vmax.f32 %v265_v25, 0.0  ;;  %v274_v34 = vmax.f32 %v266_v26, 0.0  ;;  %v275_v35 = vmax.f32 %v267_v27, 0.0 }
  0x18   : > { %v276_v40 = vmax.f32 %v268_v28, 0.0  ;;  %v277_v41 = vmax.f32 %v269_v29, 0.0  ;;  %v278_v45 = vmax.f32 %v270_v38, 0.0  ;;  %v279_v46 = vmax.f32 %v271_v42, 0.0  ;;  %595 = vmatpush3.bf16.msra.mxu1 %v621_v43 }
  0x19   : > { %v282_v37 = vpack.c.bf16 %v273_v33, %v272_v32  ;;  %v283_v39 = vpack.c.bf16 %v275_v35, %v274_v34  ;;  %596 = vmatprep.subr.bf16.mxu1 %v633_v0 }
  0x1a   : > { %v284_v44 = vpack.c.bf16 %v277_v41, %v276_v40  ;;  %v285_v48 = vpack.c.bf16 %v279_v46, %v278_v45 }
  0x1b   : > { %575 = vmatpush3.bf16.msra.mxu0 %v282_v37 }
  0x1c   : > { %576 = vmatprep.subr.bf16.mxu0 %v633_v0  ;;  %597 = vmatpush3.bf16.msra.mxu1 %v622_v47 }
  0x1d   : > { %598 = vmatprep.subr.bf16.mxu1 %v633_v0 }
  0x1f   : > { %577 = vmatpush3.bf16.msra.mxu0 %v283_v39 }
  0x20   : > { %578 = vmatprep.subr.bf16.mxu0 %v633_v0  ;;  %599 = vmatpush3.bf16.msra.mxu1 %v623_v49 }
  0x21   : > { %600 = vmatprep.subr.bf16.mxu1 %v633_v0 }
  0x23   : > { %579 = vmatpush3.bf16.msra.mxu0 %v284_v44 }
  0x24   : > { %580 = vmatprep.subr.bf16.mxu0 %v633_v0  ;;  %601 = vmatpush3.bf16.msra.mxu1 %v624_v51 }
  0x27   : > { %581 = vmatpush3.bf16.msra.mxu0 %v285_v48 }
  0x2a   : > { %583 = vmatmul.mubr.msk.bf16.vlgmr.msra.gmra.mrb[0].mxu0 %vm291_vm1, %v616_v50 }
  0xfd   : > { %v329_v52 = vpop.f32.mrb[0].mxu0 }
  0xfe   : > { %v584_v53 = vpop.f32.mrb[1].mxu0 }
  0xff   : > { %v332_v54 = vpop.f32.mrb[2].mxu0 }
 0x100   : > { %v336_v55 = vpack.c.bf16 %v332_v54, %v329_v52  ;;  %v585_v56 = vpop.f32.mrb[3].mxu0 }
 0x102   : > { %603 = vmatmul.mubr.bf16.vlgmr.msra.gmra.mrb[0].mxu1 %v336_v55 }
 0x1d5   : > { %v435_v57 = vpop.f32.mrb[0].mxu1 }
 0x1d6   : > { %v604_v58 = vpop.f32.mrb[1].mxu1 }
 0x1d7   : > { %v438_v59 = vpop.f32.mrb[2].mxu1 }
 0x1d8   : > { %v555_v60 = vpack.c.bf16 %v438_v59, %v435_v57  ;;  %v605_v61 = vpop.f32.mrb[3].mxu1 }
 0x1da   : > { %556 = vst [vmem:[%s224_s26] sm:$0xff] %v555_v60  }
 0x1db PF: > { %s15_s18 = sadd.s32 1, %s631_s18  }
 0x1dc   : > { %p12_p4 = scmp.ge.s32.totalorder %s15_s18, 4  }
 0x1de   :  { %14 = sbr.rel (!%p12_p4) target bundleno = 1 (0x1), region = 70 }

// kernel: densenet_backbone_forward.8
= control target key start
LH: loop header
LB: loop body
LE: loop exit
PB: predicated region body
PF: predicated region fallthrough
CT: control target
= control target key end

     0   :  { %s4085_s24 = smov 0   ;;  %s4811_s0 = inlined_call_operand.vmem [shape: bf16[2,64,128], index: 0, kind: input, shape index: {}, may-alias: {0,7}]   ;;  %s4812_s1 = inlined_call_operand.vmem [shape: f32[1,128], index: 1, kind: input, shape index: {}]   ;;  %s4813_s2 = inlined_call_operand.vmem [shape: f32[1,128], index: 2, kind: input, shape index: {}]   ;;  %s4814_s3 = inlined_call_operand.vmem [shape: bf16[128,128], index: 3, kind: input, shape index: {}]   ;;  %s4815_s4 = inlined_call_operand.vmem [shape: f32[1,128], index: 4, kind: input, shape index: {}]   ;;  %s4816_s5 = inlined_call_operand.vmem [shape: bf16[9,128,32], index: 5, kind: input, shape index: {}]   ;;  %s4817_s6 = inlined_call_operand.vmem [shape: bf16[9,64,64], index: 6, kind: input, shape index: {}]   ;;  %s4818_s7 = inlined_call_operand.vmem [shape: bf16[2,64,128], index: 7, kind: output, shape index: {}, may-alias: {0,7}]  }
   0x1 LB: > { %s2853_s25 = sadd.s32 4294967295, %s4042_s24   ;;  %p2857_p0 = scmp.ge.s32.totalorder %s4042_s24, 1  ;;  %s4042_s24 = sphi %s4085_s24, %s17_s24  }
   0x2   : > { %p237_p1 = scmp.lt.s32.totalorder %s4042_s24, 3 }
   0x4   : > { %p238_p2 = pnand %p2857_p0, %p237_p1 }
   0x5   : > { %v3920_v0 = vld [vmem:[%s4814_s3] sm:$0xff] (!%p238_p2)   ;;  %p269_p3 = scmp.lt.s32.totalorder (!%p238_p2), %s2853_s25, 1  ;;  %v3921_v1 = vld [vmem:[%s4814_s3 + $0x8] sm:$0xff] (!%p238_p2)   ;;  %v3922_v2 = vld [vmem:[%s4814_s3 + $0x10] sm:$0xff] (!%p238_p2)   ;;  %vm514_vm0 = vcmask (!%p238_p2), 523264   ;;  %s4044_s27 = smov (!%p238_p2), 64  }
   0x6   : > { %241 = sbr.rel (%p238_p2) target bundleno = 1318 (0x526), region = 48  ;;  %3463 = vmatprep.subr.bf16.mxu1 (!%p238_p2), %v3920_v0  ;;  %v3923_v3 = vld [vmem:[%s4814_s3 + $0x18] sm:$0xff] (!%p238_p2)   ;;  %v2862_v5 = vld [vmem:[%s4812_s1] ss:$0 sm:$0xff] (!%p238_p2)  ;;  %v3925_v29 = vld [vmem:[%s4814_s3 + $0x28] sm:$0xff] (!%p238_p2)   ;;  %vm2741_vm1 = vcmask (!%p238_p2), 785408  }
   0x7   : > { %3464 = vmatpush3.bf16.msra.mxu1 (!%p238_p2), %v3920_v0  ;;  %v2863_v6 = vld [vmem:[%s4813_s2] ss:$0 sm:$0xff] (!%p238_p2)  ;;  %v3926_v45 = vld [vmem:[%s4814_s3 + $0x30] sm:$0xff] (!%p238_p2)   ;;  %v3927_v46 = vld [vmem:[%s4814_s3 + $0x38] sm:$0xff] (!%p238_p2)  }
   0x8   : > { %3465 = vmatprep.subr.bf16.mxu1 (!%p238_p2), %v3921_v1  ;;  %v3924_v12 = vld [vmem:[%s4814_s3 + $0x20] sm:$0xff] (!%p238_p2)  }
   0x9   : > { %v3928_v50 = vld [vmem:[%s4817_s6] sm:$0xff] (!%p238_p2)  }
   0xa   : > { %v2864_v51 = vld [vmem:[%s4815_s4] ss:$0 sm:$0xff] (!%p238_p2) }
   0xb   : > { %3466 = vmatpush3.bf16.msra.mxu1 (!%p238_p2), %v3921_v1 }
   0xc   : > { %3467 = vmatprep.subr.bf16.mxu1 (!%p238_p2), %v3922_v2 }
   0xd   : > { %s4822_s25 = smov (!%p269_p3, %s2853_s25), 1 }
   0xe   : > { %s3219_s9 = sshll.u32 %s4822_s25, 5 }
   0xf   : > { %s273_s12 = scalar_lea.vmem %s4811_s0, %s3219_s9  ;;  %3468 = vmatpush3.bf16.msra.mxu1 %v3922_v2  ;;  %s278_s30 = scalar_lea.vmem %s4818_s7, %s3219_s9 }
  0x10   : > { %v4113_v4 = vld [vmem:[%s273_s12] sm:$0xff]   ;;  %v4123_v9 = vld [vmem:[%s273_s12 + $0x8] sm:$0xff]   ;;  %v4125_v10 = vld [vmem:[%s273_s12 + $0x10] sm:$0xff]   ;;  %3469 = vmatprep.subr.bf16.mxu1 %v3923_v3 }
  0x11   : > { %v3231_v7 = vunpack.c.l.bf16 %v4113_v4  ;;  %v3232_v8 = vunpack.c.h.bf16 %v4113_v4  ;;  %v4127_v11 = vld [vmem:[%s273_s12 + $0x18] sm:$0xff]   ;;  %v3235_v13 = vunpack.c.l.bf16 %v4123_v9  ;;  %v3236_v14 = vunpack.c.h.bf16 %v4123_v9 }
  0x12   : > { %v3239_v15 = vunpack.c.l.bf16 %v4125_v10  ;;  %v3240_v16 = vunpack.c.h.bf16 %v4125_v10  ;;  %v3243_v19 = vunpack.c.l.bf16 %v4127_v11  ;;  %v4819_v20 = vunpack.c.h.bf16 %v4127_v11 }
  0x13   : > { %v303_v17 = vmul.f32 %v3231_v7, %v2862_v5  ;;  %v304_v18 = vmul.f32 %v3232_v8, %v2862_v5  ;;  %v305_v21 = vmul.f32 %v3235_v13, %v2862_v5  ;;  %v306_v22 = vmul.f32 %v3236_v14, %v2862_v5  ;;  %3470 = vmatpush3.bf16.msra.mxu1 %v3923_v3 }
  0x14   : > { %v307_v23 = vmul.f32 %v3239_v15, %v2862_v5  ;;  %v308_v24 = vmul.f32 %v3240_v16, %v2862_v5  ;;  %v309_v27 = vmul.f32 %v3243_v19, %v2862_v5  ;;  %v310_v28 = vmul.f32 %v4819_v20, %v2862_v5  ;;  %3471 = vmatprep.subr.bf16.mxu1 %v3924_v12 }
  0x15   : > { %v318_v25 = vadd.f32 %v2863_v6, %v303_v17  ;;  %v319_v26 = vadd.f32 %v2863_v6, %v304_v18  ;;  %v320_v30 = vadd.f32 %v2863_v6, %v305_v21  ;;  %v321_v31 = vadd.f32 %v2863_v6, %v306_v22 }
  0x16   : > { %v322_v32 = vadd.f32 %v2863_v6, %v307_v23  ;;  %v323_v33 = vadd.f32 %v2863_v6, %v308_v24  ;;  %v324_v36 = vadd.f32 %v2863_v6, %v309_v27  ;;  %v325_v37 = vadd.f32 %v2863_v6, %v310_v28  ;;  %v3929_v28 = vld [vmem:[%s4817_s6 + $0x8] sm:$0xff]  }
  0x17   : > { %v326_v34 = vmax.f32 %v318_v25, 0.0  ;;  %v327_v35 = vmax.f32 %v319_v26, 0.0  ;;  %v328_v38 = vmax.f32 %v320_v30, 0.0  ;;  %v329_v39 = vmax.f32 %v321_v31, 0.0  ;;  %3472 = vmatpush3.bf16.msra.mxu1 %v3924_v12  ;;  %v3931_v30 = vld [vmem:[%s4817_s6 + $0x18] sm:$0xff]   ;;  %v3932_v31 = vld [vmem:[%s4817_s6 + $0x20] sm:$0xff]  }
  0x18   : > { %v330_v40 = vmax.f32 %v322_v32, 0.0  ;;  %v331_v41 = vmax.f32 %v323_v33, 0.0  ;;  %v332_v43 = vmax.f32 %v324_v36, 0.0  ;;  %v333_v44 = vmax.f32 %v325_v37, 0.0  ;;  %3473 = vmatprep.subr.bf16.mxu1 %v3925_v29  ;;  %v3936_v32 = vld [vmem:[%s4816_s5 + $0x40] sm:$0xff]   ;;  %v3933_v33 = vld [vmem:[%s4817_s6 + $0x28] sm:$0xff]  }
  0x19   : > { %v334_v42 = vpack.c.bf16 %v327_v35, %v326_v34  ;;  %v335_v47 = vpack.c.bf16 %v329_v39, %v328_v38  ;;  %v3934_v34 = vld [vmem:[%s4817_s6 + $0x30] sm:$0xff]   ;;  %v3937_v35 = vld [vmem:[%s4816_s5 + $0x48] sm:$0xff]   ;;  %v3935_v37 = vld [vmem:[%s4817_s6 + $0x38] sm:$0xff]  }
  0x1a   : > { %v336_v48 = vpack.c.bf16 %v331_v41, %v330_v40  ;;  %v337_v49 = vpack.c.bf16 %v333_v44, %v332_v43  ;;  %v3938_v36 = vld [vmem:[%s4816_s5 + $0x50] sm:$0xff]   ;;  %v3939_v38 = vld [vmem:[%s4816_s5 + $0x58] sm:$0xff]   ;;  %v3940_v39 = vld [vmem:[%s4816_s5 + $0x60] sm:$0xff]  }
  0x1b   : > { %3479 = vmatprep.mubr.bf16.mxu1 %v334_v42  ;;  %3474 = vmatpush3.bf16.msra.mxu1 %v3925_v29  ;;  %v3930_v29 = vld [vmem:[%s4817_s6 + $0x10] sm:$0xff]   ;;  %v3941_v40 = vld [vmem:[%s4816_s5 + $0x68] sm:$0xff]   ;;  %v3943_v42 = vld [vmem:[%s4816_s5 + $0x78] sm:$0xff]  }
  0x1c   : > { %3475 = vmatprep.subr.bf16.mxu1 %v3926_v45  ;;  %v3942_v41 = vld [vmem:[%s4816_s5 + $0x70] sm:$0xff]   ;;  %v3944_v43 = vld [vmem:[%s4816_s5] sm:$0xff]  }
  0x1f   : > { %3476 = vmatpush3.bf16.msra.mxu1 %v3926_v45 }
  0x20   : > { %3477 = vmatprep.subr.bf16.mxu1 %v3927_v46 }
  0x23   : > { %3478 = vmatpush3.bf16.msra.mxu1 %v3927_v46 }
  0x26   : > { %3480 = vmatmul.mubr.bf16.vlgmr.msra.gmra.mrb[0].mxu1 %v335_v47 }
  0x27   : > { %3483 = vmatprep.mubr.bf16.mxu1 %v336_v48 }
  0x2e   : > { %3484 = vmatmul.mubr.bf16.gmra.mrb[4].mxu1 %v337_v49 }
  0x2f   : > { %3495 = vmatprep.mubr.msk.bf16.mxu1 %vm514_vm0, %v3928_v50 }
  0xf9   : > { %v3481_v52 = vpop.f32.mrb[0].mxu1 }
  0xfa   : > { %v452_v53 = vadd.f32 %v3481_v52, %v2864_v51  ;;  %v443_v54 = vpop.f32.mrb[1].mxu1 }
  0xfb   : > { %v444_v55 = vadd.f32 %v2864_v51, %v443_v54  ;;  %v3482_v56 = vpop.f32.mrb[2].mxu1 }
  0xfc   : > { %v455_v57 = vadd.f32 %v3482_v56, %v2864_v51  ;;  %v446_v58 = vpop.f32.mrb[3].mxu1  ;;  %v476_v60 = vmax.f32 %v452_v53, 0.0 }
  0xfd   : > { %v447_v59 = vadd.f32 %v2864_v51, %v446_v58  ;;  %v474_v62 = vmax.f32 %v444_v55, 0.0 }
  0xfe   : > { %v477_v61 = vmax.f32 %v455_v57, 0.0 }
  0xff   : > { %v475_v63 = vmax.f32 %v447_v59, 0.0 }
 0x100   : > { %v4170_v0 = vpack.c.bf16 %v477_v61, %v476_v60 }
 0x101   : > { %v4172_v1 = vpack.c.bf16 %v475_v63, %v474_v62  ;;  %v3485_v2 = vpop.f32.mrb[4].mxu1  ;;  %v3945_v62 = vld [vmem:[%s4816_s5 + $0x8] sm:$0xff]  }
 0x102   : > { %v468_v3 = vadd.f32 %v3485_v2, %v2864_v51  ;;  %v459_v5 = vpop.f32.mrb[5].mxu1 }
 0x103   : > { %v460_v6 = vadd.f32 %v2864_v51, %v459_v5  ;;  %v3486_v12 = vpop.f32.mrb[6].mxu1  ;;  %3487 = vmatprep.subr.bf16.mxu1 %v4172_v1 }
 0x104   : > { %v471_v17 = vadd.f32 %v3486_v12, %v2864_v51  ;;  %v462_v18 = vpop.f32.mrb[7].mxu1  ;;  %3488 = vmatpush3.bf16.msra.mxu1 %v4172_v1  ;;  %v480_v22 = vmax.f32 %v468_v3, 0.0  ;;  %v3946_v3 = vld [vmem:[%s4816_s5 + $0x10] sm:$0xff]  }
 0x105   : > { %v463_v21 = vadd.f32 %v2864_v51, %v462_v18  ;;  %3489 = vmatprep.subr.bf16.mxu1 %v4170_v0  ;;  %v478_v24 = vmax.f32 %v460_v6, 0.0  ;;  %v3947_v18 = vld [vmem:[%s4816_s5 + $0x18] sm:$0xff]  }
 0x106   : > { %v481_v23 = vmax.f32 %v471_v17, 0.0 }
 0x107   : > { %v479_v25 = vmax.f32 %v463_v21, 0.0  ;;  %v3948_v21 = vld [vmem:[%s4816_s5 + $0x20] sm:$0xff]  }
 0x108   : > { %v4177_v26 = vpack.c.bf16 %v481_v23, %v480_v22  ;;  %3490 = vmatpush3.bf16.msra.mxu1 %v4170_v0  ;;  %v3976_v22 = vld [vmem:[%s4816_s5 + $0x80] sm:$0xff]   ;;  %v3949_v23 = vld [vmem:[%s4816_s5 + $0x28] sm:$0xff]  }
 0x109   : > { %v4180_v27 = vpack.c.bf16 %v479_v25, %v478_v24  ;;  %v3978_v24 = vld [vmem:[%s4816_s5 + $0x88] sm:$0xff]   ;;  %3583 = vmatprep.subr.bf16.mxu0 %v3976_v22  ;;  %v3980_v25 = vld [vmem:[%s4816_s5 + $0x90] sm:$0xff]  }
 0x10a   : > { %3584 = vmatpush3.bf16.msra.mxu0 %v3976_v22 }
 0x10b   : > { %3491 = vmatprep.subr.bf16.mxu1 %v4180_v27  ;;  %3585 = vmatprep.subr.bf16.mxu0 %v3978_v24 }
 0x10c   : > { %3492 = vmatpush3.bf16.msra.mxu1 %v4180_v27 }
 0x10d   : > { %3493 = vmatprep.subr.bf16.mxu1 %v4177_v26 }
 0x10e   : > { %3586 = vmatpush3.bf16.msra.mxu0 %v3978_v24  ;;  %v3989_v24 = vld [vmem:[%s4816_s5 + $0xc8] sm:$0xff]  }
 0x10f   : > { %3587 = vmatprep.subr.bf16.mxu0 %v3980_v25 }
 0x110   : > { %3494 = vmatpush3.bf16.msra.mxu1 %v4177_v26 }
 0x111   : > { %3503 = vmatprep.subr.bf16.mxu1 %v4172_v1 }
 0x112   : > { %3588 = vmatpush3.bf16.msra.mxu0 %v3980_v25 }
 0x113   : > { %3496 = vmatmul.mubr.msk.bf16.vlgmr.msra.gmra.mrb[8].mxu1 %vm514_vm0, %v3929_v28  ;;  %v3950_v28 = vld [vmem:[%s4816_s5 + $0x30] sm:$0xff]  }
 0x114   : > { %3504 = vmatpush3.bf16.msra.mxu1 %v4172_v1  ;;  %3499 = vmatprep.mubr.msk.bf16.mxu1 %vm514_vm0, %v3930_v29  ;;  %v3951_v29 = vld [vmem:[%s4816_s5 + $0x38] sm:$0xff]  }
 0x115   : > { %3505 = vmatprep.subr.bf16.mxu1 %v4170_v0 }
 0x118   : > { %3506 = vmatpush3.bf16.msra.mxu1 %v4170_v0 }
 0x119   : > { %3507 = vmatprep.subr.bf16.mxu1 %v4180_v27 }
 0x11b   : > { %3500 = vmatmul.mubr.msk.bf16.gmra.mrb[12].mxu1 %vm514_vm0, %v3931_v30  ;;  %v3952_v30 = vld [vmem:[%s4817_s6 + $0x40] sm:$0xff]  }
 0x11c   : > { %3508 = vmatpush3.bf16.msra.mxu1 %v4180_v27  ;;  %3511 = vmatprep.mubr.msk.bf16.mxu1 %vm514_vm0, %v3932_v31  ;;  %v3953_v31 = vld [vmem:[%s4817_s6 + $0x48] sm:$0xff]  }
 0x11d   : > { %3509 = vmatprep.subr.bf16.mxu1 %v4177_v26 }
 0x120   : > { %3510 = vmatpush3.bf16.msra.mxu1 %v4177_v26 }
 0x121   : > { %3519 = vmatprep.subr.bf16.mxu1 %v3936_v32 }
 0x123   : > { %3512 = vmatmul.mubr.msk.bf16.vlgmr.msra.gmra.mrb[16].mxu1 %vm514_vm0, %v3933_v33  ;;  %v3955_v33 = vld [vmem:[%s4817_s6 + $0x58] sm:$0xff]  }
 0x124   : > { %3515 = vmatprep.mubr.msk.bf16.mxu1 %vm514_vm0, %v3934_v34  ;;  %3520 = vmatpush3.bf16.msra.mxu1 %v3936_v32  ;;  %v3954_v32 = vld [vmem:[%s4817_s6 + $0x50] sm:$0xff]   ;;  %v3956_v34 = vld [vmem:[%s4817_s6 + $0x60] sm:$0xff]  }
 0x125   : > { %3521 = vmatprep.subr.bf16.mxu1 %v3937_v35 }
 0x128   : > { %3522 = vmatpush3.bf16.msra.mxu1 %v3937_v35  ;;  %v3957_v35 = vld [vmem:[%s4817_s6 + $0x68] sm:$0xff]  }
 0x129   : > { %3523 = vmatprep.subr.bf16.mxu1 %v3938_v36 }
 0x12b   : > { %3516 = vmatmul.mubr.msk.bf16.gmra.mrb[20].mxu1 %vm514_vm0, %v3935_v37  ;;  %v3959_v37 = vld [vmem:[%s4817_s6 + $0x78] sm:$0xff]  }
 0x12c   : > { %3524 = vmatpush3.bf16.msra.mxu1 %v3938_v36  ;;  %v3958_v36 = vld [vmem:[%s4817_s6 + $0x70] sm:$0xff]  }
 0x12d   : > { %3525 = vmatprep.subr.bf16.mxu1 %v3939_v38 }
 0x130   : > { %3526 = vmatpush3.bf16.msra.mxu1 %v3939_v38  ;;  %v3960_v38 = vld [vmem:[%s4817_s6 + $0x80] sm:$0xff]  }
 0x131   : > { %3527 = vmatprep.subr.bf16.mxu1 %v3940_v39 }
 0x134   : > { %3528 = vmatpush3.bf16.msra.mxu1 %v3940_v39  ;;  %v3961_v39 = vld [vmem:[%s4817_s6 + $0x88] sm:$0xff]  }
 0x135   : > { %3529 = vmatprep.subr.bf16.mxu1 %v3941_v40 }
 0x138   : > { %3530 = vmatpush3.bf16.msra.mxu1 %v3941_v40  ;;  %v3962_v40 = vld [vmem:[%s4817_s6 + $0x90] sm:$0xff]  }
 0x139   : > { %3531 = vmatprep.subr.bf16.mxu1 %v3942_v41 }
 0x13c   : > { %3532 = vmatpush3.bf16.msra.mxu1 %v3942_v41  ;;  %v3963_v41 = vld [vmem:[%s4817_s6 + $0x98] sm:$0xff]  }
 0x13d   : > { %3533 = vmatprep.subr.bf16.mxu1 %v3943_v42 }
 0x140   : > { %3534 = vmatpush3.bf16.msra.mxu1 %v3943_v42  ;;  %v3964_v42 = vld [vmem:[%s4817_s6 + $0xa0] sm:$0xff]  }
 0x141   : > { %3543 = vmatprep.subr.bf16.mxu1 %v3944_v43 }
 0x1e6   : > { %v3497_v44 = vpop.f32.mrb[8].mxu1 }
 0x1e7   : > { %v561_v45 = vpop.f32.mrb[9].mxu1 }
 0x1e8   : > { %v3498_v46 = vpop.f32.mrb[10].mxu1 }
 0x1e9   : > { %v593_v47 = vpack.c.bf16 %v3498_v46, %v3497_v44  ;;  %v564_v48 = vpop.f32.mrb[11].mxu1  ;;  %v3966_v44 = vld [vmem:[%s4817_s6 + $0xb0] sm:$0xff]   ;;  %v3968_v46 = vld [vmem:[%s4817_s6 + $0xc0] sm:$0xff]  }
 0x1ea   : > { %v592_v49 = vpack.c.bf16 %v564_v48, %v561_v45  ;;  %v3967_v45 = vld [vmem:[%s4817_s6 + $0xb8] sm:$0xff]   ;;  %v3970_v48 = vld [vmem:[%s4817_s6 + $0xd0] sm:$0xff]  }
 0x1ee   : > { %v3501_v50 = vpop.f32.mrb[12].mxu1 }
 0x1ef   : > { %v577_v51 = vpop.f32.mrb[13].mxu1 }
 0x1f0   : > { %v3502_v52 = vpop.f32.mrb[14].mxu1 }
 0x1f1   : > { %v595_v53 = vpack.c.bf16 %v3502_v52, %v3501_v50  ;;  %v580_v54 = vpop.f32.mrb[15].mxu1  ;;  %v3971_v50 = vld [vmem:[%s4817_s6 + $0xd8] sm:$0xff]   ;;  %v3984_v52 = vld [vmem:[%s4816_s5 + $0xa0] sm:$0xff]  }
 0x1f2   : > { %v594_v55 = vpack.c.bf16 %v580_v54, %v577_v51  ;;  %v3972_v51 = vld [vmem:[%s4817_s6 + $0xe0] sm:$0xff]   ;;  %v3973_v54 = vld [vmem:[%s4817_s6 + $0xe8] sm:$0xff]  }
 0x1f6   : > { %v3513_v56 = vpop.f32.mrb[16].mxu1 }
 0x1f7   : > { %v687_v57 = vpop.f32.mrb[17].mxu1 }
 0x1f8   : > { %v3514_v58 = vpop.f32.mrb[18].mxu1 }
 0x1f9   : > { %v719_v59 = vpack.c.bf16 %v3514_v58, %v3513_v56  ;;  %v690_v60 = vpop.f32.mrb[19].mxu1  ;;  %v3986_v56 = vld [vmem:[%s4816_s5 + $0xb0] sm:$0xff]   ;;  %v3975_v58 = vld [vmem:[%s4817_s6 + $0xf8] sm:$0xff]  }
 0x1fa   : > { %v718_v61 = vpack.c.bf16 %v690_v60, %v687_v57  ;;  %v3987_v57 = vld [vmem:[%s4816_s5 + $0xb8] sm:$0xff]   ;;  %v3981_v60 = vld [vmem:[%s4817_s6 + $0x110] sm:$0xff]  }
 0x1fc   : > { %3535 = vmatprep.mubr.bf16.mxu1 %v718_v61 }
 0x1fd   : > { %3536 = vmatmul.mubr.bf16.vlgmr.msra.gmra.mrb[24].mxu1 %v719_v59  ;;  %v3977_v59 = vld [vmem:[%s4817_s6 + $0x100] sm:$0xff]  }
 0x1fe   : > { %3544 = vmatpush3.bf16.msra.mxu1 %v3944_v43  ;;  %v3517_v63 = vpop.f32.mrb[20].mxu1  ;;  %v3965_v43 = vld [vmem:[%s4817_s6 + $0xa8] sm:$0xff]  }
 0x1ff   : > { %v703_v2 = vpop.f32.mrb[21].mxu1  ;;  %3545 = vmatprep.subr.bf16.mxu1 %v3945_v62 }
 0x200   : > { %v3518_v5 = vpop.f32.mrb[22].mxu1 }
 0x201   : > { %v721_v6 = vpack.c.bf16 %v3518_v5, %v3517_v63  ;;  %v706_v12 = vpop.f32.mrb[23].mxu1 }
 0x202   : > { %v720_v17 = vpack.c.bf16 %v706_v12, %v703_v2  ;;  %3546 = vmatpush3.bf16.msra.mxu1 %v3945_v62 }
 0x203   : > { %3547 = vmatprep.subr.bf16.mxu1 %v3946_v3 }
 0x204   : > { %3539 = vmatprep.mubr.bf16.mxu1 %v720_v17 }
 0x205   : > { %3540 = vmatmul.mubr.bf16.gmra.mrb[28].mxu1 %v721_v6 }
 0x206   : > { %3548 = vmatpush3.bf16.msra.mxu1 %v3946_v3  ;;  %3559 = vmatprep.mubr.bf16.mxu1 %v592_v49  ;;  %v3982_v49 = vld [vmem:[%s4816_s5 + $0x98] sm:$0xff]  }
 0x207   : > { %3549 = vmatprep.subr.bf16.mxu1 %v3947_v18  ;;  %3589 = vmatprep.subr.bf16.mxu0 %v3982_v49 }
 0x208   : > { %3590 = vmatpush3.bf16.msra.mxu0 %v3982_v49 }
 0x209   : > { %3591 = vmatprep.subr.bf16.mxu0 %v3984_v52 }
 0x20a   : > { %3550 = vmatpush3.bf16.msra.mxu1 %v3947_v18 }
 0x20b   : > { %3551 = vmatprep.subr.bf16.mxu1 %v3948_v21 }
 0x20c   : > { %3592 = vmatpush3.bf16.msra.mxu0 %v3984_v52  ;;  %v3996_v52 = vld [vmem:[%s4816_s5 + $0x100] sm:$0xff]  }
 0x20e   : > { %3552 = vmatpush3.bf16.msra.mxu1 %v3948_v21 }
 0x20f   : > { %3553 = vmatprep.subr.bf16.mxu1 %v3949_v23 }
 0x212   : > { %3554 = vmatpush3.bf16.msra.mxu1 %v3949_v23 }
 0x213   : > { %3555 = vmatprep.subr.bf16.mxu1 %v3950_v28 }
 0x216   : > { %3556 = vmatpush3.bf16.msra.mxu1 %v3950_v28  ;;  %v3990_v28 = vld [vmem:[%s4816_s5 + $0xd0] sm:$0xff]  }
 0x217   : > { %3557 = vmatprep.subr.bf16.mxu1 %v3951_v29 }
 0x21a   : > { %3558 = vmatpush3.bf16.msra.mxu1 %v3951_v29 }
 0x21b   : > { %3567 = vmatprep.subr.bf16.mxu1 %v4172_v1 }
 0x21d   : > { %3560 = vmatmul.mubr.bf16.vlgmr.msra.gmra.mrb[24].mxu1 %v593_v47  ;;  %v3969_v47 = vld [vmem:[%s4817_s6 + $0xc8] sm:$0xff]  }
 0x21e   : > { %3563 = vmatprep.mubr.bf16.mxu1 %v594_v55  ;;  %3568 = vmatpush3.bf16.msra.mxu1 %v4172_v1  ;;  %v3974_v55 = vld [vmem:[%s4817_s6 + $0xf0] sm:$0xff]  }
 0x21f   : > { %3569 = vmatprep.subr.bf16.mxu1 %v4170_v0 }
 0x222   : > { %3570 = vmatpush3.bf16.msra.mxu1 %v4170_v0 }
 0x223   : > { %3571 = vmatprep.subr.bf16.mxu1 %v4180_v27 }
 0x225   : > { %3564 = vmatmul.mubr.bf16.gmra.mrb[28].mxu1 %v595_v53  ;;  %v3985_v53 = vld [vmem:[%s4816_s5 + $0xa8] sm:$0xff]  }
 0x226   : > { %3572 = vmatpush3.bf16.msra.mxu1 %v4180_v27  ;;  %3575 = vmatprep.mubr.msk.bf16.mxu1 %vm514_vm0, %v3952_v30 }
 0x227   : > { %3573 = vmatprep.subr.bf16.mxu1 %v4177_v26  ;;  %3593 = vmatprep.subr.bf16.mxu0 %v3985_v53 }
 0x228   : > { %3594 = vmatpush3.bf16.msra.mxu0 %v3985_v53 }
 0x229   : > { %3595 = vmatprep.subr.bf16.mxu0 %v3986_v56 }
 0x22a   : > { %3574 = vmatpush3.bf16.msra.mxu1 %v4177_v26 }
 0x22b   : > { %3607 = vmatprep.subr.bf16.mxu1 %v4172_v1 }
 0x22c   : > { %3596 = vmatpush3.bf16.msra.mxu0 %v3986_v56 }
 0x22d   : > { %3576 = vmatmul.mubr.msk.bf16.vlgmr.msra.gmra.mrb[32].mxu1 %vm514_vm0, %v3953_v31  ;;  %3597 = vmatprep.subr.bf16.mxu0 %v3987_v57 }
 0x22e   : > { %3608 = vmatpush3.bf16.msra.mxu1 %v4172_v1  ;;  %3579 = vmatprep.mubr.msk.bf16.mxu1 %vm514_vm0, %v3954_v32 }
 0x22f   : > { %3609 = vmatprep.subr.bf16.mxu1 %v4170_v0 }
 0x230   : > { %3598 = vmatpush3.bf16.msra.mxu0 %v3987_v57 }
 0x232   : > { %3610 = vmatpush3.bf16.msra.mxu1 %v4170_v0 }
 0x233   : > { %3611 = vmatprep.subr.bf16.mxu1 %v4180_v27 }
 0x235   : > { %3580 = vmatmul.mubr.msk.bf16.gmra.mrb[36].mxu1 %vm514_vm0, %v3955_v33 }
 0x236   : > { %3612 = vmatpush3.bf16.msra.mxu1 %v4180_v27  ;;  %3615 = vmatprep.mubr.msk.bf16.mxu1 %vm514_vm0, %v3956_v34  ;;  %v3991_v34 = vld [vmem:[%s4816_s5 + $0xd8] sm:$0xff]  }
 0x237   : > { %3613 = vmatprep.subr.bf16.mxu1 %v4177_v26 }
 0x23a   : > { %3614 = vmatpush3.bf16.msra.mxu1 %v4177_v26 }
 0x23b   : > { %3647 = vmatprep.subr.bf16.mxu1 %v4172_v1 }
 0x23d   : > { %3616 = vmatmul.mubr.msk.bf16.vlgmr.msra.gmra.mrb[40].mxu1 %vm514_vm0, %v3957_v35 }
 0x23e   : > { %3648 = vmatpush3.bf16.msra.mxu1 %v4172_v1  ;;  %3619 = vmatprep.mubr.msk.bf16.mxu1 %vm514_vm0, %v3958_v36  ;;  %v3992_v36 = vld [vmem:[%s4816_s5 + $0xe0] sm:$0xff]  }
 0x23f   : > { %3649 = vmatprep.subr.bf16.mxu1 %v4170_v0 }
 0x242   : > { %3650 = vmatpush3.bf16.msra.mxu1 %v4170_v0 }
 0x243   : > { %3651 = vmatprep.subr.bf16.mxu1 %v4180_v27 }
 0x245   : > { %3620 = vmatmul.mubr.msk.bf16.gmra.mrb[44].mxu1 %vm514_vm0, %v3959_v37 }
 0x246   : > { %3652 = vmatpush3.bf16.msra.mxu1 %v4180_v27  ;;  %3655 = vmatprep.mubr.msk.bf16.mxu1 %vm514_vm0, %v3960_v38 }
 0x247   : > { %3653 = vmatprep.subr.bf16.mxu1 %v4177_v26 }
 0x24a   : > { %3654 = vmatpush3.bf16.msra.mxu1 %v4177_v26 }
 0x24b   : > { %3687 = vmatprep.subr.bf16.mxu1 %v4172_v1 }
 0x24d   : > { %3656 = vmatmul.mubr.msk.bf16.vlgmr.msra.gmra.mrb[48].mxu1 %vm514_vm0, %v3961_v39 }
 0x24e   : > { %3688 = vmatpush3.bf16.msra.mxu1 %v4172_v1  ;;  %3659 = vmatprep.mubr.msk.bf16.mxu1 %vm514_vm0, %v3962_v40 }
 0x24f   : > { %3689 = vmatprep.subr.bf16.mxu1 %v4170_v0 }
 0x252   : > { %3690 = vmatpush3.bf16.msra.mxu1 %v4170_v0 }
 0x253   : > { %3691 = vmatprep.subr.bf16.mxu1 %v4180_v27 }
 0x255   : > { %3660 = vmatmul.mubr.msk.bf16.gmra.mrb[52].mxu1 %vm514_vm0, %v3963_v41 }
 0x256   : > { %3692 = vmatpush3.bf16.msra.mxu1 %v4180_v27  ;;  %3695 = vmatprep.mubr.msk.bf16.mxu1 %vm514_vm0, %v3964_v42  ;;  %v3993_v42 = vld [vmem:[%s4816_s5 + $0xe8] sm:$0xff]  }
 0x257   : > { %3693 = vmatprep.subr.bf16.mxu1 %v4177_v26 }
 0x25a   : > { %3694 = vmatpush3.bf16.msra.mxu1 %v4177_v26 }
 0x25b   : > { %3727 = vmatprep.subr.bf16.mxu1 %v4172_v1 }
 0x25d   : > { %3696 = vmatmul.mubr.msk.bf16.vlgmr.msra.gmra.mrb[56].mxu1 %vm514_vm0, %v3965_v43 }
 0x25e   : > { %3728 = vmatpush3.bf16.msra.mxu1 %v4172_v1  ;;  %3699 = vmatprep.mubr.msk.bf16.mxu1 %vm514_vm0, %v3966_v44  ;;  %v3994_v44 = vld [vmem:[%s4816_s5 + $0xf0] sm:$0xff]  }
 0x25f   : > { %3729 = vmatprep.subr.bf16.mxu1 %v4170_v0 }
 0x262   : > { %3730 = vmatpush3.bf16.msra.mxu1 %v4170_v0 }
 0x263   : > { %3731 = vmatprep.subr.bf16.mxu1 %v4180_v27 }
 0x265   : > { %3700 = vmatmul.mubr.msk.bf16.gmra.mrb[60].mxu1 %vm514_vm0, %v3967_v45 }
 0x266   : > { %3732 = vmatpush3.bf16.msra.mxu1 %v4180_v27  ;;  %3735 = vmatprep.mubr.msk.bf16.mxu1 %vm514_vm0, %v3968_v46 }
 0x267   : > { %3733 = vmatprep.subr.bf16.mxu1 %v4177_v26 }
 0x26a   : > { %3734 = vmatpush3.bf16.msra.mxu1 %v4177_v26 }
 0x26b   : > { %3767 = vmatprep.subr.bf16.mxu1 %v4172_v1 }
 0x26d   : > { %3736 = vmatmul.mubr.msk.bf16.vlgmr.msra.gmra.mrb[64].mxu1 %vm514_vm0, %v3969_v47 }
 0x26e   : > { %3768 = vmatpush3.bf16.msra.mxu1 %v4172_v1  ;;  %3739 = vmatprep.mubr.msk.bf16.mxu1 %vm514_vm0, %v3970_v48 }
 0x26f   : > { %3769 = vmatprep.subr.bf16.mxu1 %v4170_v0 }
 0x272   : > { %3770 = vmatpush3.bf16.msra.mxu1 %v4170_v0 }
 0x273   : > { %3771 = vmatprep.subr.bf16.mxu1 %v4180_v27 }
 0x275   : > { %3740 = vmatmul.mubr.msk.bf16.gmra.mrb[68].mxu1 %vm514_vm0, %v3971_v50  ;;  %v3995_v50 = vld [vmem:[%s4816_s5 + $0xf8] sm:$0xff]  }
 0x276   : > { %3772 = vmatpush3.bf16.msra.mxu1 %v4180_v27  ;;  %3775 = vmatprep.mubr.msk.bf16.mxu1 %vm514_vm0, %v3972_v51 }
 0x277   : > { %3773 = vmatprep.subr.bf16.mxu1 %v4177_v26 }
 0x27a   : > { %3774 = vmatpush3.bf16.msra.mxu1 %v4177_v26 }
 0x27b   : > { %3807 = vmatprep.subr.bf16.mxu1 %v4172_v1 }
 0x27d   : > { %3776 = vmatmul.mubr.msk.bf16.vlgmr.msra.gmra.mrb[72].mxu1 %vm514_vm0, %v3973_v54 }
 0x27e   : > { %3808 = vmatpush3.bf16.msra.mxu1 %v4172_v1  ;;  %3779 = vmatprep.mubr.msk.bf16.mxu1 %vm514_vm0, %v3974_v55  ;;  %v3988_v1 = vld [vmem:[%s4816_s5 + $0xc0] sm:$0xff]  }
 0x27f   : > { %3809 = vmatprep.subr.bf16.mxu1 %v4170_v0  ;;  %3623 = vmatprep.subr.bf16.mxu0 %v3988_v1 }
 0x282   : > { %3810 = vmatpush3.bf16.msra.mxu1 %v4170_v0  ;;  %v3979_v0 = vld [vmem:[%s4817_s6 + $0x108] sm:$0xff]  }
 0x283   : > { %3811 = vmatprep.subr.bf16.mxu1 %v4180_v27 }
 0x285   : > { %3780 = vmatmul.mubr.msk.bf16.gmra.mrb[76].mxu1 %vm514_vm0, %v3975_v58  ;;  %v3997_v58 = vld [vmem:[%s4816_s5 + $0x108] sm:$0xff]  }
 0x286   : > { %3812 = vmatpush3.bf16.msra.mxu1 %v4180_v27  ;;  %3815 = vmatprep.mubr.msk.bf16.mxu1 %vm514_vm0, %v3977_v59  ;;  %v3983_v27 = vld [vmem:[%s4817_s6 + $0x118] sm:$0xff]  }
 0x287   : > { %3813 = vmatprep.subr.bf16.mxu1 %v4177_v26 }
 0x28a   : > { %3814 = vmatpush3.bf16.msra.mxu1 %v4177_v26 }
 0x28d   : > { %3816 = vmatmul.mubr.msk.bf16.vlgmr.msra.gmra.mrb[80].mxu1 %vm514_vm0, %v3979_v0 }
 0x28e   : > { %3819 = vmatprep.mubr.msk.bf16.mxu1 %vm514_vm0, %v3981_v60 }
 0x295   : > { %3820 = vmatmul.mubr.msk.bf16.gmra.mrb[84].mxu1 %vm514_vm0, %v3983_v27 }
 0x2f0   : > { %v4465_v61 = vpop.f32.mrb[24].mxu1 }
 0x2f1   : > { %v4467_v62 = vpop.f32.mrb[25].mxu1 }
 0x2f2   : > { %v4469_v63 = vpop.f32.mrb[26].mxu1 }
 0x2f3   : > { %v4471_v26 = vpop.f32.mrb[27].mxu1 }
 0x2f8   : > { %v4473_v2 = vpop.f32.mrb[28].mxu1 }
 0x2f9   : > { %v4475_v3 = vpop.f32.mrb[29].mxu1 }
 0x2fa   : > { %v4477_v5 = vpop.f32.mrb[30].mxu1 }
 0x2fb   : > { %v4479_v6 = vpop.f32.mrb[31].mxu1 }
 0x300   : > { %v3577_v12 = vpop.f32.mrb[32].mxu1 }
 0x301   : > { %v1040_v17 = vpop.f32.mrb[33].mxu1 }
 0x302   : > { %v3578_v18 = vpop.f32.mrb[34].mxu1 }
 0x303   : > { %v1072_v21 = vpack.c.bf16 %v3578_v18, %v3577_v12  ;;  %v1043_v22 = vpop.f32.mrb[35].mxu1  ;;  %v3999_v18 = vld [vmem:[%s4816_s5 + $0x118] sm:$0xff]  }
 0x304   : > { %v1071_v23 = vpack.c.bf16 %v1043_v22, %v1040_v17  ;;  %v4000_v22 = vld [vmem:[%s4816_s5 + $0x120] sm:$0xff]  }
 0x306   : > { %3599 = vmatprep.mubr.bf16.mxu0 %v1071_v23 }
 0x307   : > { %3600 = vmatmul.mubr.bf16.vlgmr.msra.gmra.mrb[0].mxu0 %v1072_v21 }
 0x308   : > { %3624 = vmatpush3.bf16.msra.mxu0 %v3988_v1  ;;  %v3581_v25 = vpop.f32.mrb[36].mxu1  ;;  %v3998_v1 = vld [vmem:[%s4816_s5 + $0x110] sm:$0xff]  }
 0x309   : > { %3625 = vmatprep.subr.bf16.mxu0 %v3989_v24  ;;  %v1056_v29 = vpop.f32.mrb[37].mxu1 }
 0x30a   : > { %v3582_v30 = vpop.f32.mrb[38].mxu1 }
 0x30b   : > { %v1074_v31 = vpack.c.bf16 %v3582_v30, %v3581_v25  ;;  %v1059_v32 = vpop.f32.mrb[39].mxu1  ;;  %v4001_v30 = vld [vmem:[%s4816_s5 + $0x128] sm:$0xff]  }
 0x30c   : > { %3626 = vmatpush3.bf16.msra.mxu0 %v3989_v24  ;;  %v1073_v33 = vpack.c.bf16 %v1059_v32, %v1056_v29  ;;  %v4002_v32 = vld [vmem:[%s4816_s5 + $0x130] sm:$0xff]  }
 0x30d   : > { %3627 = vmatprep.subr.bf16.mxu0 %v3990_v28 }
 0x30e   : > { %3603 = vmatprep.mubr.bf16.mxu0 %v1073_v33 }
 0x30f   : > { %3604 = vmatmul.mubr.bf16.gmra.mrb[4].mxu0 %v1074_v31 }
 0x310   : > { %3628 = vmatpush3.bf16.msra.mxu0 %v3990_v28  ;;  %v3617_v35 = vpop.f32.mrb[40].mxu1 }
 0x311   : > { %3629 = vmatprep.subr.bf16.mxu0 %v3991_v34  ;;  %v1288_v37 = vpop.f32.mrb[41].mxu1 }
 0x312   : > { %v3618_v38 = vpop.f32.mrb[42].mxu1 }
 0x313   : > { %v1320_v39 = vpack.c.bf16 %v3618_v38, %v3617_v35  ;;  %v1291_v40 = vpop.f32.mrb[43].mxu1  ;;  %v4003_v38 = vld [vmem:[%s4816_s5 + $0x138] sm:$0xff]  }
 0x314   : > { %3630 = vmatpush3.bf16.msra.mxu0 %v3991_v34  ;;  %v1319_v41 = vpack.c.bf16 %v1291_v40, %v1288_v37  ;;  %v4004_v40 = vld [vmem:[%s4816_s5 + $0x140] sm:$0xff]  }
 0x315   : > { %3631 = vmatprep.subr.bf16.mxu0 %v3992_v36 }
 0x316   : > { %3639 = vmatprep.mubr.bf16.mxu0 %v1319_v41 }
 0x318   : > { %3632 = vmatpush3.bf16.msra.mxu0 %v3992_v36  ;;  %v3621_v43 = vpop.f32.mrb[44].mxu1 }
 0x319   : > { %3633 = vmatprep.subr.bf16.mxu0 %v3993_v42  ;;  %v1304_v45 = vpop.f32.mrb[45].mxu1 }
 0x31a   : > { %v3622_v46 = vpop.f32.mrb[46].mxu1 }
 0x31b   : > { %v1322_v47 = vpack.c.bf16 %v3622_v46, %v3621_v43  ;;  %v1307_v48 = vpop.f32.mrb[47].mxu1  ;;  %v4005_v46 = vld [vmem:[%s4816_s5 + $0x148] sm:$0xff]  }
 0x31c   : > { %3634 = vmatpush3.bf16.msra.mxu0 %v3993_v42  ;;  %v1321_v49 = vpack.c.bf16 %v1307_v48, %v1304_v45  ;;  %v4006_v48 = vld [vmem:[%s4816_s5 + $0x150] sm:$0xff]  }
 0x31d   : > { %3635 = vmatprep.subr.bf16.mxu0 %v3994_v44 }
 0x320   : > { %3636 = vmatpush3.bf16.msra.mxu0 %v3994_v44  ;;  %v4502_v51 = vpop.f32.mrb[48].mxu1 }
 0x321   : > { %3637 = vmatprep.subr.bf16.mxu0 %v3995_v50  ;;  %v1536_v53 = vpop.f32.mrb[49].mxu1 }
 0x322   : > { %v3658_v54 = vpop.f32.mrb[50].mxu1 }
 0x323   : > { %v1568_v55 = vpack.c.bf16 %v3658_v54, %v4502_v51  ;;  %v1539_v56 = vpop.f32.mrb[51].mxu1  ;;  %v4007_v54 = vld [vmem:[%s4816_s5 + $0x158] sm:$0xff]  }
 0x324   : > { %3638 = vmatpush3.bf16.msra.mxu0 %v3995_v50  ;;  %v1567_v57 = vpack.c.bf16 %v1539_v56, %v1536_v53  ;;  %v4008_v56 = vld [vmem:[%s4816_s5 + $0x160] sm:$0xff]  }
 0x325   : > { %3663 = vmatprep.subr.bf16.mxu0 %v3996_v52 }
 0x327   : > { %3640 = vmatmul.mubr.bf16.vlgmr.msra.gmra.mrb[0].mxu0 %v1320_v39 }
 0x328   : > { %3664 = vmatpush3.bf16.msra.mxu0 %v3996_v52  ;;  %3643 = vmatprep.mubr.bf16.mxu0 %v1321_v49  ;;  %v4511_v59 = vpop.f32.mrb[52].mxu1 }
 0x329   : > { %3665 = vmatprep.subr.bf16.mxu0 %v3997_v58  ;;  %v1552_v0 = vpop.f32.mrb[53].mxu1 }
 0x32a   : > { %v3662_v60 = vpop.f32.mrb[54].mxu1 }
 0x32b   : > { %v1570_v27 = vpack.c.bf16 %v3662_v60, %v4511_v59  ;;  %v1555_v12 = vpop.f32.mrb[55].mxu1  ;;  %v4009_v60 = vld [vmem:[%s4816_s5 + $0x168] sm:$0xff]  }
 0x32c   : > { %3666 = vmatpush3.bf16.msra.mxu0 %v3997_v58  ;;  %v1569_v17 = vpack.c.bf16 %v1555_v12, %v1552_v0  ;;  %v4010_v12 = vld [vmem:[%s4816_s5 + $0x170] sm:$0xff]  }
 0x32d   : > { %3667 = vmatprep.subr.bf16.mxu0 %v3998_v1 }
 0x32f   : > { %3644 = vmatmul.mubr.bf16.gmra.mrb[4].mxu0 %v1322_v47 }
 0x330   : > { %3668 = vmatpush3.bf16.msra.mxu0 %v3998_v1  ;;  %3679 = vmatprep.mubr.bf16.mxu0 %v1567_v57  ;;  %v4520_v21 = vpop.f32.mrb[56].mxu1 }
 0x331   : > { %3669 = vmatprep.subr.bf16.mxu0 %v3999_v18  ;;  %v1784_v23 = vpop.f32.mrb[57].mxu1 }
 0x332   : > { %v4525_v24 = vpop.f32.mrb[58].mxu1 }
 0x333   : > { %v1816_v25 = vpack.c.bf16 %v4525_v24, %v4520_v21  ;;  %v1787_v28 = vpop.f32.mrb[59].mxu1 }
 0x334   : > { %3670 = vmatpush3.bf16.msra.mxu0 %v3999_v18  ;;  %v1815_v29 = vpack.c.bf16 %v1787_v28, %v1784_v23 }
 0x335   : > { %3671 = vmatprep.subr.bf16.mxu0 %v4000_v22 }
 0x338   : > { %3672 = vmatpush3.bf16.msra.mxu0 %v4000_v22  ;;  %v4532_v31 = vpop.f32.mrb[60].mxu1 }
 0x339   : > { %3673 = vmatprep.subr.bf16.mxu0 %v4001_v30  ;;  %v4537_v33 = vpop.f32.mrb[61].mxu1 }
 0x33a   : > { %v4539_v34 = vpop.f32.mrb[62].mxu1 }
 0x33b   : > { %v1818_v35 = vpack.c.bf16 %v4539_v34, %v4532_v31  ;;  %v4543_v36 = vpop.f32.mrb[63].mxu1  ;;  %v4018_v31 = vld [vmem:[%s4816_s5 + $0x1b0] sm:$0xff]   ;;  %v4019_v34 = vld [vmem:[%s4816_s5 + $0x1b8] sm:$0xff]  }
 0x33c   : > { %3674 = vmatpush3.bf16.msra.mxu0 %v4001_v30  ;;  %v1817_v37 = vpack.c.bf16 %v4543_v36, %v4537_v33  ;;  %v4015_v33 = vld [vmem:[%s4816_s5 + $0x198] sm:$0xff]   ;;  %v4016_v36 = vld [vmem:[%s4816_s5 + $0x1a0] sm:$0xff]  }
 0x33d   : > { %3675 = vmatprep.subr.bf16.mxu0 %v4002_v32 }
 0x340   : > { %3676 = vmatpush3.bf16.msra.mxu0 %v4002_v32  ;;  %v4550_v39 = vpop.f32.mrb[64].mxu1  ;;  %v4012_v32 = vld [vmem:[%s4816_s5 + $0x180] sm:$0xff]  }
 0x341   : > { %3677 = vmatprep.subr.bf16.mxu0 %v4003_v38  ;;  %v4555_v41 = vpop.f32.mrb[65].mxu1 }
 0x342   : > { %v4557_v42 = vpop.f32.mrb[66].mxu1 }
 0x343   : > { %v2064_v43 = vpack.c.bf16 %v4557_v42, %v4550_v39  ;;  %v4561_v44 = vpop.f32.mrb[67].mxu1  ;;  %v4024_v39 = vld [vmem:[%s4816_s5 + $0x1e0] sm:$0xff]   ;;  %v4025_v42 = vld [vmem:[%s4816_s5 + $0x1e8] sm:$0xff]  }
 0x344   : > { %3678 = vmatpush3.bf16.msra.mxu0 %v4003_v38  ;;  %v2063_v45 = vpack.c.bf16 %v4561_v44, %v4555_v41  ;;  %v4021_v41 = vld [vmem:[%s4816_s5 + $0x1c8] sm:$0xff]   ;;  %v4022_v44 = vld [vmem:[%s4816_s5 + $0x1d0] sm:$0xff]  }
 0x345   : > { %3703 = vmatprep.subr.bf16.mxu0 %v4004_v40 }
 0x347   : > { %3680 = vmatmul.mubr.bf16.vlgmr.msra.gmra.mrb[0].mxu0 %v1568_v55 }
 0x348   : > { %3704 = vmatpush3.bf16.msra.mxu0 %v4004_v40  ;;  %3683 = vmatprep.mubr.bf16.mxu0 %v1569_v17  ;;  %v4568_v47 = vpop.f32.mrb[68].mxu1 }
 0x349   : > { %3705 = vmatprep.subr.bf16.mxu0 %v4005_v46  ;;  %v4573_v49 = vpop.f32.mrb[69].mxu1 }
 0x34a   : > { %v4575_v50 = vpop.f32.mrb[70].mxu1 }
 0x34b   : > { %v2066_v51 = vpack.c.bf16 %v4575_v50, %v4568_v47  ;;  %v4579_v52 = vpop.f32.mrb[71].mxu1  ;;  %v4027_v47 = vld [vmem:[%s4816_s5 + $0x1f8] sm:$0xff]   ;;  %v4029_v50 = vld [vmem:[%s4816_s5 + $0x208] sm:$0xff]  }
 0x34c   : > { %3706 = vmatpush3.bf16.msra.mxu0 %v4005_v46  ;;  %v2065_v53 = vpack.c.bf16 %v4579_v52, %v4573_v49  ;;  %v4028_v49 = vld [vmem:[%s4816_s5 + $0x200] sm:$0xff]   ;;  %v4031_v52 = vld [vmem:[%s4816_s5 + $0x218] sm:$0xff]  }
 0x34d   : > { %3707 = vmatprep.subr.bf16.mxu0 %v4006_v48 }
 0x34f   : > { %3684 = vmatmul.mubr.bf16.gmra.mrb[4].mxu0 %v1570_v27 }
 0x350   : > { %3708 = vmatpush3.bf16.msra.mxu0 %v4006_v48  ;;  %3719 = vmatprep.mubr.bf16.mxu0 %v1815_v29  ;;  %v4586_v55 = vpop.f32.mrb[72].mxu1  ;;  %v4011_v29 = vld [vmem:[%s4816_s5 + $0x178] sm:$0xff]  }
 0x351   : > { %3709 = vmatprep.subr.bf16.mxu0 %v4007_v54  ;;  %v4591_v57 = vpop.f32.mrb[73].mxu1 }
 0x352   : > { %v4593_v58 = vpop.f32.mrb[74].mxu1 }
 0x353   : > { %v2312_v59 = vpack.c.bf16 %v4593_v58, %v4586_v55  ;;  %v4597_v1 = vpop.f32.mrb[75].mxu1  ;;  %v4033_v55 = vld [vmem:[%s4816_s5 + $0x228] sm:$0xff]   ;;  %v4035_v58 = vld [vmem:[%s4816_s5 + $0x238] sm:$0xff]  }
 0x354   : > { %3710 = vmatpush3.bf16.msra.mxu0 %v4007_v54  ;;  %v2311_v0 = vpack.c.bf16 %v4597_v1, %v4591_v57  ;;  %v4034_v57 = vld [vmem:[%s4816_s5 + $0x230] sm:$0xff]  }
 0x355   : > { %3711 = vmatprep.subr.bf16.mxu0 %v4008_v56 }
 0x358   : > { %3712 = vmatpush3.bf16.msra.mxu0 %v4008_v56  ;;  %v4604_v27 = vpop.f32.mrb[76].mxu1  ;;  %v4013_v56 = vld [vmem:[%s4816_s5 + $0x188] sm:$0xff]  }
 0x359   : > { %3713 = vmatprep.subr.bf16.mxu0 %v4009_v60  ;;  %v4609_v17 = vpop.f32.mrb[77].mxu1 }
 0x35a   : > { %v4611_v18 = vpop.f32.mrb[78].mxu1 }
 0x35b   : > { %v2314_v22 = vpack.c.bf16 %v4611_v18, %v4604_v27  ;;  %v4615_v23 = vpop.f32.mrb[79].mxu1 }
 0x35c   : > { %3714 = vmatpush3.bf16.msra.mxu0 %v4009_v60  ;;  %v2313_v28 = vpack.c.bf16 %v4615_v23, %v4609_v17 }
 0x35d   : > { %3715 = vmatprep.subr.bf16.mxu0 %v4010_v12 }
 0x360   : > { %3716 = vmatpush3.bf16.msra.mxu0 %v4010_v12  ;;  %v4622_v30 = vpop.f32.mrb[80].mxu1  ;;  %v4014_v12 = vld [vmem:[%s4816_s5 + $0x190] sm:$0xff]  }
 0x361   : > { %3717 = vmatprep.subr.bf16.mxu0 %v4011_v29  ;;  %v4627_v38 = vpop.f32.mrb[81].mxu1 }
 0x362   : > { %v4629_v40 = vpop.f32.mrb[82].mxu1 }
 0x363   : > { %v2560_v46 = vpack.c.bf16 %v4629_v40, %v4622_v30  ;;  %v4633_v48 = vpop.f32.mrb[83].mxu1 }
 0x364   : > { %3718 = vmatpush3.bf16.msra.mxu0 %v4011_v29  ;;  %v2559_v54 = vpack.c.bf16 %v4633_v48, %v4627_v38 }
 0x365   : > { %3743 = vmatprep.subr.bf16.mxu0 %v4012_v32 }
 0x367   : > { %3720 = vmatmul.mubr.bf16.vlgmr.msra.gmra.mrb[0].mxu0 %v1816_v25 }
 0x368   : > { %3744 = vmatpush3.bf16.msra.mxu0 %v4012_v32  ;;  %3723 = vmatprep.mubr.bf16.mxu0 %v1817_v37  ;;  %v4646_v60 = vpop.f32.mrb[84].mxu1  ;;  %v4017_v37 = vld [vmem:[%s4816_s5 + $0x1a8] sm:$0xff]  }
 0x369   : > { %3745 = vmatprep.subr.bf16.mxu0 %v4013_v56  ;;  %v4651_v29 = vpop.f32.mrb[85].mxu1 }
 0x36a   : > { %v4653_v20 = vpop.f32.mrb[86].mxu1 }
 0x36b   : > { %v2562_v21 = vpack.c.bf16 %v4653_v20, %v4646_v60  ;;  %v4657_v24 = vpop.f32.mrb[87].mxu1 }
 0x36c   : > { %3746 = vmatpush3.bf16.msra.mxu0 %v4013_v56  ;;  %v2561_v25 = vpack.c.bf16 %v4657_v24, %v4651_v29 }
 0x36d   : > { %3747 = vmatprep.subr.bf16.mxu0 %v4014_v12 }
 0x36f   : > { %3724 = vmatmul.mubr.bf16.gmra.mrb[4].mxu0 %v1818_v35  ;;  %v4020_v35 = vld [vmem:[%s4816_s5 + $0x1c0] sm:$0xff]  }
 0x370   : > { %3748 = vmatpush3.bf16.msra.mxu0 %v4014_v12  ;;  %3759 = vmatprep.mubr.bf16.mxu0 %v2063_v45  ;;  %v4023_v45 = vld [vmem:[%s4816_s5 + $0x1d8] sm:$0xff]  }
 0x371   : > { %3749 = vmatprep.subr.bf16.mxu0 %v4015_v33 }
 0x374   : > { %3750 = vmatpush3.bf16.msra.mxu0 %v4015_v33 }
 0x375   : > { %3751 = vmatprep.subr.bf16.mxu0 %v4016_v36 }
 0x378   : > { %3752 = vmatpush3.bf16.msra.mxu0 %v4016_v36 }
 0x379   : > { %3753 = vmatprep.subr.bf16.mxu0 %v4017_v37 }
 0x37c   : > { %3754 = vmatpush3.bf16.msra.mxu0 %v4017_v37 }
 0x37d   : > { %3755 = vmatprep.subr.bf16.mxu0 %v4018_v31 }
 0x380   : > { %3756 = vmatpush3.bf16.msra.mxu0 %v4018_v31 }
 0x381   : > { %3757 = vmatprep.subr.bf16.mxu0 %v4019_v34 }
 0x384   : > { %3758 = vmatpush3.bf16.msra.mxu0 %v4019_v34 }
 0x385   : > { %3783 = vmatprep.subr.bf16.mxu0 %v4020_v35 }
 0x387   : > { %3760 = vmatmul.mubr.bf16.vlgmr.msra.gmra.mrb[0].mxu0 %v2064_v43  ;;  %v4026_v43 = vld [vmem:[%s4816_s5 + $0x1f0] sm:$0xff]  }
 0x388   : > { %3784 = vmatpush3.bf16.msra.mxu0 %v4020_v35  ;;  %3763 = vmatprep.mubr.bf16.mxu0 %v2065_v53  ;;  %v4032_v53 = vld [vmem:[%s4816_s5 + $0x220] sm:$0xff]  }
 0x389   : > { %3785 = vmatprep.subr.bf16.mxu0 %v4021_v41 }
 0x38c   : > { %3786 = vmatpush3.bf16.msra.mxu0 %v4021_v41 }
 0x38d   : > { %3787 = vmatprep.subr.bf16.mxu0 %v4022_v44 }
 0x38f   : > { %3764 = vmatmul.mubr.bf16.gmra.mrb[4].mxu0 %v2066_v51  ;;  %v4030_v51 = vld [vmem:[%s4816_s5 + $0x210] sm:$0xff]  }
 0x390   : > { %3788 = vmatpush3.bf16.msra.mxu0 %v4022_v44  ;;  %3799 = vmatprep.mubr.bf16.mxu0 %v2311_v0 }
 0x391   : > { %3789 = vmatprep.subr.bf16.mxu0 %v4023_v45 }
 0x394   : > { %3790 = vmatpush3.bf16.msra.mxu0 %v4023_v45 }
 0x395   : > { %3791 = vmatprep.subr.bf16.mxu0 %v4024_v39 }
 0x398   : > { %3792 = vmatpush3.bf16.msra.mxu0 %v4024_v39 }
 0x399   : > { %3793 = vmatprep.subr.bf16.mxu0 %v4025_v42 }
 0x39c   : > { %3794 = vmatpush3.bf16.msra.mxu0 %v4025_v42 }
 0x39d   : > { %3795 = vmatprep.subr.bf16.mxu0 %v4026_v43 }
 0x3a0   : > { %3796 = vmatpush3.bf16.msra.mxu0 %v4026_v43 }
 0x3a1   : > { %3797 = vmatprep.subr.bf16.mxu0 %v4027_v47 }
 0x3a4   : > { %3798 = vmatpush3.bf16.msra.mxu0 %v4027_v47  ;;  %v4820_v47 = vunpack.c.h.bf16 %v4127_v11 }
 0x3a5   : > { %3823 = vmatprep.subr.bf16.mxu0 %v4028_v49 }
 0x3a7   : > { %3800 = vmatmul.mubr.bf16.vlgmr.msra.gmra.mrb[0].mxu0 %v2312_v59 }
 0x3a8   : > { %3824 = vmatpush3.bf16.msra.mxu0 %v4028_v49  ;;  %3803 = vmatprep.mubr.bf16.mxu0 %v2313_v28 }
 0x3a9   : > { %3825 = vmatprep.subr.bf16.mxu0 %v4029_v50 }
 0x3ac   : > { %3826 = vmatpush3.bf16.msra.mxu0 %v4029_v50 }
 0x3ad   : > { %3827 = vmatprep.subr.bf16.mxu0 %v4030_v51 }
 0x3af   : > { %3804 = vmatmul.mubr.bf16.gmra.mrb[4].mxu0 %v2314_v22 }
 0x3b0   : > { %3828 = vmatpush3.bf16.msra.mxu0 %v4030_v51  ;;  %3839 = vmatprep.mubr.bf16.mxu0 %v2559_v54 }
 0x3b1   : > { %3829 = vmatprep.subr.bf16.mxu0 %v4031_v52 }
 0x3b4   : > { %3830 = vmatpush3.bf16.msra.mxu0 %v4031_v52 }
 0x3b5   : > { %3831 = vmatprep.subr.bf16.mxu0 %v4032_v53 }
 0x3b8   : > { %3832 = vmatpush3.bf16.msra.mxu0 %v4032_v53 }
 0x3b9   : > { %3833 = vmatprep.subr.bf16.mxu0 %v4033_v55 }
 0x3bc   : > { %3834 = vmatpush3.bf16.msra.mxu0 %v4033_v55 }
 0x3bd   : > { %3835 = vmatprep.subr.bf16.mxu0 %v4034_v57 }
 0x3c0   : > { %3836 = vmatpush3.bf16.msra.mxu0 %v4034_v57 }
 0x3c1   : > { %3837 = vmatprep.subr.bf16.mxu0 %v4035_v58 }
 0x3c4   : > { %3838 = vmatpush3.bf16.msra.mxu0 %v4035_v58 }
 0x3c7   : > { %3840 = vmatmul.mubr.bf16.vlgmr.msra.gmra.mrb[0].mxu0 %v2560_v46 }
 0x3c8   : > { %3843 = vmatprep.mubr.bf16.mxu0 %v2561_v25 }
 0x3cf   : > { %3844 = vmatmul.mubr.bf16.gmra.mrb[4].mxu0 %v2562_v21 }
 0x49a   : > { %v3841_v59 = vpop.f32.mrb[0].mxu0 }
 0x49b   : > { %v3847_v1 = vadd.f32 %v3841_v59, %v4465_v61  ;;  %v2662_v0 = vpop.f32.mrb[1].mxu0 }
 0x49c   : > { %v3848_v27 = vadd.f32 %v2662_v0, %v4467_v62  ;;  %v3842_v17 = vpop.f32.mrb[2].mxu0 }
 0x49d   : > { %v3849_v18 = vadd.f32 %v3842_v17, %v4469_v63  ;;  %2713 = vrot.lane.b32.xlu1 %v3847_v1, %s4044_s27  ;;  %v2665_v22 = vpop.f32.mrb[3].mxu0 }
 0x49e   : > { %v3850_v23 = vadd.f32 %v2665_v22, %v4471_v26  ;;  %2709 = vrot.lane.b32.xlu0 %v3848_v27, %s4044_s27 }
 0x4a1   : > { %2715 = vrot.lane.b32.xlu1 %v3849_v18, %s4044_s27 }
 0x4a2   : > { %2711 = vrot.lane.b32.xlu0 %v3850_v23, %s4044_s27  ;;  %v3845_v28 = vpop.f32.mrb[4].mxu0 }
 0x4a3   : > { %v3851_v20 = vadd.f32 %v3845_v28, %v4473_v2  ;;  %v2678_v30 = vpop.f32.mrb[5].mxu0 }
 0x4a4   : > { %v3852_v61 = vadd.f32 %v2678_v30, %v4475_v3  ;;  %v3846_v32 = vpop.f32.mrb[6].mxu0 }
 0x4a5   : > { %v3853_v62 = vadd.f32 %v3846_v32, %v4477_v5  ;;  %v2681_v38 = vpop.f32.mrb[7].mxu0 }
 0x4a6   : > { %v3854_v63 = vadd.f32 %v2681_v38, %v4479_v6  ;;  %2717 = vrot.lane.b32.xlu0 %v3852_v61, %s4044_s27 }
 0x4a8   : > { %2719 = vrot.lane.b32.xlu1 %v3854_v63, %s4044_s27 }
 0x4aa   : > { %2721 = vrot.lane.b32.xlu0 %v3851_v20, %s4044_s27 }
 0x4ac   : > { %2723 = vrot.lane.b32.xlu1 %v3853_v62, %s4044_s27 }
 0x50f   : > { %v2714_v26 = vpop.permute.xlu1 %2713 }
 0x510   : > { %v2735_v40 = vsel %vm514_vm0, 0.0, %v2714_v26  ;;  %v2710_v46 = vpop.permute.xlu0 %2709 }
 0x511   : > { %v2733_v2 = vsel %vm514_vm0, 0.0, %v2710_v46  ;;  %v2744_v3 = vsel %vm2741_vm1, %v2735_v40, 0.0 }
 0x512   : > { %v2742_v5 = vsel %vm2741_vm1, %v2733_v2, 0.0  ;;  %v2752_v12 = vadd.f32 %v3235_v13, %v2744_v3 }
 0x513   : > { %v2716_v48 = vpop.permute.xlu1 %2715  ;;  %v2750_v24 = vadd.f32 %v3231_v7, %v2742_v5 }
 0x514   : > { %v2736_v54 = vsel %vm514_vm0, 0.0, %v2716_v48  ;;  %v2712_v6 = vpop.permute.xlu0 %2711 }
 0x515   : > { %v2745_v56 = vsel %vm2741_vm1, %v2736_v54, 0.0  ;;  %v2734_v60 = vsel %vm514_vm0, 0.0, %v2712_v6 }
 0x516   : > { %v2753_v29 = vadd.f32 %v3236_v14, %v2745_v56  ;;  %v2743_v21 = vsel %vm2741_vm1, %v2734_v60, 0.0 }
 0x517   : > { %v2751_v25 = vadd.f32 %v3232_v8, %v2743_v21 }
 0x518   : > { %v3253_v33 = vpack.c.bf16 %v2753_v29, %v2752_v12  ;;  %v2718_v36 = vpop.permute.xlu0 %2717 }
 0x519   : > { %v3248_v37 = vpack.c.bf16 %v2751_v25, %v2750_v24  ;;  %v2737_v13 = vsel %vm514_vm0, 0.0, %v2718_v36 }
 0x51a   : > { %3268 = vst [vmem:[%s278_s30 + $0x8] sm:$0xff] %v3253_v33   ;;  %v2746_v9 = vsel %vm2741_vm1, %v2737_v13, 0.0  ;;  %v2720_v14 = vpop.permute.xlu1 %2719 }
 0x51b   : > { %3249 = vst [vmem:[%s278_s30] sm:$0xff] %v3248_v37   ;;  %v2738_v31 = vsel %vm514_vm0, 0.0, %v2720_v14  ;;  %v2754_v7 = vadd.f32 %v3239_v15, %v2746_v9 }
 0x51c   : > { %v2747_v34 = vsel %vm2741_vm1, %v2738_v31, 0.0  ;;  %v2722_v35 = vpop.permute.xlu0 %2721 }
 0x51d   : > { %v2755_v4 = vadd.f32 %v3240_v16, %v2747_v34  ;;  %v2739_v8 = vsel %vm514_vm0, 0.0, %v2722_v35 }
 0x51e   : > { %v2748_v41 = vsel %vm2741_vm1, %v2739_v8, 0.0  ;;  %v2724_v44 = vpop.permute.xlu1 %2723 }
 0x51f   : > { %v3258_v45 = vpack.c.bf16 %v2755_v4, %v2754_v7  ;;  %v2740_v39 = vsel %vm514_vm0, 0.0, %v2724_v44  ;;  %v2756_v43 = vadd.f32 %v3243_v19, %v2748_v41 }
 0x520   : > { %v2749_v42 = vsel %vm2741_vm1, %v2740_v39, 0.0 }
 0x521   : > { %3269 = vst [vmem:[%s278_s30 + $0x10] sm:$0xff] %v3258_v45   ;;  %v2757_v15 = vadd.f32 %v4820_v47, %v2749_v42 }
 0x523   : > { %v3263_v49 = vpack.c.bf16 %v2757_v15, %v2756_v43 }
 0x525   : > { %3270 = vst [vmem:[%s278_s30 + $0x18] sm:$0xff] %v3263_v49  }
 0x526 PF: > { %s17_s24 = sadd.s32 1, %s4042_s24  }
 0x527   : > { %p14_p4 = scmp.ge.s32.totalorder %s17_s24, 4  }
 0x529   :  { %16 = sbr.rel (!%p14_p4) target bundleno = 1 (0x1), region = 94 }

// kernel: densenet_backbone_forward.9
= control target key start
LH: loop header
LB: loop body
LE: loop exit
PB: predicated region body
PF: predicated region fallthrough
CT: control target
= control target key end

     0   :  { %s4077_s24 = smov 0   ;;  %s4795_s0 = inlined_call_operand.vmem [shape: bf16[2,64,128], index: 0, kind: input, shape index: {}, may-alias: {0,7}]   ;;  %s4796_s1 = inlined_call_operand.vmem [shape: f32[1,128], index: 1, kind: input, shape index: {}]   ;;  %s4797_s2 = inlined_call_operand.vmem [shape: f32[1,128], index: 2, kind: input, shape index: {}]   ;;  %s4798_s3 = inlined_call_operand.vmem [shape: bf16[128,128], index: 3, kind: input, shape index: {}]   ;;  %s4799_s4 = inlined_call_operand.vmem [shape: f32[1,128], index: 4, kind: input, shape index: {}]   ;;  %s4800_s5 = inlined_call_operand.vmem [shape: bf16[9,128,32], index: 5, kind: input, shape index: {}]   ;;  %s4801_s6 = inlined_call_operand.vmem [shape: bf16[9,64,64], index: 6, kind: input, shape index: {}]   ;;  %s4802_s7 = inlined_call_operand.vmem [shape: bf16[2,64,128], index: 7, kind: output, shape index: {}, may-alias: {0,7}]  }
   0x1 LB: > { %s2845_s25 = sadd.s32 4294967295, %s4034_s24   ;;  %p2849_p0 = scmp.ge.s32.totalorder %s4034_s24, 1  ;;  %s4034_s24 = sphi %s4077_s24, %s17_s24  }
   0x2   : > { %p237_p1 = scmp.lt.s32.totalorder %s4034_s24, 3 }
   0x4   : > { %p238_p2 = pnand %p2849_p0, %p237_p1 }
   0x5   : > { %v3912_v0 = vld [vmem:[%s4798_s3] sm:$0xff] (!%p238_p2)   ;;  %p269_p3 = scmp.lt.s32.totalorder (!%p238_p2), %s2845_s25, 1  ;;  %v3913_v1 = vld [vmem:[%s4798_s3 + $0x8] sm:$0xff] (!%p238_p2)   ;;  %v3914_v2 = vld [vmem:[%s4798_s3 + $0x10] sm:$0xff] (!%p238_p2)   ;;  %vm514_vm0 = vcmask (!%p238_p2), 523264   ;;  %s4036_s27 = smov (!%p238_p2), 96  }
   0x6   : > { %241 = sbr.rel (%p238_p2) target bundleno = 1317 (0x525), region = 48  ;;  %3455 = vmatprep.subr.bf16.mxu1 (!%p238_p2), %v3912_v0  ;;  %v3915_v3 = vld [vmem:[%s4798_s3 + $0x18] sm:$0xff] (!%p238_p2)   ;;  %v2854_v5 = vld [vmem:[%s4796_s1] ss:$0 sm:$0xff] (!%p238_p2)  ;;  %v3917_v29 = vld [vmem:[%s4798_s3 + $0x28] sm:$0xff] (!%p238_p2)   ;;  %vm2733_vm1 = vcmask (!%p238_p2), 785408  }
   0x7   : > { %3456 = vmatpush3.bf16.msra.mxu1 (!%p238_p2), %v3912_v0  ;;  %v2855_v6 = vld [vmem:[%s4797_s2] ss:$0 sm:$0xff] (!%p238_p2)  ;;  %v3918_v45 = vld [vmem:[%s4798_s3 + $0x30] sm:$0xff] (!%p238_p2)   ;;  %v3919_v46 = vld [vmem:[%s4798_s3 + $0x38] sm:$0xff] (!%p238_p2)  }
   0x8   : > { %3457 = vmatprep.subr.bf16.mxu1 (!%p238_p2), %v3913_v1  ;;  %v3916_v12 = vld [vmem:[%s4798_s3 + $0x20] sm:$0xff] (!%p238_p2)  }
   0x9   : > { %v3920_v50 = vld [vmem:[%s4801_s6] sm:$0xff] (!%p238_p2)  }
   0xa   : > { %v2856_v51 = vld [vmem:[%s4799_s4] ss:$0 sm:$0xff] (!%p238_p2) }
   0xb   : > { %3458 = vmatpush3.bf16.msra.mxu1 (!%p238_p2), %v3913_v1 }
   0xc   : > { %3459 = vmatprep.subr.bf16.mxu1 (!%p238_p2), %v3914_v2 }
   0xd   : > { %s4806_s25 = smov (!%p269_p3, %s2845_s25), 1 }
   0xe   : > { %s3211_s9 = sshll.u32 %s4806_s25, 5 }
   0xf   : > { %s273_s12 = scalar_lea.vmem %s4795_s0, %s3211_s9  ;;  %3460 = vmatpush3.bf16.msra.mxu1 %v3914_v2  ;;  %s278_s30 = scalar_lea.vmem %s4802_s7, %s3211_s9 }
  0x10   : > { %v4105_v4 = vld [vmem:[%s273_s12] sm:$0xff]   ;;  %v4115_v9 = vld [vmem:[%s273_s12 + $0x8] sm:$0xff]   ;;  %v4117_v10 = vld [vmem:[%s273_s12 + $0x10] sm:$0xff]   ;;  %3461 = vmatprep.subr.bf16.mxu1 %v3915_v3 }
  0x11   : > { %v3223_v7 = vunpack.c.l.bf16 %v4105_v4  ;;  %v3224_v8 = vunpack.c.h.bf16 %v4105_v4  ;;  %v4119_v11 = vld [vmem:[%s273_s12 + $0x18] sm:$0xff]   ;;  %v3227_v13 = vunpack.c.l.bf16 %v4115_v9  ;;  %v3228_v14 = vunpack.c.h.bf16 %v4115_v9 }
  0x12   : > { %v3231_v15 = vunpack.c.l.bf16 %v4117_v10  ;;  %v3232_v16 = vunpack.c.h.bf16 %v4117_v10  ;;  %v3235_v19 = vunpack.c.l.bf16 %v4119_v11  ;;  %v4803_v20 = vunpack.c.h.bf16 %v4119_v11 }
  0x13   : > { %v303_v17 = vmul.f32 %v3223_v7, %v2854_v5  ;;  %v304_v18 = vmul.f32 %v3224_v8, %v2854_v5  ;;  %v305_v21 = vmul.f32 %v3227_v13, %v2854_v5  ;;  %v306_v22 = vmul.f32 %v3228_v14, %v2854_v5  ;;  %3462 = vmatpush3.bf16.msra.mxu1 %v3915_v3 }
  0x14   : > { %v307_v23 = vmul.f32 %v3231_v15, %v2854_v5  ;;  %v308_v24 = vmul.f32 %v3232_v16, %v2854_v5  ;;  %v309_v27 = vmul.f32 %v3235_v19, %v2854_v5  ;;  %v310_v28 = vmul.f32 %v4803_v20, %v2854_v5  ;;  %3463 = vmatprep.subr.bf16.mxu1 %v3916_v12 }
  0x15   : > { %v318_v25 = vadd.f32 %v2855_v6, %v303_v17  ;;  %v319_v26 = vadd.f32 %v2855_v6, %v304_v18  ;;  %v320_v30 = vadd.f32 %v2855_v6, %v305_v21  ;;  %v321_v31 = vadd.f32 %v2855_v6, %v306_v22 }
  0x16   : > { %v322_v32 = vadd.f32 %v2855_v6, %v307_v23  ;;  %v323_v33 = vadd.f32 %v2855_v6, %v308_v24  ;;  %v324_v36 = vadd.f32 %v2855_v6, %v309_v27  ;;  %v325_v37 = vadd.f32 %v2855_v6, %v310_v28  ;;  %v3921_v28 = vld [vmem:[%s4801_s6 + $0x8] sm:$0xff]  }
  0x17   : > { %v326_v34 = vmax.f32 %v318_v25, 0.0  ;;  %v327_v35 = vmax.f32 %v319_v26, 0.0  ;;  %v328_v38 = vmax.f32 %v320_v30, 0.0  ;;  %v329_v39 = vmax.f32 %v321_v31, 0.0  ;;  %3464 = vmatpush3.bf16.msra.mxu1 %v3916_v12  ;;  %v3923_v30 = vld [vmem:[%s4801_s6 + $0x18] sm:$0xff]   ;;  %v3924_v31 = vld [vmem:[%s4801_s6 + $0x20] sm:$0xff]  }
  0x18   : > { %v330_v40 = vmax.f32 %v322_v32, 0.0  ;;  %v331_v41 = vmax.f32 %v323_v33, 0.0  ;;  %v332_v43 = vmax.f32 %v324_v36, 0.0  ;;  %v333_v44 = vmax.f32 %v325_v37, 0.0  ;;  %3465 = vmatprep.subr.bf16.mxu1 %v3917_v29  ;;  %v3928_v32 = vld [vmem:[%s4800_s5 + $0x40] sm:$0xff]   ;;  %v3925_v33 = vld [vmem:[%s4801_s6 + $0x28] sm:$0xff]  }
  0x19   : > { %v334_v42 = vpack.c.bf16 %v327_v35, %v326_v34  ;;  %v335_v47 = vpack.c.bf16 %v329_v39, %v328_v38  ;;  %v3926_v34 = vld [vmem:[%s4801_s6 + $0x30] sm:$0xff]   ;;  %v3929_v35 = vld [vmem:[%s4800_s5 + $0x48] sm:$0xff]   ;;  %v3927_v37 = vld [vmem:[%s4801_s6 + $0x38] sm:$0xff]  }
  0x1a   : > { %v336_v48 = vpack.c.bf16 %v331_v41, %v330_v40  ;;  %v337_v49 = vpack.c.bf16 %v333_v44, %v332_v43  ;;  %v3930_v36 = vld [vmem:[%s4800_s5 + $0x50] sm:$0xff]   ;;  %v3931_v38 = vld [vmem:[%s4800_s5 + $0x58] sm:$0xff]   ;;  %v3932_v39 = vld [vmem:[%s4800_s5 + $0x60] sm:$0xff]  }
  0x1b   : > { %3471 = vmatprep.mubr.bf16.mxu1 %v334_v42  ;;  %3466 = vmatpush3.bf16.msra.mxu1 %v3917_v29  ;;  %v3922_v29 = vld [vmem:[%s4801_s6 + $0x10] sm:$0xff]   ;;  %v3933_v40 = vld [vmem:[%s4800_s5 + $0x68] sm:$0xff]   ;;  %v3935_v42 = vld [vmem:[%s4800_s5 + $0x78] sm:$0xff]  }
  0x1c   : > { %3467 = vmatprep.subr.bf16.mxu1 %v3918_v45  ;;  %v3934_v41 = vld [vmem:[%s4800_s5 + $0x70] sm:$0xff]   ;;  %v3936_v43 = vld [vmem:[%s4800_s5] sm:$0xff]  }
  0x1f   : > { %3468 = vmatpush3.bf16.msra.mxu1 %v3918_v45 }
  0x20   : > { %3469 = vmatprep.subr.bf16.mxu1 %v3919_v46 }
  0x23   : > { %3470 = vmatpush3.bf16.msra.mxu1 %v3919_v46 }
  0x26   : > { %3472 = vmatmul.mubr.bf16.vlgmr.msra.gmra.mrb[0].mxu1 %v335_v47 }
  0x27   : > { %3475 = vmatprep.mubr.bf16.mxu1 %v336_v48 }
  0x2e   : > { %3476 = vmatmul.mubr.bf16.gmra.mrb[4].mxu1 %v337_v49 }
  0x2f   : > { %3487 = vmatprep.mubr.msk.bf16.mxu1 %vm514_vm0, %v3920_v50 }
  0xf9   : > { %v3473_v52 = vpop.f32.mrb[0].mxu1 }
  0xfa   : > { %v452_v53 = vadd.f32 %v3473_v52, %v2856_v51  ;;  %v443_v54 = vpop.f32.mrb[1].mxu1 }
  0xfb   : > { %v444_v55 = vadd.f32 %v2856_v51, %v443_v54  ;;  %v3474_v56 = vpop.f32.mrb[2].mxu1 }
  0xfc   : > { %v455_v57 = vadd.f32 %v3474_v56, %v2856_v51  ;;  %v446_v58 = vpop.f32.mrb[3].mxu1  ;;  %v476_v60 = vmax.f32 %v452_v53, 0.0 }
  0xfd   : > { %v447_v59 = vadd.f32 %v2856_v51, %v446_v58  ;;  %v474_v62 = vmax.f32 %v444_v55, 0.0 }
  0xfe   : > { %v477_v61 = vmax.f32 %v455_v57, 0.0 }
  0xff   : > { %v475_v63 = vmax.f32 %v447_v59, 0.0 }
 0x100   : > { %v4162_v0 = vpack.c.bf16 %v477_v61, %v476_v60 }
 0x101   : > { %v4164_v1 = vpack.c.bf16 %v475_v63, %v474_v62  ;;  %v3477_v2 = vpop.f32.mrb[4].mxu1  ;;  %v3937_v62 = vld [vmem:[%s4800_s5 + $0x8] sm:$0xff]  }
 0x102   : > { %v468_v3 = vadd.f32 %v3477_v2, %v2856_v51  ;;  %v459_v5 = vpop.f32.mrb[5].mxu1 }
 0x103   : > { %v460_v6 = vadd.f32 %v2856_v51, %v459_v5  ;;  %v3478_v12 = vpop.f32.mrb[6].mxu1  ;;  %3479 = vmatprep.subr.bf16.mxu1 %v4164_v1 }
 0x104   : > { %v471_v17 = vadd.f32 %v3478_v12, %v2856_v51  ;;  %v462_v18 = vpop.f32.mrb[7].mxu1  ;;  %3480 = vmatpush3.bf16.msra.mxu1 %v4164_v1  ;;  %v480_v22 = vmax.f32 %v468_v3, 0.0  ;;  %v3938_v3 = vld [vmem:[%s4800_s5 + $0x10] sm:$0xff]  }
 0x105   : > { %v463_v21 = vadd.f32 %v2856_v51, %v462_v18  ;;  %3481 = vmatprep.subr.bf16.mxu1 %v4162_v0  ;;  %v478_v24 = vmax.f32 %v460_v6, 0.0  ;;  %v3939_v18 = vld [vmem:[%s4800_s5 + $0x18] sm:$0xff]  }
 0x106   : > { %v481_v23 = vmax.f32 %v471_v17, 0.0 }
 0x107   : > { %v479_v25 = vmax.f32 %v463_v21, 0.0  ;;  %v3940_v21 = vld [vmem:[%s4800_s5 + $0x20] sm:$0xff]  }
 0x108   : > { %v4169_v26 = vpack.c.bf16 %v481_v23, %v480_v22  ;;  %3482 = vmatpush3.bf16.msra.mxu1 %v4162_v0  ;;  %v3968_v22 = vld [vmem:[%s4800_s5 + $0x80] sm:$0xff]   ;;  %v3941_v23 = vld [vmem:[%s4800_s5 + $0x28] sm:$0xff]  }
 0x109   : > { %v4172_v27 = vpack.c.bf16 %v479_v25, %v478_v24  ;;  %v3970_v24 = vld [vmem:[%s4800_s5 + $0x88] sm:$0xff]   ;;  %3575 = vmatprep.subr.bf16.mxu0 %v3968_v22  ;;  %v3972_v25 = vld [vmem:[%s4800_s5 + $0x90] sm:$0xff]  }
 0x10a   : > { %3576 = vmatpush3.bf16.msra.mxu0 %v3968_v22 }
 0x10b   : > { %3483 = vmatprep.subr.bf16.mxu1 %v4172_v27  ;;  %3577 = vmatprep.subr.bf16.mxu0 %v3970_v24 }
 0x10c   : > { %3484 = vmatpush3.bf16.msra.mxu1 %v4172_v27 }
 0x10d   : > { %3485 = vmatprep.subr.bf16.mxu1 %v4169_v26 }
 0x10e   : > { %3578 = vmatpush3.bf16.msra.mxu0 %v3970_v24  ;;  %v3981_v24 = vld [vmem:[%s4800_s5 + $0xc8] sm:$0xff]  }
 0x10f   : > { %3579 = vmatprep.subr.bf16.mxu0 %v3972_v25 }
 0x110   : > { %3486 = vmatpush3.bf16.msra.mxu1 %v4169_v26 }
 0x111   : > { %3495 = vmatprep.subr.bf16.mxu1 %v4164_v1 }
 0x112   : > { %3580 = vmatpush3.bf16.msra.mxu0 %v3972_v25 }
 0x113   : > { %3488 = vmatmul.mubr.msk.bf16.vlgmr.msra.gmra.mrb[8].mxu1 %vm514_vm0, %v3921_v28  ;;  %v3942_v28 = vld [vmem:[%s4800_s5 + $0x30] sm:$0xff]  }
 0x114   : > { %3496 = vmatpush3.bf16.msra.mxu1 %v4164_v1  ;;  %3491 = vmatprep.mubr.msk.bf16.mxu1 %vm514_vm0, %v3922_v29  ;;  %v3943_v29 = vld [vmem:[%s4800_s5 + $0x38] sm:$0xff]  }
 0x115   : > { %3497 = vmatprep.subr.bf16.mxu1 %v4162_v0 }
 0x118   : > { %3498 = vmatpush3.bf16.msra.mxu1 %v4162_v0 }
 0x119   : > { %3499 = vmatprep.subr.bf16.mxu1 %v4172_v27 }
 0x11b   : > { %3492 = vmatmul.mubr.msk.bf16.gmra.mrb[12].mxu1 %vm514_vm0, %v3923_v30  ;;  %v3944_v30 = vld [vmem:[%s4801_s6 + $0x40] sm:$0xff]  }
 0x11c   : > { %3500 = vmatpush3.bf16.msra.mxu1 %v4172_v27  ;;  %3503 = vmatprep.mubr.msk.bf16.mxu1 %vm514_vm0, %v3924_v31  ;;  %v3945_v31 = vld [vmem:[%s4801_s6 + $0x48] sm:$0xff]  }
 0x11d   : > { %3501 = vmatprep.subr.bf16.mxu1 %v4169_v26 }
 0x120   : > { %3502 = vmatpush3.bf16.msra.mxu1 %v4169_v26 }
 0x121   : > { %3511 = vmatprep.subr.bf16.mxu1 %v3928_v32 }
 0x123   : > { %3504 = vmatmul.mubr.msk.bf16.vlgmr.msra.gmra.mrb[16].mxu1 %vm514_vm0, %v3925_v33  ;;  %v3947_v33 = vld [vmem:[%s4801_s6 + $0x58] sm:$0xff]  }
 0x124   : > { %3507 = vmatprep.mubr.msk.bf16.mxu1 %vm514_vm0, %v3926_v34  ;;  %3512 = vmatpush3.bf16.msra.mxu1 %v3928_v32  ;;  %v3946_v32 = vld [vmem:[%s4801_s6 + $0x50] sm:$0xff]   ;;  %v3948_v34 = vld [vmem:[%s4801_s6 + $0x60] sm:$0xff]  }
 0x125   : > { %3513 = vmatprep.subr.bf16.mxu1 %v3929_v35 }
 0x128   : > { %3514 = vmatpush3.bf16.msra.mxu1 %v3929_v35  ;;  %v3949_v35 = vld [vmem:[%s4801_s6 + $0x68] sm:$0xff]  }
 0x129   : > { %3515 = vmatprep.subr.bf16.mxu1 %v3930_v36 }
 0x12b   : > { %3508 = vmatmul.mubr.msk.bf16.gmra.mrb[20].mxu1 %vm514_vm0, %v3927_v37  ;;  %v3951_v37 = vld [vmem:[%s4801_s6 + $0x78] sm:$0xff]  }
 0x12c   : > { %3516 = vmatpush3.bf16.msra.mxu1 %v3930_v36  ;;  %v3950_v36 = vld [vmem:[%s4801_s6 + $0x70] sm:$0xff]  }
 0x12d   : > { %3517 = vmatprep.subr.bf16.mxu1 %v3931_v38 }
 0x130   : > { %3518 = vmatpush3.bf16.msra.mxu1 %v3931_v38  ;;  %v3952_v38 = vld [vmem:[%s4801_s6 + $0x80] sm:$0xff]  }
 0x131   : > { %3519 = vmatprep.subr.bf16.mxu1 %v3932_v39 }
 0x134   : > { %3520 = vmatpush3.bf16.msra.mxu1 %v3932_v39  ;;  %v3953_v39 = vld [vmem:[%s4801_s6 + $0x88] sm:$0xff]  }
 0x135   : > { %3521 = vmatprep.subr.bf16.mxu1 %v3933_v40 }
 0x138   : > { %3522 = vmatpush3.bf16.msra.mxu1 %v3933_v40  ;;  %v3954_v40 = vld [vmem:[%s4801_s6 + $0x90] sm:$0xff]  }
 0x139   : > { %3523 = vmatprep.subr.bf16.mxu1 %v3934_v41 }
 0x13c   : > { %3524 = vmatpush3.bf16.msra.mxu1 %v3934_v41  ;;  %v3955_v41 = vld [vmem:[%s4801_s6 + $0x98] sm:$0xff]  }
 0x13d   : > { %3525 = vmatprep.subr.bf16.mxu1 %v3935_v42 }
 0x140   : > { %3526 = vmatpush3.bf16.msra.mxu1 %v3935_v42  ;;  %v3956_v42 = vld [vmem:[%s4801_s6 + $0xa0] sm:$0xff]  }
 0x141   : > { %3535 = vmatprep.subr.bf16.mxu1 %v3936_v43 }
 0x1e6   : > { %v3489_v44 = vpop.f32.mrb[8].mxu1 }
 0x1e7   : > { %v561_v45 = vpop.f32.mrb[9].mxu1 }
 0x1e8   : > { %v3490_v46 = vpop.f32.mrb[10].mxu1 }
 0x1e9   : > { %v593_v47 = vpack.c.bf16 %v3490_v46, %v3489_v44  ;;  %v564_v48 = vpop.f32.mrb[11].mxu1  ;;  %v3958_v44 = vld [vmem:[%s4801_s6 + $0xb0] sm:$0xff]   ;;  %v3960_v46 = vld [vmem:[%s4801_s6 + $0xc0] sm:$0xff]  }
 0x1ea   : > { %v592_v49 = vpack.c.bf16 %v564_v48, %v561_v45  ;;  %v3959_v45 = vld [vmem:[%s4801_s6 + $0xb8] sm:$0xff]   ;;  %v3962_v48 = vld [vmem:[%s4801_s6 + $0xd0] sm:$0xff]  }
 0x1ee   : > { %v3493_v50 = vpop.f32.mrb[12].mxu1 }
 0x1ef   : > { %v577_v51 = vpop.f32.mrb[13].mxu1 }
 0x1f0   : > { %v3494_v52 = vpop.f32.mrb[14].mxu1 }
 0x1f1   : > { %v595_v53 = vpack.c.bf16 %v3494_v52, %v3493_v50  ;;  %v580_v54 = vpop.f32.mrb[15].mxu1  ;;  %v3963_v50 = vld [vmem:[%s4801_s6 + $0xd8] sm:$0xff]   ;;  %v3976_v52 = vld [vmem:[%s4800_s5 + $0xa0] sm:$0xff]  }
 0x1f2   : > { %v594_v55 = vpack.c.bf16 %v580_v54, %v577_v51  ;;  %v3964_v51 = vld [vmem:[%s4801_s6 + $0xe0] sm:$0xff]   ;;  %v3965_v54 = vld [vmem:[%s4801_s6 + $0xe8] sm:$0xff]  }
 0x1f6   : > { %v3505_v56 = vpop.f32.mrb[16].mxu1 }
 0x1f7   : > { %v687_v57 = vpop.f32.mrb[17].mxu1 }
 0x1f8   : > { %v3506_v58 = vpop.f32.mrb[18].mxu1 }
 0x1f9   : > { %v719_v59 = vpack.c.bf16 %v3506_v58, %v3505_v56  ;;  %v690_v60 = vpop.f32.mrb[19].mxu1  ;;  %v3978_v56 = vld [vmem:[%s4800_s5 + $0xb0] sm:$0xff]   ;;  %v3967_v58 = vld [vmem:[%s4801_s6 + $0xf8] sm:$0xff]  }
 0x1fa   : > { %v718_v61 = vpack.c.bf16 %v690_v60, %v687_v57  ;;  %v3979_v57 = vld [vmem:[%s4800_s5 + $0xb8] sm:$0xff]   ;;  %v3973_v60 = vld [vmem:[%s4801_s6 + $0x110] sm:$0xff]  }
 0x1fc   : > { %3527 = vmatprep.mubr.bf16.mxu1 %v718_v61 }
 0x1fd   : > { %3528 = vmatmul.mubr.bf16.vlgmr.msra.gmra.mrb[24].mxu1 %v719_v59  ;;  %v3969_v59 = vld [vmem:[%s4801_s6 + $0x100] sm:$0xff]  }
 0x1fe   : > { %3536 = vmatpush3.bf16.msra.mxu1 %v3936_v43  ;;  %v3509_v63 = vpop.f32.mrb[20].mxu1  ;;  %v3957_v43 = vld [vmem:[%s4801_s6 + $0xa8] sm:$0xff]  }
 0x1ff   : > { %v703_v2 = vpop.f32.mrb[21].mxu1  ;;  %3537 = vmatprep.subr.bf16.mxu1 %v3937_v62 }
 0x200   : > { %v3510_v5 = vpop.f32.mrb[22].mxu1 }
 0x201   : > { %v721_v6 = vpack.c.bf16 %v3510_v5, %v3509_v63  ;;  %v706_v12 = vpop.f32.mrb[23].mxu1 }
 0x202   : > { %v720_v17 = vpack.c.bf16 %v706_v12, %v703_v2  ;;  %3538 = vmatpush3.bf16.msra.mxu1 %v3937_v62 }
 0x203   : > { %3539 = vmatprep.subr.bf16.mxu1 %v3938_v3 }
 0x204   : > { %3531 = vmatprep.mubr.bf16.mxu1 %v720_v17 }
 0x205   : > { %3532 = vmatmul.mubr.bf16.gmra.mrb[28].mxu1 %v721_v6 }
 0x206   : > { %3540 = vmatpush3.bf16.msra.mxu1 %v3938_v3  ;;  %3551 = vmatprep.mubr.bf16.mxu1 %v592_v49  ;;  %v3974_v49 = vld [vmem:[%s4800_s5 + $0x98] sm:$0xff]  }
 0x207   : > { %3541 = vmatprep.subr.bf16.mxu1 %v3939_v18  ;;  %3581 = vmatprep.subr.bf16.mxu0 %v3974_v49 }
 0x208   : > { %3582 = vmatpush3.bf16.msra.mxu0 %v3974_v49 }
 0x209   : > { %3583 = vmatprep.subr.bf16.mxu0 %v3976_v52 }
 0x20a   : > { %3542 = vmatpush3.bf16.msra.mxu1 %v3939_v18 }
 0x20b   : > { %3543 = vmatprep.subr.bf16.mxu1 %v3940_v21 }
 0x20c   : > { %3584 = vmatpush3.bf16.msra.mxu0 %v3976_v52  ;;  %v3988_v52 = vld [vmem:[%s4800_s5 + $0x100] sm:$0xff]  }
 0x20e   : > { %3544 = vmatpush3.bf16.msra.mxu1 %v3940_v21 }
 0x20f   : > { %3545 = vmatprep.subr.bf16.mxu1 %v3941_v23 }
 0x212   : > { %3546 = vmatpush3.bf16.msra.mxu1 %v3941_v23 }
 0x213   : > { %3547 = vmatprep.subr.bf16.mxu1 %v3942_v28 }
 0x216   : > { %3548 = vmatpush3.bf16.msra.mxu1 %v3942_v28  ;;  %v3982_v28 = vld [vmem:[%s4800_s5 + $0xd0] sm:$0xff]  }
 0x217   : > { %3549 = vmatprep.subr.bf16.mxu1 %v3943_v29 }
 0x21a   : > { %3550 = vmatpush3.bf16.msra.mxu1 %v3943_v29 }
 0x21b   : > { %3559 = vmatprep.subr.bf16.mxu1 %v4164_v1 }
 0x21d   : > { %3552 = vmatmul.mubr.bf16.vlgmr.msra.gmra.mrb[24].mxu1 %v593_v47  ;;  %v3961_v47 = vld [vmem:[%s4801_s6 + $0xc8] sm:$0xff]  }
 0x21e   : > { %3555 = vmatprep.mubr.bf16.mxu1 %v594_v55  ;;  %3560 = vmatpush3.bf16.msra.mxu1 %v4164_v1  ;;  %v3966_v55 = vld [vmem:[%s4801_s6 + $0xf0] sm:$0xff]  }
 0x21f   : > { %3561 = vmatprep.subr.bf16.mxu1 %v4162_v0 }
 0x222   : > { %3562 = vmatpush3.bf16.msra.mxu1 %v4162_v0 }
 0x223   : > { %3563 = vmatprep.subr.bf16.mxu1 %v4172_v27 }
 0x225   : > { %3556 = vmatmul.mubr.bf16.gmra.mrb[28].mxu1 %v595_v53  ;;  %v3977_v53 = vld [vmem:[%s4800_s5 + $0xa8] sm:$0xff]  }
 0x226   : > { %3564 = vmatpush3.bf16.msra.mxu1 %v4172_v27  ;;  %3567 = vmatprep.mubr.msk.bf16.mxu1 %vm514_vm0, %v3944_v30 }
 0x227   : > { %3565 = vmatprep.subr.bf16.mxu1 %v4169_v26  ;;  %3585 = vmatprep.subr.bf16.mxu0 %v3977_v53 }
 0x228   : > { %3586 = vmatpush3.bf16.msra.mxu0 %v3977_v53 }
 0x229   : > { %3587 = vmatprep.subr.bf16.mxu0 %v3978_v56 }
 0x22a   : > { %3566 = vmatpush3.bf16.msra.mxu1 %v4169_v26 }
 0x22b   : > { %3599 = vmatprep.subr.bf16.mxu1 %v4164_v1 }
 0x22c   : > { %3588 = vmatpush3.bf16.msra.mxu0 %v3978_v56 }
 0x22d   : > { %3568 = vmatmul.mubr.msk.bf16.vlgmr.msra.gmra.mrb[32].mxu1 %vm514_vm0, %v3945_v31  ;;  %3589 = vmatprep.subr.bf16.mxu0 %v3979_v57 }
 0x22e   : > { %3600 = vmatpush3.bf16.msra.mxu1 %v4164_v1  ;;  %3571 = vmatprep.mubr.msk.bf16.mxu1 %vm514_vm0, %v3946_v32 }
 0x22f   : > { %3601 = vmatprep.subr.bf16.mxu1 %v4162_v0 }
 0x230   : > { %3590 = vmatpush3.bf16.msra.mxu0 %v3979_v57 }
 0x232   : > { %3602 = vmatpush3.bf16.msra.mxu1 %v4162_v0 }
 0x233   : > { %3603 = vmatprep.subr.bf16.mxu1 %v4172_v27 }
 0x235   : > { %3572 = vmatmul.mubr.msk.bf16.gmra.mrb[36].mxu1 %vm514_vm0, %v3947_v33 }
 0x236   : > { %3604 = vmatpush3.bf16.msra.mxu1 %v4172_v27  ;;  %3607 = vmatprep.mubr.msk.bf16.mxu1 %vm514_vm0, %v3948_v34  ;;  %v3983_v34 = vld [vmem:[%s4800_s5 + $0xd8] sm:$0xff]  }
 0x237   : > { %3605 = vmatprep.subr.bf16.mxu1 %v4169_v26 }
 0x23a   : > { %3606 = vmatpush3.bf16.msra.mxu1 %v4169_v26 }
 0x23b   : > { %3639 = vmatprep.subr.bf16.mxu1 %v4164_v1 }
 0x23d   : > { %3608 = vmatmul.mubr.msk.bf16.vlgmr.msra.gmra.mrb[40].mxu1 %vm514_vm0, %v3949_v35 }
 0x23e   : > { %3640 = vmatpush3.bf16.msra.mxu1 %v4164_v1  ;;  %3611 = vmatprep.mubr.msk.bf16.mxu1 %vm514_vm0, %v3950_v36  ;;  %v3984_v36 = vld [vmem:[%s4800_s5 + $0xe0] sm:$0xff]  }
 0x23f   : > { %3641 = vmatprep.subr.bf16.mxu1 %v4162_v0 }
 0x242   : > { %3642 = vmatpush3.bf16.msra.mxu1 %v4162_v0 }
 0x243   : > { %3643 = vmatprep.subr.bf16.mxu1 %v4172_v27 }
 0x245   : > { %3612 = vmatmul.mubr.msk.bf16.gmra.mrb[44].mxu1 %vm514_vm0, %v3951_v37 }
 0x246   : > { %3644 = vmatpush3.bf16.msra.mxu1 %v4172_v27  ;;  %3647 = vmatprep.mubr.msk.bf16.mxu1 %vm514_vm0, %v3952_v38 }
 0x247   : > { %3645 = vmatprep.subr.bf16.mxu1 %v4169_v26 }
 0x24a   : > { %3646 = vmatpush3.bf16.msra.mxu1 %v4169_v26 }
 0x24b   : > { %3679 = vmatprep.subr.bf16.mxu1 %v4164_v1 }
 0x24d   : > { %3648 = vmatmul.mubr.msk.bf16.vlgmr.msra.gmra.mrb[48].mxu1 %vm514_vm0, %v3953_v39 }
 0x24e   : > { %3680 = vmatpush3.bf16.msra.mxu1 %v4164_v1  ;;  %3651 = vmatprep.mubr.msk.bf16.mxu1 %vm514_vm0, %v3954_v40 }
 0x24f   : > { %3681 = vmatprep.subr.bf16.mxu1 %v4162_v0 }
 0x252   : > { %3682 = vmatpush3.bf16.msra.mxu1 %v4162_v0 }
 0x253   : > { %3683 = vmatprep.subr.bf16.mxu1 %v4172_v27 }
 0x255   : > { %3652 = vmatmul.mubr.msk.bf16.gmra.mrb[52].mxu1 %vm514_vm0, %v3955_v41 }
 0x256   : > { %3684 = vmatpush3.bf16.msra.mxu1 %v4172_v27  ;;  %3687 = vmatprep.mubr.msk.bf16.mxu1 %vm514_vm0, %v3956_v42  ;;  %v3985_v42 = vld [vmem:[%s4800_s5 + $0xe8] sm:$0xff]  }
 0x257   : > { %3685 = vmatprep.subr.bf16.mxu1 %v4169_v26 }
 0x25a   : > { %3686 = vmatpush3.bf16.msra.mxu1 %v4169_v26 }
 0x25b   : > { %3719 = vmatprep.subr.bf16.mxu1 %v4164_v1 }
 0x25d   : > { %3688 = vmatmul.mubr.msk.bf16.vlgmr.msra.gmra.mrb[56].mxu1 %vm514_vm0, %v3957_v43 }
 0x25e   : > { %3720 = vmatpush3.bf16.msra.mxu1 %v4164_v1  ;;  %3691 = vmatprep.mubr.msk.bf16.mxu1 %vm514_vm0, %v3958_v44  ;;  %v3986_v44 = vld [vmem:[%s4800_s5 + $0xf0] sm:$0xff]  }
 0x25f   : > { %3721 = vmatprep.subr.bf16.mxu1 %v4162_v0 }
 0x262   : > { %3722 = vmatpush3.bf16.msra.mxu1 %v4162_v0 }
 0x263   : > { %3723 = vmatprep.subr.bf16.mxu1 %v4172_v27 }
 0x265   : > { %3692 = vmatmul.mubr.msk.bf16.gmra.mrb[60].mxu1 %vm514_vm0, %v3959_v45 }
 0x266   : > { %3724 = vmatpush3.bf16.msra.mxu1 %v4172_v27  ;;  %3727 = vmatprep.mubr.msk.bf16.mxu1 %vm514_vm0, %v3960_v46 }
 0x267   : > { %3725 = vmatprep.subr.bf16.mxu1 %v4169_v26 }
 0x26a   : > { %3726 = vmatpush3.bf16.msra.mxu1 %v4169_v26 }
 0x26b   : > { %3759 = vmatprep.subr.bf16.mxu1 %v4164_v1 }
 0x26d   : > { %3728 = vmatmul.mubr.msk.bf16.vlgmr.msra.gmra.mrb[64].mxu1 %vm514_vm0, %v3961_v47 }
 0x26e   : > { %3760 = vmatpush3.bf16.msra.mxu1 %v4164_v1  ;;  %3731 = vmatprep.mubr.msk.bf16.mxu1 %vm514_vm0, %v3962_v48 }
 0x26f   : > { %3761 = vmatprep.subr.bf16.mxu1 %v4162_v0 }
 0x272   : > { %3762 = vmatpush3.bf16.msra.mxu1 %v4162_v0 }
 0x273   : > { %3763 = vmatprep.subr.bf16.mxu1 %v4172_v27 }
 0x275   : > { %3732 = vmatmul.mubr.msk.bf16.gmra.mrb[68].mxu1 %vm514_vm0, %v3963_v50  ;;  %v3987_v50 = vld [vmem:[%s4800_s5 + $0xf8] sm:$0xff]  }
 0x276   : > { %3764 = vmatpush3.bf16.msra.mxu1 %v4172_v27  ;;  %3767 = vmatprep.mubr.msk.bf16.mxu1 %vm514_vm0, %v3964_v51 }
 0x277   : > { %3765 = vmatprep.subr.bf16.mxu1 %v4169_v26 }
 0x27a   : > { %3766 = vmatpush3.bf16.msra.mxu1 %v4169_v26 }
 0x27b   : > { %3799 = vmatprep.subr.bf16.mxu1 %v4164_v1 }
 0x27d   : > { %3768 = vmatmul.mubr.msk.bf16.vlgmr.msra.gmra.mrb[72].mxu1 %vm514_vm0, %v3965_v54 }
 0x27e   : > { %3800 = vmatpush3.bf16.msra.mxu1 %v4164_v1  ;;  %3771 = vmatprep.mubr.msk.bf16.mxu1 %vm514_vm0, %v3966_v55  ;;  %v3980_v1 = vld [vmem:[%s4800_s5 + $0xc0] sm:$0xff]  }
 0x27f   : > { %3801 = vmatprep.subr.bf16.mxu1 %v4162_v0  ;;  %3615 = vmatprep.subr.bf16.mxu0 %v3980_v1 }
 0x282   : > { %3802 = vmatpush3.bf16.msra.mxu1 %v4162_v0  ;;  %v3971_v0 = vld [vmem:[%s4801_s6 + $0x108] sm:$0xff]  }
 0x283   : > { %3803 = vmatprep.subr.bf16.mxu1 %v4172_v27 }
 0x285   : > { %3772 = vmatmul.mubr.msk.bf16.gmra.mrb[76].mxu1 %vm514_vm0, %v3967_v58  ;;  %v3989_v58 = vld [vmem:[%s4800_s5 + $0x108] sm:$0xff]  }
 0x286   : > { %3804 = vmatpush3.bf16.msra.mxu1 %v4172_v27  ;;  %3807 = vmatprep.mubr.msk.bf16.mxu1 %vm514_vm0, %v3969_v59  ;;  %v3975_v27 = vld [vmem:[%s4801_s6 + $0x118] sm:$0xff]  }
 0x287   : > { %3805 = vmatprep.subr.bf16.mxu1 %v4169_v26 }
 0x28a   : > { %3806 = vmatpush3.bf16.msra.mxu1 %v4169_v26 }
 0x28d   : > { %3808 = vmatmul.mubr.msk.bf16.vlgmr.msra.gmra.mrb[80].mxu1 %vm514_vm0, %v3971_v0 }
 0x28e   : > { %3811 = vmatprep.mubr.msk.bf16.mxu1 %vm514_vm0, %v3973_v60 }
 0x295   : > { %3812 = vmatmul.mubr.msk.bf16.gmra.mrb[84].mxu1 %vm514_vm0, %v3975_v27 }
 0x2f0   : > { %v4457_v61 = vpop.f32.mrb[24].mxu1 }
 0x2f1   : > { %v4459_v62 = vpop.f32.mrb[25].mxu1 }
 0x2f2   : > { %v4461_v63 = vpop.f32.mrb[26].mxu1 }
 0x2f3   : > { %v4463_v26 = vpop.f32.mrb[27].mxu1 }
 0x2f8   : > { %v4465_v2 = vpop.f32.mrb[28].mxu1 }
 0x2f9   : > { %v4467_v3 = vpop.f32.mrb[29].mxu1 }
 0x2fa   : > { %v4469_v5 = vpop.f32.mrb[30].mxu1 }
 0x2fb   : > { %v4471_v6 = vpop.f32.mrb[31].mxu1 }
 0x300   : > { %v3569_v12 = vpop.f32.mrb[32].mxu1 }
 0x301   : > { %v1040_v17 = vpop.f32.mrb[33].mxu1 }
 0x302   : > { %v3570_v18 = vpop.f32.mrb[34].mxu1 }
 0x303   : > { %v1072_v21 = vpack.c.bf16 %v3570_v18, %v3569_v12  ;;  %v1043_v22 = vpop.f32.mrb[35].mxu1  ;;  %v3991_v18 = vld [vmem:[%s4800_s5 + $0x118] sm:$0xff]  }
 0x304   : > { %v1071_v23 = vpack.c.bf16 %v1043_v22, %v1040_v17  ;;  %v3992_v22 = vld [vmem:[%s4800_s5 + $0x120] sm:$0xff]  }
 0x306   : > { %3591 = vmatprep.mubr.bf16.mxu0 %v1071_v23 }
 0x307   : > { %3592 = vmatmul.mubr.bf16.vlgmr.msra.gmra.mrb[0].mxu0 %v1072_v21 }
 0x308   : > { %3616 = vmatpush3.bf16.msra.mxu0 %v3980_v1  ;;  %v3573_v25 = vpop.f32.mrb[36].mxu1  ;;  %v3990_v1 = vld [vmem:[%s4800_s5 + $0x110] sm:$0xff]  }
 0x309   : > { %3617 = vmatprep.subr.bf16.mxu0 %v3981_v24  ;;  %v1056_v29 = vpop.f32.mrb[37].mxu1 }
 0x30a   : > { %v3574_v30 = vpop.f32.mrb[38].mxu1 }
 0x30b   : > { %v1074_v31 = vpack.c.bf16 %v3574_v30, %v3573_v25  ;;  %v1059_v32 = vpop.f32.mrb[39].mxu1  ;;  %v3993_v30 = vld [vmem:[%s4800_s5 + $0x128] sm:$0xff]  }
 0x30c   : > { %3618 = vmatpush3.bf16.msra.mxu0 %v3981_v24  ;;  %v1073_v33 = vpack.c.bf16 %v1059_v32, %v1056_v29  ;;  %v3994_v32 = vld [vmem:[%s4800_s5 + $0x130] sm:$0xff]  }
 0x30d   : > { %3619 = vmatprep.subr.bf16.mxu0 %v3982_v28 }
 0x30e   : > { %3595 = vmatprep.mubr.bf16.mxu0 %v1073_v33 }
 0x30f   : > { %3596 = vmatmul.mubr.bf16.gmra.mrb[4].mxu0 %v1074_v31 }
 0x310   : > { %3620 = vmatpush3.bf16.msra.mxu0 %v3982_v28  ;;  %v3609_v35 = vpop.f32.mrb[40].mxu1 }
 0x311   : > { %3621 = vmatprep.subr.bf16.mxu0 %v3983_v34  ;;  %v1288_v37 = vpop.f32.mrb[41].mxu1 }
 0x312   : > { %v3610_v38 = vpop.f32.mrb[42].mxu1 }
 0x313   : > { %v1320_v39 = vpack.c.bf16 %v3610_v38, %v3609_v35  ;;  %v1291_v40 = vpop.f32.mrb[43].mxu1  ;;  %v3995_v38 = vld [vmem:[%s4800_s5 + $0x138] sm:$0xff]  }
 0x314   : > { %3622 = vmatpush3.bf16.msra.mxu0 %v3983_v34  ;;  %v1319_v41 = vpack.c.bf16 %v1291_v40, %v1288_v37  ;;  %v3996_v40 = vld [vmem:[%s4800_s5 + $0x140] sm:$0xff]  }
 0x315   : > { %3623 = vmatprep.subr.bf16.mxu0 %v3984_v36 }
 0x316   : > { %3631 = vmatprep.mubr.bf16.mxu0 %v1319_v41 }
 0x318   : > { %3624 = vmatpush3.bf16.msra.mxu0 %v3984_v36  ;;  %v3613_v43 = vpop.f32.mrb[44].mxu1 }
 0x319   : > { %3625 = vmatprep.subr.bf16.mxu0 %v3985_v42  ;;  %v1304_v45 = vpop.f32.mrb[45].mxu1 }
 0x31a   : > { %v3614_v46 = vpop.f32.mrb[46].mxu1 }
 0x31b   : > { %v1322_v47 = vpack.c.bf16 %v3614_v46, %v3613_v43  ;;  %v1307_v48 = vpop.f32.mrb[47].mxu1  ;;  %v3997_v46 = vld [vmem:[%s4800_s5 + $0x148] sm:$0xff]  }
 0x31c   : > { %3626 = vmatpush3.bf16.msra.mxu0 %v3985_v42  ;;  %v1321_v49 = vpack.c.bf16 %v1307_v48, %v1304_v45  ;;  %v3998_v48 = vld [vmem:[%s4800_s5 + $0x150] sm:$0xff]  }
 0x31d   : > { %3627 = vmatprep.subr.bf16.mxu0 %v3986_v44 }
 0x320   : > { %3628 = vmatpush3.bf16.msra.mxu0 %v3986_v44  ;;  %v4494_v51 = vpop.f32.mrb[48].mxu1 }
 0x321   : > { %3629 = vmatprep.subr.bf16.mxu0 %v3987_v50  ;;  %v1536_v53 = vpop.f32.mrb[49].mxu1 }
 0x322   : > { %v3650_v54 = vpop.f32.mrb[50].mxu1 }
 0x323   : > { %v1568_v55 = vpack.c.bf16 %v3650_v54, %v4494_v51  ;;  %v1539_v56 = vpop.f32.mrb[51].mxu1  ;;  %v3999_v54 = vld [vmem:[%s4800_s5 + $0x158] sm:$0xff]  }
 0x324   : > { %3630 = vmatpush3.bf16.msra.mxu0 %v3987_v50  ;;  %v1567_v57 = vpack.c.bf16 %v1539_v56, %v1536_v53  ;;  %v4000_v56 = vld [vmem:[%s4800_s5 + $0x160] sm:$0xff]  }
 0x325   : > { %3655 = vmatprep.subr.bf16.mxu0 %v3988_v52 }
 0x327   : > { %3632 = vmatmul.mubr.bf16.vlgmr.msra.gmra.mrb[0].mxu0 %v1320_v39 }
 0x328   : > { %3656 = vmatpush3.bf16.msra.mxu0 %v3988_v52  ;;  %3635 = vmatprep.mubr.bf16.mxu0 %v1321_v49  ;;  %v4503_v59 = vpop.f32.mrb[52].mxu1 }
 0x329   : > { %3657 = vmatprep.subr.bf16.mxu0 %v3989_v58  ;;  %v1552_v0 = vpop.f32.mrb[53].mxu1 }
 0x32a   : > { %v3654_v60 = vpop.f32.mrb[54].mxu1 }
 0x32b   : > { %v1570_v27 = vpack.c.bf16 %v3654_v60, %v4503_v59  ;;  %v1555_v12 = vpop.f32.mrb[55].mxu1  ;;  %v4001_v60 = vld [vmem:[%s4800_s5 + $0x168] sm:$0xff]  }
 0x32c   : > { %3658 = vmatpush3.bf16.msra.mxu0 %v3989_v58  ;;  %v1569_v17 = vpack.c.bf16 %v1555_v12, %v1552_v0  ;;  %v4002_v12 = vld [vmem:[%s4800_s5 + $0x170] sm:$0xff]  }
 0x32d   : > { %3659 = vmatprep.subr.bf16.mxu0 %v3990_v1 }
 0x32f   : > { %3636 = vmatmul.mubr.bf16.gmra.mrb[4].mxu0 %v1322_v47 }
 0x330   : > { %3660 = vmatpush3.bf16.msra.mxu0 %v3990_v1  ;;  %3671 = vmatprep.mubr.bf16.mxu0 %v1567_v57  ;;  %v4512_v21 = vpop.f32.mrb[56].mxu1 }
 0x331   : > { %3661 = vmatprep.subr.bf16.mxu0 %v3991_v18  ;;  %v1784_v23 = vpop.f32.mrb[57].mxu1 }
 0x332   : > { %v4517_v24 = vpop.f32.mrb[58].mxu1 }
 0x333   : > { %v1816_v25 = vpack.c.bf16 %v4517_v24, %v4512_v21  ;;  %v1787_v28 = vpop.f32.mrb[59].mxu1 }
 0x334   : > { %3662 = vmatpush3.bf16.msra.mxu0 %v3991_v18  ;;  %v1815_v29 = vpack.c.bf16 %v1787_v28, %v1784_v23 }
 0x335   : > { %3663 = vmatprep.subr.bf16.mxu0 %v3992_v22 }
 0x338   : > { %3664 = vmatpush3.bf16.msra.mxu0 %v3992_v22  ;;  %v4524_v31 = vpop.f32.mrb[60].mxu1 }
 0x339   : > { %3665 = vmatprep.subr.bf16.mxu0 %v3993_v30  ;;  %v4529_v33 = vpop.f32.mrb[61].mxu1 }
 0x33a   : > { %v4531_v34 = vpop.f32.mrb[62].mxu1 }
 0x33b   : > { %v1818_v35 = vpack.c.bf16 %v4531_v34, %v4524_v31  ;;  %v4535_v36 = vpop.f32.mrb[63].mxu1  ;;  %v4010_v31 = vld [vmem:[%s4800_s5 + $0x1b0] sm:$0xff]   ;;  %v4011_v34 = vld [vmem:[%s4800_s5 + $0x1b8] sm:$0xff]  }
 0x33c   : > { %3666 = vmatpush3.bf16.msra.mxu0 %v3993_v30  ;;  %v1817_v37 = vpack.c.bf16 %v4535_v36, %v4529_v33  ;;  %v4007_v33 = vld [vmem:[%s4800_s5 + $0x198] sm:$0xff]   ;;  %v4008_v36 = vld [vmem:[%s4800_s5 + $0x1a0] sm:$0xff]  }
 0x33d   : > { %3667 = vmatprep.subr.bf16.mxu0 %v3994_v32 }
 0x340   : > { %3668 = vmatpush3.bf16.msra.mxu0 %v3994_v32  ;;  %v4542_v39 = vpop.f32.mrb[64].mxu1  ;;  %v4004_v32 = vld [vmem:[%s4800_s5 + $0x180] sm:$0xff]  }
 0x341   : > { %3669 = vmatprep.subr.bf16.mxu0 %v3995_v38  ;;  %v4547_v41 = vpop.f32.mrb[65].mxu1 }
 0x342   : > { %v4549_v42 = vpop.f32.mrb[66].mxu1 }
 0x343   : > { %v2064_v43 = vpack.c.bf16 %v4549_v42, %v4542_v39  ;;  %v4553_v44 = vpop.f32.mrb[67].mxu1  ;;  %v4016_v39 = vld [vmem:[%s4800_s5 + $0x1e0] sm:$0xff]   ;;  %v4017_v42 = vld [vmem:[%s4800_s5 + $0x1e8] sm:$0xff]  }
 0x344   : > { %3670 = vmatpush3.bf16.msra.mxu0 %v3995_v38  ;;  %v2063_v45 = vpack.c.bf16 %v4553_v44, %v4547_v41  ;;  %v4013_v41 = vld [vmem:[%s4800_s5 + $0x1c8] sm:$0xff]   ;;  %v4014_v44 = vld [vmem:[%s4800_s5 + $0x1d0] sm:$0xff]  }
 0x345   : > { %3695 = vmatprep.subr.bf16.mxu0 %v3996_v40 }
 0x347   : > { %3672 = vmatmul.mubr.bf16.vlgmr.msra.gmra.mrb[0].mxu0 %v1568_v55 }
 0x348   : > { %3696 = vmatpush3.bf16.msra.mxu0 %v3996_v40  ;;  %3675 = vmatprep.mubr.bf16.mxu0 %v1569_v17  ;;  %v4560_v47 = vpop.f32.mrb[68].mxu1 }
 0x349   : > { %3697 = vmatprep.subr.bf16.mxu0 %v3997_v46  ;;  %v4565_v49 = vpop.f32.mrb[69].mxu1 }
 0x34a   : > { %v4567_v50 = vpop.f32.mrb[70].mxu1 }
 0x34b   : > { %v2066_v51 = vpack.c.bf16 %v4567_v50, %v4560_v47  ;;  %v4571_v52 = vpop.f32.mrb[71].mxu1  ;;  %v4019_v47 = vld [vmem:[%s4800_s5 + $0x1f8] sm:$0xff]   ;;  %v4021_v50 = vld [vmem:[%s4800_s5 + $0x208] sm:$0xff]  }
 0x34c   : > { %3698 = vmatpush3.bf16.msra.mxu0 %v3997_v46  ;;  %v2065_v53 = vpack.c.bf16 %v4571_v52, %v4565_v49  ;;  %v4020_v49 = vld [vmem:[%s4800_s5 + $0x200] sm:$0xff]   ;;  %v4023_v52 = vld [vmem:[%s4800_s5 + $0x218] sm:$0xff]  }
 0x34d   : > { %3699 = vmatprep.subr.bf16.mxu0 %v3998_v48 }
 0x34f   : > { %3676 = vmatmul.mubr.bf16.gmra.mrb[4].mxu0 %v1570_v27 }
 0x350   : > { %3700 = vmatpush3.bf16.msra.mxu0 %v3998_v48  ;;  %3711 = vmatprep.mubr.bf16.mxu0 %v1815_v29  ;;  %v4578_v55 = vpop.f32.mrb[72].mxu1  ;;  %v4003_v29 = vld [vmem:[%s4800_s5 + $0x178] sm:$0xff]  }
 0x351   : > { %3701 = vmatprep.subr.bf16.mxu0 %v3999_v54  ;;  %v4583_v57 = vpop.f32.mrb[73].mxu1 }
 0x352   : > { %v4585_v58 = vpop.f32.mrb[74].mxu1 }
 0x353   : > { %v2312_v59 = vpack.c.bf16 %v4585_v58, %v4578_v55  ;;  %v4589_v1 = vpop.f32.mrb[75].mxu1  ;;  %v4025_v55 = vld [vmem:[%s4800_s5 + $0x228] sm:$0xff]   ;;  %v4027_v58 = vld [vmem:[%s4800_s5 + $0x238] sm:$0xff]  }
 0x354   : > { %3702 = vmatpush3.bf16.msra.mxu0 %v3999_v54  ;;  %v2311_v0 = vpack.c.bf16 %v4589_v1, %v4583_v57  ;;  %v4026_v57 = vld [vmem:[%s4800_s5 + $0x230] sm:$0xff]  }
 0x355   : > { %3703 = vmatprep.subr.bf16.mxu0 %v4000_v56 }
 0x358   : > { %3704 = vmatpush3.bf16.msra.mxu0 %v4000_v56  ;;  %v4596_v27 = vpop.f32.mrb[76].mxu1  ;;  %v4005_v56 = vld [vmem:[%s4800_s5 + $0x188] sm:$0xff]  }
 0x359   : > { %3705 = vmatprep.subr.bf16.mxu0 %v4001_v60  ;;  %v4601_v17 = vpop.f32.mrb[77].mxu1 }
 0x35a   : > { %v4603_v18 = vpop.f32.mrb[78].mxu1 }
 0x35b   : > { %v2314_v22 = vpack.c.bf16 %v4603_v18, %v4596_v27  ;;  %v4607_v23 = vpop.f32.mrb[79].mxu1 }
 0x35c   : > { %3706 = vmatpush3.bf16.msra.mxu0 %v4001_v60  ;;  %v2313_v28 = vpack.c.bf16 %v4607_v23, %v4601_v17 }
 0x35d   : > { %3707 = vmatprep.subr.bf16.mxu0 %v4002_v12 }
 0x360   : > { %3708 = vmatpush3.bf16.msra.mxu0 %v4002_v12  ;;  %v4614_v30 = vpop.f32.mrb[80].mxu1  ;;  %v4006_v12 = vld [vmem:[%s4800_s5 + $0x190] sm:$0xff]  }
 0x361   : > { %3709 = vmatprep.subr.bf16.mxu0 %v4003_v29  ;;  %v4619_v38 = vpop.f32.mrb[81].mxu1 }
 0x362   : > { %v4621_v40 = vpop.f32.mrb[82].mxu1 }
 0x363   : > { %v2560_v46 = vpack.c.bf16 %v4621_v40, %v4614_v30  ;;  %v4625_v48 = vpop.f32.mrb[83].mxu1 }
 0x364   : > { %3710 = vmatpush3.bf16.msra.mxu0 %v4003_v29  ;;  %v2559_v54 = vpack.c.bf16 %v4625_v48, %v4619_v38 }
 0x365   : > { %3735 = vmatprep.subr.bf16.mxu0 %v4004_v32 }
 0x367   : > { %3712 = vmatmul.mubr.bf16.vlgmr.msra.gmra.mrb[0].mxu0 %v1816_v25 }
 0x368   : > { %3736 = vmatpush3.bf16.msra.mxu0 %v4004_v32  ;;  %3715 = vmatprep.mubr.bf16.mxu0 %v1817_v37  ;;  %v4638_v60 = vpop.f32.mrb[84].mxu1  ;;  %v4009_v37 = vld [vmem:[%s4800_s5 + $0x1a8] sm:$0xff]  }
 0x369   : > { %3737 = vmatprep.subr.bf16.mxu0 %v4005_v56  ;;  %v4643_v29 = vpop.f32.mrb[85].mxu1 }
 0x36a   : > { %v4645_v20 = vpop.f32.mrb[86].mxu1 }
 0x36b   : > { %v2562_v21 = vpack.c.bf16 %v4645_v20, %v4638_v60  ;;  %v4649_v24 = vpop.f32.mrb[87].mxu1 }
 0x36c   : > { %3738 = vmatpush3.bf16.msra.mxu0 %v4005_v56  ;;  %v2561_v25 = vpack.c.bf16 %v4649_v24, %v4643_v29 }
 0x36d   : > { %3739 = vmatprep.subr.bf16.mxu0 %v4006_v12 }
 0x36f   : > { %3716 = vmatmul.mubr.bf16.gmra.mrb[4].mxu0 %v1818_v35  ;;  %v4012_v35 = vld [vmem:[%s4800_s5 + $0x1c0] sm:$0xff]  }
 0x370   : > { %3740 = vmatpush3.bf16.msra.mxu0 %v4006_v12  ;;  %3751 = vmatprep.mubr.bf16.mxu0 %v2063_v45  ;;  %v4015_v45 = vld [vmem:[%s4800_s5 + $0x1d8] sm:$0xff]  }
 0x371   : > { %3741 = vmatprep.subr.bf16.mxu0 %v4007_v33 }
 0x374   : > { %3742 = vmatpush3.bf16.msra.mxu0 %v4007_v33 }
 0x375   : > { %3743 = vmatprep.subr.bf16.mxu0 %v4008_v36 }
 0x378   : > { %3744 = vmatpush3.bf16.msra.mxu0 %v4008_v36 }
 0x379   : > { %3745 = vmatprep.subr.bf16.mxu0 %v4009_v37 }
 0x37c   : > { %3746 = vmatpush3.bf16.msra.mxu0 %v4009_v37 }
 0x37d   : > { %3747 = vmatprep.subr.bf16.mxu0 %v4010_v31 }
 0x380   : > { %3748 = vmatpush3.bf16.msra.mxu0 %v4010_v31 }
 0x381   : > { %3749 = vmatprep.subr.bf16.mxu0 %v4011_v34 }
 0x384   : > { %3750 = vmatpush3.bf16.msra.mxu0 %v4011_v34  ;;  %v4804_v34 = vunpack.c.h.bf16 %v4119_v11 }
 0x385   : > { %3775 = vmatprep.subr.bf16.mxu0 %v4012_v35 }
 0x387   : > { %3752 = vmatmul.mubr.bf16.vlgmr.msra.gmra.mrb[0].mxu0 %v2064_v43  ;;  %v4018_v43 = vld [vmem:[%s4800_s5 + $0x1f0] sm:$0xff]  }
 0x388   : > { %3776 = vmatpush3.bf16.msra.mxu0 %v4012_v35  ;;  %3755 = vmatprep.mubr.bf16.mxu0 %v2065_v53  ;;  %v4024_v53 = vld [vmem:[%s4800_s5 + $0x220] sm:$0xff]  }
 0x389   : > { %3777 = vmatprep.subr.bf16.mxu0 %v4013_v41 }
 0x38c   : > { %3778 = vmatpush3.bf16.msra.mxu0 %v4013_v41 }
 0x38d   : > { %3779 = vmatprep.subr.bf16.mxu0 %v4014_v44 }
 0x38f   : > { %3756 = vmatmul.mubr.bf16.gmra.mrb[4].mxu0 %v2066_v51  ;;  %v4022_v51 = vld [vmem:[%s4800_s5 + $0x210] sm:$0xff]  }
 0x390   : > { %3780 = vmatpush3.bf16.msra.mxu0 %v4014_v44  ;;  %3791 = vmatprep.mubr.bf16.mxu0 %v2311_v0 }
 0x391   : > { %3781 = vmatprep.subr.bf16.mxu0 %v4015_v45 }
 0x394   : > { %3782 = vmatpush3.bf16.msra.mxu0 %v4015_v45 }
 0x395   : > { %3783 = vmatprep.subr.bf16.mxu0 %v4016_v39 }
 0x398   : > { %3784 = vmatpush3.bf16.msra.mxu0 %v4016_v39 }
 0x399   : > { %3785 = vmatprep.subr.bf16.mxu0 %v4017_v42 }
 0x39c   : > { %3786 = vmatpush3.bf16.msra.mxu0 %v4017_v42 }
 0x39d   : > { %3787 = vmatprep.subr.bf16.mxu0 %v4018_v43 }
 0x3a0   : > { %3788 = vmatpush3.bf16.msra.mxu0 %v4018_v43 }
 0x3a1   : > { %3789 = vmatprep.subr.bf16.mxu0 %v4019_v47 }
 0x3a4   : > { %3790 = vmatpush3.bf16.msra.mxu0 %v4019_v47 }
 0x3a5   : > { %3815 = vmatprep.subr.bf16.mxu0 %v4020_v49 }
 0x3a7   : > { %3792 = vmatmul.mubr.bf16.vlgmr.msra.gmra.mrb[0].mxu0 %v2312_v59 }
 0x3a8   : > { %3816 = vmatpush3.bf16.msra.mxu0 %v4020_v49  ;;  %3795 = vmatprep.mubr.bf16.mxu0 %v2313_v28 }
 0x3a9   : > { %3817 = vmatprep.subr.bf16.mxu0 %v4021_v50 }
 0x3ac   : > { %3818 = vmatpush3.bf16.msra.mxu0 %v4021_v50 }
 0x3ad   : > { %3819 = vmatprep.subr.bf16.mxu0 %v4022_v51 }
 0x3af   : > { %3796 = vmatmul.mubr.bf16.gmra.mrb[4].mxu0 %v2314_v22 }
 0x3b0   : > { %3820 = vmatpush3.bf16.msra.mxu0 %v4022_v51  ;;  %3831 = vmatprep.mubr.bf16.mxu0 %v2559_v54 }
 0x3b1   : > { %3821 = vmatprep.subr.bf16.mxu0 %v4023_v52 }
 0x3b4   : > { %3822 = vmatpush3.bf16.msra.mxu0 %v4023_v52 }
 0x3b5   : > { %3823 = vmatprep.subr.bf16.mxu0 %v4024_v53 }
 0x3b8   : > { %3824 = vmatpush3.bf16.msra.mxu0 %v4024_v53 }
 0x3b9   : > { %3825 = vmatprep.subr.bf16.mxu0 %v4025_v55 }
 0x3bc   : > { %3826 = vmatpush3.bf16.msra.mxu0 %v4025_v55 }
 0x3bd   : > { %3827 = vmatprep.subr.bf16.mxu0 %v4026_v57 }
 0x3c0   : > { %3828 = vmatpush3.bf16.msra.mxu0 %v4026_v57 }
 0x3c1   : > { %3829 = vmatprep.subr.bf16.mxu0 %v4027_v58 }
 0x3c4   : > { %3830 = vmatpush3.bf16.msra.mxu0 %v4027_v58 }
 0x3c7   : > { %3832 = vmatmul.mubr.bf16.vlgmr.msra.gmra.mrb[0].mxu0 %v2560_v46 }
 0x3c8   : > { %3835 = vmatprep.mubr.bf16.mxu0 %v2561_v25 }
 0x3cf   : > { %3836 = vmatmul.mubr.bf16.gmra.mrb[4].mxu0 %v2562_v21 }
 0x49a   : > { %v3833_v59 = vpop.f32.mrb[0].mxu0 }
 0x49b   : > { %v3839_v1 = vadd.f32 %v3833_v59, %v4457_v61  ;;  %v2662_v0 = vpop.f32.mrb[1].mxu0 }
 0x49c   : > { %v3840_v27 = vadd.f32 %v2662_v0, %v4459_v62  ;;  %v3834_v17 = vpop.f32.mrb[2].mxu0 }
 0x49d   : > { %v3841_v18 = vadd.f32 %v3834_v17, %v4461_v63  ;;  %2713 = vrot.lane.b32.xlu1 %v3839_v1, %s4036_s27  ;;  %v2665_v22 = vpop.f32.mrb[3].mxu0 }
 0x49e   : > { %v3842_v23 = vadd.f32 %v2665_v22, %v4463_v26  ;;  %2709 = vrot.lane.b32.xlu0 %v3840_v27, %s4036_s27 }
 0x4a1   : > { %2715 = vrot.lane.b32.xlu1 %v3841_v18, %s4036_s27 }
 0x4a2   : > { %2711 = vrot.lane.b32.xlu0 %v3842_v23, %s4036_s27  ;;  %v3837_v28 = vpop.f32.mrb[4].mxu0 }
 0x4a3   : > { %v3843_v20 = vadd.f32 %v3837_v28, %v4465_v2  ;;  %v2678_v30 = vpop.f32.mrb[5].mxu0 }
 0x4a4   : > { %v3844_v61 = vadd.f32 %v2678_v30, %v4467_v3  ;;  %v3838_v32 = vpop.f32.mrb[6].mxu0 }
 0x4a5   : > { %v3845_v62 = vadd.f32 %v3838_v32, %v4469_v5  ;;  %v2681_v38 = vpop.f32.mrb[7].mxu0 }
 0x4a6   : > { %v3846_v63 = vadd.f32 %v2681_v38, %v4471_v6  ;;  %2717 = vrot.lane.b32.xlu0 %v3844_v61, %s4036_s27 }
 0x4a8   : > { %2719 = vrot.lane.b32.xlu1 %v3846_v63, %s4036_s27 }
 0x4aa   : > { %2721 = vrot.lane.b32.xlu0 %v3843_v20, %s4036_s27 }
 0x4ac   : > { %2723 = vrot.lane.b32.xlu1 %v3845_v62, %s4036_s27 }
 0x50f   : > { %v2714_v26 = vpop.permute.xlu1 %2713 }
 0x510   : > { %v2710_v40 = vpop.permute.xlu0 %2709  ;;  %v2736_v46 = vsel %vm2733_vm1, 0.0, %v2714_v26 }
 0x511   : > { %v2734_v2 = vsel %vm2733_vm1, 0.0, %v2710_v40  ;;  %v2744_v5 = vadd.f32 %v3227_v13, %v2736_v46 }
 0x512   : > { %v2742_v60 = vadd.f32 %v3223_v7, %v2734_v2 }
 0x513   : > { %v2716_v48 = vpop.permute.xlu1 %2715 }
 0x514   : > { %v2737_v3 = vsel %vm2733_vm1, 0.0, %v2716_v48  ;;  %v2712_v54 = vpop.permute.xlu0 %2711 }
 0x515   : > { %v2745_v6 = vadd.f32 %v3228_v14, %v2737_v3  ;;  %v2735_v56 = vsel %vm2733_vm1, 0.0, %v2712_v54 }
 0x516   : > { %v2743_v12 = vadd.f32 %v3224_v8, %v2735_v56 }
 0x517   : > { %v3245_v29 = vpack.c.bf16 %v2745_v6, %v2744_v5 }
 0x518   : > { %v3240_v21 = vpack.c.bf16 %v2743_v12, %v2742_v60  ;;  %v2718_v24 = vpop.permute.xlu0 %2717 }
 0x519   : > { %3260 = vst [vmem:[%s278_s30 + $0x8] sm:$0xff] %v3245_v29   ;;  %v2738_v9 = vsel %vm2733_vm1, 0.0, %v2718_v24 }
 0x51a   : > { %3241 = vst [vmem:[%s278_s30] sm:$0xff] %v3240_v21   ;;  %v2720_v13 = vpop.permute.xlu1 %2719  ;;  %v2746_v25 = vadd.f32 %v3231_v15, %v2738_v9 }
 0x51b   : > { %v2739_v14 = vsel %vm2733_vm1, 0.0, %v2720_v13 }
 0x51c   : > { %v2747_v33 = vadd.f32 %v3232_v16, %v2739_v14  ;;  %v2722_v7 = vpop.permute.xlu0 %2721 }
 0x51d   : > { %v2740_v4 = vsel %vm2733_vm1, 0.0, %v2722_v7 }
 0x51e   : > { %v3250_v8 = vpack.c.bf16 %v2747_v33, %v2746_v25  ;;  %v2724_v36 = vpop.permute.xlu1 %2723  ;;  %v2748_v31 = vadd.f32 %v3235_v19, %v2740_v4 }
 0x51f   : > { %v2741_v37 = vsel %vm2733_vm1, 0.0, %v2724_v36 }
 0x520   : > { %3261 = vst [vmem:[%s278_s30 + $0x10] sm:$0xff] %v3250_v8   ;;  %v2749_v35 = vadd.f32 %v4804_v34, %v2741_v37 }
 0x522   : > { %v3255_v41 = vpack.c.bf16 %v2749_v35, %v2748_v31 }
 0x524   : > { %3262 = vst [vmem:[%s278_s30 + $0x18] sm:$0xff] %v3255_v41  }
 0x525 PF: > { %s17_s24 = sadd.s32 1, %s4034_s24  }
 0x526   : > { %p14_p4 = scmp.ge.s32.totalorder %s17_s24, 4  }
 0x528   :  { %16 = sbr.rel (!%p14_p4) target bundleno = 1 (0x1), region = 94 }

// kernel: densenet_backbone_forward.11
= control target key start
LH: loop header
LB: loop body
LE: loop exit
PB: predicated region body
PF: predicated region fallthrough
CT: control target
= control target key end

     0   :  { %s2759_s24 = smov 0   ;;  %s3251_s0 = inlined_call_operand.vmem [shape: bf16[2,16,128], index: 0, kind: input, shape index: {}, may-alias: {0,7}]   ;;  %s3252_s1 = inlined_call_operand.vmem [shape: f32[1,128], index: 1, kind: input, shape index: {}]   ;;  %s3253_s2 = inlined_call_operand.vmem [shape: f32[1,128], index: 2, kind: input, shape index: {}]   ;;  %s3254_s3 = inlined_call_operand.vmem [shape: bf16[128,128], index: 3, kind: input, shape index: {}]   ;;  %s3255_s4 = inlined_call_operand.vmem [shape: f32[1,128], index: 4, kind: input, shape index: {}]   ;;  %s3256_s5 = inlined_call_operand.vmem [shape: bf16[9,128,32], index: 5, kind: input, shape index: {}]   ;;  %s3257_s6 = inlined_call_operand.vmem [shape: bf16[9,16,16], index: 6, kind: input, shape index: {}]   ;;  %s3258_s7 = inlined_call_operand.vmem [shape: bf16[2,16,128], index: 7, kind: output, shape index: {}, may-alias: {0,7}]  }
   0x1 LB: > { %s1945_s25 = sadd.s32 4294967295, %s2714_s24   ;;  %p1949_p0 = scmp.ge.s32.totalorder %s2714_s24, 1  ;;  %s2714_s24 = sphi %s2759_s24, %s17_s24  }
   0x2   : > { %p237_p1 = scmp.lt.s32.totalorder %s2714_s24, 3 }
   0x4   : > { %p238_p2 = pnand %p1949_p0, %p237_p1 }
   0x5   : > { %v2619_v0 = vld [vmem:[%s3254_s3] sm:$0xff] (!%p238_p2)   ;;  %v2716_v1 = vmov (!%p238_p2), 0.0   ;;  %v2620_v2 = vld [vmem:[%s3254_s3 + $0x8] sm:$0xff] (!%p238_p2)   ;;  %vm2717_vm0 = vmmov (!%p238_p2), 0   ;;  %p269_p3 = scmp.lt.s32.totalorder (!%p238_p2), %s1945_s25, 1  ;;  %v2621_v3 = vld [vmem:[%s3254_s3 + $0x10] sm:$0xff] (!%p238_p2)  }
   0x6   : > { %241 = sbr.rel (%p238_p2) target bundleno = 1457 (0x5b1), region = 48  ;;  %2324 = vmatprep.subr.bf16.mxu0 (!%p238_p2), %v2716_v1  ;;  %2350 = vmatprep.subr.bf16.mxu1 (!%p238_p2), %v2716_v1  ;;  %v2622_v4 = vld [vmem:[%s3254_s3 + $0x18] sm:$0xff] (!%p238_p2)   ;;  %v1954_v6 = vld [vmem:[%s3252_s1] ss:$0 sm:$0xff] (!%p238_p2)  ;;  %v2624_v17 = vld [vmem:[%s3254_s3 + $0x28] sm:$0xff] (!%p238_p2)   ;;  %vm427_vm1 = vcmask (!%p238_p2), 130048  }
   0x7   : > { %2325 = vmatpush3.bf16.msra.mxu0 (!%p238_p2), %v2619_v0  ;;  %2340 = vmatprep.mubr.msk.bf16.mxu0 (!%p238_p2), %vm2717_vm0, %v2716_v1  ;;  %v1955_v9 = vld [vmem:[%s3253_s2] ss:$0 sm:$0xff] (!%p238_p2)  ;;  %v2625_v18 = vld [vmem:[%s3254_s3 + $0x30] sm:$0xff] (!%p238_p2)   ;;  %v2626_v19 = vld [vmem:[%s3254_s3 + $0x38] sm:$0xff] (!%p238_p2)   ;;  %s2718_s11 = smov (!%p238_p2), 64   ;;  %vm1872_vm2 = vcmask (!%p238_p2), 523264  }
   0x8   : > { %2326 = vmatprep.subr.bf16.mxu0 (!%p238_p2), %v2716_v1  ;;  %2352 = vmatprep.mubr.msk.bf16.mxu1 (!%p238_p2), %vm2717_vm0, %v2716_v1  ;;  %v2623_v12 = vld [vmem:[%s3254_s3 + $0x20] sm:$0xff] (!%p238_p2)   ;;  %v2627_v31 = vld [vmem:[%s3257_s6 + $0x8] sm:$0xff] (!%p238_p2)   ;;  %v2631_v35 = vld [vmem:[%s3256_s5 + $0x50] sm:$0xff] (!%p238_p2)   ;;  %vm1875_vm3 = vcmask (!%p238_p2), 785408  }
   0x9   : > { %v1956_v21 = vld [vmem:[%s3255_s4] ss:$0 sm:$0xff] (!%p238_p2)  ;;  %v2630_v34 = vld [vmem:[%s3256_s5 + $0x48] sm:$0xff] (!%p238_p2)   ;;  %v2632_v36 = vld [vmem:[%s3256_s5 + $0x58] sm:$0xff] (!%p238_p2)  }
   0xa   : > { %v2628_v32 = vld [vmem:[%s3257_s6] sm:$0xff] (!%p238_p2)   ;;  %v2634_v38 = vld [vmem:[%s3256_s5 + $0x68] sm:$0xff] (!%p238_p2)   ;;  %v2635_v39 = vld [vmem:[%s3256_s5 + $0x70] sm:$0xff] (!%p238_p2)  }
   0xb   : > { %2327 = vmatpush3.bf16.msra.mxu0 (!%p238_p2), %v2620_v2  ;;  %v2629_v33 = vld [vmem:[%s3256_s5 + $0x40] sm:$0xff] (!%p238_p2)   ;;  %v2636_v40 = vld [vmem:[%s3256_s5 + $0x78] sm:$0xff] (!%p238_p2)   ;;  %v2638_v52 = vld [vmem:[%s3256_s5 + $0x8] sm:$0xff] (!%p238_p2)  }
   0xc   : > { %2328 = vmatprep.subr.bf16.mxu0 (!%p238_p2), %v2716_v1  ;;  %v2633_v37 = vld [vmem:[%s3256_s5 + $0x60] sm:$0xff] (!%p238_p2)   ;;  %v2639_v53 = vld [vmem:[%s3256_s5 + $0x10] sm:$0xff] (!%p238_p2)   ;;  %v2640_v54 = vld [vmem:[%s3256_s5 + $0x18] sm:$0xff] (!%p238_p2)  }
   0xd   : > { %s3260_s25 = smov (!%p269_p3, %s1945_s25), 1  ;;  %v2637_v46 = vld [vmem:[%s3256_s5] sm:$0xff]   ;;  %v2642_v56 = vld [vmem:[%s3256_s5 + $0x28] sm:$0xff]   ;;  %v2643_v57 = vld [vmem:[%s3256_s5 + $0x30] sm:$0xff]  }
   0xe   : > { %s2203_s9 = sshll.u32 %s3260_s25, 3  ;;  %v2641_v55 = vld [vmem:[%s3256_s5 + $0x20] sm:$0xff]   ;;  %v2644_v58 = vld [vmem:[%s3256_s5 + $0x38] sm:$0xff]   ;;  %v2645_v59 = vld [vmem:[%s3257_s6 + $0x10] sm:$0xff]  }
   0xf   : > { %s273_s12 = scalar_lea.vmem %s3251_s0, %s2203_s9  ;;  %2329 = vmatpush3.bf16.msra.mxu0 %v2621_v3  ;;  %v2646_v60 = vld [vmem:[%s3256_s5 + $0x80] sm:$0xff]   ;;  %v2647_v61 = vld [vmem:[%s3256_s5 + $0x88] sm:$0xff]   ;;  %v2648_v62 = vld [vmem:[%s3256_s5 + $0x90] sm:$0xff]   ;;  %s278_s14 = scalar_lea.vmem %s3258_s7, %s2203_s9 }
  0x10   : > { %v2795_v5 = vld [vmem:[%s273_s12] sm:$0xff]   ;;  %2330 = vmatprep.subr.bf16.mxu0 %v2716_v1  ;;  %v2649_v63 = vld [vmem:[%s3256_s5 + $0x98] sm:$0xff]   ;;  %v2651_v2 = vld [vmem:[%s3256_s5 + $0xa8] sm:$0xff]  }
  0x11   : > { %v2209_v7 = vunpack.c.l.bf16 %v2795_v5  ;;  %v2210_v8 = vunpack.c.h.bf16 %v2795_v5  ;;  %v2650_v0 = vld [vmem:[%s3256_s5 + $0xa0] sm:$0xff]   ;;  %v2652_v3 = vld [vmem:[%s3256_s5 + $0xb0] sm:$0xff]  }
  0x13   : > { %v291_v10 = vmul.f32 %v2209_v7, %v1954_v6  ;;  %v292_v11 = vmul.f32 %v2210_v8, %v1954_v6  ;;  %2331 = vmatpush3.bf16.msra.mxu0 %v2622_v4  ;;  %v2653_v4 = vld [vmem:[%s3256_s5 + $0xb8] sm:$0xff]   ;;  %v2660_v6 = vld [vmem:[%s3256_s5 + $0xc0] sm:$0xff]  }
  0x14   : > { %2332 = vmatprep.subr.bf16.mxu0 %v2716_v1 }
  0x15   : > { %v300_v13 = vadd.f32 %v1955_v9, %v291_v10  ;;  %v301_v14 = vadd.f32 %v1955_v9, %v292_v11  ;;  %v2661_v9 = vld [vmem:[%s3256_s5 + $0xc8] sm:$0xff]   ;;  %v2662_v10 = vld [vmem:[%s3256_s5 + $0xd0] sm:$0xff]   ;;  %v2663_v11 = vld [vmem:[%s3256_s5 + $0xd8] sm:$0xff]  }
  0x17   : > { %v302_v15 = vmax.f32 %v300_v13, 0.0  ;;  %v303_v16 = vmax.f32 %v301_v14, 0.0  ;;  %2333 = vmatpush3.bf16.msra.mxu0 %v2623_v12  ;;  %v2664_v12 = vld [vmem:[%s3256_s5 + $0xe0] sm:$0xff]  }
  0x18   : > { %2334 = vmatprep.subr.bf16.mxu0 %v2716_v1 }
  0x19   : > { %v304_v20 = vpack.c.bf16 %v303_v16, %v302_v15 }
  0x1b   : > { %2335 = vmatpush3.bf16.msra.mxu0 %v2624_v17 }
  0x1c   : > { %2336 = vmatprep.subr.bf16.mxu0 %v2716_v1 }
  0x1f   : > { %2337 = vmatpush3.bf16.msra.mxu0 %v2625_v18  ;;  %v2654_v18 = vld [vmem:[%s3257_s6 + $0x18] sm:$0xff]  }
  0x20   : > { %2338 = vmatprep.subr.bf16.mxu0 %v2716_v1 }
  0x23   : > { %2339 = vmatpush3.bf16.msra.mxu0 %v2626_v19  ;;  %v2655_v19 = vld [vmem:[%s3257_s6 + $0x20] sm:$0xff]  }
  0x24   : > { %2344 = vmatprep.subr.bf16.mxu0 %v2716_v1 }
  0x26   : > { %2341 = vmatmul.mubr.bf16.vlgmr.msra.gmra.mrb[0].mxu0 %v304_v20  ;;  %v2656_v20 = vld [vmem:[%s3257_s6 + $0x28] sm:$0xff]  }
  0x27   : > { %2346 = vmatprep.mubr.msk.bf16.mxu0 %vm2717_vm0, %v2716_v1 }
  0xf9   : > { %v410_v22 = vpop.f32.mrb[0].mxu0 }
  0xfa   : > { %v411_v23 = vadd.f32 %v1956_v21, %v410_v22  ;;  %v2342_v24 = vpop.f32.mrb[1].mxu0  ;;  %v2658_v22 = vld [vmem:[%s3257_s6 + $0x38] sm:$0xff]  }
  0xfb   : > { %v413_v25 = vpop.f32.mrb[2].mxu0  ;;  %v2665_v24 = vld [vmem:[%s3256_s5 + $0xe8] sm:$0xff]  }
  0xfc   : > { %v414_v26 = vadd.f32 %v1956_v21, %v413_v25  ;;  %v2343_v27 = vpop.f32.mrb[3].mxu0  ;;  %v417_v28 = vmax.f32 %v411_v23, 0.0  ;;  %v2657_v21 = vld [vmem:[%s3257_s6 + $0x30] sm:$0xff]   ;;  %v2659_v23 = vld [vmem:[%s3257_s6 + $0x40] sm:$0xff]  }
  0xfd   : > { %v2666_v25 = vld [vmem:[%s3256_s5 + $0xf0] sm:$0xff]  }
  0xfe   : > { %v418_v29 = vmax.f32 %v414_v26, 0.0  ;;  %v2667_v26 = vld [vmem:[%s3256_s5 + $0xf8] sm:$0xff]  }
 0x100   : > { %v2832_v30 = vpack.c.bf16 %v418_v29, %v417_v28 }
 0x102   : > { %2345 = vmatpush3.bf16.msra.mxu0 %v2832_v30  ;;  %2351 = vmatpush3.bf16.msra.mxu1 %v2832_v30 }
 0x103   : > { %2356 = vmatprep.subr.bf16.mxu0 %v2716_v1  ;;  %2428 = vmatprep.subr.bf16.mxu1 %v2716_v1 }
 0x105   : > { %2353 = vmatmul.mubr.msk.bf16.vlgmr.msra.gmra.mrb[0].mxu1 %vm427_vm1, %v2627_v31  ;;  %2347 = vmatmul.mubr.msk.bf16.vlgmr.msra.gmra.mrb[4].mxu0 %vm427_vm1, %v2628_v32 }
 0x106   : > { %2357 = vmatpush3.bf16.msra.mxu0 %v2629_v33  ;;  %2372 = vmatprep.mubr.msk.bf16.mxu0 %vm2717_vm0, %v2716_v1 }
 0x107   : > { %2358 = vmatprep.subr.bf16.mxu0 %v2716_v1  ;;  %2444 = vmatprep.mubr.msk.bf16.mxu1 %vm2717_vm0, %v2716_v1 }
 0x108   : > { %2429 = vmatpush3.bf16.msra.mxu1 %v2660_v6  ;;  %v2678_v6 = vld [vmem:[%s3256_s5 + $0x150] sm:$0xff]  }
 0x109   : > { %2430 = vmatprep.subr.bf16.mxu1 %v2716_v1 }
 0x10a   : > { %2359 = vmatpush3.bf16.msra.mxu0 %v2630_v34  ;;  %v2668_v34 = vld [vmem:[%s3256_s5 + $0x100] sm:$0xff]  }
 0x10b   : > { %2360 = vmatprep.subr.bf16.mxu0 %v2716_v1 }
 0x10c   : > { %2431 = vmatpush3.bf16.msra.mxu1 %v2661_v9 }
 0x10d   : > { %2432 = vmatprep.subr.bf16.mxu1 %v2716_v1 }
 0x10e   : > { %2361 = vmatpush3.bf16.msra.mxu0 %v2631_v35 }
 0x10f   : > { %2362 = vmatprep.subr.bf16.mxu0 %v2716_v1 }
 0x110   : > { %2433 = vmatpush3.bf16.msra.mxu1 %v2662_v10 }
 0x111   : > { %2434 = vmatprep.subr.bf16.mxu1 %v2716_v1 }
 0x112   : > { %2363 = vmatpush3.bf16.msra.mxu0 %v2632_v36 }
 0x113   : > { %2364 = vmatprep.subr.bf16.mxu0 %v2716_v1 }
 0x114   : > { %2435 = vmatpush3.bf16.msra.mxu1 %v2663_v11 }
 0x115   : > { %2436 = vmatprep.subr.bf16.mxu1 %v2716_v1 }
 0x116   : > { %2365 = vmatpush3.bf16.msra.mxu0 %v2633_v37  ;;  %v2669_v37 = vld [vmem:[%s3256_s5 + $0x108] sm:$0xff]  }
 0x117   : > { %2366 = vmatprep.subr.bf16.mxu0 %v2716_v1 }
 0x118   : > { %2437 = vmatpush3.bf16.msra.mxu1 %v2664_v12  ;;  %v2679_v12 = vld [vmem:[%s3256_s5 + $0x158] sm:$0xff]  }
 0x119   : > { %2438 = vmatprep.subr.bf16.mxu1 %v2716_v1 }
 0x11a   : > { %2367 = vmatpush3.bf16.msra.mxu0 %v2634_v38 }
 0x11b   : > { %2368 = vmatprep.subr.bf16.mxu0 %v2716_v1 }
 0x11c   : > { %2439 = vmatpush3.bf16.msra.mxu1 %v2665_v24  ;;  %v2691_v24 = vld [vmem:[%s3256_s5 + $0x1b8] sm:$0xff]  }
 0x11d   : > { %2440 = vmatprep.subr.bf16.mxu1 %v2716_v1 }
 0x11e   : > { %2369 = vmatpush3.bf16.msra.mxu0 %v2635_v39 }
 0x11f   : > { %2370 = vmatprep.subr.bf16.mxu0 %v2716_v1 }
 0x120   : > { %2441 = vmatpush3.bf16.msra.mxu1 %v2666_v25  ;;  %v2692_v25 = vld [vmem:[%s3256_s5 + $0x1c0] sm:$0xff]  }
 0x121   : > { %2442 = vmatprep.subr.bf16.mxu1 %v2716_v1 }
 0x122   : > { %2371 = vmatpush3.bf16.msra.mxu0 %v2636_v40  ;;  %v2670_v40 = vld [vmem:[%s3256_s5 + $0x110] sm:$0xff]  }
 0x123   : > { %2376 = vmatprep.subr.bf16.mxu0 %v2716_v1 }
 0x124   : > { %2443 = vmatpush3.bf16.msra.mxu1 %v2667_v26  ;;  %v2693_v26 = vld [vmem:[%s3256_s5 + $0x1c8] sm:$0xff]  }
 0x125   : > { %2454 = vmatprep.subr.bf16.mxu1 %v2716_v1 }
 0x1d8   : > { %v534_v41 = vpop.f32.mrb[0].mxu1  ;;  %v465_v42 = vpop.f32.mrb[4].mxu0 }
 0x1d9   : > { %v2354_v43 = vpop.f32.mrb[1].mxu1  ;;  %v2348_v44 = vpop.f32.mrb[5].mxu0 }
 0x1da   : > { %v537_v45 = vpop.f32.mrb[2].mxu1  ;;  %v468_v47 = vpop.f32.mrb[6].mxu0  ;;  %v2671_v44 = vld [vmem:[%s3256_s5 + $0x118] sm:$0xff]  }
 0x1db   : > { %v541_v48 = vpack.c.bf16 %v537_v45, %v534_v41  ;;  %v2355_v49 = vpop.f32.mrb[3].mxu1  ;;  %v472_v50 = vpack.c.bf16 %v468_v47, %v465_v42  ;;  %v2349_v51 = vpop.f32.mrb[7].mxu0  ;;  %v2672_v47 = vld [vmem:[%s3256_s5 + $0x120] sm:$0xff]  }
 0x1dc   : > { %v2673_v51 = vld [vmem:[%s3256_s5 + $0x128] sm:$0xff]  }
 0x1dd   : > { %2373 = vmatmul.mubr.bf16.vlgmr.msra.gmra.mrb[8].mxu0 %v541_v48 }
 0x1de   : > { %2377 = vmatpush3.bf16.msra.mxu0 %v2637_v46  ;;  %2392 = vmatprep.mubr.msk.bf16.mxu0 %vm2717_vm0, %v2716_v1 }
 0x1df   : > { %2378 = vmatprep.subr.bf16.mxu0 %v2716_v1 }
 0x1e2   : > { %2379 = vmatpush3.bf16.msra.mxu0 %v2638_v52 }
 0x1e3   : > { %2380 = vmatprep.subr.bf16.mxu0 %v2716_v1 }
 0x1e6   : > { %2381 = vmatpush3.bf16.msra.mxu0 %v2639_v53 }
 0x1e7   : > { %2382 = vmatprep.subr.bf16.mxu0 %v2716_v1 }
 0x1ea   : > { %2383 = vmatpush3.bf16.msra.mxu0 %v2640_v54  ;;  %v2674_v54 = vld [vmem:[%s3256_s5 + $0x130] sm:$0xff]  }
 0x1eb   : > { %2384 = vmatprep.subr.bf16.mxu0 %v2716_v1 }
 0x1ee   : > { %2385 = vmatpush3.bf16.msra.mxu0 %v2641_v55 }
 0x1ef   : > { %2386 = vmatprep.subr.bf16.mxu0 %v2716_v1 }
 0x1f2   : > { %2387 = vmatpush3.bf16.msra.mxu0 %v2642_v56 }
 0x1f3   : > { %2388 = vmatprep.subr.bf16.mxu0 %v2716_v1 }
 0x1f6   : > { %2389 = vmatpush3.bf16.msra.mxu0 %v2643_v57 }
 0x1f7   : > { %2390 = vmatprep.subr.bf16.mxu0 %v2716_v1 }
 0x1fa   : > { %2391 = vmatpush3.bf16.msra.mxu0 %v2644_v58  ;;  %v2675_v58 = vld [vmem:[%s3256_s5 + $0x138] sm:$0xff]  }
 0x1fb   : > { %2396 = vmatprep.subr.bf16.mxu0 %v2716_v1 }
 0x1fd   : > { %2393 = vmatmul.mubr.bf16.vlgmr.msra.gmra.mrb[8].mxu0 %v472_v50 }
 0x1fe   : > { %2397 = vmatpush3.bf16.msra.mxu0 %v2832_v30  ;;  %2398 = vmatprep.mubr.msk.bf16.mxu0 %vm2717_vm0, %v2716_v1 }
 0x1ff   : > { %2402 = vmatprep.subr.bf16.mxu0 %v2716_v1 }
 0x205   : > { %2399 = vmatmul.mubr.msk.bf16.vlgmr.msra.gmra.mrb[12].mxu0 %vm427_vm1, %v2645_v59 }
 0x206   : > { %2403 = vmatpush3.bf16.msra.mxu0 %v2646_v60  ;;  %2418 = vmatprep.mubr.msk.bf16.mxu0 %vm2717_vm0, %v2716_v1 }
 0x207   : > { %2404 = vmatprep.subr.bf16.mxu0 %v2716_v1 }
 0x20a   : > { %2405 = vmatpush3.bf16.msra.mxu0 %v2647_v61  ;;  %v2676_v61 = vld [vmem:[%s3256_s5 + $0x140] sm:$0xff]  }
 0x20b   : > { %2406 = vmatprep.subr.bf16.mxu0 %v2716_v1 }
 0x20e   : > { %2407 = vmatpush3.bf16.msra.mxu0 %v2648_v62 }
 0x20f   : > { %2408 = vmatprep.subr.bf16.mxu0 %v2716_v1 }
 0x212   : > { %2409 = vmatpush3.bf16.msra.mxu0 %v2649_v63 }
 0x213   : > { %2410 = vmatprep.subr.bf16.mxu0 %v2716_v1 }
 0x216   : > { %2411 = vmatpush3.bf16.msra.mxu0 %v2650_v0 }
 0x217   : > { %2412 = vmatprep.subr.bf16.mxu0 %v2716_v1 }
 0x21a   : > { %2413 = vmatpush3.bf16.msra.mxu0 %v2651_v2  ;;  %v2677_v2 = vld [vmem:[%s3256_s5 + $0x148] sm:$0xff]  }
 0x21b   : > { %2414 = vmatprep.subr.bf16.mxu0 %v2716_v1 }
 0x21e   : > { %2415 = vmatpush3.bf16.msra.mxu0 %v2652_v3 }
 0x21f   : > { %2416 = vmatprep.subr.bf16.mxu0 %v2716_v1 }
 0x222   : > { %2417 = vmatpush3.bf16.msra.mxu0 %v2653_v4 }
 0x223   : > { %2422 = vmatprep.subr.bf16.mxu0 %v2716_v1 }
 0x2d8   : > { %v782_v13 = vpop.f32.mrb[12].mxu0 }
 0x2d9   : > { %v2400_v14 = vpop.f32.mrb[13].mxu0 }
 0x2da   : > { %v785_v15 = vpop.f32.mrb[14].mxu0  ;;  %v2681_v14 = vld [vmem:[%s3256_s5 + $0x168] sm:$0xff]  }
 0x2db   : > { %v789_v16 = vpack.c.bf16 %v785_v15, %v782_v13  ;;  %v2401_v17 = vpop.f32.mrb[15].mxu0  ;;  %v2680_v13 = vld [vmem:[%s3256_s5 + $0x160] sm:$0xff]   ;;  %v2682_v15 = vld [vmem:[%s3256_s5 + $0x170] sm:$0xff]  }
 0x2dc   : > { %v2684_v17 = vld [vmem:[%s3256_s5 + $0x180] sm:$0xff]  }
 0x2dd   : > { %2419 = vmatmul.mubr.bf16.vlgmr.msra.gmra.mrb[8].mxu0 %v789_v16  ;;  %v2683_v16 = vld [vmem:[%s3256_s5 + $0x178] sm:$0xff]  }
 0x2de   : > { %2423 = vmatpush3.bf16.msra.mxu0 %v2832_v30  ;;  %2424 = vmatprep.mubr.msk.bf16.mxu0 %vm2717_vm0, %v2716_v1 }
 0x2df   : > { %2448 = vmatprep.subr.bf16.mxu0 %v2716_v1 }
 0x2e5   : > { %2425 = vmatmul.mubr.msk.bf16.vlgmr.msra.gmra.mrb[16].mxu0 %vm427_vm1, %v2654_v18  ;;  %v2685_v18 = vld [vmem:[%s3256_s5 + $0x188] sm:$0xff]  }
 0x2e6   : > { %2449 = vmatpush3.bf16.msra.mxu0 %v2832_v30  ;;  %2450 = vmatprep.mubr.msk.bf16.mxu0 %vm2717_vm0, %v2716_v1 }
 0x2e7   : > { %2474 = vmatprep.subr.bf16.mxu0 %v2716_v1 }
 0x2ed   : > { %2451 = vmatmul.mubr.msk.bf16.vlgmr.msra.gmra.mrb[20].mxu0 %vm427_vm1, %v2655_v19  ;;  %v2686_v19 = vld [vmem:[%s3256_s5 + $0x190] sm:$0xff]  }
 0x2ee   : > { %2475 = vmatpush3.bf16.msra.mxu0 %v2832_v30  ;;  %2476 = vmatprep.mubr.msk.bf16.mxu0 %vm2717_vm0, %v2716_v1 }
 0x2ef   : > { %2500 = vmatprep.subr.bf16.mxu0 %v2716_v1 }
 0x2f5   : > { %2477 = vmatmul.mubr.msk.bf16.vlgmr.msra.gmra.mrb[24].mxu0 %vm427_vm1, %v2656_v20  ;;  %v2687_v20 = vld [vmem:[%s3256_s5 + $0x198] sm:$0xff]  }
 0x2f6   : > { %2501 = vmatpush3.bf16.msra.mxu0 %v2832_v30  ;;  %2502 = vmatprep.mubr.msk.bf16.mxu0 %vm2717_vm0, %v2716_v1 }
 0x2f7   : > { %2526 = vmatprep.subr.bf16.mxu0 %v2716_v1 }
 0x2fd   : > { %2503 = vmatmul.mubr.msk.bf16.vlgmr.msra.gmra.mrb[28].mxu0 %vm427_vm1, %v2657_v21  ;;  %v2688_v21 = vld [vmem:[%s3256_s5 + $0x1a0] sm:$0xff]  }
 0x2fe   : > { %2527 = vmatpush3.bf16.msra.mxu0 %v2832_v30  ;;  %2528 = vmatprep.mubr.msk.bf16.mxu0 %vm2717_vm0, %v2716_v1 }
 0x2ff   : > { %2552 = vmatprep.subr.bf16.mxu0 %v2716_v1 }
 0x305   : > { %2529 = vmatmul.mubr.msk.bf16.vlgmr.msra.gmra.mrb[32].mxu0 %vm427_vm1, %v2658_v22  ;;  %v2689_v22 = vld [vmem:[%s3256_s5 + $0x1a8] sm:$0xff]  }
 0x306   : > { %2553 = vmatpush3.bf16.msra.mxu0 %v2832_v30  ;;  %2554 = vmatprep.mubr.msk.bf16.mxu0 %vm2717_vm0, %v2716_v1 }
 0x30d   : > { %2555 = vmatmul.mubr.msk.bf16.vlgmr.msra.gmra.mrb[36].mxu0 %vm427_vm1, %v2659_v23  ;;  %v2690_v23 = vld [vmem:[%s3256_s5 + $0x1b0] sm:$0xff]  }
 0x3b0   : > { %v3037_v27 = vpop.f32.mrb[8].mxu0 }
 0x3b1   : > { %v2420_v28 = vpop.f32.mrb[9].mxu0 }
 0x3b2   : > { %v3039_v29 = vpop.f32.mrb[10].mxu0  ;;  %v2694_v28 = vld [vmem:[%s3256_s5 + $0x1d0] sm:$0xff]  }
 0x3b3   : > { %v2421_v30 = vpop.f32.mrb[11].mxu0 }
 0x3b4   : > { %v2695_v30 = vld [vmem:[%s3256_s5 + $0x1d8] sm:$0xff]  }
 0x3b8   : > { %v943_v31 = vpop.f32.mrb[16].mxu0 }
 0x3b9   : > { %v2426_v32 = vpop.f32.mrb[17].mxu0 }
 0x3ba   : > { %v946_v33 = vpop.f32.mrb[18].mxu0  ;;  %v2697_v32 = vld [vmem:[%s3256_s5 + $0x1e8] sm:$0xff]  }
 0x3bb   : > { %v950_v35 = vpack.c.bf16 %v946_v33, %v943_v31  ;;  %v2427_v36 = vpop.f32.mrb[19].mxu0  ;;  %v2696_v31 = vld [vmem:[%s3256_s5 + $0x1e0] sm:$0xff]   ;;  %v2698_v33 = vld [vmem:[%s3256_s5 + $0x1f0] sm:$0xff]  }
 0x3bc   : > { %v2701_v36 = vld [vmem:[%s3256_s5 + $0x208] sm:$0xff]  }
 0x3bd   : > { %2445 = vmatmul.mubr.bf16.vlgmr.msra.gmra.mrb[4].mxu1 %v950_v35  ;;  %v2700_v35 = vld [vmem:[%s3256_s5 + $0x200] sm:$0xff]  }
 0x3be   : > { %2455 = vmatpush3.bf16.msra.mxu1 %v2668_v34  ;;  %2470 = vmatprep.mubr.msk.bf16.mxu1 %vm2717_vm0, %v2716_v1  ;;  %v2699_v34 = vld [vmem:[%s3256_s5 + $0x1f8] sm:$0xff]  }
 0x3bf   : > { %2456 = vmatprep.subr.bf16.mxu1 %v2716_v1 }
 0x3c0   : > { %v1104_v38 = vpop.f32.mrb[20].mxu0 }
 0x3c1   : > { %v2452_v39 = vpop.f32.mrb[21].mxu0 }
 0x3c2   : > { %2457 = vmatpush3.bf16.msra.mxu1 %v2669_v37  ;;  %v1107_v41 = vpop.f32.mrb[22].mxu0  ;;  %v2702_v37 = vld [vmem:[%s3256_s5 + $0x210] sm:$0xff]   ;;  %v2704_v39 = vld [vmem:[%s3256_s5 + $0x220] sm:$0xff]  }
 0x3c3   : > { %2458 = vmatprep.subr.bf16.mxu1 %v2716_v1  ;;  %v1111_v42 = vpack.c.bf16 %v1107_v41, %v1104_v38  ;;  %v2453_v43 = vpop.f32.mrb[23].mxu0  ;;  %v2703_v38 = vld [vmem:[%s3256_s5 + $0x218] sm:$0xff]   ;;  %v2706_v41 = vld [vmem:[%s3256_s5 + $0x230] sm:$0xff]  }
 0x3c6   : > { %2459 = vmatpush3.bf16.msra.mxu1 %v2670_v40  ;;  %v2705_v40 = vld [vmem:[%s3256_s5 + $0x228] sm:$0xff]  }
 0x3c7   : > { %2460 = vmatprep.subr.bf16.mxu1 %v2716_v1 }
 0x3c8   : > { %v1265_v45 = vpop.f32.mrb[24].mxu0 }
 0x3c9   : > { %v2478_v46 = vpop.f32.mrb[25].mxu0 }
 0x3ca   : > { %2461 = vmatpush3.bf16.msra.mxu1 %v2671_v44  ;;  %v1268_v48 = vpop.f32.mrb[26].mxu0 }
 0x3cb   : > { %2462 = vmatprep.subr.bf16.mxu1 %v2716_v1  ;;  %v1272_v49 = vpack.c.bf16 %v1268_v48, %v1265_v45  ;;  %v2479_v50 = vpop.f32.mrb[27].mxu0 }
 0x3ce   : > { %2463 = vmatpush3.bf16.msra.mxu1 %v2672_v47 }
 0x3cf   : > { %2464 = vmatprep.subr.bf16.mxu1 %v2716_v1 }
 0x3d0   : > { %v3066_v52 = vpop.f32.mrb[28].mxu0 }
 0x3d1   : > { %v2504_v53 = vpop.f32.mrb[29].mxu0 }
 0x3d2   : > { %2465 = vmatpush3.bf16.msra.mxu1 %v2673_v51  ;;  %v3071_v55 = vpop.f32.mrb[30].mxu0 }
 0x3d3   : > { %2466 = vmatprep.subr.bf16.mxu1 %v2716_v1  ;;  %v1433_v56 = vpack.c.bf16 %v3071_v55, %v3066_v52  ;;  %v2505_v57 = vpop.f32.mrb[31].mxu0 }
 0x3d6   : > { %2467 = vmatpush3.bf16.msra.mxu1 %v2674_v54 }
 0x3d7   : > { %2468 = vmatprep.subr.bf16.mxu1 %v2716_v1 }
 0x3d8   : > { %v3080_v59 = vpop.f32.mrb[32].mxu0 }
 0x3d9   : > { %v2530_v60 = vpop.f32.mrb[33].mxu0 }
 0x3da   : > { %2469 = vmatpush3.bf16.msra.mxu1 %v2675_v58  ;;  %v3085_v62 = vpop.f32.mrb[34].mxu0 }
 0x3db   : > { %2480 = vmatprep.subr.bf16.mxu1 %v2716_v1  ;;  %v1594_v63 = vpack.c.bf16 %v3085_v62, %v3080_v59  ;;  %v2531_v0 = vpop.f32.mrb[35].mxu0 }
 0x3dd   : > { %2471 = vmatmul.mubr.bf16.vlgmr.msra.gmra.mrb[4].mxu1 %v1111_v42  ;;  %v2707_v42 = vld [vmem:[%s3256_s5 + $0x238] sm:$0xff]  }
 0x3de   : > { %2481 = vmatpush3.bf16.msra.mxu1 %v2676_v61  ;;  %2496 = vmatprep.mubr.msk.bf16.mxu1 %vm2717_vm0, %v2716_v1 }
 0x3df   : > { %2482 = vmatprep.subr.bf16.mxu1 %v2716_v1 }
 0x3e0   : > { %v3096_v3 = vpop.f32.mrb[36].mxu0 }
 0x3e1   : > { %v2556_v4 = vpop.f32.mrb[37].mxu0 }
 0x3e2   : > { %2483 = vmatpush3.bf16.msra.mxu1 %v2677_v2  ;;  %v3101_v9 = vpop.f32.mrb[38].mxu0 }
 0x3e3   : > { %2484 = vmatprep.subr.bf16.mxu1 %v2716_v1  ;;  %v1755_v10 = vpack.c.bf16 %v3101_v9, %v3096_v3  ;;  %v2557_v11 = vpop.f32.mrb[39].mxu0 }
 0x3e6   : > { %2485 = vmatpush3.bf16.msra.mxu1 %v2678_v6 }
 0x3e7   : > { %2486 = vmatprep.subr.bf16.mxu1 %v2716_v1 }
 0x3ea   : > { %2487 = vmatpush3.bf16.msra.mxu1 %v2679_v12 }
 0x3eb   : > { %2488 = vmatprep.subr.bf16.mxu1 %v2716_v1 }
 0x3ee   : > { %2489 = vmatpush3.bf16.msra.mxu1 %v2680_v13 }
 0x3ef   : > { %2490 = vmatprep.subr.bf16.mxu1 %v2716_v1 }
 0x3f2   : > { %2491 = vmatpush3.bf16.msra.mxu1 %v2681_v14 }
 0x3f3   : > { %2492 = vmatprep.subr.bf16.mxu1 %v2716_v1 }
 0x3f6   : > { %2493 = vmatpush3.bf16.msra.mxu1 %v2682_v15 }
 0x3f7   : > { %2494 = vmatprep.subr.bf16.mxu1 %v2716_v1 }
 0x3fa   : > { %2495 = vmatpush3.bf16.msra.mxu1 %v2683_v16 }
 0x3fb   : > { %2506 = vmatprep.subr.bf16.mxu1 %v2716_v1 }
 0x3fd   : > { %2497 = vmatmul.mubr.bf16.vlgmr.msra.gmra.mrb[4].mxu1 %v1272_v49 }
 0x3fe   : > { %2507 = vmatpush3.bf16.msra.mxu1 %v2684_v17  ;;  %2522 = vmatprep.mubr.msk.bf16.mxu1 %vm2717_vm0, %v2716_v1 }
 0x3ff   : > { %2508 = vmatprep.subr.bf16.mxu1 %v2716_v1 }
 0x402   : > { %2509 = vmatpush3.bf16.msra.mxu1 %v2685_v18 }
 0x403   : > { %2510 = vmatprep.subr.bf16.mxu1 %v2716_v1 }
 0x406   : > { %2511 = vmatpush3.bf16.msra.mxu1 %v2686_v19 }
 0x407   : > { %2512 = vmatprep.subr.bf16.mxu1 %v2716_v1 }
 0x40a   : > { %2513 = vmatpush3.bf16.msra.mxu1 %v2687_v20 }
 0x40b   : > { %2514 = vmatprep.subr.bf16.mxu1 %v2716_v1 }
 0x40e   : > { %2515 = vmatpush3.bf16.msra.mxu1 %v2688_v21 }
 0x40f   : > { %2516 = vmatprep.subr.bf16.mxu1 %v2716_v1 }
 0x412   : > { %2517 = vmatpush3.bf16.msra.mxu1 %v2689_v22 }
 0x413   : > { %2518 = vmatprep.subr.bf16.mxu1 %v2716_v1 }
 0x416   : > { %2519 = vmatpush3.bf16.msra.mxu1 %v2690_v23 }
 0x417   : > { %2520 = vmatprep.subr.bf16.mxu1 %v2716_v1 }
 0x41a   : > { %2521 = vmatpush3.bf16.msra.mxu1 %v2691_v24 }
 0x41b   : > { %2532 = vmatprep.subr.bf16.mxu1 %v2716_v1 }
 0x41d   : > { %2523 = vmatmul.mubr.bf16.vlgmr.msra.gmra.mrb[4].mxu1 %v1433_v56 }
 0x41e   : > { %2533 = vmatpush3.bf16.msra.mxu1 %v2692_v25  ;;  %2548 = vmatprep.mubr.msk.bf16.mxu1 %vm2717_vm0, %v2716_v1 }
 0x41f   : > { %2534 = vmatprep.subr.bf16.mxu1 %v2716_v1 }
 0x422   : > { %2535 = vmatpush3.bf16.msra.mxu1 %v2693_v26 }
 0x423   : > { %2536 = vmatprep.subr.bf16.mxu1 %v2716_v1 }
 0x426   : > { %2537 = vmatpush3.bf16.msra.mxu1 %v2694_v28 }
 0x427   : > { %2538 = vmatprep.subr.bf16.mxu1 %v2716_v1 }
 0x42a   : > { %2539 = vmatpush3.bf16.msra.mxu1 %v2695_v30 }
 0x42b   : > { %2540 = vmatprep.subr.bf16.mxu1 %v2716_v1 }
 0x42e   : > { %2541 = vmatpush3.bf16.msra.mxu1 %v2696_v31 }
 0x42f   : > { %2542 = vmatprep.subr.bf16.mxu1 %v2716_v1 }
 0x432   : > { %2543 = vmatpush3.bf16.msra.mxu1 %v2697_v32 }
 0x433   : > { %2544 = vmatprep.subr.bf16.mxu1 %v2716_v1 }
 0x436   : > { %2545 = vmatpush3.bf16.msra.mxu1 %v2698_v33 }
 0x437   : > { %2546 = vmatprep.subr.bf16.mxu1 %v2716_v1 }
 0x43a   : > { %2547 = vmatpush3.bf16.msra.mxu1 %v2699_v34 }
 0x43b   : > { %2558 = vmatprep.subr.bf16.mxu1 %v2716_v1 }
 0x43d   : > { %2549 = vmatmul.mubr.bf16.vlgmr.msra.gmra.mrb[4].mxu1 %v1594_v63 }
 0x43e   : > { %2559 = vmatpush3.bf16.msra.mxu1 %v2700_v35  ;;  %2574 = vmatprep.mubr.msk.bf16.mxu1 %vm2717_vm0, %v2716_v1 }
 0x43f   : > { %2560 = vmatprep.subr.bf16.mxu1 %v2716_v1 }
 0x442   : > { %2561 = vmatpush3.bf16.msra.mxu1 %v2701_v36 }
 0x443   : > { %2562 = vmatprep.subr.bf16.mxu1 %v2716_v1 }
 0x446   : > { %2563 = vmatpush3.bf16.msra.mxu1 %v2702_v37 }
 0x447   : > { %2564 = vmatprep.subr.bf16.mxu1 %v2716_v1 }
 0x44a   : > { %2565 = vmatpush3.bf16.msra.mxu1 %v2703_v38 }
 0x44b   : > { %2566 = vmatprep.subr.bf16.mxu1 %v2716_v1 }
 0x44e   : > { %2567 = vmatpush3.bf16.msra.mxu1 %v2704_v39 }
 0x44f   : > { %2568 = vmatprep.subr.bf16.mxu1 %v2716_v1 }
 0x452   : > { %2569 = vmatpush3.bf16.msra.mxu1 %v2705_v40 }
 0x453   : > { %2570 = vmatprep.subr.bf16.mxu1 %v2716_v1 }
 0x456   : > { %2571 = vmatpush3.bf16.msra.mxu1 %v2706_v41 }
 0x457   : > { %2572 = vmatprep.subr.bf16.mxu1 %v2716_v1 }
 0x45a   : > { %2573 = vmatpush3.bf16.msra.mxu1 %v2707_v42 }
 0x45d   : > { %2575 = vmatmul.mubr.bf16.vlgmr.msra.gmra.mrb[4].mxu1 %v1755_v10 }
 0x530   : > { %v1855_v43 = vpop.f32.mrb[4].mxu1 }
 0x531   : > { %v2578_v44 = vadd.f32 %v1855_v43, %v3037_v27  ;;  %v2576_v45 = vpop.f32.mrb[5].mxu1 }
 0x532   : > { %v1858_v46 = vpop.f32.mrb[6].mxu1 }
 0x533   : > { %v2579_v47 = vadd.f32 %v1858_v46, %v3039_v29  ;;  %1866 = vrot.lane.b32.xlu0 %v2578_v44, %s2718_s11  ;;  %v2577_v48 = vpop.f32.mrb[7].mxu1 }
 0x537   : > { %1868 = vrot.lane.b32.xlu0 %v2579_v47, %s2718_s11 }
 0x5a5   : > { %v1867_v49 = vpop.permute.xlu0 %1866 }
 0x5a6   : > { %v1873_v1 = vsel %vm1872_vm2, 0.0, %v1867_v49 }
 0x5a7   : > { %v1876_v50 = vsel %vm1875_vm3, %v1873_v1, 0.0 }
 0x5a8   : > { %v1878_v27 = vadd.f32 %v2209_v7, %v1876_v50 }
 0x5a9   : > { %v1869_v51 = vpop.permute.xlu0 %1868 }
 0x5aa   : > { %v1874_v52 = vsel %vm1872_vm2, 0.0, %v1869_v51 }
 0x5ab   : > { %v1877_v53 = vsel %vm1875_vm3, %v1874_v52, 0.0 }
 0x5ac   : > { %v1879_v54 = vadd.f32 %v2210_v8, %v1877_v53 }
 0x5ae   : > { %v2214_v29 = vpack.c.bf16 %v1879_v54, %v1878_v27 }
 0x5b0   : > { %2215 = vst [vmem:[%s278_s14] sm:$0xff] %v2214_v29  }
 0x5b1 PF: > { %s17_s24 = sadd.s32 1, %s2714_s24  }
 0x5b2   : > { %p14_p4 = scmp.ge.s32.totalorder %s17_s24, 4  }
 0x5b4   :  { %16 = sbr.rel (!%p14_p4) target bundleno = 1 (0x1), region = 94 }

// kernel: densenet_backbone_forward.13
= control target key start
LH: loop header
LB: loop body
LE: loop exit
PB: predicated region body
PF: predicated region fallthrough
CT: control target
= control target key end

     0   :  { %8 = vsyncpa [#allocation3], 0  ;;  %s498_s0 = inlined_call_operand.vmem [shape: bf16[2,16,128], index: 0, kind: input, shape index: {}]   ;;  %s499_s1 = inlined_call_operand.vmem [shape: f32[1,128], index: 1, kind: input, shape index: {}]   ;;  %s500_s2 = inlined_call_operand.vmem [shape: f32[1,128], index: 2, kind: input, shape index: {}]   ;;  %s501_s3 = inlined_call_operand.hbm [shape: f32[2,1,128], index: 3, kind: output, shape index: {}]  }
   0x1   :  { %10 = vsyncpa [#allocation3 + $0x1], 0  ;;  %s392_s12 = smov 0   ;;  %s394_s13 = smov 0  }
   0x2   :  { %s396_s14 = smov 0   ;;  %s398_s15 = smov 0  }
   0x3 LB: > { %s413_s16 = sadd.s32 4294967295, %s369_s15   ;;  %s254_s17 = sadd.s32 4294967294, %s369_s15   ;;  %s369_s15 = sphi %s398_s15, %s507_s15   ;;  %s365_s14 = sphi %s396_s14, %s506_s14   ;;  %s361_s13 = sphi %s394_s13, %s505_s13   ;;  %s357_s12 = sphi %s392_s12, %s504_s12  }
   0x4   : > { %s417_s18 = sadd.s32 1, %s369_s15   ;;  %s91_s19 = sadd.s32 1, %s365_s14 }
   0x5   : > { %s88_s20 = ssub.s32 %s369_s15, %s417_s18  ;;  %p101_p0 = scmp.ne.s32.totalorder %s365_s14, %s361_s13 }
   0x6   : > { %p89_p1 = scmp.eq.s32.totalorder %s88_s20, 0  ;;  %p102_p2 = scmp.eq.s32.totalorder %s413_s16, 1 }
   0x7   : > { %p107_p3 = scmp.ne.s32.totalorder %s361_s13, %s357_s12  ;;  %p108_p4 = scmp.eq.s32.totalorder %s254_s17, 1 }
   0x8   : > { %s428_s21 = scalar_select %p89_p1, %s365_s14, %s91_s19  }
   0x9   : > { %p430_p5 = por %p102_p2, %p101_p0  ;;  %p434_p6 = por %p108_p4, %p107_p3 }
   0xa   : > { %p257_p7 = scmp.ge.s32.totalorder %s369_s15, 1  ;;  %p140_p8 = scmp.lt.s32.totalorder %s369_s15, 3 }
   0xc   : > { %p141_p9 = pnand %p257_p7, %p140_p8 }
   0xd   : > { %p163_p10 = scmp.lt.s32.totalorder (!%p141_p9), %s413_s16, 1  ;;  %s161_s29 = sand.u32 (!%p141_p9), 1, %s361_s13   ;;  %v181_v10 = vld [vmem:[%s499_s1] sm:$0x1] (!%p141_p9) }
   0xe   : > { %144 = sbr.rel (%p141_p9) target bundleno = 62 (0x3e), region = 32  ;;  %v183_v12 = vld [vmem:[%s500_s2] sm:$0x1] (!%p141_p9)  ;;  %s162_s7 = scalar_lea.vmem (!%p141_p9), [#allocation2], %s161_s29 }
   0xf   : > { %s199_s8 = sshll.u32 (!%p141_p9), %s162_s7, 4  ;;  %s260_s9 = sshll.u32 (!%p141_p9), %s413_s16, 4  ;;  %s453_s8 = int_to_ptr.vmem [resolvable:$true] %s199_s8 }
  0x10   : > { %s458_s17 = scalar_lea.hbm (!%p141_p9), %s501_s3, %s260_s9  ;;  %s187_s19 = scalar_lea.sflag (!%p141_p9), [#allocation3], %s161_s29 }
  0x11   : > { %s307_s20 = scalar_lea.vmem (!%p141_p9), %s453_s8, 16 }
  0x12   : > { %p308_p11 = scmp.ne.s32.totalorder (!%p141_p9), %s453_s8, %s307_s20 }
  0x14   : > { %p309_p12 = pnand (!%p141_p9), %p308_p11, %p430_p5 }
  0x15   : > { %s164_s24 = scalar_select %p163_p10, %s413_s16, 1 }
  0x16   : > { %p310_p13 = pneg %p309_p12  ;;  %s371_s16 = smov [#allocation2]  }
  0x17   : > { %s263_s25 = sshll.u32 %s164_s24, 3  ;;  %s311_s24 = sshll.u32 %s371_s16, 4  ;;  %s312_s24 = int_to_ptr.vmem [resolvable:$false] %s311_s24 }
  0x18   : > { %s167_s28 = scalar_lea.vmem %s498_s0, %s263_s25  ;;  %s313_s25 = scalar_lea.vmem %s312_s24, 32 }
  0x19   : > { %v265_v0 = vld [vmem:[%s167_s28] sm:$0xff]   ;;  %p314_p0 = scmp.lt.s32.totalorder %s453_s8, %s312_s24  ;;  %p315_p1 = scmp.lt.s32.totalorder %s313_s25, %s307_s20 }
  0x1a   : > { %v266_v1 = vunpack.c.l.bf16 %v265_v0  ;;  %v267_v2 = vunpack.c.h.bf16 %v265_v0 }
  0x1b   : > { %p316_p2 = por %p315_p1, %p314_p0 }
  0x1c   : > { %v172_v3 = vadd.f32 %v267_v2, %v266_v1 }
  0x1d   : > { %p317_p3 = pnand %p316_p2, %p310_p13 }
  0x1e   : > { %v173_v4 = vrot.slane %v172_v3, 4 }
  0x20   : > { %v174_v5 = vadd.f32 %v173_v4, %v172_v3 }
  0x22   : > { %v175_v6 = vrot.slane %v174_v5, 2 }
  0x24   : > { %v176_v7 = vadd.f32 %v175_v6, %v174_v5 }
  0x26   : > { %v177_v8 = vrot.slane %v176_v7, 1 }
  0x28   : > { %v178_v9 = vadd.f32 %v177_v8, %v176_v7 }
  0x2a   : > { %v180_v11 = vmul.f32 0.0625, %v178_v9 }
  0x2c   : > { %v182_v13 = vmul.f32 %v181_v10, %v180_v11 }
  0x2e   : > { %v184_v14 = vadd.f32 %v183_v12, %v182_v13 }
  0x30   : > { %185 = vst [vmem:[%s162_s7] sm:$0x1] %v184_v14 }
  0x31   : > { %320 = shalt.err (!%p317_p3)
}
  0x32   : > { %s321_s26 = scalar_lea.hbm %s458_s17, 16  ;;  %s325_s29 = scalar_lea.hbm %s501_s3, 32 }
  0x33   : > { %p322_p4 = scmp.ne.s32.totalorder %s458_s17, %s321_s26  ;;  %p326_p9 = scmp.lt.u32.totalorder %s458_s17, %s501_s3 }
  0x34   : > { %p327_p10 = scmp.lt.u32.totalorder %s325_s29, %s321_s26  ;;  %p329_p12 = scmp.lt.u32.totalorder %s321_s26, %s458_s17 }
  0x35   : > { %p323_p7 = pnand %p322_p4, %p430_p5 }
  0x36   : > { %p328_p11 = por %p327_p10, %p326_p9 }
  0x37   : > { %p324_p8 = pneg %p323_p7 }
  0x38   : > { %p330_p13 = por %p329_p12, %p328_p11 }
  0x3a   : > { %p331_p0 = pnand %p330_p13, %p324_p8 }
  0x3c   : > { %334 = shalt.err (!%p331_p0)
}
  0x3d   : > { %268 = dma.vmem_to_hbm [thread:$0]  (%p430_p5), %s453_s8, 16, %s458_s17, %s187_s19  }
  0x3e PF: > { %p274_p1 = scmp.ge.s32.totalorder %s369_s15, 2  ;;  %s211_s5 = sand.u32 1, %s357_s12  }
  0x3f   : > { %s212_s6 = scalar_lea.sflag [#allocation3], %s211_s5 }
  0x40   : > { %p271_p2 = pnand %p274_p1, %p434_p6 }
  0x42   : > { %352 = dma.done.wait (!%p271_p2), %s212_s6, 16  }
  0x43   : > { %354 = vsyncadd (!%p271_p2), %s212_s6, 4294967280  ;;  %p13_p3 = scmp.ge.s32.totalorder %s417_s18, 4   ;;  %s504_s12 = smov %s361_s13 }
  0x44   : > { %s505_s13 = smov %s365_s14  ;;  %s506_s14 = smov %s428_s21 }
  0x45   : > { %s507_s15 = smov %s417_s18  ;;  %15 = sbr.rel (!%p13_p3) target bundleno = 3 (0x3), region = 67 }
  0x4c   :  { %216 = vsyncpa [#allocation3], 1 }
  0x4d   :  { %218 = vsyncpa [#allocation3 + $0x1], 1 }

// kernel: densenet_backbone_forward.12
= control target key start
LH: loop header
LB: loop body
LE: loop exit
PB: predicated region body
PF: predicated region fallthrough
CT: control target
= control target key end

     0   :  { %s2756_s24 = smov 0   ;;  %s3248_s0 = inlined_call_operand.vmem [shape: bf16[2,16,128], index: 0, kind: input, shape index: {}, may-alias: {0,7}]   ;;  %s3249_s1 = inlined_call_operand.vmem [shape: f32[1,128], index: 1, kind: input, shape index: {}]   ;;  %s3250_s2 = inlined_call_operand.vmem [shape: f32[1,128], index: 2, kind: input, shape index: {}]   ;;  %s3251_s3 = inlined_call_operand.vmem [shape: bf16[128,128], index: 3, kind: input, shape index: {}]   ;;  %s3252_s4 = inlined_call_operand.vmem [shape: f32[1,128], index: 4, kind: input, shape index: {}]   ;;  %s3253_s5 = inlined_call_operand.vmem [shape: bf16[9,128,32], index: 5, kind: input, shape index: {}]   ;;  %s3254_s6 = inlined_call_operand.vmem [shape: bf16[9,16,16], index: 6, kind: input, shape index: {}]   ;;  %s3255_s7 = inlined_call_operand.vmem [shape: bf16[2,16,128], index: 7, kind: output, shape index: {}, may-alias: {0,7}]  }
   0x1 LB: > { %s1942_s25 = sadd.s32 4294967295, %s2711_s24   ;;  %p1946_p0 = scmp.ge.s32.totalorder %s2711_s24, 1  ;;  %s2711_s24 = sphi %s2756_s24, %s17_s24  }
   0x2   : > { %p237_p1 = scmp.lt.s32.totalorder %s2711_s24, 3 }
   0x4   : > { %p238_p2 = pnand %p1946_p0, %p237_p1 }
   0x5   : > { %v2616_v0 = vld [vmem:[%s3251_s3] sm:$0xff] (!%p238_p2)   ;;  %v2713_v1 = vmov (!%p238_p2), 0.0   ;;  %v2617_v2 = vld [vmem:[%s3251_s3 + $0x8] sm:$0xff] (!%p238_p2)   ;;  %vm2714_vm0 = vmmov (!%p238_p2), 0   ;;  %p269_p3 = scmp.lt.s32.totalorder (!%p238_p2), %s1942_s25, 1  ;;  %v2618_v3 = vld [vmem:[%s3251_s3 + $0x10] sm:$0xff] (!%p238_p2)  }
   0x6   : > { %241 = sbr.rel (%p238_p2) target bundleno = 1456 (0x5b0), region = 48  ;;  %2321 = vmatprep.subr.bf16.mxu0 (!%p238_p2), %v2713_v1  ;;  %2347 = vmatprep.subr.bf16.mxu1 (!%p238_p2), %v2713_v1  ;;  %v2619_v4 = vld [vmem:[%s3251_s3 + $0x18] sm:$0xff] (!%p238_p2)   ;;  %v1951_v6 = vld [vmem:[%s3249_s1] ss:$0 sm:$0xff] (!%p238_p2)  ;;  %v2621_v17 = vld [vmem:[%s3251_s3 + $0x28] sm:$0xff] (!%p238_p2)   ;;  %vm427_vm1 = vcmask (!%p238_p2), 130048  }
   0x7   : > { %2322 = vmatpush3.bf16.msra.mxu0 (!%p238_p2), %v2616_v0  ;;  %2337 = vmatprep.mubr.msk.bf16.mxu0 (!%p238_p2), %vm2714_vm0, %v2713_v1  ;;  %v1952_v9 = vld [vmem:[%s3250_s2] ss:$0 sm:$0xff] (!%p238_p2)  ;;  %v2622_v18 = vld [vmem:[%s3251_s3 + $0x30] sm:$0xff] (!%p238_p2)   ;;  %v2623_v19 = vld [vmem:[%s3251_s3 + $0x38] sm:$0xff] (!%p238_p2)   ;;  %s2715_s11 = smov (!%p238_p2), 96   ;;  %vm1872_vm2 = vcmask (!%p238_p2), 785408  }
   0x8   : > { %2323 = vmatprep.subr.bf16.mxu0 (!%p238_p2), %v2713_v1  ;;  %2349 = vmatprep.mubr.msk.bf16.mxu1 (!%p238_p2), %vm2714_vm0, %v2713_v1  ;;  %v2620_v12 = vld [vmem:[%s3251_s3 + $0x20] sm:$0xff] (!%p238_p2)   ;;  %v2624_v31 = vld [vmem:[%s3254_s6 + $0x8] sm:$0xff] (!%p238_p2)   ;;  %v2628_v35 = vld [vmem:[%s3253_s5 + $0x50] sm:$0xff] (!%p238_p2)  }
   0x9   : > { %v1953_v21 = vld [vmem:[%s3252_s4] ss:$0 sm:$0xff] (!%p238_p2)  ;;  %v2627_v34 = vld [vmem:[%s3253_s5 + $0x48] sm:$0xff] (!%p238_p2)   ;;  %v2629_v36 = vld [vmem:[%s3253_s5 + $0x58] sm:$0xff] (!%p238_p2)  }
   0xa   : > { %v2625_v32 = vld [vmem:[%s3254_s6] sm:$0xff] (!%p238_p2)   ;;  %v2631_v38 = vld [vmem:[%s3253_s5 + $0x68] sm:$0xff] (!%p238_p2)   ;;  %v2632_v39 = vld [vmem:[%s3253_s5 + $0x70] sm:$0xff] (!%p238_p2)  }
   0xb   : > { %2324 = vmatpush3.bf16.msra.mxu0 (!%p238_p2), %v2617_v2  ;;  %v2626_v33 = vld [vmem:[%s3253_s5 + $0x40] sm:$0xff] (!%p238_p2)   ;;  %v2633_v40 = vld [vmem:[%s3253_s5 + $0x78] sm:$0xff] (!%p238_p2)   ;;  %v2635_v52 = vld [vmem:[%s3253_s5 + $0x8] sm:$0xff] (!%p238_p2)  }
   0xc   : > { %2325 = vmatprep.subr.bf16.mxu0 (!%p238_p2), %v2713_v1  ;;  %v2630_v37 = vld [vmem:[%s3253_s5 + $0x60] sm:$0xff] (!%p238_p2)   ;;  %v2636_v53 = vld [vmem:[%s3253_s5 + $0x10] sm:$0xff] (!%p238_p2)   ;;  %v2637_v54 = vld [vmem:[%s3253_s5 + $0x18] sm:$0xff] (!%p238_p2)  }
   0xd   : > { %s3257_s25 = smov (!%p269_p3, %s1942_s25), 1  ;;  %v2634_v46 = vld [vmem:[%s3253_s5] sm:$0xff]   ;;  %v2639_v56 = vld [vmem:[%s3253_s5 + $0x28] sm:$0xff]   ;;  %v2640_v57 = vld [vmem:[%s3253_s5 + $0x30] sm:$0xff]  }
   0xe   : > { %s2200_s9 = sshll.u32 %s3257_s25, 3  ;;  %v2638_v55 = vld [vmem:[%s3253_s5 + $0x20] sm:$0xff]   ;;  %v2641_v58 = vld [vmem:[%s3253_s5 + $0x38] sm:$0xff]   ;;  %v2642_v59 = vld [vmem:[%s3254_s6 + $0x10] sm:$0xff]  }
   0xf   : > { %s273_s12 = scalar_lea.vmem %s3248_s0, %s2200_s9  ;;  %2326 = vmatpush3.bf16.msra.mxu0 %v2618_v3  ;;  %v2643_v60 = vld [vmem:[%s3253_s5 + $0x80] sm:$0xff]   ;;  %v2644_v61 = vld [vmem:[%s3253_s5 + $0x88] sm:$0xff]   ;;  %v2645_v62 = vld [vmem:[%s3253_s5 + $0x90] sm:$0xff]   ;;  %s278_s14 = scalar_lea.vmem %s3255_s7, %s2200_s9 }
  0x10   : > { %v2792_v5 = vld [vmem:[%s273_s12] sm:$0xff]   ;;  %2327 = vmatprep.subr.bf16.mxu0 %v2713_v1  ;;  %v2646_v63 = vld [vmem:[%s3253_s5 + $0x98] sm:$0xff]   ;;  %v2648_v2 = vld [vmem:[%s3253_s5 + $0xa8] sm:$0xff]  }
  0x11   : > { %v2206_v7 = vunpack.c.l.bf16 %v2792_v5  ;;  %v2207_v8 = vunpack.c.h.bf16 %v2792_v5  ;;  %v2647_v0 = vld [vmem:[%s3253_s5 + $0xa0] sm:$0xff]   ;;  %v2649_v3 = vld [vmem:[%s3253_s5 + $0xb0] sm:$0xff]  }
  0x13   : > { %v291_v10 = vmul.f32 %v2206_v7, %v1951_v6  ;;  %v292_v11 = vmul.f32 %v2207_v8, %v1951_v6  ;;  %2328 = vmatpush3.bf16.msra.mxu0 %v2619_v4  ;;  %v2650_v4 = vld [vmem:[%s3253_s5 + $0xb8] sm:$0xff]   ;;  %v2657_v6 = vld [vmem:[%s3253_s5 + $0xc0] sm:$0xff]  }
  0x14   : > { %2329 = vmatprep.subr.bf16.mxu0 %v2713_v1 }
  0x15   : > { %v300_v13 = vadd.f32 %v1952_v9, %v291_v10  ;;  %v301_v14 = vadd.f32 %v1952_v9, %v292_v11  ;;  %v2658_v9 = vld [vmem:[%s3253_s5 + $0xc8] sm:$0xff]   ;;  %v2659_v10 = vld [vmem:[%s3253_s5 + $0xd0] sm:$0xff]   ;;  %v2660_v11 = vld [vmem:[%s3253_s5 + $0xd8] sm:$0xff]  }
  0x17   : > { %v302_v15 = vmax.f32 %v300_v13, 0.0  ;;  %v303_v16 = vmax.f32 %v301_v14, 0.0  ;;  %2330 = vmatpush3.bf16.msra.mxu0 %v2620_v12  ;;  %v2661_v12 = vld [vmem:[%s3253_s5 + $0xe0] sm:$0xff]  }
  0x18   : > { %2331 = vmatprep.subr.bf16.mxu0 %v2713_v1 }
  0x19   : > { %v304_v20 = vpack.c.bf16 %v303_v16, %v302_v15 }
  0x1b   : > { %2332 = vmatpush3.bf16.msra.mxu0 %v2621_v17 }
  0x1c   : > { %2333 = vmatprep.subr.bf16.mxu0 %v2713_v1 }
  0x1f   : > { %2334 = vmatpush3.bf16.msra.mxu0 %v2622_v18  ;;  %v2651_v18 = vld [vmem:[%s3254_s6 + $0x18] sm:$0xff]  }
  0x20   : > { %2335 = vmatprep.subr.bf16.mxu0 %v2713_v1 }
  0x23   : > { %2336 = vmatpush3.bf16.msra.mxu0 %v2623_v19  ;;  %v2652_v19 = vld [vmem:[%s3254_s6 + $0x20] sm:$0xff]  }
  0x24   : > { %2341 = vmatprep.subr.bf16.mxu0 %v2713_v1 }
  0x26   : > { %2338 = vmatmul.mubr.bf16.vlgmr.msra.gmra.mrb[0].mxu0 %v304_v20  ;;  %v2653_v20 = vld [vmem:[%s3254_s6 + $0x28] sm:$0xff]  }
  0x27   : > { %2343 = vmatprep.mubr.msk.bf16.mxu0 %vm2714_vm0, %v2713_v1 }
  0xf9   : > { %v410_v22 = vpop.f32.mrb[0].mxu0 }
  0xfa   : > { %v411_v23 = vadd.f32 %v1953_v21, %v410_v22  ;;  %v2339_v24 = vpop.f32.mrb[1].mxu0  ;;  %v2655_v22 = vld [vmem:[%s3254_s6 + $0x38] sm:$0xff]  }
  0xfb   : > { %v413_v25 = vpop.f32.mrb[2].mxu0  ;;  %v2662_v24 = vld [vmem:[%s3253_s5 + $0xe8] sm:$0xff]  }
  0xfc   : > { %v414_v26 = vadd.f32 %v1953_v21, %v413_v25  ;;  %v2340_v27 = vpop.f32.mrb[3].mxu0  ;;  %v417_v28 = vmax.f32 %v411_v23, 0.0  ;;  %v2654_v21 = vld [vmem:[%s3254_s6 + $0x30] sm:$0xff]   ;;  %v2656_v23 = vld [vmem:[%s3254_s6 + $0x40] sm:$0xff]  }
  0xfd   : > { %v2663_v25 = vld [vmem:[%s3253_s5 + $0xf0] sm:$0xff]  }
  0xfe   : > { %v418_v29 = vmax.f32 %v414_v26, 0.0  ;;  %v2664_v26 = vld [vmem:[%s3253_s5 + $0xf8] sm:$0xff]  }
 0x100   : > { %v2829_v30 = vpack.c.bf16 %v418_v29, %v417_v28 }
 0x102   : > { %2342 = vmatpush3.bf16.msra.mxu0 %v2829_v30  ;;  %2348 = vmatpush3.bf16.msra.mxu1 %v2829_v30 }
 0x103   : > { %2353 = vmatprep.subr.bf16.mxu0 %v2713_v1  ;;  %2425 = vmatprep.subr.bf16.mxu1 %v2713_v1 }
 0x105   : > { %2350 = vmatmul.mubr.msk.bf16.vlgmr.msra.gmra.mrb[0].mxu1 %vm427_vm1, %v2624_v31  ;;  %2344 = vmatmul.mubr.msk.bf16.vlgmr.msra.gmra.mrb[4].mxu0 %vm427_vm1, %v2625_v32 }
 0x106   : > { %2354 = vmatpush3.bf16.msra.mxu0 %v2626_v33  ;;  %2369 = vmatprep.mubr.msk.bf16.mxu0 %vm2714_vm0, %v2713_v1 }
 0x107   : > { %2355 = vmatprep.subr.bf16.mxu0 %v2713_v1  ;;  %2441 = vmatprep.mubr.msk.bf16.mxu1 %vm2714_vm0, %v2713_v1 }
 0x108   : > { %2426 = vmatpush3.bf16.msra.mxu1 %v2657_v6  ;;  %v2675_v6 = vld [vmem:[%s3253_s5 + $0x150] sm:$0xff]  }
 0x109   : > { %2427 = vmatprep.subr.bf16.mxu1 %v2713_v1 }
 0x10a   : > { %2356 = vmatpush3.bf16.msra.mxu0 %v2627_v34  ;;  %v2665_v34 = vld [vmem:[%s3253_s5 + $0x100] sm:$0xff]  }
 0x10b   : > { %2357 = vmatprep.subr.bf16.mxu0 %v2713_v1 }
 0x10c   : > { %2428 = vmatpush3.bf16.msra.mxu1 %v2658_v9 }
 0x10d   : > { %2429 = vmatprep.subr.bf16.mxu1 %v2713_v1 }
 0x10e   : > { %2358 = vmatpush3.bf16.msra.mxu0 %v2628_v35 }
 0x10f   : > { %2359 = vmatprep.subr.bf16.mxu0 %v2713_v1 }
 0x110   : > { %2430 = vmatpush3.bf16.msra.mxu1 %v2659_v10 }
 0x111   : > { %2431 = vmatprep.subr.bf16.mxu1 %v2713_v1 }
 0x112   : > { %2360 = vmatpush3.bf16.msra.mxu0 %v2629_v36 }
 0x113   : > { %2361 = vmatprep.subr.bf16.mxu0 %v2713_v1 }
 0x114   : > { %2432 = vmatpush3.bf16.msra.mxu1 %v2660_v11 }
 0x115   : > { %2433 = vmatprep.subr.bf16.mxu1 %v2713_v1 }
 0x116   : > { %2362 = vmatpush3.bf16.msra.mxu0 %v2630_v37  ;;  %v2666_v37 = vld [vmem:[%s3253_s5 + $0x108] sm:$0xff]  }
 0x117   : > { %2363 = vmatprep.subr.bf16.mxu0 %v2713_v1 }
 0x118   : > { %2434 = vmatpush3.bf16.msra.mxu1 %v2661_v12  ;;  %v2676_v12 = vld [vmem:[%s3253_s5 + $0x158] sm:$0xff]  }
 0x119   : > { %2435 = vmatprep.subr.bf16.mxu1 %v2713_v1 }
 0x11a   : > { %2364 = vmatpush3.bf16.msra.mxu0 %v2631_v38 }
 0x11b   : > { %2365 = vmatprep.subr.bf16.mxu0 %v2713_v1 }
 0x11c   : > { %2436 = vmatpush3.bf16.msra.mxu1 %v2662_v24  ;;  %v2688_v24 = vld [vmem:[%s3253_s5 + $0x1b8] sm:$0xff]  }
 0x11d   : > { %2437 = vmatprep.subr.bf16.mxu1 %v2713_v1 }
 0x11e   : > { %2366 = vmatpush3.bf16.msra.mxu0 %v2632_v39 }
 0x11f   : > { %2367 = vmatprep.subr.bf16.mxu0 %v2713_v1 }
 0x120   : > { %2438 = vmatpush3.bf16.msra.mxu1 %v2663_v25  ;;  %v2689_v25 = vld [vmem:[%s3253_s5 + $0x1c0] sm:$0xff]  }
 0x121   : > { %2439 = vmatprep.subr.bf16.mxu1 %v2713_v1 }
 0x122   : > { %2368 = vmatpush3.bf16.msra.mxu0 %v2633_v40  ;;  %v2667_v40 = vld [vmem:[%s3253_s5 + $0x110] sm:$0xff]  }
 0x123   : > { %2373 = vmatprep.subr.bf16.mxu0 %v2713_v1 }
 0x124   : > { %2440 = vmatpush3.bf16.msra.mxu1 %v2664_v26  ;;  %v2690_v26 = vld [vmem:[%s3253_s5 + $0x1c8] sm:$0xff]  }
 0x125   : > { %2451 = vmatprep.subr.bf16.mxu1 %v2713_v1 }
 0x1d8   : > { %v534_v41 = vpop.f32.mrb[0].mxu1  ;;  %v465_v42 = vpop.f32.mrb[4].mxu0 }
 0x1d9   : > { %v2351_v43 = vpop.f32.mrb[1].mxu1  ;;  %v2345_v44 = vpop.f32.mrb[5].mxu0 }
 0x1da   : > { %v537_v45 = vpop.f32.mrb[2].mxu1  ;;  %v468_v47 = vpop.f32.mrb[6].mxu0  ;;  %v2668_v44 = vld [vmem:[%s3253_s5 + $0x118] sm:$0xff]  }
 0x1db   : > { %v541_v48 = vpack.c.bf16 %v537_v45, %v534_v41  ;;  %v2352_v49 = vpop.f32.mrb[3].mxu1  ;;  %v472_v50 = vpack.c.bf16 %v468_v47, %v465_v42  ;;  %v2346_v51 = vpop.f32.mrb[7].mxu0  ;;  %v2669_v47 = vld [vmem:[%s3253_s5 + $0x120] sm:$0xff]  }
 0x1dc   : > { %v2670_v51 = vld [vmem:[%s3253_s5 + $0x128] sm:$0xff]  }
 0x1dd   : > { %2370 = vmatmul.mubr.bf16.vlgmr.msra.gmra.mrb[8].mxu0 %v541_v48 }
 0x1de   : > { %2374 = vmatpush3.bf16.msra.mxu0 %v2634_v46  ;;  %2389 = vmatprep.mubr.msk.bf16.mxu0 %vm2714_vm0, %v2713_v1 }
 0x1df   : > { %2375 = vmatprep.subr.bf16.mxu0 %v2713_v1 }
 0x1e2   : > { %2376 = vmatpush3.bf16.msra.mxu0 %v2635_v52 }
 0x1e3   : > { %2377 = vmatprep.subr.bf16.mxu0 %v2713_v1 }
 0x1e6   : > { %2378 = vmatpush3.bf16.msra.mxu0 %v2636_v53 }
 0x1e7   : > { %2379 = vmatprep.subr.bf16.mxu0 %v2713_v1 }
 0x1ea   : > { %2380 = vmatpush3.bf16.msra.mxu0 %v2637_v54  ;;  %v2671_v54 = vld [vmem:[%s3253_s5 + $0x130] sm:$0xff]  }
 0x1eb   : > { %2381 = vmatprep.subr.bf16.mxu0 %v2713_v1 }
 0x1ee   : > { %2382 = vmatpush3.bf16.msra.mxu0 %v2638_v55 }
 0x1ef   : > { %2383 = vmatprep.subr.bf16.mxu0 %v2713_v1 }
 0x1f2   : > { %2384 = vmatpush3.bf16.msra.mxu0 %v2639_v56 }
 0x1f3   : > { %2385 = vmatprep.subr.bf16.mxu0 %v2713_v1 }
 0x1f6   : > { %2386 = vmatpush3.bf16.msra.mxu0 %v2640_v57 }
 0x1f7   : > { %2387 = vmatprep.subr.bf16.mxu0 %v2713_v1 }
 0x1fa   : > { %2388 = vmatpush3.bf16.msra.mxu0 %v2641_v58  ;;  %v2672_v58 = vld [vmem:[%s3253_s5 + $0x138] sm:$0xff]  }
 0x1fb   : > { %2393 = vmatprep.subr.bf16.mxu0 %v2713_v1 }
 0x1fd   : > { %2390 = vmatmul.mubr.bf16.vlgmr.msra.gmra.mrb[8].mxu0 %v472_v50 }
 0x1fe   : > { %2394 = vmatpush3.bf16.msra.mxu0 %v2829_v30  ;;  %2395 = vmatprep.mubr.msk.bf16.mxu0 %vm2714_vm0, %v2713_v1 }
 0x1ff   : > { %2399 = vmatprep.subr.bf16.mxu0 %v2713_v1 }
 0x205   : > { %2396 = vmatmul.mubr.msk.bf16.vlgmr.msra.gmra.mrb[12].mxu0 %vm427_vm1, %v2642_v59 }
 0x206   : > { %2400 = vmatpush3.bf16.msra.mxu0 %v2643_v60  ;;  %2415 = vmatprep.mubr.msk.bf16.mxu0 %vm2714_vm0, %v2713_v1 }
 0x207   : > { %2401 = vmatprep.subr.bf16.mxu0 %v2713_v1 }
 0x20a   : > { %2402 = vmatpush3.bf16.msra.mxu0 %v2644_v61  ;;  %v2673_v61 = vld [vmem:[%s3253_s5 + $0x140] sm:$0xff]  }
 0x20b   : > { %2403 = vmatprep.subr.bf16.mxu0 %v2713_v1 }
 0x20e   : > { %2404 = vmatpush3.bf16.msra.mxu0 %v2645_v62 }
 0x20f   : > { %2405 = vmatprep.subr.bf16.mxu0 %v2713_v1 }
 0x212   : > { %2406 = vmatpush3.bf16.msra.mxu0 %v2646_v63 }
 0x213   : > { %2407 = vmatprep.subr.bf16.mxu0 %v2713_v1 }
 0x216   : > { %2408 = vmatpush3.bf16.msra.mxu0 %v2647_v0 }
 0x217   : > { %2409 = vmatprep.subr.bf16.mxu0 %v2713_v1 }
 0x21a   : > { %2410 = vmatpush3.bf16.msra.mxu0 %v2648_v2  ;;  %v2674_v2 = vld [vmem:[%s3253_s5 + $0x148] sm:$0xff]  }
 0x21b   : > { %2411 = vmatprep.subr.bf16.mxu0 %v2713_v1 }
 0x21e   : > { %2412 = vmatpush3.bf16.msra.mxu0 %v2649_v3 }
 0x21f   : > { %2413 = vmatprep.subr.bf16.mxu0 %v2713_v1 }
 0x222   : > { %2414 = vmatpush3.bf16.msra.mxu0 %v2650_v4 }
 0x223   : > { %2419 = vmatprep.subr.bf16.mxu0 %v2713_v1 }
 0x2d8   : > { %v782_v13 = vpop.f32.mrb[12].mxu0 }
 0x2d9   : > { %v2397_v14 = vpop.f32.mrb[13].mxu0 }
 0x2da   : > { %v785_v15 = vpop.f32.mrb[14].mxu0  ;;  %v2678_v14 = vld [vmem:[%s3253_s5 + $0x168] sm:$0xff]  }
 0x2db   : > { %v789_v16 = vpack.c.bf16 %v785_v15, %v782_v13  ;;  %v2398_v17 = vpop.f32.mrb[15].mxu0  ;;  %v2677_v13 = vld [vmem:[%s3253_s5 + $0x160] sm:$0xff]   ;;  %v2679_v15 = vld [vmem:[%s3253_s5 + $0x170] sm:$0xff]  }
 0x2dc   : > { %v2681_v17 = vld [vmem:[%s3253_s5 + $0x180] sm:$0xff]  }
 0x2dd   : > { %2416 = vmatmul.mubr.bf16.vlgmr.msra.gmra.mrb[8].mxu0 %v789_v16  ;;  %v2680_v16 = vld [vmem:[%s3253_s5 + $0x178] sm:$0xff]  }
 0x2de   : > { %2420 = vmatpush3.bf16.msra.mxu0 %v2829_v30  ;;  %2421 = vmatprep.mubr.msk.bf16.mxu0 %vm2714_vm0, %v2713_v1 }
 0x2df   : > { %2445 = vmatprep.subr.bf16.mxu0 %v2713_v1 }
 0x2e5   : > { %2422 = vmatmul.mubr.msk.bf16.vlgmr.msra.gmra.mrb[16].mxu0 %vm427_vm1, %v2651_v18  ;;  %v2682_v18 = vld [vmem:[%s3253_s5 + $0x188] sm:$0xff]  }
 0x2e6   : > { %2446 = vmatpush3.bf16.msra.mxu0 %v2829_v30  ;;  %2447 = vmatprep.mubr.msk.bf16.mxu0 %vm2714_vm0, %v2713_v1 }
 0x2e7   : > { %2471 = vmatprep.subr.bf16.mxu0 %v2713_v1 }
 0x2ed   : > { %2448 = vmatmul.mubr.msk.bf16.vlgmr.msra.gmra.mrb[20].mxu0 %vm427_vm1, %v2652_v19  ;;  %v2683_v19 = vld [vmem:[%s3253_s5 + $0x190] sm:$0xff]  }
 0x2ee   : > { %2472 = vmatpush3.bf16.msra.mxu0 %v2829_v30  ;;  %2473 = vmatprep.mubr.msk.bf16.mxu0 %vm2714_vm0, %v2713_v1 }
 0x2ef   : > { %2497 = vmatprep.subr.bf16.mxu0 %v2713_v1 }
 0x2f5   : > { %2474 = vmatmul.mubr.msk.bf16.vlgmr.msra.gmra.mrb[24].mxu0 %vm427_vm1, %v2653_v20  ;;  %v2684_v20 = vld [vmem:[%s3253_s5 + $0x198] sm:$0xff]  }
 0x2f6   : > { %2498 = vmatpush3.bf16.msra.mxu0 %v2829_v30  ;;  %2499 = vmatprep.mubr.msk.bf16.mxu0 %vm2714_vm0, %v2713_v1 }
 0x2f7   : > { %2523 = vmatprep.subr.bf16.mxu0 %v2713_v1 }
 0x2fd   : > { %2500 = vmatmul.mubr.msk.bf16.vlgmr.msra.gmra.mrb[28].mxu0 %vm427_vm1, %v2654_v21  ;;  %v2685_v21 = vld [vmem:[%s3253_s5 + $0x1a0] sm:$0xff]  }
 0x2fe   : > { %2524 = vmatpush3.bf16.msra.mxu0 %v2829_v30  ;;  %2525 = vmatprep.mubr.msk.bf16.mxu0 %vm2714_vm0, %v2713_v1 }
 0x2ff   : > { %2549 = vmatprep.subr.bf16.mxu0 %v2713_v1 }
 0x305   : > { %2526 = vmatmul.mubr.msk.bf16.vlgmr.msra.gmra.mrb[32].mxu0 %vm427_vm1, %v2655_v22  ;;  %v2686_v22 = vld [vmem:[%s3253_s5 + $0x1a8] sm:$0xff]  }
 0x306   : > { %2550 = vmatpush3.bf16.msra.mxu0 %v2829_v30  ;;  %2551 = vmatprep.mubr.msk.bf16.mxu0 %vm2714_vm0, %v2713_v1 }
 0x30d   : > { %2552 = vmatmul.mubr.msk.bf16.vlgmr.msra.gmra.mrb[36].mxu0 %vm427_vm1, %v2656_v23  ;;  %v2687_v23 = vld [vmem:[%s3253_s5 + $0x1b0] sm:$0xff]  }
 0x3b0   : > { %v3034_v27 = vpop.f32.mrb[8].mxu0 }
 0x3b1   : > { %v2417_v28 = vpop.f32.mrb[9].mxu0 }
 0x3b2   : > { %v3036_v29 = vpop.f32.mrb[10].mxu0  ;;  %v2691_v28 = vld [vmem:[%s3253_s5 + $0x1d0] sm:$0xff]  }
 0x3b3   : > { %v2418_v30 = vpop.f32.mrb[11].mxu0 }
 0x3b4   : > { %v2692_v30 = vld [vmem:[%s3253_s5 + $0x1d8] sm:$0xff]  }
 0x3b8   : > { %v943_v31 = vpop.f32.mrb[16].mxu0 }
 0x3b9   : > { %v2423_v32 = vpop.f32.mrb[17].mxu0 }
 0x3ba   : > { %v946_v33 = vpop.f32.mrb[18].mxu0  ;;  %v2694_v32 = vld [vmem:[%s3253_s5 + $0x1e8] sm:$0xff]  }
 0x3bb   : > { %v950_v35 = vpack.c.bf16 %v946_v33, %v943_v31  ;;  %v2424_v36 = vpop.f32.mrb[19].mxu0  ;;  %v2693_v31 = vld [vmem:[%s3253_s5 + $0x1e0] sm:$0xff]   ;;  %v2695_v33 = vld [vmem:[%s3253_s5 + $0x1f0] sm:$0xff]  }
 0x3bc   : > { %v2698_v36 = vld [vmem:[%s3253_s5 + $0x208] sm:$0xff]  }
 0x3bd   : > { %2442 = vmatmul.mubr.bf16.vlgmr.msra.gmra.mrb[4].mxu1 %v950_v35  ;;  %v2697_v35 = vld [vmem:[%s3253_s5 + $0x200] sm:$0xff]  }
 0x3be   : > { %2452 = vmatpush3.bf16.msra.mxu1 %v2665_v34  ;;  %2467 = vmatprep.mubr.msk.bf16.mxu1 %vm2714_vm0, %v2713_v1  ;;  %v2696_v34 = vld [vmem:[%s3253_s5 + $0x1f8] sm:$0xff]  }
 0x3bf   : > { %2453 = vmatprep.subr.bf16.mxu1 %v2713_v1 }
 0x3c0   : > { %v1104_v38 = vpop.f32.mrb[20].mxu0 }
 0x3c1   : > { %v2449_v39 = vpop.f32.mrb[21].mxu0 }
 0x3c2   : > { %2454 = vmatpush3.bf16.msra.mxu1 %v2666_v37  ;;  %v1107_v41 = vpop.f32.mrb[22].mxu0  ;;  %v2699_v37 = vld [vmem:[%s3253_s5 + $0x210] sm:$0xff]   ;;  %v2701_v39 = vld [vmem:[%s3253_s5 + $0x220] sm:$0xff]  }
 0x3c3   : > { %2455 = vmatprep.subr.bf16.mxu1 %v2713_v1  ;;  %v1111_v42 = vpack.c.bf16 %v1107_v41, %v1104_v38  ;;  %v2450_v43 = vpop.f32.mrb[23].mxu0  ;;  %v2700_v38 = vld [vmem:[%s3253_s5 + $0x218] sm:$0xff]   ;;  %v2703_v41 = vld [vmem:[%s3253_s5 + $0x230] sm:$0xff]  }
 0x3c6   : > { %2456 = vmatpush3.bf16.msra.mxu1 %v2667_v40  ;;  %v2702_v40 = vld [vmem:[%s3253_s5 + $0x228] sm:$0xff]  }
 0x3c7   : > { %2457 = vmatprep.subr.bf16.mxu1 %v2713_v1 }
 0x3c8   : > { %v1265_v45 = vpop.f32.mrb[24].mxu0 }
 0x3c9   : > { %v2475_v46 = vpop.f32.mrb[25].mxu0 }
 0x3ca   : > { %2458 = vmatpush3.bf16.msra.mxu1 %v2668_v44  ;;  %v1268_v48 = vpop.f32.mrb[26].mxu0 }
 0x3cb   : > { %2459 = vmatprep.subr.bf16.mxu1 %v2713_v1  ;;  %v1272_v49 = vpack.c.bf16 %v1268_v48, %v1265_v45  ;;  %v2476_v50 = vpop.f32.mrb[27].mxu0 }
 0x3ce   : > { %2460 = vmatpush3.bf16.msra.mxu1 %v2669_v47 }
 0x3cf   : > { %2461 = vmatprep.subr.bf16.mxu1 %v2713_v1 }
 0x3d0   : > { %v3063_v52 = vpop.f32.mrb[28].mxu0 }
 0x3d1   : > { %v2501_v53 = vpop.f32.mrb[29].mxu0 }
 0x3d2   : > { %2462 = vmatpush3.bf16.msra.mxu1 %v2670_v51  ;;  %v3068_v55 = vpop.f32.mrb[30].mxu0 }
 0x3d3   : > { %2463 = vmatprep.subr.bf16.mxu1 %v2713_v1  ;;  %v1433_v56 = vpack.c.bf16 %v3068_v55, %v3063_v52  ;;  %v2502_v57 = vpop.f32.mrb[31].mxu0 }
 0x3d6   : > { %2464 = vmatpush3.bf16.msra.mxu1 %v2671_v54 }
 0x3d7   : > { %2465 = vmatprep.subr.bf16.mxu1 %v2713_v1 }
 0x3d8   : > { %v3077_v59 = vpop.f32.mrb[32].mxu0 }
 0x3d9   : > { %v2527_v60 = vpop.f32.mrb[33].mxu0 }
 0x3da   : > { %2466 = vmatpush3.bf16.msra.mxu1 %v2672_v58  ;;  %v3082_v62 = vpop.f32.mrb[34].mxu0 }
 0x3db   : > { %2477 = vmatprep.subr.bf16.mxu1 %v2713_v1  ;;  %v1594_v63 = vpack.c.bf16 %v3082_v62, %v3077_v59  ;;  %v2528_v0 = vpop.f32.mrb[35].mxu0 }
 0x3dd   : > { %2468 = vmatmul.mubr.bf16.vlgmr.msra.gmra.mrb[4].mxu1 %v1111_v42  ;;  %v2704_v42 = vld [vmem:[%s3253_s5 + $0x238] sm:$0xff]  }
 0x3de   : > { %2478 = vmatpush3.bf16.msra.mxu1 %v2673_v61  ;;  %2493 = vmatprep.mubr.msk.bf16.mxu1 %vm2714_vm0, %v2713_v1 }
 0x3df   : > { %2479 = vmatprep.subr.bf16.mxu1 %v2713_v1 }
 0x3e0   : > { %v3093_v3 = vpop.f32.mrb[36].mxu0 }
 0x3e1   : > { %v2553_v4 = vpop.f32.mrb[37].mxu0 }
 0x3e2   : > { %2480 = vmatpush3.bf16.msra.mxu1 %v2674_v2  ;;  %v3098_v9 = vpop.f32.mrb[38].mxu0 }
 0x3e3   : > { %2481 = vmatprep.subr.bf16.mxu1 %v2713_v1  ;;  %v1755_v10 = vpack.c.bf16 %v3098_v9, %v3093_v3  ;;  %v2554_v11 = vpop.f32.mrb[39].mxu0 }
 0x3e6   : > { %2482 = vmatpush3.bf16.msra.mxu1 %v2675_v6 }
 0x3e7   : > { %2483 = vmatprep.subr.bf16.mxu1 %v2713_v1 }
 0x3ea   : > { %2484 = vmatpush3.bf16.msra.mxu1 %v2676_v12 }
 0x3eb   : > { %2485 = vmatprep.subr.bf16.mxu1 %v2713_v1 }
 0x3ee   : > { %2486 = vmatpush3.bf16.msra.mxu1 %v2677_v13 }
 0x3ef   : > { %2487 = vmatprep.subr.bf16.mxu1 %v2713_v1 }
 0x3f2   : > { %2488 = vmatpush3.bf16.msra.mxu1 %v2678_v14 }
 0x3f3   : > { %2489 = vmatprep.subr.bf16.mxu1 %v2713_v1 }
 0x3f6   : > { %2490 = vmatpush3.bf16.msra.mxu1 %v2679_v15 }
 0x3f7   : > { %2491 = vmatprep.subr.bf16.mxu1 %v2713_v1 }
 0x3fa   : > { %2492 = vmatpush3.bf16.msra.mxu1 %v2680_v16 }
 0x3fb   : > { %2503 = vmatprep.subr.bf16.mxu1 %v2713_v1 }
 0x3fd   : > { %2494 = vmatmul.mubr.bf16.vlgmr.msra.gmra.mrb[4].mxu1 %v1272_v49 }
 0x3fe   : > { %2504 = vmatpush3.bf16.msra.mxu1 %v2681_v17  ;;  %2519 = vmatprep.mubr.msk.bf16.mxu1 %vm2714_vm0, %v2713_v1 }
 0x3ff   : > { %2505 = vmatprep.subr.bf16.mxu1 %v2713_v1 }
 0x402   : > { %2506 = vmatpush3.bf16.msra.mxu1 %v2682_v18 }
 0x403   : > { %2507 = vmatprep.subr.bf16.mxu1 %v2713_v1 }
 0x406   : > { %2508 = vmatpush3.bf16.msra.mxu1 %v2683_v19 }
 0x407   : > { %2509 = vmatprep.subr.bf16.mxu1 %v2713_v1 }
 0x40a   : > { %2510 = vmatpush3.bf16.msra.mxu1 %v2684_v20 }
 0x40b   : > { %2511 = vmatprep.subr.bf16.mxu1 %v2713_v1 }
 0x40e   : > { %2512 = vmatpush3.bf16.msra.mxu1 %v2685_v21 }
 0x40f   : > { %2513 = vmatprep.subr.bf16.mxu1 %v2713_v1 }
 0x412   : > { %2514 = vmatpush3.bf16.msra.mxu1 %v2686_v22 }
 0x413   : > { %2515 = vmatprep.subr.bf16.mxu1 %v2713_v1 }
 0x416   : > { %2516 = vmatpush3.bf16.msra.mxu1 %v2687_v23 }
 0x417   : > { %2517 = vmatprep.subr.bf16.mxu1 %v2713_v1 }
 0x41a   : > { %2518 = vmatpush3.bf16.msra.mxu1 %v2688_v24 }
 0x41b   : > { %2529 = vmatprep.subr.bf16.mxu1 %v2713_v1 }
 0x41d   : > { %2520 = vmatmul.mubr.bf16.vlgmr.msra.gmra.mrb[4].mxu1 %v1433_v56 }
 0x41e   : > { %2530 = vmatpush3.bf16.msra.mxu1 %v2689_v25  ;;  %2545 = vmatprep.mubr.msk.bf16.mxu1 %vm2714_vm0, %v2713_v1 }
 0x41f   : > { %2531 = vmatprep.subr.bf16.mxu1 %v2713_v1 }
 0x422   : > { %2532 = vmatpush3.bf16.msra.mxu1 %v2690_v26 }
 0x423   : > { %2533 = vmatprep.subr.bf16.mxu1 %v2713_v1 }
 0x426   : > { %2534 = vmatpush3.bf16.msra.mxu1 %v2691_v28 }
 0x427   : > { %2535 = vmatprep.subr.bf16.mxu1 %v2713_v1 }
 0x42a   : > { %2536 = vmatpush3.bf16.msra.mxu1 %v2692_v30 }
 0x42b   : > { %2537 = vmatprep.subr.bf16.mxu1 %v2713_v1 }
 0x42e   : > { %2538 = vmatpush3.bf16.msra.mxu1 %v2693_v31 }
 0x42f   : > { %2539 = vmatprep.subr.bf16.mxu1 %v2713_v1 }
 0x432   : > { %2540 = vmatpush3.bf16.msra.mxu1 %v2694_v32 }
 0x433   : > { %2541 = vmatprep.subr.bf16.mxu1 %v2713_v1 }
 0x436   : > { %2542 = vmatpush3.bf16.msra.mxu1 %v2695_v33 }
 0x437   : > { %2543 = vmatprep.subr.bf16.mxu1 %v2713_v1 }
 0x43a   : > { %2544 = vmatpush3.bf16.msra.mxu1 %v2696_v34 }
 0x43b   : > { %2555 = vmatprep.subr.bf16.mxu1 %v2713_v1 }
 0x43d   : > { %2546 = vmatmul.mubr.bf16.vlgmr.msra.gmra.mrb[4].mxu1 %v1594_v63 }
 0x43e   : > { %2556 = vmatpush3.bf16.msra.mxu1 %v2697_v35  ;;  %2571 = vmatprep.mubr.msk.bf16.mxu1 %vm2714_vm0, %v2713_v1 }
 0x43f   : > { %2557 = vmatprep.subr.bf16.mxu1 %v2713_v1 }
 0x442   : > { %2558 = vmatpush3.bf16.msra.mxu1 %v2698_v36 }
 0x443   : > { %2559 = vmatprep.subr.bf16.mxu1 %v2713_v1 }
 0x446   : > { %2560 = vmatpush3.bf16.msra.mxu1 %v2699_v37 }
 0x447   : > { %2561 = vmatprep.subr.bf16.mxu1 %v2713_v1 }
 0x44a   : > { %2562 = vmatpush3.bf16.msra.mxu1 %v2700_v38 }
 0x44b   : > { %2563 = vmatprep.subr.bf16.mxu1 %v2713_v1 }
 0x44e   : > { %2564 = vmatpush3.bf16.msra.mxu1 %v2701_v39 }
 0x44f   : > { %2565 = vmatprep.subr.bf16.mxu1 %v2713_v1 }
 0x452   : > { %2566 = vmatpush3.bf16.msra.mxu1 %v2702_v40 }
 0x453   : > { %2567 = vmatprep.subr.bf16.mxu1 %v2713_v1 }
 0x456   : > { %2568 = vmatpush3.bf16.msra.mxu1 %v2703_v41 }
 0x457   : > { %2569 = vmatprep.subr.bf16.mxu1 %v2713_v1 }
 0x45a   : > { %2570 = vmatpush3.bf16.msra.mxu1 %v2704_v42 }
 0x45d   : > { %2572 = vmatmul.mubr.bf16.vlgmr.msra.gmra.mrb[4].mxu1 %v1755_v10 }
 0x530   : > { %v1855_v43 = vpop.f32.mrb[4].mxu1 }
 0x531   : > { %v2575_v44 = vadd.f32 %v1855_v43, %v3034_v27  ;;  %v2573_v45 = vpop.f32.mrb[5].mxu1 }
 0x532   : > { %v1858_v46 = vpop.f32.mrb[6].mxu1 }
 0x533   : > { %v2576_v47 = vadd.f32 %v1858_v46, %v3036_v29  ;;  %1866 = vrot.lane.b32.xlu0 %v2575_v44, %s2715_s11  ;;  %v2574_v48 = vpop.f32.mrb[7].mxu1 }
 0x537   : > { %1868 = vrot.lane.b32.xlu0 %v2576_v47, %s2715_s11 }
 0x5a5   : > { %v1867_v49 = vpop.permute.xlu0 %1866 }
 0x5a6   : > { %v1873_v1 = vsel %vm1872_vm2, 0.0, %v1867_v49 }
 0x5a7   : > { %v1875_v52 = vadd.f32 %v2206_v7, %v1873_v1 }
 0x5a9   : > { %v1869_v50 = vpop.permute.xlu0 %1868 }
 0x5aa   : > { %v1874_v51 = vsel %vm1872_vm2, 0.0, %v1869_v50 }
 0x5ab   : > { %v1876_v53 = vadd.f32 %v2207_v8, %v1874_v51 }
 0x5ad   : > { %v2211_v27 = vpack.c.bf16 %v1876_v53, %v1875_v52 }
 0x5af   : > { %2212 = vst [vmem:[%s278_s14] sm:$0xff] %v2211_v27  }
 0x5b0 PF: > { %s17_s24 = sadd.s32 1, %s2711_s24  }
 0x5b1   : > { %p14_p4 = scmp.ge.s32.totalorder %s17_s24, 4  }
 0x5b3   :  { %16 = sbr.rel (!%p14_p4) target bundleno = 1 (0x1), region = 94 }

</bundles_post_ra>
